<compile_context>
chip_gen: v7x
topology: tpu7x:2x2x1
jax: 0.10.0
libtpu: 0.0.40
codegen_flags: <defaults>
</compile_context>

<pallas_src>
import math

import jax
import jax.numpy as jnp
from jax import lax
from jax.experimental import pallas as pl
from jax.experimental.pallas import tpu as pltpu

S = 8                 # sequence length (dim 0 of src)
B = 2                 # batch (dim 1 of src) -- GeM pools over this dim
E = 384               # embed dim (fixed by the module)
H = 4                 # attention heads
DH = E // H           # 96
HP = 128              # lane-padded per-head width (96 real + 32 zero lanes)
QKVP = 3 * H * HP     # 1536: head-aligned qkv width
FF = 1536             # FFN hidden dim
C, P = 3, 16          # image channels / size (one 16x16 patch per instance)
PATCH_DIM = C * P * P # 768
N = S * B             # tokens per bag, flat index n = s*B + b
LN_EPS = 1e-5
GEM_EPS = 1e-6
NEG_INF = -1e30


# ---------------------------------------------------------------------------
# Host-side weight re-layout: 128-lane-aligned heads.
# ---------------------------------------------------------------------------
def _relayout_qkv_weights(in_w, in_b):
    """in_proj_weight.T (E,3E) + bias (3E,) -> head-aligned (E,QKVP), (1,QKVP)."""
    def pad_w(block):                                   # (E, E) -> (E, H*HP)
        heads = jnp.split(block, H, axis=1)
        return jnp.concatenate(
            [jnp.pad(h, ((0, 0), (0, HP - DH))) for h in heads], axis=1)

    def pad_b(block):                                   # (E,) -> (H*HP,)
        heads = jnp.split(block, H)
        return jnp.concatenate([jnp.pad(h, (0, HP - DH)) for h in heads])

    wq, wk, wv = jnp.split(in_w, 3, axis=1)
    bq, bk, bv = jnp.split(in_b, 3)
    w = jnp.concatenate([pad_w(wq), pad_w(wk), pad_w(wv)], axis=1)
    b = jnp.concatenate([pad_b(bq), pad_b(bk), pad_b(bv)]).reshape(1, QKVP)
    return w, b


def _relayout_out_weight(out_w):
    """out_proj.weight.T (E,E) -> (H*HP, E); zero rows at padded head lanes."""
    heads = jnp.split(out_w, H, axis=0)
    return jnp.concatenate(
        [jnp.pad(h, ((0, HP - DH), (0, 0))) for h in heads], axis=0)


# ---------------------------------------------------------------------------
# Fused per-bag kernel: patch-embed stub + instance head + MHA + LayerNorm +
# FFN + GeM + classifier.  Tokens are kept flat as (N, E) with n = s*B + b.
# ---------------------------------------------------------------------------
def _vitmil_kernel(
    x_ref,       # (N, PATCH_DIM) bf16   per-bag tokens (flattened patches)
    bias_ref,    # (N, N)         f32    additive attn bias (cross-batch + pad)
    sel_ref,     # (S, N)         f32    GeM batch-mean selection matrix
    pw_ref,      # (PATCH_DIM, E) bf16   patch-embed weight (ViT stub)
    instw_ref,   # (1, E)         f32    instance head weight
    inw_ref,     # (E, QKVP)      bf16   head-aligned in_proj weight
    inb_ref,     # (1, QKVP)      f32
    outw_ref,    # (H*HP, E)      bf16   zero-row-padded out_proj weight
    outb_ref,    # (1, E)         f32
    lnw_ref,     # (1, E)         f32
    lnb_ref,     # (1, E)         f32
    w1_ref,      # (E, FF)        bf16
    b1_ref,      # (1, FF)        f32
    w2_ref,      # (FF, E)        bf16
    b2_ref,      # (1, E)         f32
    clsw_ref,    # (1, E)         f32
    scal_ref,    # (1, 4)         f32 SMEM: [inst_b, cls_b, gem_p, 1/gem_p]
    inst_ref,    # (1, N)         f32 out
    out_ref,     # (1, S)         f32 out
):
    inst_b = scal_ref[0, 0]
    cls_b = scal_ref[0, 1]
    p_gem = scal_ref[0, 2]
    inv_p = scal_ref[0, 3]

    # ---- ViT stub: bias-free linear patch embedding ----
    feats = jnp.dot(x_ref[...], pw_ref[...],
                    preferred_element_type=jnp.float32)               # (N, E) f32

    # per-instance head -> lane-dense (1, N) output (no transpose)
    inst_ref[...] = (jnp.einsum('oe,ne->on', instw_ref[...], feats,
                                preferred_element_type=jnp.float32) + inst_b)

    # ---- nn.MultiheadAttention(384, 4 heads), eval mode ----
    qkv = (jnp.dot(feats.astype(jnp.bfloat16), inw_ref[...],
                   preferred_element_type=jnp.float32) + inb_ref[0, :])  # (N, QKVP)
    bias = bias_ref[...]
    scale = jnp.float32(1.0 / math.sqrt(DH))
    ctx_parts = []
    for h in range(H):                           # static unroll; 128-aligned slices
        q0 = h * HP
        k0 = H * HP + h * HP
        v0 = 2 * H * HP + h * HP
        qh = qkv[:, q0:q0 + HP] * scale          # (N, 128), padded lanes are zero
        kh = qkv[:, k0:k0 + HP]
        vh = qkv[:, v0:v0 + HP]
        sc = jnp.einsum('nd,md->nm', qh, kh,
                        preferred_element_type=jnp.float32) + bias     # (N, N)
        sc = sc - jnp.max(sc, axis=-1, keepdims=True)
        pexp = jnp.exp(sc)
        attn = pexp / jnp.sum(pexp, axis=-1, keepdims=True)            # exact divide
        # NOTE: fully-masked rows give a uniform softmax (PyTorch would give NaN).
        ctx_parts.append(jnp.dot(attn, vh,
                                 preferred_element_type=jnp.float32))  # (N, HP)
    ctx = jnp.concatenate(ctx_parts, axis=1)                           # (N, H*HP)
    a = (jnp.dot(ctx.astype(jnp.bfloat16), outw_ref[...],
                 preferred_element_type=jnp.float32) + outb_ref[0, :])  # (N, E)

    # ---- LayerNorm(384) ----
    mu = jnp.mean(a, axis=-1, keepdims=True)
    var = jnp.mean(jnp.square(a - mu), axis=-1, keepdims=True)
    y = (a - mu) * lax.rsqrt(var + LN_EPS) * lnw_ref[0, :] + lnb_ref[0, :]

    # ---- FFN: Linear(384,1536) -> GELU (tanh form) -> Linear(1536,384) ----
    h1 = (jnp.dot(y.astype(jnp.bfloat16), w1_ref[...],
                  preferred_element_type=jnp.float32) + b1_ref[0, :])    # (N, FF)
    c0 = jnp.float32(math.sqrt(2.0 / math.pi))
    g = 0.5 * h1 * (1.0 + jnp.tanh(c0 * (h1 + 0.044715 * h1 * h1 * h1)))
    f = (jnp.dot(g.astype(jnp.bfloat16), w2_ref[...],
                 preferred_element_type=jnp.float32) + b2_ref[0, :])     # (N, E)

    # ---- GeM pool over the PyTorch batch axis (dim=1 of (S,B,E)) ----
    clamped = jnp.maximum(f, jnp.float32(GEM_EPS))
    powed = jnp.exp(p_gem * jnp.log(clamped))                            # x^p
    mean_p = jnp.dot(sel_ref[...], powed,
                     preferred_element_type=jnp.float32)                 # (S, E)
    pooled = jnp.exp(inv_p * jnp.log(mean_p))                            # ^(1/p)

    # ---- classifier Linear(384, 1), lane-dense (1, S) output ----
    out_ref[...] = (jnp.einsum('oe,se->os', clsw_ref[...], pooled,
                               preferred_element_type=jnp.float32) + cls_b)


# ---------------------------------------------------------------------------
# Parameters (kernel-ready layouts).
# ---------------------------------------------------------------------------
def init_params(key):
    ks = jax.random.split(key, 10)
    sc = 0.02
    f32, bf16 = jnp.float32, jnp.bfloat16
    in_w = jax.random.normal(ks[2], (E, 3 * E), f32) * sc     # in_proj_weight.T
    in_b = jax.random.normal(ks[3], (3 * E,), f32) * sc       # in_proj_bias
    out_w = jax.random.normal(ks[4], (E, E), f32) * sc        # out_proj.weight.T
    in_w_p, in_b_p = _relayout_qkv_weights(in_w, in_b)
    out_w_p = _relayout_out_weight(out_w)
    gem_p = 3.0
    return dict(
        patch_w=(jax.random.normal(ks[0], (PATCH_DIM, E), f32) * sc).astype(bf16),
        inst_w=jax.random.normal(ks[1], (1, E), f32) * sc,
        in_w=in_w_p.astype(bf16),
        in_b=in_b_p,
        out_w=out_w_p.astype(bf16),
        out_b=jnp.zeros((1, E), f32),
        ln_w=jnp.ones((1, E), f32),
        ln_b=jnp.zeros((1, E), f32),
        w1=(jax.random.normal(ks[5], (E, FF), f32) * sc).astype(bf16),
        b1=(jax.random.normal(ks[6], (FF,), f32) * sc).reshape(1, FF),
        w2=(jax.random.normal(ks[7], (FF, E), f32) * sc).astype(bf16),
        b2=(jax.random.normal(ks[8], (E,), f32) * sc).reshape(1, E),
        cls_w=jax.random.normal(ks[9], (1, E), f32) * sc,
        # [instance_head_bias, classifier_bias, GeM p, 1/p]
        scalars=jnp.array([[0.0, 0.0, gem_p, 1.0 / gem_p]], f32),
    )


# ---------------------------------------------------------------------------
# Wrapper: grid over bags; weights VMEM-resident via constant index maps.
# ---------------------------------------------------------------------------
def _vitmil_forward_batched_impl(x, params):
    # x: (G, S, B, C, P, P) -- G independent bags
    G = x.shape[0]
    x_flat = x.reshape(G, N, PATCH_DIM).astype(jnp.float32)

    # key_padding_mask = all(src == 0, -1); the patch-embed stub is bias-free
    # and linear, so zero raw instances <=> zero tokens (mask built on raw x).
    is_pad = jnp.all(x_flat == 0.0, axis=-1)                          # (G, N)
    tok_b = jnp.arange(N, dtype=jnp.int32) % B
    cross = tok_b[:, None] != tok_b[None, :]                          # (N, N)
    masked = cross[None, :, :] | is_pad[:, None, :]                   # (G, N, N)
    attn_bias = jnp.where(masked, jnp.float32(NEG_INF), jnp.float32(0.0))

    # GeM mean-over-batch selection: n = s*B + b  =>  n // B == s
    sel = ((jnp.arange(N) // B == jnp.arange(S)[:, None])
           .astype(jnp.float32) / B)                                   # (S, N)

    x_bf = x_flat.astype(jnp.bfloat16)
    const2 = lambda g: (0, 0)

    inst_rows, out_rows = pl.pallas_call(
        _vitmil_kernel,
        out_shape=(jax.ShapeDtypeStruct((G, 1, N), jnp.float32),
                   jax.ShapeDtypeStruct((G, 1, S), jnp.float32)),
        grid=(G,),
        in_specs=[
            pl.BlockSpec((None, N, PATCH_DIM), lambda g: (g, 0, 0)),   # x (per bag)
            pl.BlockSpec((None, N, N), lambda g: (g, 0, 0)),           # attn bias
            pl.BlockSpec((S, N), const2),                              # GeM selection
            pl.BlockSpec((PATCH_DIM, E), const2),                      # patch_w
            pl.BlockSpec((1, E), const2),                              # inst_w
            pl.BlockSpec((E, QKVP), const2),                           # in_w (aligned)
            pl.BlockSpec((1, QKVP), const2),                           # in_b
            pl.BlockSpec((H * HP, E), const2),                         # out_w (padded)
            pl.BlockSpec((1, E), const2),                              # out_b
            pl.BlockSpec((1, E), const2),                              # ln_w
            pl.BlockSpec((1, E), const2),                              # ln_b
            pl.BlockSpec((E, FF), const2),                             # w1
            pl.BlockSpec((1, FF), const2),                             # b1
            pl.BlockSpec((FF, E), const2),                             # w2
            pl.BlockSpec((1, E), const2),                              # b2
            pl.BlockSpec((1, E), const2),                              # cls_w
            pl.BlockSpec(memory_space=pltpu.MemorySpace.SMEM),         # scalars
        ],
        out_specs=(pl.BlockSpec((None, 1, N), lambda g: (g, 0, 0)),
                   pl.BlockSpec((None, 1, S), lambda g: (g, 0, 0))),
        compiler_params=pltpu.CompilerParams(
            dimension_semantics=("parallel",),        # bag-parallel (v7x: 2 TCs)
            vmem_limit_bytes=32 * 1024 * 1024,        # ~9.5 MiB footprint, headroom
        ),
    )(x_bf, attn_bias, sel,
      params['patch_w'], params['inst_w'],
      params['in_w'], params['in_b'], params['out_w'], params['out_b'],
      params['ln_w'], params['ln_b'],
      params['w1'], params['b1'], params['w2'], params['b2'],
      params['cls_w'], params['scalars'])

    return inst_rows[:, 0, :], out_rows[:, 0, :]      # (G, N), (G, S)


@jax.jit
def vitmil_forward_batched(x, params):
    """x: (G, S, B, C, P, P) -> (out_instance (G, N), out (G, S))."""
    return _vitmil_forward_batched_impl(x, params)


@jax.jit
def vitmil_forward(x, params):
    """Single bag, matching the PyTorch module: x (S, B, C, P, P) -> ((N,), (S,))."""
    inst, out = _vitmil_forward_batched_impl(x[None], params)
    return inst[0], out[0]                            # .squeeze()


if __name__ == "__main__":
    key = jax.random.PRNGKey(0)
    pkey, xkey = jax.random.split(key)
    params = init_params(pkey)

    G = 4
    x = jax.random.normal(xkey, (G, S, B, C, P, P), jnp.float32)
    # zero a few instances so the key_padding_mask path is actually exercised
    x = x.at[0, 6, 0].set(0.0)
    x = x.at[0, 7, 0].set(0.0)
    x = x.at[1, 7, 1].set(0.0)

    inst_g, out_g = jax.block_until_ready(vitmil_forward_batched(x, params))
    assert inst_g.shape == (G, N) and out_g.shape == (G, S)
    assert bool(jnp.all(jnp.isfinite(inst_g))) and bool(jnp.all(jnp.isfinite(out_g)))

    inst1, out1 = jax.block_until_ready(vitmil_forward(x[0], params))
    assert inst1.shape == (N,) and out1.shape == (S,)
    assert bool(jnp.all(jnp.isfinite(inst1))) and bool(jnp.all(jnp.isfinite(out1)))

    print("KERNEL_OK")
</pallas_src>

<mosaic_0001>
module attributes {stable_mosaic.version = 11 : i64} {
  func.func @_vitmil_kernel(%arg0: i32, %arg1: memref<1x16x768xbf16, #tpu.memory_space<vmem>>, %arg2: memref<1x16x16xf32, #tpu.memory_space<vmem>>, %arg3: memref<8x16xf32, #tpu.memory_space<vmem>>, %arg4: memref<768x384xbf16, #tpu.memory_space<vmem>>, %arg5: memref<1x384xf32, #tpu.memory_space<vmem>>, %arg6: memref<384x1536xbf16, #tpu.memory_space<vmem>>, %arg7: memref<1x1536xf32, #tpu.memory_space<vmem>>, %arg8: memref<512x384xbf16, #tpu.memory_space<vmem>>, %arg9: memref<1x384xf32, #tpu.memory_space<vmem>>, %arg10: memref<1x384xf32, #tpu.memory_space<vmem>>, %arg11: memref<1x384xf32, #tpu.memory_space<vmem>>, %arg12: memref<384x1536xbf16, #tpu.memory_space<vmem>>, %arg13: memref<1x1536xf32, #tpu.memory_space<vmem>>, %arg14: memref<1536x384xbf16, #tpu.memory_space<vmem>>, %arg15: memref<1x384xf32, #tpu.memory_space<vmem>>, %arg16: memref<1x384xf32, #tpu.memory_space<vmem>>, %arg17: memref<1x4xf32, #tpu.memory_space<smem>>, %arg18: memref<1x1x16xf32, #tpu.memory_space<vmem>>, %arg19: memref<1x1x8xf32, #tpu.memory_space<vmem>>) attributes {dimension_semantics = [#tpu.dimension_semantics<parallel>], iteration_bounds = array<i64: 4>, scalar_prefetch = 0 : i64, scratch_operands = 0 : i64, tpu.core_type = #tpu.core_type<tc>, window_params = [{transform_indices = @transform_0, window_bounds = array<i64: 1, 16, 768>}, {transform_indices = @transform_1, window_bounds = array<i64: 1, 16, 16>}, {pipeline_mode = #tpu.pipeline_mode<synchronous>, transform_indices = @transform_2, window_bounds = array<i64: 8, 16>}, {pipeline_mode = #tpu.pipeline_mode<synchronous>, transform_indices = @transform_3, window_bounds = array<i64: 768, 384>}, {pipeline_mode = #tpu.pipeline_mode<synchronous>, transform_indices = @transform_4, window_bounds = array<i64: 1, 384>}, {pipeline_mode = #tpu.pipeline_mode<synchronous>, transform_indices = @transform_5, window_bounds = array<i64: 384, 1536>}, {pipeline_mode = #tpu.pipeline_mode<synchronous>, transform_indices = @transform_6, window_bounds = array<i64: 1, 1536>}, {pipeline_mode = #tpu.pipeline_mode<synchronous>, transform_indices = @transform_7, window_bounds = array<i64: 512, 384>}, {pipeline_mode = #tpu.pipeline_mode<synchronous>, transform_indices = @transform_8, window_bounds = array<i64: 1, 384>}, {pipeline_mode = #tpu.pipeline_mode<synchronous>, transform_indices = @transform_9, window_bounds = array<i64: 1, 384>}, {pipeline_mode = #tpu.pipeline_mode<synchronous>, transform_indices = @transform_10, window_bounds = array<i64: 1, 384>}, {pipeline_mode = #tpu.pipeline_mode<synchronous>, transform_indices = @transform_11, window_bounds = array<i64: 384, 1536>}, {pipeline_mode = #tpu.pipeline_mode<synchronous>, transform_indices = @transform_12, window_bounds = array<i64: 1, 1536>}, {pipeline_mode = #tpu.pipeline_mode<synchronous>, transform_indices = @transform_13, window_bounds = array<i64: 1536, 384>}, {pipeline_mode = #tpu.pipeline_mode<synchronous>, transform_indices = @transform_14, window_bounds = array<i64: 1, 384>}, {pipeline_mode = #tpu.pipeline_mode<synchronous>, transform_indices = @transform_15, window_bounds = array<i64: 1, 384>}, {transform_indices = @transform_16, window_bounds = array<i64: 1, 4>}, {transform_indices = @transform_17, window_bounds = array<i64: 1, 1, 16>}, {transform_indices = @transform_18, window_bounds = array<i64: 1, 1, 8>}]} {
    %c0 = arith.constant 0 : index
    %c0_0 = arith.constant 0 : index
    %0 = memref.load %arg17[%c0, %c0_0] : memref<1x4xf32, #tpu.memory_space<smem>>
    %c0_1 = arith.constant 0 : index
    %c1 = arith.constant 1 : index
    %1 = memref.load %arg17[%c0_1, %c1] : memref<1x4xf32, #tpu.memory_space<smem>>
    %c0_2 = arith.constant 0 : index
    %c2 = arith.constant 2 : index
    %2 = memref.load %arg17[%c0_2, %c2] : memref<1x4xf32, #tpu.memory_space<smem>>
    %c0_3 = arith.constant 0 : index
    %c3 = arith.constant 3 : index
    %3 = memref.load %arg17[%c0_3, %c3] : memref<1x4xf32, #tpu.memory_space<smem>>
    %c0_4 = arith.constant 0 : index
    %c0_5 = arith.constant 0 : index
    %c0_6 = arith.constant 0 : index
    %4 = vector.load %arg1[%c0_4, %c0_5, %c0_6] : memref<1x16x768xbf16, #tpu.memory_space<vmem>>, vector<1x16x768xbf16>
    %5 = vector.shape_cast %4 : vector<1x16x768xbf16> to vector<16x768xbf16>
    %c0_7 = arith.constant 0 : index
    %c0_8 = arith.constant 0 : index
    %6 = vector.load %arg4[%c0_7, %c0_8] : memref<768x384xbf16, #tpu.memory_space<vmem>>, vector<768x384xbf16>
    %cst = arith.constant dense<0.000000e+00> : vector<16x384xf32>
    %7 = tpu.matmul %5, %6, %cst {dimension_numbers = #tpu.dot_dimension_numbers<[1], [0], [0], [1], [0, 0, 1, 1], [], []>} : vector<16x768xbf16>, vector<768x384xbf16>, vector<16x384xf32> -> vector<16x384xf32>
    %c0_9 = arith.constant 0 : index
    %c0_10 = arith.constant 0 : index
    %8 = vector.load %arg5[%c0_9, %c0_10] : memref<1x384xf32, #tpu.memory_space<vmem>>, vector<1x384xf32>
    "tpu.trace_start"() <{level = 10 : i32, message = "oe,ne->on"}> : () -> ()
    %cst_11 = arith.constant dense<0.000000e+00> : vector<1x16xf32>
    %9 = tpu.matmul %8, %7, %cst_11 {dimension_numbers = #tpu.dot_dimension_numbers<[1], [1], [0], [0], [0, 0, 1, 0], [], []>} : vector<1x384xf32>, vector<16x384xf32>, vector<1x16xf32> -> vector<1x16xf32>
    "tpu.trace_stop"() : () -> ()
    %10 = vector.broadcast %0 : f32 to vector<1x16xf32>
    %11 = arith.addf %9, %10 : vector<1x16xf32>
    %c0_12 = arith.constant 0 : index
    %c0_13 = arith.constant 0 : index
    %c0_14 = arith.constant 0 : index
    %12 = vector.load %arg18[%c0_12, %c0_13, %c0_14] : memref<1x1x16xf32, #tpu.memory_space<vmem>>, vector<1x1x16xf32>
    %13 = vector.shape_cast %12 : vector<1x1x16xf32> to vector<1x16xf32>
    %14 = vector.shape_cast %11 : vector<1x16xf32> to vector<1x1x16xf32>
    tpu.vector_store %arg18[%c0_12, %c0_13, %c0_14], %14 {strides = array<i32>} : memref<1x1x16xf32, #tpu.memory_space<vmem>>, vector<1x1x16xf32>,
    %15 = arith.truncf %7 : vector<16x384xf32> to vector<16x384xbf16>
    %c0_15 = arith.constant 0 : index
    %c0_16 = arith.constant 0 : index
    %16 = vector.load %arg6[%c0_15, %c0_16] : memref<384x1536xbf16, #tpu.memory_space<vmem>>, vector<384x1536xbf16>
    %cst_17 = arith.constant dense<0.000000e+00> : vector<16x1536xf32>
    %17 = tpu.matmul %15, %16, %cst_17 {dimension_numbers = #tpu.dot_dimension_numbers<[1], [0], [0], [1], [0, 0, 1, 1], [], []>} : vector<16x384xbf16>, vector<384x1536xbf16>, vector<16x1536xf32> -> vector<16x1536xf32>
    %c0_18 = arith.constant 0 : index
    %c0_19 = arith.constant 0 : index
    %18 = vector.load %arg7[%c0_18, %c0_19] : memref<1x1536xf32, #tpu.memory_space<vmem>>, vector<1x1536xf32>
    %19 = vector.shape_cast %18 : vector<1x1536xf32> to vector<1536xf32>
    %20 = vector.shape_cast %19 : vector<1536xf32> to vector<1x1536xf32>
    %21 = vector.broadcast %20 : vector<1x1536xf32> to vector<16x1536xf32>
    %22 = arith.addf %17, %21 : vector<16x1536xf32>
    %c0_20 = arith.constant 0 : index
    %c0_21 = arith.constant 0 : index
    %c0_22 = arith.constant 0 : index
    %23 = vector.load %arg2[%c0_20, %c0_21, %c0_22] : memref<1x16x16xf32, #tpu.memory_space<vmem>>, vector<1x16x16xf32>
    %24 = vector.shape_cast %23 : vector<1x16x16xf32> to vector<16x16xf32>
    %25 = vector.extract_strided_slice %22 {offsets = [0, 0], sizes = [16, 128], strides = [1, 1]} : vector<16x1536xf32> to vector<16x128xf32>
    %cst_23 = arith.constant 0.102062076 : f32
    %26 = vector.broadcast %cst_23 : f32 to vector<16x128xf32>
    %27 = arith.mulf %25, %26 : vector<16x128xf32>
    %28 = vector.extract_strided_slice %22 {offsets = [0, 512], sizes = [16, 128], strides = [1, 1]} : vector<16x1536xf32> to vector<16x128xf32>
    %29 = vector.extract_strided_slice %22 {offsets = [0, 1024], sizes = [16, 128], strides = [1, 1]} : vector<16x1536xf32> to vector<16x128xf32>
    "tpu.trace_start"() <{level = 10 : i32, message = "nd,md->nm"}> : () -> ()
    %cst_24 = arith.constant dense<0.000000e+00> : vector<16x16xf32>
    %30 = tpu.matmul %27, %28, %cst_24 {dimension_numbers = #tpu.dot_dimension_numbers<[1], [1], [0], [0], [0, 0, 1, 0], [], []>} : vector<16x128xf32>, vector<16x128xf32>, vector<16x16xf32> -> vector<16x16xf32>
    "tpu.trace_stop"() : () -> ()
    %31 = arith.addf %30, %24 : vector<16x16xf32>
    %cst_25 = arith.constant dense<0xFF800000> : vector<16xf32>
    %32 = vector.multi_reduction <maximumf>, %31, %cst_25 [1] : vector<16x16xf32> to vector<16xf32>
    %33 = vector.shape_cast %32 : vector<16xf32> to vector<16x1xf32>
    %34 = vector.broadcast %33 : vector<16x1xf32> to vector<16x16xf32>
    %35 = arith.subf %31, %34 : vector<16x16xf32>
    %36 = math.exp %35 : vector<16x16xf32>
    %cst_26 = arith.constant dense<0.000000e+00> : vector<16xf32>
    %37 = vector.multi_reduction <add>, %36, %cst_26 [1] : vector<16x16xf32> to vector<16xf32>
    %38 = vector.shape_cast %37 : vector<16xf32> to vector<16x1xf32>
    %39 = vector.broadcast %38 : vector<16x1xf32> to vector<16x16xf32>
    %40 = arith.divf %36, %39 : vector<16x16xf32>
    %cst_27 = arith.constant dense<0.000000e+00> : vector<16x128xf32>
    %41 = tpu.matmul %40, %29, %cst_27 {dimension_numbers = #tpu.dot_dimension_numbers<[1], [0], [0], [1], [0, 0, 1, 1], [], []>} : vector<16x16xf32>, vector<16x128xf32>, vector<16x128xf32> -> vector<16x128xf32>
    %42 = vector.extract_strided_slice %22 {offsets = [0, 128], sizes = [16, 128], strides = [1, 1]} : vector<16x1536xf32> to vector<16x128xf32>
    %cst_28 = arith.constant 0.102062076 : f32
    %43 = vector.broadcast %cst_28 : f32 to vector<16x128xf32>
    %44 = arith.mulf %42, %43 : vector<16x128xf32>
    %45 = vector.extract_strided_slice %22 {offsets = [0, 640], sizes = [16, 128], strides = [1, 1]} : vector<16x1536xf32> to vector<16x128xf32>
    %46 = vector.extract_strided_slice %22 {offsets = [0, 1152], sizes = [16, 128], strides = [1, 1]} : vector<16x1536xf32> to vector<16x128xf32>
    "tpu.trace_start"() <{level = 10 : i32, message = "nd,md->nm"}> : () -> ()
    %cst_29 = arith.constant dense<0.000000e+00> : vector<16x16xf32>
    %47 = tpu.matmul %44, %45, %cst_29 {dimension_numbers = #tpu.dot_dimension_numbers<[1], [1], [0], [0], [0, 0, 1, 0], [], []>} : vector<16x128xf32>, vector<16x128xf32>, vector<16x16xf32> -> vector<16x16xf32>
    "tpu.trace_stop"() : () -> ()
    %48 = arith.addf %47, %24 : vector<16x16xf32>
    %cst_30 = arith.constant dense<0xFF800000> : vector<16xf32>
    %49 = vector.multi_reduction <maximumf>, %48, %cst_30 [1] : vector<16x16xf32> to vector<16xf32>
    %50 = vector.shape_cast %49 : vector<16xf32> to vector<16x1xf32>
    %51 = vector.broadcast %50 : vector<16x1xf32> to vector<16x16xf32>
    %52 = arith.subf %48, %51 : vector<16x16xf32>
    %53 = math.exp %52 : vector<16x16xf32>
    %cst_31 = arith.constant dense<0.000000e+00> : vector<16xf32>
    %54 = vector.multi_reduction <add>, %53, %cst_31 [1] : vector<16x16xf32> to vector<16xf32>
    %55 = vector.shape_cast %54 : vector<16xf32> to vector<16x1xf32>
    %56 = vector.broadcast %55 : vector<16x1xf32> to vector<16x16xf32>
    %57 = arith.divf %53, %56 : vector<16x16xf32>
    %cst_32 = arith.constant dense<0.000000e+00> : vector<16x128xf32>
    %58 = tpu.matmul %57, %46, %cst_32 {dimension_numbers = #tpu.dot_dimension_numbers<[1], [0], [0], [1], [0, 0, 1, 1], [], []>} : vector<16x16xf32>, vector<16x128xf32>, vector<16x128xf32> -> vector<16x128xf32>
    %59 = vector.extract_strided_slice %22 {offsets = [0, 256], sizes = [16, 128], strides = [1, 1]} : vector<16x1536xf32> to vector<16x128xf32>
    %cst_33 = arith.constant 0.102062076 : f32
    %60 = vector.broadcast %cst_33 : f32 to vector<16x128xf32>
    %61 = arith.mulf %59, %60 : vector<16x128xf32>
    %62 = vector.extract_strided_slice %22 {offsets = [0, 768], sizes = [16, 128], strides = [1, 1]} : vector<16x1536xf32> to vector<16x128xf32>
    %63 = vector.extract_strided_slice %22 {offsets = [0, 1280], sizes = [16, 128], strides = [1, 1]} : vector<16x1536xf32> to vector<16x128xf32>
    "tpu.trace_start"() <{level = 10 : i32, message = "nd,md->nm"}> : () -> ()
    %cst_34 = arith.constant dense<0.000000e+00> : vector<16x16xf32>
    %64 = tpu.matmul %61, %62, %cst_34 {dimension_numbers = #tpu.dot_dimension_numbers<[1], [1], [0], [0], [0, 0, 1, 0], [], []>} : vector<16x128xf32>, vector<16x128xf32>, vector<16x16xf32> -> vector<16x16xf32>
    "tpu.trace_stop"() : () -> ()
    %65 = arith.addf %64, %24 : vector<16x16xf32>
    %cst_35 = arith.constant dense<0xFF800000> : vector<16xf32>
    %66 = vector.multi_reduction <maximumf>, %65, %cst_35 [1] : vector<16x16xf32> to vector<16xf32>
    %67 = vector.shape_cast %66 : vector<16xf32> to vector<16x1xf32>
    %68 = vector.broadcast %67 : vector<16x1xf32> to vector<16x16xf32>
    %69 = arith.subf %65, %68 : vector<16x16xf32>
    %70 = math.exp %69 : vector<16x16xf32>
    %cst_36 = arith.constant dense<0.000000e+00> : vector<16xf32>
    %71 = vector.multi_reduction <add>, %70, %cst_36 [1] : vector<16x16xf32> to vector<16xf32>
    %72 = vector.shape_cast %71 : vector<16xf32> to vector<16x1xf32>
    %73 = vector.broadcast %72 : vector<16x1xf32> to vector<16x16xf32>
    %74 = arith.divf %70, %73 : vector<16x16xf32>
    %cst_37 = arith.constant dense<0.000000e+00> : vector<16x128xf32>
    %75 = tpu.matmul %74, %63, %cst_37 {dimension_numbers = #tpu.dot_dimension_numbers<[1], [0], [0], [1], [0, 0, 1, 1], [], []>} : vector<16x16xf32>, vector<16x128xf32>, vector<16x128xf32> -> vector<16x128xf32>
    %76 = vector.extract_strided_slice %22 {offsets = [0, 384], sizes = [16, 128], strides = [1, 1]} : vector<16x1536xf32> to vector<16x128xf32>
    %cst_38 = arith.constant 0.102062076 : f32
    %77 = vector.broadcast %cst_38 : f32 to vector<16x128xf32>
    %78 = arith.mulf %76, %77 : vector<16x128xf32>
    %79 = vector.extract_strided_slice %22 {offsets = [0, 896], sizes = [16, 128], strides = [1, 1]} : vector<16x1536xf32> to vector<16x128xf32>
    %80 = vector.extract_strided_slice %22 {offsets = [0, 1408], sizes = [16, 128], strides = [1, 1]} : vector<16x1536xf32> to vector<16x128xf32>
    "tpu.trace_start"() <{level = 10 : i32, message = "nd,md->nm"}> : () -> ()
    %cst_39 = arith.constant dense<0.000000e+00> : vector<16x16xf32>
    %81 = tpu.matmul %78, %79, %cst_39 {dimension_numbers = #tpu.dot_dimension_numbers<[1], [1], [0], [0], [0, 0, 1, 0], [], []>} : vector<16x128xf32>, vector<16x128xf32>, vector<16x16xf32> -> vector<16x16xf32>
    "tpu.trace_stop"() : () -> ()
    %82 = arith.addf %81, %24 : vector<16x16xf32>
    %cst_40 = arith.constant dense<0xFF800000> : vector<16xf32>
    %83 = vector.multi_reduction <maximumf>, %82, %cst_40 [1] : vector<16x16xf32> to vector<16xf32>
    %84 = vector.shape_cast %83 : vector<16xf32> to vector<16x1xf32>
    %85 = vector.broadcast %84 : vector<16x1xf32> to vector<16x16xf32>
    %86 = arith.subf %82, %85 : vector<16x16xf32>
    %87 = math.exp %86 : vector<16x16xf32>
    %cst_41 = arith.constant dense<0.000000e+00> : vector<16xf32>
    %88 = vector.multi_reduction <add>, %87, %cst_41 [1] : vector<16x16xf32> to vector<16xf32>
    %89 = vector.shape_cast %88 : vector<16xf32> to vector<16x1xf32>
    %90 = vector.broadcast %89 : vector<16x1xf32> to vector<16x16xf32>
    %91 = arith.divf %87, %90 : vector<16x16xf32>
    %cst_42 = arith.constant dense<0.000000e+00> : vector<16x128xf32>
    %92 = tpu.matmul %91, %80, %cst_42 {dimension_numbers = #tpu.dot_dimension_numbers<[1], [0], [0], [1], [0, 0, 1, 1], [], []>} : vector<16x16xf32>, vector<16x128xf32>, vector<16x128xf32> -> vector<16x128xf32>
    %93 = tpu.concatenate %41, %58, %75, %92 in 1 : vector<16x128xf32>, vector<16x128xf32>, vector<16x128xf32>, vector<16x128xf32> -> vector<16x512xf32>
    %94 = arith.truncf %93 : vector<16x512xf32> to vector<16x512xbf16>
    %c0_43 = arith.constant 0 : index
    %c0_44 = arith.constant 0 : index
    %95 = vector.load %arg8[%c0_43, %c0_44] : memref<512x384xbf16, #tpu.memory_space<vmem>>, vector<512x384xbf16>
    %cst_45 = arith.constant dense<0.000000e+00> : vector<16x384xf32>
    %96 = tpu.matmul %94, %95, %cst_45 {dimension_numbers = #tpu.dot_dimension_numbers<[1], [0], [0], [1], [0, 0, 1, 1], [], []>} : vector<16x512xbf16>, vector<512x384xbf16>, vector<16x384xf32> -> vector<16x384xf32>
    %c0_46 = arith.constant 0 : index
    %c0_47 = arith.constant 0 : index
    %97 = vector.load %arg9[%c0_46, %c0_47] : memref<1x384xf32, #tpu.memory_space<vmem>>, vector<1x384xf32>
    %98 = vector.shape_cast %97 : vector<1x384xf32> to vector<384xf32>
    %99 = vector.shape_cast %98 : vector<384xf32> to vector<1x384xf32>
    %100 = vector.broadcast %99 : vector<1x384xf32> to vector<16x384xf32>
    %101 = arith.addf %96, %100 : vector<16x384xf32>
    %cst_48 = arith.constant dense<0.000000e+00> : vector<16xf32>
    %102 = vector.multi_reduction <add>, %101, %cst_48 [1] : vector<16x384xf32> to vector<16xf32>
    %103 = vector.shape_cast %102 : vector<16xf32> to vector<16x1xf32>
    %cst_49 = arith.constant 3.840000e+02 : f32
    %104 = vector.broadcast %cst_49 : f32 to vector<16x1xf32>
    %105 = arith.divf %103, %104 : vector<16x1xf32>
    %106 = vector.broadcast %105 : vector<16x1xf32> to vector<16x384xf32>
    %107 = arith.subf %101, %106 : vector<16x384xf32>
    %108 = arith.mulf %107, %107 : vector<16x384xf32>
    %cst_50 = arith.constant dense<0.000000e+00> : vector<16xf32>
    %109 = vector.multi_reduction <add>, %108, %cst_50 [1] : vector<16x384xf32> to vector<16xf32>
    %110 = vector.shape_cast %109 : vector<16xf32> to vector<16x1xf32>
    %cst_51 = arith.constant 3.840000e+02 : f32
    %111 = vector.broadcast %cst_51 : f32 to vector<16x1xf32>
    %112 = arith.divf %110, %111 : vector<16x1xf32>
    %113 = vector.broadcast %105 : vector<16x1xf32> to vector<16x384xf32>
    %114 = arith.subf %101, %113 : vector<16x384xf32>
    %cst_52 = arith.constant 9.99999974E-6 : f32
    %115 = vector.broadcast %cst_52 : f32 to vector<16x1xf32>
    %116 = arith.addf %112, %115 : vector<16x1xf32>
    %117 = math.rsqrt %116 : vector<16x1xf32>
    %118 = vector.broadcast %117 : vector<16x1xf32> to vector<16x384xf32>
    %119 = arith.mulf %114, %118 : vector<16x384xf32>
    %c0_53 = arith.constant 0 : index
    %c0_54 = arith.constant 0 : index
    %120 = vector.load %arg10[%c0_53, %c0_54] : memref<1x384xf32, #tpu.memory_space<vmem>>, vector<1x384xf32>
    %121 = vector.shape_cast %120 : vector<1x384xf32> to vector<384xf32>
    %122 = vector.shape_cast %121 : vector<384xf32> to vector<1x384xf32>
    %123 = vector.broadcast %122 : vector<1x384xf32> to vector<16x384xf32>
    %124 = arith.mulf %119, %123 : vector<16x384xf32>
    %c0_55 = arith.constant 0 : index
    %c0_56 = arith.constant 0 : index
    %125 = vector.load %arg11[%c0_55, %c0_56] : memref<1x384xf32, #tpu.memory_space<vmem>>, vector<1x384xf32>
    %126 = vector.shape_cast %125 : vector<1x384xf32> to vector<384xf32>
    %127 = vector.shape_cast %126 : vector<384xf32> to vector<1x384xf32>
    %128 = vector.broadcast %127 : vector<1x384xf32> to vector<16x384xf32>
    %129 = arith.addf %124, %128 : vector<16x384xf32>
    %130 = arith.truncf %129 : vector<16x384xf32> to vector<16x384xbf16>
    %c0_57 = arith.constant 0 : index
    %c0_58 = arith.constant 0 : index
    %131 = vector.load %arg12[%c0_57, %c0_58] : memref<384x1536xbf16, #tpu.memory_space<vmem>>, vector<384x1536xbf16>
    %cst_59 = arith.constant dense<0.000000e+00> : vector<16x1536xf32>
    %132 = tpu.matmul %130, %131, %cst_59 {dimension_numbers = #tpu.dot_dimension_numbers<[1], [0], [0], [1], [0, 0, 1, 1], [], []>} : vector<16x384xbf16>, vector<384x1536xbf16>, vector<16x1536xf32> -> vector<16x1536xf32>
    %c0_60 = arith.constant 0 : index
    %c0_61 = arith.constant 0 : index
    %133 = vector.load %arg13[%c0_60, %c0_61] : memref<1x1536xf32, #tpu.memory_space<vmem>>, vector<1x1536xf32>
    %134 = vector.shape_cast %133 : vector<1x1536xf32> to vector<1536xf32>
    %135 = vector.shape_cast %134 : vector<1536xf32> to vector<1x1536xf32>
    %136 = vector.broadcast %135 : vector<1x1536xf32> to vector<16x1536xf32>
    %137 = arith.addf %132, %136 : vector<16x1536xf32>
    %cst_62 = arith.constant 5.000000e-01 : f32
    %138 = vector.broadcast %cst_62 : f32 to vector<16x1536xf32>
    %139 = arith.mulf %138, %137 : vector<16x1536xf32>
    %cst_63 = arith.constant 4.471500e-02 : f32
    %140 = vector.broadcast %cst_63 : f32 to vector<16x1536xf32>
    %141 = arith.mulf %140, %137 : vector<16x1536xf32>
    %142 = arith.mulf %141, %137 : vector<16x1536xf32>
    %143 = arith.mulf %142, %137 : vector<16x1536xf32>
    %144 = arith.addf %137, %143 : vector<16x1536xf32>
    %cst_64 = arith.constant 0.797884583 : f32
    %145 = vector.broadcast %cst_64 : f32 to vector<16x1536xf32>
    %146 = arith.mulf %145, %144 : vector<16x1536xf32>
    %147 = math.tanh %146 : vector<16x1536xf32>
    %cst_65 = arith.constant 1.000000e+00 : f32
    %148 = vector.broadcast %cst_65 : f32 to vector<16x1536xf32>
    %149 = arith.addf %148, %147 : vector<16x1536xf32>
    %150 = arith.mulf %139, %149 : vector<16x1536xf32>
    %151 = arith.truncf %150 : vector<16x1536xf32> to vector<16x1536xbf16>
    %c0_66 = arith.constant 0 : index
    %c0_67 = arith.constant 0 : index
    %152 = vector.load %arg14[%c0_66, %c0_67] : memref<1536x384xbf16, #tpu.memory_space<vmem>>, vector<1536x384xbf16>
    %cst_68 = arith.constant dense<0.000000e+00> : vector<16x384xf32>
    %153 = tpu.matmul %151, %152, %cst_68 {dimension_numbers = #tpu.dot_dimension_numbers<[1], [0], [0], [1], [0, 0, 1, 1], [], []>} : vector<16x1536xbf16>, vector<1536x384xbf16>, vector<16x384xf32> -> vector<16x384xf32>
    %c0_69 = arith.constant 0 : index
    %c0_70 = arith.constant 0 : index
    %154 = vector.load %arg15[%c0_69, %c0_70] : memref<1x384xf32, #tpu.memory_space<vmem>>, vector<1x384xf32>
    %155 = vector.shape_cast %154 : vector<1x384xf32> to vector<384xf32>
    %156 = vector.shape_cast %155 : vector<384xf32> to vector<1x384xf32>
    %157 = vector.broadcast %156 : vector<1x384xf32> to vector<16x384xf32>
    %158 = arith.addf %153, %157 : vector<16x384xf32>
    %cst_71 = arith.constant 9.99999997E-7 : f32
    %159 = vector.broadcast %cst_71 : f32 to vector<16x384xf32>
    %160 = arith.maximumf %158, %159 : vector<16x384xf32>
    %161 = math.log %160 : vector<16x384xf32>
    %162 = vector.broadcast %2 : f32 to vector<16x384xf32>
    %163 = arith.mulf %162, %161 : vector<16x384xf32>
    %164 = math.exp %163 : vector<16x384xf32>
    %c0_72 = arith.constant 0 : index
    %c0_73 = arith.constant 0 : index
    %165 = vector.load %arg3[%c0_72, %c0_73] : memref<8x16xf32, #tpu.memory_space<vmem>>, vector<8x16xf32>
    %cst_74 = arith.constant dense<0.000000e+00> : vector<8x384xf32>
    %166 = tpu.matmul %165, %164, %cst_74 {dimension_numbers = #tpu.dot_dimension_numbers<[1], [0], [0], [1], [0, 0, 1, 1], [], []>} : vector<8x16xf32>, vector<16x384xf32>, vector<8x384xf32> -> vector<8x384xf32>
    %167 = math.log %166 : vector<8x384xf32>
    %168 = vector.broadcast %3 : f32 to vector<8x384xf32>
    %169 = arith.mulf %168, %167 : vector<8x384xf32>
    %170 = math.exp %169 : vector<8x384xf32>
    %c0_75 = arith.constant 0 : index
    %c0_76 = arith.constant 0 : index
    %171 = vector.load %arg16[%c0_75, %c0_76] : memref<1x384xf32, #tpu.memory_space<vmem>>, vector<1x384xf32>
    "tpu.trace_start"() <{level = 10 : i32, message = "oe,se->os"}> : () -> ()
    %cst_77 = arith.constant dense<0.000000e+00> : vector<1x8xf32>
    %172 = tpu.matmul %171, %170, %cst_77 {dimension_numbers = #tpu.dot_dimension_numbers<[1], [1], [0], [0], [0, 0, 1, 0], [], []>} : vector<1x384xf32>, vector<8x384xf32>, vector<1x8xf32> -> vector<1x8xf32>
    "tpu.trace_stop"() : () -> ()
    %173 = vector.broadcast %1 : f32 to vector<1x8xf32>
    %174 = arith.addf %172, %173 : vector<1x8xf32>
    %c0_78 = arith.constant 0 : index
    %c0_79 = arith.constant 0 : index
    %c0_80 = arith.constant 0 : index
    %175 = vector.load %arg19[%c0_78, %c0_79, %c0_80] : memref<1x1x8xf32, #tpu.memory_space<vmem>>, vector<1x1x8xf32>
    %176 = vector.shape_cast %175 : vector<1x1x8xf32> to vector<1x8xf32>
    %177 = vector.shape_cast %174 : vector<1x8xf32> to vector<1x1x8xf32>
    tpu.vector_store %arg19[%c0_78, %c0_79, %c0_80], %177 {strides = array<i32>} : memref<1x1x8xf32, #tpu.memory_space<vmem>>, vector<1x1x8xf32>,
    return
  }
  func.func @transform_0(%arg0: i32) -> (i32, i32, i32) {
    %c0_i32 = arith.constant 0 : i32
    %c0_i32_0 = arith.constant 0 : i32
    %c0_i32_1 = arith.constant 0 : i32
    return %arg0, %c0_i32, %c0_i32_0 : i32, i32, i32
  }
  func.func @transform_1(%arg0: i32) -> (i32, i32, i32) {
    %c0_i32 = arith.constant 0 : i32
    %c0_i32_0 = arith.constant 0 : i32
    %c0_i32_1 = arith.constant 0 : i32
    return %arg0, %c0_i32, %c0_i32_0 : i32, i32, i32
  }
  func.func @transform_2(%arg0: i32) -> (i32, i32) {
    %c0_i32 = arith.constant 0 : i32
    %c0_i32_0 = arith.constant 0 : i32
    %c0_i32_1 = arith.constant 0 : i32
    return %c0_i32, %c0_i32_0 : i32, i32
  }
  func.func @transform_3(%arg0: i32) -> (i32, i32) {
    %c0_i32 = arith.constant 0 : i32
    %c0_i32_0 = arith.constant 0 : i32
    %c0_i32_1 = arith.constant 0 : i32
    return %c0_i32, %c0_i32_0 : i32, i32
  }
  func.func @transform_4(%arg0: i32) -> (i32, i32) {
    %c0_i32 = arith.constant 0 : i32
    %c0_i32_0 = arith.constant 0 : i32
    %c0_i32_1 = arith.constant 0 : i32
    return %c0_i32, %c0_i32_0 : i32, i32
  }
  func.func @transform_5(%arg0: i32) -> (i32, i32) {
    %c0_i32 = arith.constant 0 : i32
    %c0_i32_0 = arith.constant 0 : i32
    %c0_i32_1 = arith.constant 0 : i32
    return %c0_i32, %c0_i32_0 : i32, i32
  }
  func.func @transform_6(%arg0: i32) -> (i32, i32) {
    %c0_i32 = arith.constant 0 : i32
    %c0_i32_0 = arith.constant 0 : i32
    %c0_i32_1 = arith.constant 0 : i32
    return %c0_i32, %c0_i32_0 : i32, i32
  }
  func.func @transform_7(%arg0: i32) -> (i32, i32) {
    %c0_i32 = arith.constant 0 : i32
    %c0_i32_0 = arith.constant 0 : i32
    %c0_i32_1 = arith.constant 0 : i32
    return %c0_i32, %c0_i32_0 : i32, i32
  }
  func.func @transform_8(%arg0: i32) -> (i32, i32) {
    %c0_i32 = arith.constant 0 : i32
    %c0_i32_0 = arith.constant 0 : i32
    %c0_i32_1 = arith.constant 0 : i32
    return %c0_i32, %c0_i32_0 : i32, i32
  }
  func.func @transform_9(%arg0: i32) -> (i32, i32) {
    %c0_i32 = arith.constant 0 : i32
    %c0_i32_0 = arith.constant 0 : i32
    %c0_i32_1 = arith.constant 0 : i32
    return %c0_i32, %c0_i32_0 : i32, i32
  }
  func.func @transform_10(%arg0: i32) -> (i32, i32) {
    %c0_i32 = arith.constant 0 : i32
    %c0_i32_0 = arith.constant 0 : i32
    %c0_i32_1 = arith.constant 0 : i32
    return %c0_i32, %c0_i32_0 : i32, i32
  }
  func.func @transform_11(%arg0: i32) -> (i32, i32) {
    %c0_i32 = arith.constant 0 : i32
    %c0_i32_0 = arith.constant 0 : i32
    %c0_i32_1 = arith.constant 0 : i32
    return %c0_i32, %c0_i32_0 : i32, i32
  }
  func.func @transform_12(%arg0: i32) -> (i32, i32) {
    %c0_i32 = arith.constant 0 : i32
    %c0_i32_0 = arith.constant 0 : i32
    %c0_i32_1 = arith.constant 0 : i32
    return %c0_i32, %c0_i32_0 : i32, i32
  }
  func.func @transform_13(%arg0: i32) -> (i32, i32) {
    %c0_i32 = arith.constant 0 : i32
    %c0_i32_0 = arith.constant 0 : i32
    %c0_i32_1 = arith.constant 0 : i32
    return %c0_i32, %c0_i32_0 : i32, i32
  }
  func.func @transform_14(%arg0: i32) -> (i32, i32) {
    %c0_i32 = arith.constant 0 : i32
    %c0_i32_0 = arith.constant 0 : i32
    %c0_i32_1 = arith.constant 0 : i32
    return %c0_i32, %c0_i32_0 : i32, i32
  }
  func.func @transform_15(%arg0: i32) -> (i32, i32) {
    %c0_i32 = arith.constant 0 : i32
    %c0_i32_0 = arith.constant 0 : i32
    %c0_i32_1 = arith.constant 0 : i32
    return %c0_i32, %c0_i32_0 : i32, i32
  }
  func.func @transform_16(%arg0: i32) -> (i32, i32) {
    %c0_i32 = arith.constant 0 : i32
    %c0_i32_0 = arith.constant 0 : i32
    %c0_i32_1 = arith.constant 0 : i32
    return %c0_i32, %c0_i32_0 : i32, i32
  }
  func.func @transform_17(%arg0: i32) -> (i32, i32, i32) {
    %c0_i32 = arith.constant 0 : i32
    %c0_i32_0 = arith.constant 0 : i32
    %c0_i32_1 = arith.constant 0 : i32
    return %arg0, %c0_i32, %c0_i32_0 : i32, i32, i32
  }
  func.func @transform_18(%arg0: i32) -> (i32, i32, i32) {
    %c0_i32 = arith.constant 0 : i32
    %c0_i32_0 = arith.constant 0 : i32
    %c0_i32_1 = arith.constant 0 : i32
    return %arg0, %c0_i32, %c0_i32_0 : i32, i32, i32
  }
}

</mosaic_0001>

<bundles_post_ra>
// kernel: vitmil_forward_batched.1
= control target key start
LH: loop header
LB: loop body
LE: loop exit
PB: predicated region body
PF: predicated region fallthrough
CT: control target
= control target key end

     0   :  { %s18253_s0 = inlined_call_operand.vmem [shape: bf16[4,16,768], index: 0, kind: input, shape index: {}]   ;;  %s18254_s1 = inlined_call_operand.vmem [shape: f32[4,16,16], index: 1, kind: input, shape index: {}]   ;;  %s18255_s2 = inlined_call_operand.vmem [shape: f32[8,16], index: 2, kind: input, shape index: {}]   ;;  %s18256_s3 = inlined_call_operand.vmem [shape: bf16[768,384], index: 3, kind: input, shape index: {}]   ;;  %s18257_s4 = inlined_call_operand.vmem [shape: f32[1,384], index: 4, kind: input, shape index: {}]   ;;  %s18258_s5 = inlined_call_operand.vmem [shape: bf16[384,1536], index: 5, kind: input, shape index: {}]   ;;  %s18259_s6 = inlined_call_operand.vmem [shape: f32[1,1536], index: 6, kind: input, shape index: {}]   ;;  %s18260_s7 = inlined_call_operand.hbm [shape: bf16[512,384], index: 7, kind: input, shape index: {}]   ;;  %s18261_s8 = inlined_call_operand.vmem [shape: f32[1,384], index: 8, kind: input, shape index: {}]   ;;  %s18262_s9 = inlined_call_operand.vmem [shape: f32[1,384], index: 9, kind: input, shape index: {}]   ;;  %s18263_s10 = inlined_call_operand.vmem [shape: f32[1,384], index: 10, kind: input, shape index: {}]   ;;  %s18264_s11 = inlined_call_operand.vmem [shape: bf16[384,1536], index: 11, kind: input, shape index: {}]   ;;  %s18265_s12 = inlined_call_operand.vmem [shape: f32[1,1536], index: 12, kind: input, shape index: {}]   ;;  %s18266_s13 = inlined_call_operand.hbm [shape: bf16[1536,384], index: 13, kind: input, shape index: {}]   ;;  %s18267_s14 = inlined_call_operand.vmem [shape: f32[1,384], index: 14, kind: input, shape index: {}]   ;;  %s18268_s15 = inlined_call_operand.vmem [shape: f32[1,384], index: 15, kind: input, shape index: {}]   ;;  %s18269_s16 = inlined_call_operand.vmem [shape: f32[1,4], index: 16, kind: input, shape index: {}]   ;;  %s18270_s17 = inlined_call_operand.hbm [shape: f32[4,1,16], index: 17, kind: output, shape index: {0}]   ;;  %s18271_s18 = inlined_call_operand.hbm [shape: f32[4,1,8], index: 18, kind: output, shape index: {1}]  }
   0x1   :  { %18283 = sst [smem:[#allocation24_spill]] %s18253_s0 }
   0x2   :  { %18284 = sst [smem:[#allocation25_spill]] %s18254_s1 }
   0x3   :  { %18285 = sst [smem:[#allocation26_spill]] %s18255_s2 }
   0x4   :  { %18286 = sst [smem:[#allocation27_spill]] %s18268_s15 }
   0x5   :  { %18287 = sst [smem:[#allocation28_spill]] %s18269_s16 }
   0x6   :  { %18288 = sst [smem:[#allocation29_spill]] %s18270_s17 }
   0x7   :  { %18289 = sst [smem:[#allocation30_spill]] %s18271_s18 }
   0x8   :  { %24 = vsyncpa [#allocation3], 0 }
   0x9   :  { %25 = vsyncpa [#allocation7], 0 }
   0xa   :  { %26 = vsyncpa [#allocation5], 0 }
   0xb   :  { %27 = vsyncpa [#allocation4], 0 }
   0xc   :  { %29 = vsyncpa [#allocation4 + $0x1], 0 }
   0xd   :  { %30 = vsyncpa [#allocation11], 0 }
   0xe   :  { %32 = vsyncpa [#allocation11 + $0x1], 0  ;;  %s15259_s27 = smov 0   ;;  %s15261_s28 = smov 0  }
   0xf   :  { %s15263_s29 = smov 0   ;;  %s15265_s30 = smov 0  }
  0x10 LB: > { %18290 = sst [smem:[#allocation17_spill]] %s15139_s27  ;;  %s15280_s0 = sadd.s32 4294967295, %s15151_s30   ;;  %s15151_s30 = sphi %s15265_s30, %s18321_s30   ;;  %s15147_s29 = sphi %s15263_s29, %s18323_s29   ;;  %s15143_s28 = sphi %s15261_s28, %s18325_s28   ;;  %s15139_s27 = sphi %s15259_s27, %s18324_s27  }
  0x11   : > { %18291 = sst [smem:[#allocation18_spill]] %s15147_s29  ;;  %s11509_s19 = sadd.s32 4294967294, %s15151_s30  }
  0x12   : > { %18292 = sst [smem:[#allocation19_spill]] %s15151_s30  ;;  %s15284_s1 = sadd.s32 1, %s15151_s30  }
  0x13   : > { %18293 = sst [smem:[#allocation20_spill]] %s15284_s1  ;;  %s412_s20 = sadd.s32 1, %s15147_s29 }
  0x14   : > { %s409_s21 = ssub.s32 %s15151_s30, %s15284_s1  ;;  %p422_p0 = scmp.ne.s32.totalorder %s15147_s29, %s15143_s28 }
  0x15   : > { %p410_p1 = scmp.eq.s32.totalorder %s409_s21, 0  ;;  %p423_p2 = scmp.eq.s32.totalorder %s15280_s0, 3 }
  0x16   : > { %p428_p3 = scmp.ne.s32.totalorder %s15143_s28, %s15139_s27  ;;  %p429_p4 = scmp.eq.s32.totalorder %s11509_s19, 3 }
  0x17   : > { %s15295_s22 = scalar_select %p410_p1, %s15147_s29, %s412_s20  }
  0x18   : > { %p15297_p5 = por %p423_p2, %p422_p0  ;;  %p15301_p6 = por %p429_p4, %p428_p3 }
  0x19   : > { %18294 = sst [smem:[#allocation21_spill]] %s15295_s22  ;;  %p11510_p7 = scmp.ge.s32.totalorder %s15151_s30, 1 }
  0x1a   : > { %s18295_s2 = scalar_select %p15297_p5, 1, 0 }
  0x1b   : > { %s18297_s23 = scalar_select %p15301_p6, 1, 0 }
  0x1c   : > { %18296 = sst [smem:[#allocation22_spill]] %s18295_s2  ;;  %p462_p8 = scmp.lt.s32.totalorder %s15151_s30, 5 }
  0x1d   : > { %18298 = sst [smem:[#allocation23_spill]] %s18297_s23  ;;  %p18280_p9 = scmp.eq.s32.totalorder %s15280_s0, 0 }
  0x1e   : > { %p15308_p10 = pnand %p11510_p7, %p462_p8  ;;  %s15153_s25 = smov [#allocation2]  }
  0x1f   : > { %s489_s26 = sshll.u32 %s15153_s25, 4  ;;  %s15154_s20 = smov [#allocation6]   ;;  %s15314_s26 = int_to_ptr.vmem [resolvable:$true] %s489_s26 }
  0x20   : > { %p13212_p11 = pneg %p15308_p10  ;;  %s517_s21 = sshll.u32 %s15154_s20, 4  ;;  %s15322_s21 = int_to_ptr.vmem [resolvable:$true] %s517_s21 }
  0x21   : > { %s18301_s16 = sld [smem:[#allocation28_spill]]  ;;  %s14974_s27 = scalar_lea.hbm %s18260_s7, 12288 }
  0x22   : > { %p15318_p12 = pnand %p18280_p9, %p13212_p11  ;;  %p14975_p13 = scmp.ne.s32.totalorder %s18260_s7, %s14974_s27 }
  0x23   : > { %p14981_p3 = scmp.lt.u32.totalorder %s14974_s27, %s18260_s7 }
  0x24   : > { %p15337_p0 = pneg %p15318_p12 }
  0x26   : > { %p14977_p1 = pnand %p15337_p0, %p14975_p13 }
  0x27   : > { %s537_s1 = sshll.u32 %s18301_s16, 4  ;;  %s15327_s1 = int_to_ptr.vmem [resolvable:$true] %s537_s1 }
  0x28   : > { %p14978_p2 = pneg %p14977_p1 }
  0x2a   : > { %p14983_p4 = pnand %p14981_p3, %p14978_p2 }
  0x2c   : > { %14986 = shalt.err (!%p14983_p4)
}
  0x2d   : > { %s14987_s18 = scalar_lea.vmem %s15314_s26, 12288  ;;  %p14995_p9 = scmp.lt.s32.totalorder %s15314_s26, %s15314_s26 }
  0x2e   : > { %p14988_p7 = scmp.ne.s32.totalorder %s15314_s26, %s14987_s18  ;;  %p14996_p6 = scmp.lt.s32.totalorder %s14987_s18, %s14987_s18 }
  0x30   : > { %p14990_p8 = pnand %p14988_p7, %p15337_p0  ;;  %p14997_p13 = por %p14996_p6, %p14995_p9 }
  0x32   : > { %p14991_p11 = pneg %p14990_p8 }
  0x34   : > { %p14998_p1 = pnand %p14997_p13, %p14991_p11 }
  0x36   : > { %15001 = shalt.err (!%p14998_p1)
}
  0x37   : > { %s15155_s30 = smov 192   ;;  %s15156_s27 = smov 12  }
  0x38   : > { %13215 = dma.hbm_to_vmem [thread:$0]  (!%p15318_p12), %s18260_s7, 12288, %s15314_s26, [#allocation3], %s15155_s30, %s15155_s30, %s15156_s27  }
  0x39   : > { %s15002_s22 = scalar_lea.hbm %s18266_s13, 36864 }
  0x3a   : > { %p15003_p6 = scmp.ne.s32.totalorder %s18266_s13, %s15002_s22  ;;  %p15009_p3 = scmp.lt.u32.totalorder %s15002_s22, %s18266_s13 }
  0x3c   : > { %p15005_p9 = pnand %p15003_p6, %p15337_p0 }
  0x3e   : > { %p15006_p2 = pneg %p15005_p9 }
  0x40   : > { %p15011_p4 = pnand %p15009_p3, %p15006_p2 }
  0x42   : > { %15014 = shalt.err (!%p15011_p4)
}
  0x43   : > { %s15015_s26 = scalar_lea.vmem %s15322_s21, 36864  ;;  %p15023_p13 = scmp.lt.s32.totalorder %s15322_s21, %s15322_s21 }
  0x44   : > { %p15016_p7 = scmp.ne.s32.totalorder %s15322_s21, %s15015_s26  ;;  %p15024_p1 = scmp.lt.s32.totalorder %s15015_s26, %s15015_s26 }
  0x46   : > { %p15018_p8 = pnand %p15016_p7, %p15337_p0  ;;  %p15025_p6 = por %p15024_p1, %p15023_p13 }
  0x48   : > { %p15019_p11 = pneg %p15018_p8 }
  0x4a   : > { %p15026_p9 = pnand %p15025_p6, %p15019_p11 }
  0x4c   : > { %15029 = shalt.err (!%p15026_p9)
}
  0x4d   : > { %13218 = dma.hbm_to_vmem [thread:$0]  (!%p15318_p12), %s18266_s13, 36864, %s15322_s21, [#allocation7], %s15155_s30, %s15155_s30, %s15156_s27  }
  0x4e   : > { %s15030_s2 = scalar_lea.vmem %s15327_s1, 16  ;;  %p15038_p7 = scmp.lt.s32.totalorder %s15327_s1, %s15327_s1 }
  0x4f   : > { %p15031_p2 = scmp.ne.s32.totalorder %s15327_s1, %s15030_s2  ;;  %p15039_p8 = scmp.lt.s32.totalorder %s15030_s2, %s15030_s2 }
  0x51   : > { %p15033_p3 = pnand %p15031_p2, %p15337_p0  ;;  %p15040_p11 = por %p15039_p8, %p15038_p7 }
  0x53   : > { %p15034_p4 = pneg %p15033_p3 }
  0x55   : > { %p15041_p13 = pnand %p15040_p11, %p15034_p4 }
  0x57   : > { %15044 = shalt.err (!%p15041_p13)
}
  0x58   : > { %s15157_s23 = smov [#allocation8]   ;;  %566 = sbr.rel (%p15308_p10) target bundleno = 5156 (0x1424), region = 88 }
  0x59   : > { %13221 = dma.vmem_to_smem (!%p15318_p12), %s15327_s1, 16, %s15157_s23, [#allocation5]  }
  0x5a   : > { %p18303_p1 = scmp.eq.s32.totalorder (!%p15308_p10), %s15280_s0, 0 }
  0x5f   : > { %15118 = dma.done.wait (%p18303_p1), [#allocation3], 12288   ;;  %p18304_p0 = pmov %p18303_p1 }
  0x61   : > { %15120 = vsyncadd (%p18304_p0), [#allocation3], 4294955008  ;;  %p18305_p6 = pmov %p18304_p0 }
  0x62   : > { %p18306_p9 = pmov %p18304_p0 }
  0x63   : > { %15122 = dma.done.wait (%p18305_p6), [#allocation7], 36864  }
  0x64   : > { %15124 = vsyncadd (%p18306_p9), [#allocation7], 4294930432  ;;  %p18307_p2 = pmov %p18304_p0 }
  0x65   : > { %p18308_p12 = pmov %p18304_p0 }
  0x66   : > { %15126 = dma.done.wait (%p18307_p2), [#allocation5], 16  }
  0x67   : > { %15128 = vsyncadd (%p18308_p12), [#allocation5], 4294967280 }
  0x68   : > { %580 = sfence }
  0x69   : > { %v13277_v0 = vld [vmem:[%s18256_s3 + $0x4] ss:$12 sps:$4 sm:$0xff]   ;;  %v13281_v2 = vld [vmem:[%s18256_s3] ss:$12 sps:$4 sm:$0xff]   ;;  %v13283_v4 = vld [vmem:[%s18256_s3 + $0x1c] ss:$12 sps:$4 sm:$0xff]  }
  0x6a   : > { %v13279_v1 = vld [vmem:[%s18256_s3 + $0x184] ss:$12 sps:$4 sm:$0xff]   ;;  %1648 = vmatprep.subr.bf16.mxu1 %v13277_v0  ;;  %v13282_v3 = vld [vmem:[%s18256_s3 + $0x180] ss:$12 sps:$4 sm:$0xff]   ;;  %v13285_v5 = vld [vmem:[%s18256_s3 + $0x19c] ss:$12 sps:$4 sm:$0xff]  }
  0x6b   : > { %1691 = vmatprep.subr.bf16.mxu0 %v13279_v1  ;;  %1649 = vmatpush1.bf16.msra.mxu1 %v13281_v2  ;;  %v13287_v6 = vld [vmem:[%s18256_s3 + $0x18] ss:$12 sps:$4 sm:$0xff]   ;;  %v13289_v8 = vld [vmem:[%s18256_s3 + $0x34] ss:$12 sps:$4 sm:$0xff]   ;;  %v13293_v10 = vld [vmem:[%s18256_s3 + $0x30] ss:$12 sps:$4 sm:$0xff]  }
  0x6c   : > { %1692 = vmatpush1.bf16.msra.mxu0 %v13282_v3  ;;  %1650 = vmatprep.subr.bf16.mxu1 %v13283_v4  ;;  %v13288_v7 = vld [vmem:[%s18256_s3 + $0x198] ss:$12 sps:$4 sm:$0xff]   ;;  %v13291_v9 = vld [vmem:[%s18256_s3 + $0x1b4] ss:$12 sps:$4 sm:$0xff]   ;;  %v13294_v11 = vld [vmem:[%s18256_s3 + $0x1b0] ss:$12 sps:$4 sm:$0xff]  }
  0x6d   : > { %1693 = vmatprep.subr.bf16.mxu0 %v13285_v5  ;;  %v13295_v12 = vld [vmem:[%s18256_s3 + $0x4c] ss:$12 sps:$4 sm:$0xff]   ;;  %v13299_v14 = vld [vmem:[%s18256_s3 + $0x48] ss:$12 sps:$4 sm:$0xff]   ;;  %v13301_v16 = vld [vmem:[%s18256_s3 + $0x64] ss:$12 sps:$4 sm:$0xff]  }
  0x6e   : > { %v13297_v13 = vld [vmem:[%s18256_s3 + $0x1cc] ss:$12 sps:$4 sm:$0xff]   ;;  %v13300_v15 = vld [vmem:[%s18256_s3 + $0x1c8] ss:$12 sps:$4 sm:$0xff]   ;;  %v13303_v17 = vld [vmem:[%s18256_s3 + $0x1e4] ss:$12 sps:$4 sm:$0xff]  }
  0x6f   : > { %1651 = vmatpush1.bf16.msra.mxu1 %v13287_v6  ;;  %v13305_v18 = vld [vmem:[%s18256_s3 + $0x60] ss:$12 sps:$4 sm:$0xff]   ;;  %v13307_v20 = vld [vmem:[%s18256_s3 + $0x7c] ss:$12 sps:$4 sm:$0xff]   ;;  %v13311_v22 = vld [vmem:[%s18256_s3 + $0x78] ss:$12 sps:$4 sm:$0xff]  }
  0x70   : > { %1694 = vmatpush1.bf16.msra.mxu0 %v13288_v7  ;;  %1652 = vmatprep.subr.bf16.mxu1 %v13289_v8  ;;  %v13306_v19 = vld [vmem:[%s18256_s3 + $0x1e0] ss:$12 sps:$4 sm:$0xff]   ;;  %v13309_v21 = vld [vmem:[%s18256_s3 + $0x1fc] ss:$12 sps:$4 sm:$0xff]   ;;  %v13312_v23 = vld [vmem:[%s18256_s3 + $0x1f8] ss:$12 sps:$4 sm:$0xff]  }
  0x71   : > { %1695 = vmatprep.subr.bf16.mxu0 %v13291_v9  ;;  %v13313_v24 = vld [vmem:[%s18256_s3 + $0x94] ss:$12 sps:$4 sm:$0xff]   ;;  %v13317_v26 = vld [vmem:[%s18256_s3 + $0x90] ss:$12 sps:$4 sm:$0xff]   ;;  %v13319_v28 = vld [vmem:[%s18256_s3 + $0xac] ss:$12 sps:$4 sm:$0xff]  }
  0x72   : > { %v13315_v25 = vld [vmem:[%s18256_s3 + $0x214] ss:$12 sps:$4 sm:$0xff]   ;;  %v13318_v27 = vld [vmem:[%s18256_s3 + $0x210] ss:$12 sps:$4 sm:$0xff]   ;;  %v13321_v29 = vld [vmem:[%s18256_s3 + $0x22c] ss:$12 sps:$4 sm:$0xff]  }
  0x73   : > { %1653 = vmatpush1.bf16.msra.mxu1 %v13293_v10  ;;  %v13323_v30 = vld [vmem:[%s18256_s3 + $0xa8] ss:$12 sps:$4 sm:$0xff]   ;;  %v13325_v32 = vld [vmem:[%s18256_s3 + $0xc4] ss:$12 sps:$4 sm:$0xff]   ;;  %p637_p10 = scmp.lt.s32.totalorder %s15280_s0, 3  ;;  %s18309_s22 = sld [smem:[#allocation24_spill]] }
  0x74   : > { %1696 = vmatpush1.bf16.msra.mxu0 %v13294_v11  ;;  %1654 = vmatprep.subr.bf16.mxu1 %v13295_v12  ;;  %v13324_v31 = vld [vmem:[%s18256_s3 + $0x228] ss:$12 sps:$4 sm:$0xff]   ;;  %v13327_v33 = vld [vmem:[%s18256_s3 + $0x244] ss:$12 sps:$4 sm:$0xff]   ;;  %v13329_v34 = vld [vmem:[%s18256_s3 + $0xc0] ss:$12 sps:$4 sm:$0xff]  }
  0x75   : > { %1697 = vmatprep.subr.bf16.mxu0 %v13297_v13  ;;  %v13330_v35 = vld [vmem:[%s18256_s3 + $0x240] ss:$12 sps:$4 sm:$0xff]   ;;  %v13331_v36 = vld [vmem:[%s18256_s3 + $0xdc] ss:$12 sps:$4 sm:$0xff]   ;;  %s15517_s27 = scalar_select %p637_p10, %s15280_s0, 3  ;;  %vm15160_vm0 = vmmov 0  }
  0x76   : > { %v13333_v37 = vld [vmem:[%s18256_s3 + $0x25c] ss:$12 sps:$4 sm:$0xff]   ;;  %v13335_v38 = vld [vmem:[%s18256_s3 + $0xd8] ss:$12 sps:$4 sm:$0xff]   ;;  %v13337_v40 = vld [vmem:[%s18256_s3 + $0xf4] ss:$12 sps:$4 sm:$0xff]  }
  0x77   : > { %1655 = vmatpush1.bf16.msra.mxu1 %v13299_v14  ;;  %v13336_v39 = vld [vmem:[%s18256_s3 + $0x258] ss:$12 sps:$4 sm:$0xff]   ;;  %s13195_s2 = smul.u32 48, %s15517_s27  ;;  %v13339_v41 = vld [vmem:[%s18256_s3 + $0x274] ss:$12 sps:$4 sm:$0xff]   ;;  %s648_s23 = sld [smem:[#allocation8]] }
  0x78   : > { %1698 = vmatpush1.bf16.msra.mxu0 %v13300_v15  ;;  %1656 = vmatprep.subr.bf16.mxu1 %v13301_v16  ;;  %v13341_v42 = vld [vmem:[%s18256_s3 + $0xf0] ss:$12 sps:$4 sm:$0xff]   ;;  %v13343_v44 = vld [vmem:[%s18256_s3 + $0x10c] ss:$12 sps:$4 sm:$0xff]   ;;  %v13347_v46 = vld [vmem:[%s18256_s3 + $0x108] ss:$12 sps:$4 sm:$0xff]  }
  0x79   : > { %1699 = vmatprep.subr.bf16.mxu0 %v13303_v17  ;;  %v13342_v43 = vld [vmem:[%s18256_s3 + $0x270] ss:$12 sps:$4 sm:$0xff]   ;;  %s15547_s18 = scalar_lea.vmem %s18309_s22, %s13195_s2  ;;  %v13345_v45 = vld [vmem:[%s18256_s3 + $0x28c] ss:$12 sps:$4 sm:$0xff]   ;;  %v13348_v47 = vld [vmem:[%s18256_s3 + $0x288] ss:$12 sps:$4 sm:$0xff]  }
  0x7a   : > { %v13349_v48 = vld [vmem:[%s18256_s3 + $0x124] ss:$12 sps:$4 sm:$0xff]   ;;  %v13353_v52 = vld [vmem:[%s18256_s3 + $0x120] ss:$12 sps:$4 sm:$0xff]   ;;  %v13355_v54 = vld [vmem:[%s18256_s3 + $0x13c] ss:$12 sps:$4 sm:$0xff]  }
  0x7b   : > { %1657 = vmatpush1.bf16.msra.mxu1 %v13305_v18  ;;  %v13375_v49 = vld [vmem:[%s15547_s18 + $0x4] ss:$24 sps:$4 sm:$0xff]   ;;  %v13354_v53 = vld [vmem:[%s18256_s3 + $0x2a0] ss:$12 sps:$4 sm:$0xff]   ;;  %v13371_v0 = vld [vmem:[%s18256_s3 + $0x168] ss:$12 sps:$4 sm:$0xff]  }
  0x7c   : > { %1700 = vmatpush1.bf16.msra.mxu0 %v13306_v19  ;;  %1658 = vmatprep.subr.bf16.mxu1 %v13307_v20  ;;  %v13351_v50 = vld [vmem:[%s18256_s3 + $0x2a4] ss:$12 sps:$4 sm:$0xff]   ;;  %v13357_v55 = vld [vmem:[%s18256_s3 + $0x2bc] ss:$12 sps:$4 sm:$0xff]   ;;  %v13361_v58 = vld [vmem:[%s18256_s3 + $0x154] ss:$12 sps:$4 sm:$0xff]  }
  0x7d   : > { %1701 = vmatprep.subr.bf16.mxu0 %v13309_v21  ;;  %v15566_v51 = vld [vmem:[%s15547_s18 + $0xc] ss:$24 sps:$4 sm:$0xff]   ;;  %1680 = vmatprep.mubr.bf16.mxu1 %v13375_v49  ;;  %v13363_v59 = vld [vmem:[%s18256_s3 + $0x2d4] ss:$12 sps:$4 sm:$0xff]   ;;  %v13365_v60 = vld [vmem:[%s18256_s3 + $0x150] ss:$12 sps:$4 sm:$0xff]  }
  0x7e   : > { %1723 = vmatprep.mubr.bf16.mxu0 %v15566_v51  ;;  %v13359_v56 = vld [vmem:[%s18256_s3 + $0x138] ss:$12 sps:$4 sm:$0xff]   ;;  %v13366_v61 = vld [vmem:[%s18256_s3 + $0x2d0] ss:$12 sps:$4 sm:$0xff]   ;;  %v13372_v1 = vld [vmem:[%s18256_s3 + $0x2e8] ss:$12 sps:$4 sm:$0xff]  }
  0x7f   : > { %1659 = vmatpush1.bf16.msra.mxu1 %v13311_v22  ;;  %v13360_v57 = vld [vmem:[%s18256_s3 + $0x2b8] ss:$12 sps:$4 sm:$0xff]   ;;  %v15618_v4 = vld [vmem:[%s15547_s18 + $0x8] ss:$24 sps:$4 sm:$0xff]   ;;  %v13389_v14 = vld [vmem:[%s18256_s3 + $0x330] ss:$12 sps:$4 sm:$0xff]  }
  0x80   : > { %1702 = vmatpush1.bf16.msra.mxu0 %v13312_v23  ;;  %1660 = vmatprep.subr.bf16.mxu1 %v13313_v24  ;;  %v13367_v62 = vld [vmem:[%s18256_s3 + $0x16c] ss:$12 sps:$4 sm:$0xff]   ;;  %v13381_v2 = vld [vmem:[%s18256_s3 + $0x304] ss:$12 sps:$4 sm:$0xff]   ;;  %v13382_v5 = vld [vmem:[%s18256_s3 + $0xc8] ss:$12 sps:$4 sm:$0xff]  }
  0x81   : > { %1703 = vmatprep.subr.bf16.mxu0 %v13315_v25  ;;  %v13369_v63 = vld [vmem:[%s18256_s3 + $0x2ec] ss:$12 sps:$4 sm:$0xff]   ;;  %v13383_v7 = vld [vmem:[%s18256_s3 + $0x8] ss:$12 sps:$4 sm:$0xff]   ;;  %v13397_v17 = vld [vmem:[%s18256_s3 + $0x110] ss:$12 sps:$4 sm:$0xff]  }
  0x82   : > { %v15615_v3 = vld [vmem:[%s15547_s18] ss:$24 sps:$4 sm:$0xff]   ;;  %v13386_v8 = vld [vmem:[%s18256_s3 + $0x31c] ss:$12 sps:$4 sm:$0xff]   ;;  %v13401_v20 = vld [vmem:[%s18256_s3 + $0x364] ss:$12 sps:$4 sm:$0xff]  }
  0x83   : > { %1661 = vmatpush1.bf16.msra.mxu1 %v13317_v26  ;;  %v13379_v6 = vld [vmem:[%s18256_s3 + $0x300] ss:$12 sps:$4 sm:$0xff]   ;;  %v13384_v10 = vld [vmem:[%s18256_s3 + $0x318] ss:$12 sps:$4 sm:$0xff]   ;;  %v13394_v18 = vld [vmem:[%s18256_s3 + $0x348] ss:$12 sps:$4 sm:$0xff]  }
  0x84   : > { %1704 = vmatpush1.bf16.msra.mxu0 %v13318_v27  ;;  %1662 = vmatprep.subr.bf16.mxu1 %v13319_v28  ;;  %v13387_v9 = vld [vmem:[%s18256_s3 + $0xe0] ss:$12 sps:$4 sm:$0xff]   ;;  %v13392_v13 = vld [vmem:[%s18256_s3 + $0xf8] ss:$12 sps:$4 sm:$0xff]   ;;  %v13398_v19 = vld [vmem:[%s18256_s3 + $0x50] ss:$12 sps:$4 sm:$0xff]  }
  0x85   : > { %1705 = vmatprep.subr.bf16.mxu0 %v13321_v29  ;;  %v13388_v11 = vld [vmem:[%s18256_s3 + $0x20] ss:$12 sps:$4 sm:$0xff]   ;;  %v13393_v15 = vld [vmem:[%s18256_s3 + $0x38] ss:$12 sps:$4 sm:$0xff]   ;;  %v13402_v21 = vld [vmem:[%s18256_s3 + $0x128] ss:$12 sps:$4 sm:$0xff]  }
  0x86   : > { %v13391_v12 = vld [vmem:[%s18256_s3 + $0x334] ss:$12 sps:$4 sm:$0xff]   ;;  %v13396_v16 = vld [vmem:[%s18256_s3 + $0x34c] ss:$12 sps:$4 sm:$0xff]   ;;  %v13406_v24 = vld [vmem:[%s18256_s3 + $0x37c] ss:$12 sps:$4 sm:$0xff]  }
  0x87   : > { %1663 = vmatpush1.bf16.msra.mxu1 %v13323_v30  ;;  %v13399_v22 = vld [vmem:[%s18256_s3 + $0x360] ss:$12 sps:$4 sm:$0xff]   ;;  %v13403_v23 = vld [vmem:[%s18256_s3 + $0x68] ss:$12 sps:$4 sm:$0xff]   ;;  %v13404_v26 = vld [vmem:[%s18256_s3 + $0x378] ss:$12 sps:$4 sm:$0xff]  }
  0x88   : > { %1706 = vmatpush1.bf16.msra.mxu0 %v13324_v31  ;;  %1664 = vmatprep.subr.bf16.mxu1 %v13325_v32  ;;  %v13407_v25 = vld [vmem:[%s18256_s3 + $0x140] ss:$12 sps:$4 sm:$0xff]   ;;  %v13412_v29 = vld [vmem:[%s18256_s3 + $0x158] ss:$12 sps:$4 sm:$0xff]   ;;  %v13409_v30 = vld [vmem:[%s18256_s3 + $0x390] ss:$12 sps:$4 sm:$0xff]  }
  0x89   : > { %1707 = vmatprep.subr.bf16.mxu0 %v13327_v33  ;;  %v13408_v27 = vld [vmem:[%s18256_s3 + $0x80] ss:$12 sps:$4 sm:$0xff]   ;;  %v13413_v31 = vld [vmem:[%s18256_s3 + $0x98] ss:$12 sps:$4 sm:$0xff]   ;;  %v13417_v33 = vld [vmem:[%s18256_s3 + $0x170] ss:$12 sps:$4 sm:$0xff]  }
  0x8a   : > { %v13411_v28 = vld [vmem:[%s18256_s3 + $0x394] ss:$12 sps:$4 sm:$0xff]   ;;  %v13416_v32 = vld [vmem:[%s18256_s3 + $0x3ac] ss:$12 sps:$4 sm:$0xff]   ;;  %vm2058_vm1 = vcmask 122880   ;;  %s12649_s17 = sshll.u32 %s15517_s27, 4 }
  0x8b   : > { %1665 = vmatpush1.bf16.msra.mxu1 %v13329_v34  ;;  %v13414_v34 = vld [vmem:[%s18256_s3 + $0x3a8] ss:$12 sps:$4 sm:$0xff]   ;;  %s18310_s19 = sld [smem:[#allocation25_spill]]  ;;  %vm4450_vm2 = vcmask 130048   ;;  %s18311_s22 = sld [smem:[#allocation26_spill]] }
  0x8c   : > { %1708 = vmatpush1.bf16.msra.mxu0 %v13330_v35  ;;  %1666 = vmatprep.subr.bf16.mxu1 %v13331_v36  ;;  %v13418_v35 = vld [vmem:[%s18256_s3 + $0xb0] ss:$12 sps:$4 sm:$0xff]   ;;  %s11523_s20 = sld [smem:[#allocation8 + $0x2]]  ;;  %s18312_s16 = sld [smem:[#allocation27_spill]] }
  0x8d   : > { %1709 = vmatprep.subr.bf16.mxu0 %v13333_v37  ;;  %v13421_v36 = vld [vmem:[%s18256_s3 + $0x3c4] ss:$12 sps:$4 sm:$0xff]   ;;  %v13422_v37 = vld [vmem:[%s18256_s3 + $0x248] ss:$12 sps:$4 sm:$0xff]   ;;  %s12645_s24 = sshll.u32 %s15280_s0, 4  ;;  %s18314_s27 = sld [smem:[#allocation29_spill]] }
  0x8f   : > { %1667 = vmatpush1.bf16.msra.mxu1 %v13335_v38  ;;  %v13419_v38 = vld [vmem:[%s18256_s3 + $0x3c0] ss:$12 sps:$4 sm:$0xff]  }
  0x90   : > { %1710 = vmatpush1.bf16.msra.mxu0 %v13336_v39  ;;  %1668 = vmatprep.subr.bf16.mxu1 %v13337_v40  ;;  %v13423_v39 = vld [vmem:[%s18256_s3 + $0x188] ss:$12 sps:$4 sm:$0xff]  }
  0x91   : > { %1711 = vmatprep.subr.bf16.mxu0 %v13339_v41  ;;  %v13426_v40 = vld [vmem:[%s18256_s3 + $0x3dc] ss:$12 sps:$4 sm:$0xff]   ;;  %v13427_v41 = vld [vmem:[%s18256_s3 + $0x260] ss:$12 sps:$4 sm:$0xff]   ;;  %s646_s2 = scalar_lea.vmem %s18310_s19, %s12649_s17  ;;  %s11524_s17 = sld [smem:[#allocation8 + $0x3]] }
  0x93   : > { %1669 = vmatpush1.bf16.msra.mxu1 %v13341_v42  ;;  %v13424_v42 = vld [vmem:[%s18256_s3 + $0x3d8] ss:$12 sps:$4 sm:$0xff]   ;;  %s18315_s21 = smov %s18314_s27  ;;  %s18182_s30 = scalar_lea.hbm %s18314_s27, %s12645_s24 }
  0x94   : > { %1712 = vmatpush1.bf16.msra.mxu0 %v13342_v43  ;;  %1670 = vmatprep.subr.bf16.mxu1 %v13343_v44  ;;  %v13428_v43 = vld [vmem:[%s18256_s3 + $0x1a0] ss:$12 sps:$4 sm:$0xff]  }
  0x95   : > { %1713 = vmatprep.subr.bf16.mxu0 %v13345_v45  ;;  %v15741_v44 = vld [vmem:[%s15547_s18 + $0x14] ss:$24 sps:$4 sm:$0xff]  }
  0x96   : > { %v13431_v45 = vld [vmem:[%s18256_s3 + $0x3f4] ss:$12 sps:$4 sm:$0xff]  }
  0x97   : > { %1671 = vmatpush1.bf16.msra.mxu1 %v13347_v46  ;;  %v13432_v46 = vld [vmem:[%s18256_s3 + $0x278] ss:$12 sps:$4 sm:$0xff]  }
  0x98   : > { %1714 = vmatpush1.bf16.msra.mxu0 %v13348_v47  ;;  %1672 = vmatprep.subr.bf16.mxu1 %v13349_v48  ;;  %v13429_v47 = vld [vmem:[%s18256_s3 + $0x3f0] ss:$12 sps:$4 sm:$0xff]   ;;  %v13433_v48 = vld [vmem:[%s18256_s3 + $0x1b8] ss:$12 sps:$4 sm:$0xff]  }
  0x99   : > { %1715 = vmatprep.subr.bf16.mxu0 %v13351_v50  ;;  %v13437_v50 = vld [vmem:[%s18256_s3 + $0x290] ss:$12 sps:$4 sm:$0xff]  }
  0x9b   : > { %1673 = vmatpush1.bf16.msra.mxu1 %v13353_v52  ;;  %v13438_v52 = vld [vmem:[%s18256_s3 + $0x1d0] ss:$12 sps:$4 sm:$0xff]  }
  0x9c   : > { %1716 = vmatpush1.bf16.msra.mxu0 %v13354_v53  ;;  %1674 = vmatprep.subr.bf16.mxu1 %v13355_v54  ;;  %v13441_v53 = vld [vmem:[%s18256_s3 + $0x424] ss:$12 sps:$4 sm:$0xff]   ;;  %v13442_v54 = vld [vmem:[%s18256_s3 + $0x2a8] ss:$12 sps:$4 sm:$0xff]  }
  0x9d   : > { %1717 = vmatprep.subr.bf16.mxu0 %v13357_v55  ;;  %v13439_v55 = vld [vmem:[%s18256_s3 + $0x420] ss:$12 sps:$4 sm:$0xff]  }
  0x9f   : > { %1675 = vmatpush1.bf16.msra.mxu1 %v13359_v56  ;;  %v13443_v56 = vld [vmem:[%s18256_s3 + $0x1e8] ss:$12 sps:$4 sm:$0xff]  }
  0xa0   : > { %1718 = vmatpush1.bf16.msra.mxu0 %v13360_v57  ;;  %1676 = vmatprep.subr.bf16.mxu1 %v13361_v58  ;;  %v13446_v57 = vld [vmem:[%s18256_s3 + $0x43c] ss:$12 sps:$4 sm:$0xff]   ;;  %v13447_v58 = vld [vmem:[%s18256_s3 + $0x2c0] ss:$12 sps:$4 sm:$0xff]  }
  0xa1   : > { %1719 = vmatprep.subr.bf16.mxu0 %v13363_v59  ;;  %v13444_v59 = vld [vmem:[%s18256_s3 + $0x438] ss:$12 sps:$4 sm:$0xff]  }
  0xa3   : > { %1677 = vmatpush1.bf16.msra.mxu1 %v13365_v60  ;;  %v13448_v60 = vld [vmem:[%s18256_s3 + $0x200] ss:$12 sps:$4 sm:$0xff]  }
  0xa4   : > { %1720 = vmatpush1.bf16.msra.mxu0 %v13366_v61  ;;  %1678 = vmatprep.subr.bf16.mxu1 %v13367_v62  ;;  %v13451_v61 = vld [vmem:[%s18256_s3 + $0x454] ss:$12 sps:$4 sm:$0xff]   ;;  %v13452_v62 = vld [vmem:[%s18256_s3 + $0x2d8] ss:$12 sps:$4 sm:$0xff]  }
  0xa5   : > { %1721 = vmatprep.subr.bf16.mxu0 %v13369_v63  ;;  %v13449_v63 = vld [vmem:[%s18256_s3 + $0x450] ss:$12 sps:$4 sm:$0xff]  }
  0xa7   : > { %1679 = vmatpush1.bf16.msra.mxu1 %v13371_v0  ;;  %v13453_v0 = vld [vmem:[%s18256_s3 + $0x218] ss:$12 sps:$4 sm:$0xff]  }
  0xa8   : > { %1722 = vmatpush1.bf16.msra.mxu0 %v13372_v1  ;;  %12650 = vmatprep.subr.bf16.mxu1 %v13382_v5  ;;  %v13456_v1 = vld [vmem:[%s18256_s3 + $0x46c] ss:$12 sps:$4 sm:$0xff]   ;;  %v13458_v5 = vld [vmem:[%s18256_s3 + $0x230] ss:$12 sps:$4 sm:$0xff]  }
  0xa9   : > { %1734 = vmatprep.subr.bf16.mxu0 %v13381_v2  ;;  %v13457_v2 = vld [vmem:[%s18256_s3 + $0x2f0] ss:$12 sps:$4 sm:$0xff]  }
  0xaa   : > { %1681 = vmatmul.mubr.bf16.vlgmr.msra.gmra.mrb[0].mxu1 %v15615_v3 }
  0xab   : > { %1724 = vmatmul.mubr.bf16.vlgmr.msra.gmra.mrb[0].mxu0 %v15618_v4  ;;  %12651 = vmatpush3.bf16.msra.mxu1 %v13383_v7  ;;  %v13459_v7 = vld [vmem:[%s15547_s18 + $0x10] ss:$24 sps:$4 sm:$0xff]   ;;  %s16685_s18 = sand.u32 1, %s15143_s28  }
  0xac   : > { %1735 = vmatpush1.bf16.msra.mxu0 %v13379_v6  ;;  %12652 = vmatprep.subr.bf16.mxu1 %v13387_v9  ;;  %v13462_v6 = vld [vmem:[%s18256_s3 + $0x3c8] ss:$12 sps:$4 sm:$0xff]   ;;  %v13464_v9 = vld [vmem:[%s18256_s3 + $0x3e0] ss:$12 sps:$4 sm:$0xff]   ;;  %s11351_s25 = scalar_lea.sflag [#allocation4], %s16685_s18 }
  0xad   : > { %1736 = vmatprep.subr.bf16.mxu0 %v13386_v8  ;;  %1809 = vmatprep.mubr.bf16.mxu1 %v13375_v49  ;;  %v13436_v49 = vld [vmem:[%s18256_s3 + $0x40c] ss:$12 sps:$4 sm:$0xff]   ;;  %v13463_v8 = vld [vmem:[%s18256_s3 + $0x308] ss:$12 sps:$4 sm:$0xff]  }
  0xae   : > { %1766 = vmatprep.mubr.bf16.mxu0 %v15741_v44 }
  0xaf   : > { %12653 = vmatpush3.bf16.msra.mxu1 %v13388_v11  ;;  %v13466_v11 = vld [vmem:[%s18256_s3 + $0x3f8] ss:$12 sps:$4 sm:$0xff]  }
  0xb0   : > { %1737 = vmatpush1.bf16.msra.mxu0 %v13384_v10  ;;  %12654 = vmatprep.subr.bf16.mxu1 %v13392_v13  ;;  %v13465_v10 = vld [vmem:[%s18256_s3 + $0x320] ss:$12 sps:$4 sm:$0xff]   ;;  %v13468_v13 = vld [vmem:[%s18256_s3 + $0x410] ss:$12 sps:$4 sm:$0xff]  }
  0xb1   : > { %1738 = vmatprep.subr.bf16.mxu0 %v13391_v12  ;;  %v13467_v12 = vld [vmem:[%s18256_s3 + $0x338] ss:$12 sps:$4 sm:$0xff]  }
  0xb3   : > { %12655 = vmatpush3.bf16.msra.mxu1 %v13393_v15  ;;  %v13471_v15 = vld [vmem:[%s18256_s3 + $0x368] ss:$12 sps:$4 sm:$0xff]  }
  0xb4   : > { %1739 = vmatpush1.bf16.msra.mxu0 %v13389_v14  ;;  %12656 = vmatprep.subr.bf16.mxu1 %v13397_v17  ;;  %v13470_v14 = vld [vmem:[%s18256_s3 + $0x428] ss:$12 sps:$4 sm:$0xff]   ;;  %v13473_v17 = vld [vmem:[%s18256_s3 + $0x380] ss:$12 sps:$4 sm:$0xff]  }
  0xb5   : > { %1740 = vmatprep.subr.bf16.mxu0 %v13396_v16  ;;  %v13472_v16 = vld [vmem:[%s18256_s3 + $0x440] ss:$12 sps:$4 sm:$0xff]  }
  0xb7   : > { %12657 = vmatpush3.bf16.msra.mxu1 %v13398_v19  ;;  %v13475_v19 = vld [vmem:[%s18256_s3 + $0x398] ss:$12 sps:$4 sm:$0xff]  }
  0xb8   : > { %1741 = vmatpush1.bf16.msra.mxu0 %v13394_v18  ;;  %12658 = vmatprep.subr.bf16.mxu1 %v13402_v21  ;;  %v13474_v18 = vld [vmem:[%s18256_s3 + $0x458] ss:$12 sps:$4 sm:$0xff]  }
  0xb9   : > { %1742 = vmatprep.subr.bf16.mxu0 %v13401_v20  ;;  %v13476_v20 = vld [vmem:[%s18256_s3 + $0x470] ss:$12 sps:$4 sm:$0xff]   ;;  %v13478_v21 = vld [vmem:[%s18258_s5 + $0x8] ss:$48 sps:$4 sm:$0xff]  }
  0xbb   : > { %12659 = vmatpush3.bf16.msra.mxu1 %v13403_v23  ;;  %v13483_v23 = vld [vmem:[%s18258_s5 + $0x6c] ss:$48 sps:$4 sm:$0xff]  }
  0xbc   : > { %1743 = vmatpush1.bf16.msra.mxu0 %v13399_v22  ;;  %12660 = vmatprep.subr.bf16.mxu1 %v13407_v25  ;;  %v13480_v22 = vld [vmem:[%s18258_s5 + $0xc] ss:$48 sps:$4 sm:$0xff]   ;;  %v13481_v25 = vld [vmem:[%s18258_s5 + $0x68] ss:$48 sps:$4 sm:$0xff]  }
  0xbd   : > { %1744 = vmatprep.subr.bf16.mxu0 %v13406_v24  ;;  %v13477_v24 = vld [vmem:[%s18256_s3 + $0x3b0] ss:$12 sps:$4 sm:$0xff]  }
  0xbf   : > { %12661 = vmatpush3.bf16.msra.mxu1 %v13408_v27  ;;  %v13484_v27 = vld [vmem:[%s18258_s5 + $0xc8] ss:$48 sps:$4 sm:$0xff]  }
  0xc0   : > { %1745 = vmatpush1.bf16.msra.mxu0 %v13404_v26  ;;  %12662 = vmatprep.subr.bf16.mxu1 %v13412_v29  ;;  %v13486_v26 = vld [vmem:[%s18258_s5 + $0xcc] ss:$48 sps:$4 sm:$0xff]   ;;  %v13487_v29 = vld [vmem:[%s18258_s5 + $0x128] ss:$48 sps:$4 sm:$0xff]  }
  0xc1   : > { %1746 = vmatprep.subr.bf16.mxu0 %v13411_v28  ;;  %v13489_v28 = vld [vmem:[%s18258_s5 + $0x12c] ss:$48 sps:$4 sm:$0xff]  }
  0xc3   : > { %12663 = vmatpush3.bf16.msra.mxu1 %v13413_v31  ;;  %v13490_v31 = vld [vmem:[%s18258_s5 + $0x188] ss:$48 sps:$4 sm:$0xff]  }
  0xc4   : > { %1747 = vmatpush1.bf16.msra.mxu0 %v13409_v30  ;;  %12664 = vmatprep.subr.bf16.mxu1 %v13417_v33  ;;  %v13492_v30 = vld [vmem:[%s18258_s5 + $0x18c] ss:$48 sps:$4 sm:$0xff]   ;;  %v13493_v33 = vld [vmem:[%s18258_s5 + $0x1e8] ss:$48 sps:$4 sm:$0xff]  }
  0xc5   : > { %1748 = vmatprep.subr.bf16.mxu0 %v13416_v32  ;;  %v13495_v32 = vld [vmem:[%s18258_s5 + $0x1ec] ss:$48 sps:$4 sm:$0xff]  }
  0xc7   : > { %12665 = vmatpush3.bf16.msra.mxu1 %v13418_v35  ;;  %v13496_v35 = vld [vmem:[%s18258_s5 + $0x248] ss:$48 sps:$4 sm:$0xff]  }
  0xc8   : > { %1749 = vmatpush1.bf16.msra.mxu0 %v13414_v34  ;;  %12672 = vmatprep.subr.bf16.mxu1 %v13422_v37  ;;  %v13498_v34 = vld [vmem:[%s18258_s5 + $0x24c] ss:$48 sps:$4 sm:$0xff]   ;;  %v13499_v37 = vld [vmem:[%s18258_s5 + $0x2a8] ss:$48 sps:$4 sm:$0xff]  }
  0xc9   : > { %1750 = vmatprep.subr.bf16.mxu0 %v13421_v36  ;;  %v13501_v36 = vld [vmem:[%s18258_s5 + $0x2ac] ss:$48 sps:$4 sm:$0xff]  }
  0xca   : > { %1810 = vmatmul.mubr.bf16.vlgmr.msra.gmra.mrb[4].mxu1 %v15615_v3  ;;  %v13454_v3 = vld [vmem:[%s18256_s3 + $0x468] ss:$12 sps:$4 sm:$0xff]  }
  0xcb   : > { %12673 = vmatpush3.bf16.msra.mxu1 %v13423_v39  ;;  %1850 = vmatprep.mubr.bf16.mxu1 %v15566_v51  ;;  %v13434_v51 = vld [vmem:[%s18256_s3 + $0x408] ss:$12 sps:$4 sm:$0xff]  }
  0xcc   : > { %1751 = vmatpush1.bf16.msra.mxu0 %v13419_v38  ;;  %12674 = vmatprep.subr.bf16.mxu1 %v13427_v41  ;;  %v13504_v38 = vld [vmem:[%s18258_s5 + $0x30c] ss:$48 sps:$4 sm:$0xff]   ;;  %v13502_v39 = vld [vmem:[%s18258_s5 + $0x308] ss:$48 sps:$4 sm:$0xff]  }
  0xcd   : > { %1752 = vmatprep.subr.bf16.mxu0 %v13426_v40  ;;  %v13507_v40 = vld [vmem:[%s18258_s5 + $0x36c] ss:$48 sps:$4 sm:$0xff]   ;;  %v13505_v41 = vld [vmem:[%s18258_s5 + $0x368] ss:$48 sps:$4 sm:$0xff]  }
  0xcf   : > { %12675 = vmatpush3.bf16.msra.mxu1 %v13428_v43  ;;  %v13508_v43 = vld [vmem:[%s18258_s5 + $0x3c8] ss:$48 sps:$4 sm:$0xff]  }
  0xd0   : > { %1753 = vmatpush1.bf16.msra.mxu0 %v13424_v42  ;;  %12676 = vmatprep.subr.bf16.mxu1 %v13432_v46  ;;  %v13510_v42 = vld [vmem:[%s18258_s5 + $0x3cc] ss:$48 sps:$4 sm:$0xff]  }
  0xd1   : > { %1754 = vmatprep.subr.bf16.mxu0 %v13431_v45  ;;  %v13511_v45 = vld [vmem:[%s18258_s5 + $0x428] ss:$48 sps:$4 sm:$0xff]   ;;  %v13516_v46 = vld [vmem:[%s18258_s5 + $0x48c] ss:$48 sps:$4 sm:$0xff]  }
  0xd3   : > { %12677 = vmatpush3.bf16.msra.mxu1 %v13433_v48  ;;  %v13519_v48 = vld [vmem:[%s18258_s5 + $0x4ec] ss:$48 sps:$4 sm:$0xff]  }
  0xd4   : > { %1755 = vmatpush1.bf16.msra.mxu0 %v13429_v47  ;;  %12678 = vmatprep.subr.bf16.mxu1 %v13437_v50  ;;  %v13514_v47 = vld [vmem:[%s18258_s5 + $0x488] ss:$48 sps:$4 sm:$0xff]   ;;  %v13522_v50 = vld [vmem:[%s18258_s5 + $0x54c] ss:$48 sps:$4 sm:$0xff]  }
  0xd5   : > { %1756 = vmatprep.subr.bf16.mxu0 %v13436_v49  ;;  %v13517_v49 = vld [vmem:[%s18258_s5 + $0x4e8] ss:$48 sps:$4 sm:$0xff]  }
  0xd7   : > { %12679 = vmatpush3.bf16.msra.mxu1 %v13438_v52  ;;  %v13525_v52 = vld [vmem:[%s18258_s5 + $0x5ac] ss:$48 sps:$4 sm:$0xff]  }
  0xd8   : > { %1757 = vmatpush1.bf16.msra.mxu0 %v13434_v51  ;;  %12680 = vmatprep.subr.bf16.mxu1 %v13442_v54  ;;  %v13520_v51 = vld [vmem:[%s18258_s5 + $0x548] ss:$48 sps:$4 sm:$0xff]   ;;  %v13528_v54 = vld [vmem:[%s18258_s5 + $0x60c] ss:$48 sps:$4 sm:$0xff]  }
  0xd9   : > { %1758 = vmatprep.subr.bf16.mxu0 %v13441_v53  ;;  %v13523_v53 = vld [vmem:[%s18258_s5 + $0x5a8] ss:$48 sps:$4 sm:$0xff]  }
  0xdb   : > { %12681 = vmatpush3.bf16.msra.mxu1 %v13443_v56 }
  0xdc   : > { %1759 = vmatpush1.bf16.msra.mxu0 %v13439_v55  ;;  %12682 = vmatprep.subr.bf16.mxu1 %v13447_v58  ;;  %v1903_v55 = vlaneseq  ;;  %v15975_v58 = vld [vmem:[%s18257_s4] sm:$0x7] }
  0xdd   : > { %1760 = vmatprep.subr.bf16.mxu0 %v13446_v57 }
  0xde   : > { %v15967_v56 = vshrl.u32 %v1903_v55, 7 }
  0xdf   : > { %12683 = vmatpush3.bf16.msra.mxu1 %v13448_v60 }
  0xe0   : > { %1761 = vmatpush1.bf16.msra.mxu0 %v13444_v59  ;;  %12684 = vmatprep.subr.bf16.mxu1 %v13452_v62  ;;  %v15970_v57 = vsub.s32 1, %v15967_v56 }
  0xe1   : > { %1762 = vmatprep.subr.bf16.mxu0 %v13451_v61 }
  0xe2   : > { %v1910_v59 = vrot.slane %v15975_v58, %v15970_v57 }
  0xe3   : > { %12685 = vmatpush3.bf16.msra.mxu1 %v13453_v0 }
  0xe4   : > { %1763 = vmatpush1.bf16.msra.mxu0 %v13449_v63  ;;  %12686 = vmatprep.subr.bf16.mxu1 %v13457_v2 }
  0xe5   : > { %1764 = vmatprep.subr.bf16.mxu0 %v13456_v1 }
  0xe7   : > { %12687 = vmatpush3.bf16.msra.mxu1 %v13458_v5 }
  0xe8   : > { %1765 = vmatpush1.bf16.msra.mxu0 %v13454_v3  ;;  %12694 = vmatprep.subr.bf16.mxu1 %v13462_v6 }
  0xe9   : > { %3941 = vmatprep.subr.bf16.mxu0 %v13480_v22 }
  0xea   : > { %1851 = vmatmul.mubr.bf16.vlgmr.msra.gmra.mrb[8].mxu1 %v15618_v4  ;;  %v13469_v4 = vld [vmem:[%s18256_s3 + $0x350] ss:$12 sps:$4 sm:$0xff]  }
  0xeb   : > { %1767 = vmatmul.mubr.bf16.vlgmr.msra.gmra.mrb[0].mxu0 %v13459_v7  ;;  %12695 = vmatpush3.bf16.msra.mxu1 %v13463_v8 }
  0xec   : > { %1891 = vmatprep.mubr.bf16.mxu1 %v15741_v44  ;;  %12696 = vmatprep.subr.bf16.mxu1 %v13464_v9  ;;  %v13513_v44 = vld [vmem:[%s18258_s5 + $0x42c] ss:$48 sps:$4 sm:$0xff]  }
  0xed   : > { %3942 = vmatpush1.bf16.msra.mxu0 %v13478_v21  ;;  %v13526_v21 = vld [vmem:[%s18258_s5 + $0x608] ss:$48 sps:$4 sm:$0xff]  }
  0xee   : > { %3943 = vmatprep.subr.bf16.mxu0 %v13483_v23 }
  0xef   : > { %12697 = vmatpush3.bf16.msra.mxu1 %v13465_v10 }
  0xf0   : > { %12698 = vmatprep.subr.bf16.mxu1 %v13466_v11 }
  0xf1   : > { %3944 = vmatpush1.bf16.msra.mxu0 %v13481_v25  ;;  %v13531_v25 = vld [vmem:[%s18258_s5 + $0x66c] ss:$48 sps:$4 sm:$0xff]  }
  0xf2   : > { %3945 = vmatprep.subr.bf16.mxu0 %v13486_v26  ;;  %v15992_v26 = vsub.s32 0, %v15967_v56 }
  0xf3   : > { %12699 = vmatpush3.bf16.msra.mxu1 %v13467_v12 }
  0xf4   : > { %12700 = vmatprep.subr.bf16.mxu1 %v13468_v13 }
  0xf5   : > { %3946 = vmatpush1.bf16.msra.mxu0 %v13484_v27  ;;  %v13529_v27 = vld [vmem:[%s18258_s5 + $0x668] ss:$48 sps:$4 sm:$0xff]  }
  0xf6   : > { %3947 = vmatprep.subr.bf16.mxu0 %v13489_v28  ;;  %v15158_v28 = vmov 0.0|0.0  }
  0xf7   : > { %12701 = vmatpush3.bf16.msra.mxu1 %v13469_v4 }
  0xf8   : > { %12702 = vmatprep.subr.bf16.mxu1 %v13470_v14 }
  0xf9   : > { %3948 = vmatpush1.bf16.msra.mxu0 %v13487_v29  ;;  %v13534_v29 = vld [vmem:[%s18258_s5 + $0x6cc] ss:$48 sps:$4 sm:$0xff]  }
  0xfa   : > { %3949 = vmatprep.subr.bf16.mxu0 %v13492_v30  ;;  %v15159_v30 = vmov 0  }
  0xfb   : > { %12703 = vmatpush3.bf16.msra.mxu1 %v13471_v15 }
  0xfc   : > { %12704 = vmatprep.subr.bf16.mxu1 %v13472_v16 }
  0xfd   : > { %3950 = vmatpush1.bf16.msra.mxu0 %v13490_v31  ;;  %v13532_v31 = vld [vmem:[%s18258_s5 + $0x6c8] ss:$48 sps:$4 sm:$0xff]  }
  0xfe   : > { %3951 = vmatprep.subr.bf16.mxu0 %v13495_v32  ;;  %v1906_v32 = vrot.slane %v15975_v58, %v15992_v26 }
  0xff   : > { %12705 = vmatpush3.bf16.msra.mxu1 %v13473_v17 }
 0x100   : > { %12706 = vmatprep.subr.bf16.mxu1 %v13474_v18 }
 0x101   : > { %3952 = vmatpush1.bf16.msra.mxu0 %v13493_v33  ;;  %v13537_v33 = vld [vmem:[%s18258_s5 + $0x72c] ss:$48 sps:$4 sm:$0xff]  }
 0x102   : > { %3953 = vmatprep.subr.bf16.mxu0 %v13498_v34  ;;  %v13535_v34 = vld [vmem:[%s18258_s5 + $0x728] ss:$48 sps:$4 sm:$0xff]  }
 0x103   : > { %12707 = vmatpush3.bf16.msra.mxu1 %v13475_v19 }
 0x104   : > { %12708 = vmatprep.subr.bf16.mxu1 %v13476_v20 }
 0x105   : > { %3954 = vmatpush1.bf16.msra.mxu0 %v13496_v35  ;;  %v15161_v35 = vmov 0.0  }
 0x106   : > { %3955 = vmatprep.subr.bf16.mxu0 %v13501_v36  ;;  %v13540_v36 = vld [vmem:[%s18258_s5 + $0x78c] ss:$48 sps:$4 sm:$0xff]  }
 0x107   : > { %12709 = vmatpush3.bf16.msra.mxu1 %v13477_v24 }
 0x109   : > { %3956 = vmatpush1.bf16.msra.mxu0 %v13499_v37  ;;  %v13538_v37 = vld [vmem:[%s18258_s5 + $0x788] ss:$48 sps:$4 sm:$0xff]  }
 0x10a   : > { %1892 = vmatmul.mubr.bf16.vlgmr.msra.gmra.mrb[12].mxu1 %v13459_v7  ;;  %3957 = vmatprep.subr.bf16.mxu0 %v13504_v38  ;;  %v13543_v38 = vld [vmem:[%s18258_s5 + $0x7ec] ss:$48 sps:$4 sm:$0xff]  }
 0x10b   : > { %1982 = vmatprep.mubr.f32.mxu1 %v1910_v59  ;;  %v13558_v59 = vld [vmem:[%s18258_s5 + $0x4] ss:$48 sps:$4 sm:$0xff]  }
 0x10d   : > { %3958 = vmatpush1.bf16.msra.mxu0 %v13502_v39  ;;  %v13541_v39 = vld [vmem:[%s18258_s5 + $0x7e8] ss:$48 sps:$4 sm:$0xff]  }
 0x10e   : > { %3959 = vmatprep.subr.bf16.mxu0 %v13507_v40  ;;  %v13546_v40 = vld [vmem:[%s18258_s5 + $0x84c] ss:$48 sps:$4 sm:$0xff]  }
 0x111   : > { %3960 = vmatpush1.bf16.msra.mxu0 %v13505_v41  ;;  %v13544_v41 = vld [vmem:[%s18258_s5 + $0x848] ss:$48 sps:$4 sm:$0xff]  }
 0x112   : > { %3961 = vmatprep.subr.bf16.mxu0 %v13510_v42  ;;  %v13549_v42 = vld [vmem:[%s18258_s5 + $0x8ac] ss:$48 sps:$4 sm:$0xff]  }
 0x115   : > { %3962 = vmatpush1.bf16.msra.mxu0 %v13508_v43 }
 0x116   : > { %3963 = vmatprep.subr.bf16.mxu0 %v13513_v44  ;;  %v13547_v44 = vld [vmem:[%s18258_s5 + $0x8a8] ss:$48 sps:$4 sm:$0xff]  }
 0x119   : > { %3964 = vmatpush1.bf16.msra.mxu0 %v13511_v45 }
 0x11a   : > { %3965 = vmatprep.subr.bf16.mxu0 %v13516_v46 }
 0x11d   : > { %3966 = vmatpush1.bf16.msra.mxu0 %v13514_v47 }
 0x11e   : > { %3967 = vmatprep.subr.bf16.mxu0 %v13519_v48 }
 0x121   : > { %3968 = vmatpush1.bf16.msra.mxu0 %v13517_v49  ;;  %v13552_v49 = vld [vmem:[%s18258_s5 + $0x1c] ss:$48 sps:$4 sm:$0xff]  }
 0x122   : > { %3969 = vmatprep.subr.bf16.mxu0 %v13522_v50 }
 0x125   : > { %3970 = vmatpush1.bf16.msra.mxu0 %v13520_v51 }
 0x126   : > { %3971 = vmatprep.subr.bf16.mxu0 %v13525_v52 }
 0x129   : > { %3972 = vmatpush1.bf16.msra.mxu0 %v13523_v53  ;;  %v13550_v53 = vld [vmem:[%s18258_s5 + $0x18] ss:$48 sps:$4 sm:$0xff]  }
 0x12a   : > { %3984 = vmatprep.subr.bf16.mxu0 %v13528_v54  ;;  %v13555_v54 = vld [vmem:[%s18258_s5 + $0x7c] ss:$48 sps:$4 sm:$0xff]  }
 0x17d   : > { %v1682_v60 = vpop.f32.mrb[0].mxu1 }
 0x17e   : > { %v1684_v61 = vpop.f32.mrb[1].mxu1 }
 0x17f   : > { %v1686_v62 = vpop.f32.mrb[2].mxu1 }
 0x180   : > { %v1688_v63 = vpop.f32.mrb[3].mxu1 }
 0x19d   : > { %v12666_v0 = vpop.f32.mrb[4].mxu1 }
 0x19e   : > { %v12667_v1 = vpop.f32.mrb[5].mxu1 }
 0x19f   : > { %v12668_v2 = vadd.f32 %v12667_v1, %v12666_v0  ;;  %v12669_v3 = vpop.f32.mrb[6].mxu1  ;;  %v13559_v1 = vld [vmem:[%s18258_s5 + $0xd8] ss:$48 sps:$4 sm:$0xff]  }
 0x1a0   : > { %v12670_v5 = vpop.f32.mrb[7].mxu1 }
 0x1a1   : > { %v12671_v6 = vadd.f32 %v12670_v5, %v12669_v3  ;;  %v13562_v3 = vld [vmem:[%s18258_s5 + $0x60] ss:$48 sps:$4 sm:$0xff]   ;;  %v13567_v5 = vld [vmem:[%s18258_s5 + $0x13c] ss:$48 sps:$4 sm:$0xff]  }
 0x1bd   : > { %v12688_v8 = vpop.f32.mrb[8].mxu1 }
 0x1be   : > { %v1768_v7 = vpop.f32.mrb[0].mxu0  ;;  %v12689_v11 = vpop.f32.mrb[9].mxu1 }
 0x1bf   : > { %v13053_v9 = vadd.f32 %v1768_v7, %v1682_v60  ;;  %v1770_v10 = vpop.f32.mrb[1].mxu0  ;;  %v12690_v13 = vadd.f32 %v12689_v11, %v12688_v8  ;;  %v12691_v14 = vpop.f32.mrb[10].mxu1  ;;  %v16056_v60 = vsub.s32 2, %v15967_v56  ;;  %v13568_v7 = vld [vmem:[%s18258_s5 + $0xc0] ss:$48 sps:$4 sm:$0xff]  }
 0x1c0   : > { %v13054_v12 = vadd.f32 %v1770_v10, %v1684_v61  ;;  %v1772_v4 = vpop.f32.mrb[2].mxu0  ;;  %v12692_v17 = vpop.f32.mrb[11].mxu1  ;;  %v13553_v61 = vld [vmem:[%s18258_s5 + $0x78] ss:$48 sps:$4 sm:$0xff]   ;;  %v13573_v8 = vld [vmem:[%s18258_s5 + $0x19c] ss:$48 sps:$4 sm:$0xff]  }
 0x1c1   : > { %v13055_v15 = vadd.f32 %v1772_v4, %v1686_v62  ;;  %v1774_v16 = vpop.f32.mrb[3].mxu0  ;;  %v1853_v18 = vadd.f32 %v12690_v13, %v12668_v2  ;;  %v12693_v20 = vadd.f32 %v12692_v17, %v12691_v14  ;;  %v13561_v62 = vld [vmem:[%s18258_s5 + $0xdc] ss:$48 sps:$4 sm:$0xff]   ;;  %v1914_v0 = vrot.slane %v15975_v58, %v16056_v60  ;;  %v13564_v2 = vld [vmem:[%s18258_s5 + $0x64] ss:$48 sps:$4 sm:$0xff]  }
 0x1c2   : > { %v13056_v19 = vadd.f32 %v1774_v16, %v1688_v63  ;;  %v13556_v63 = vld [vmem:[%s18258_s5] ss:$48 sps:$4 sm:$0xff]   ;;  %v13565_v58 = vld [vmem:[%s18258_s5 + $0x138] ss:$48 sps:$4 sm:$0xff]   ;;  %v13576_v10 = vld [vmem:[%s18258_s5 + $0x124] ss:$48 sps:$4 sm:$0xff]  }
 0x1c3   : > { %v15982_v22 = vpack.c.bf16 %v13055_v15, %v13053_v9  ;;  %v1856_v24 = vadd.f32 %v12693_v20, %v12671_v6  ;;  %v13570_v6 = vld [vmem:[%s18258_s5 + $0xc4] ss:$48 sps:$4 sm:$0xff]   ;;  %v13571_v9 = vld [vmem:[%s18258_s5 + $0x198] ss:$48 sps:$4 sm:$0xff]   ;;  %v13574_v11 = vld [vmem:[%s18258_s5 + $0x120] ss:$48 sps:$4 sm:$0xff]  }
 0x1c4   : > { %v15984_v23 = vpack.c.bf16 %v13056_v19, %v13054_v12  ;;  %v13579_v12 = vld [vmem:[%s18258_s5 + $0x1fc] ss:$48 sps:$4 sm:$0xff]   ;;  %v13577_v13 = vld [vmem:[%s18258_s5 + $0x1f8] ss:$48 sps:$4 sm:$0xff]   ;;  %v13582_v4 = vld [vmem:[%s18258_s5 + $0x184] ss:$48 sps:$4 sm:$0xff]  }
 0x1c5   : > { %v13580_v14 = vld [vmem:[%s18258_s5 + $0x180] ss:$48 sps:$4 sm:$0xff]   ;;  %v13585_v15 = vld [vmem:[%s18258_s5 + $0x25c] ss:$48 sps:$4 sm:$0xff]   ;;  %v13583_v16 = vld [vmem:[%s18258_s5 + $0x258] ss:$48 sps:$4 sm:$0xff]  }
 0x1c6   : > { %13008 = vmatprep.subr.bf16.mxu1 %v15984_v23  ;;  %3973 = vmatprep.mubr.bf16.mxu0 %v15984_v23  ;;  %v13588_v17 = vld [vmem:[%s18258_s5 + $0x1e4] ss:$48 sps:$4 sm:$0xff]   ;;  %v13591_v19 = vld [vmem:[%s18258_s5 + $0x2bc] ss:$48 sps:$4 sm:$0xff]   ;;  %v13589_v20 = vld [vmem:[%s18258_s5 + $0x2b8] ss:$48 sps:$4 sm:$0xff]  }
 0x1c7   : > { %13010 = vmatpush1.bf16.xpose.msra.mxu1 %v15982_v22  ;;  %3974 = vmatmul.mubr.bf16.vlgmr.msra.gmra.mrb[4].mxu0 %v15982_v22 }
 0x1c8   : > { %3985 = vmatpush1.bf16.msra.mxu0 %v13526_v21  ;;  %13011 = vmatprep.subr.bf16.mxu1 %v15158_v28  ;;  %v13594_v21 = vld [vmem:[%s18258_s5 + $0x244] ss:$48 sps:$4 sm:$0xff]  }
 0x1c9   : > { %3986 = vmatprep.subr.bf16.mxu0 %v13531_v25  ;;  %4016 = vmatprep.mubr.bf16.mxu0 %v15159_v30  ;;  %v13597_v25 = vld [vmem:[%s18258_s5 + $0x31c] ss:$48 sps:$4 sm:$0xff]  }
 0x1cc   : > { %3987 = vmatpush1.bf16.msra.mxu0 %v13529_v27  ;;  %v13595_v27 = vld [vmem:[%s18258_s5 + $0x318] ss:$48 sps:$4 sm:$0xff]  }
 0x1cd   : > { %3988 = vmatprep.subr.bf16.mxu0 %v13534_v29  ;;  %v13600_v29 = vld [vmem:[%s18258_s5 + $0x2a4] ss:$48 sps:$4 sm:$0xff]  }
 0x1ce   : > { %1983 = vmatmul.mubr.f32.vlgmr.msra.gmra.mrb[16].mxu1 %v1906_v32  ;;  %v13598_v32 = vld [vmem:[%s18258_s5 + $0x2a0] ss:$48 sps:$4 sm:$0xff]  }
 0x1cf   : > { %12936 = vmatprep.mubr.msk.f32.mxu1 %vm15160_vm0, %v15161_v35 }
 0x1d0   : > { %3989 = vmatpush1.bf16.msra.mxu0 %v13532_v31  ;;  %v13603_v31 = vld [vmem:[%s18258_s5 + $0x37c] ss:$48 sps:$4 sm:$0xff]  }
 0x1d1   : > { %3990 = vmatprep.subr.bf16.mxu0 %v13537_v33  ;;  %v13601_v33 = vld [vmem:[%s18258_s5 + $0x378] ss:$48 sps:$4 sm:$0xff]  }
 0x1d4   : > { %3991 = vmatpush1.bf16.msra.mxu0 %v13535_v34  ;;  %v13606_v34 = vld [vmem:[%s18258_s5 + $0x304] ss:$48 sps:$4 sm:$0xff]  }
 0x1d5   : > { %3992 = vmatprep.subr.bf16.mxu0 %v13540_v36  ;;  %v13604_v36 = vld [vmem:[%s18258_s5 + $0x300] ss:$48 sps:$4 sm:$0xff]  }
 0x1d8   : > { %3993 = vmatpush1.bf16.msra.mxu0 %v13538_v37  ;;  %v13609_v37 = vld [vmem:[%s18258_s5 + $0x3dc] ss:$48 sps:$4 sm:$0xff]  }
 0x1d9   : > { %3994 = vmatprep.subr.bf16.mxu0 %v13543_v38  ;;  %v13607_v38 = vld [vmem:[%s18258_s5 + $0x3d8] ss:$48 sps:$4 sm:$0xff]  }
 0x1dc   : > { %3995 = vmatpush1.bf16.msra.mxu0 %v13541_v39  ;;  %v13612_v39 = vld [vmem:[%s18258_s5 + $0x364] ss:$48 sps:$4 sm:$0xff]  }
 0x1dd   : > { %3996 = vmatprep.subr.bf16.mxu0 %v13546_v40  ;;  %v12710_v43 = vpop.f32.mrb[12].mxu1  ;;  %v13615_v40 = vld [vmem:[%s18258_s5 + $0x43c] ss:$48 sps:$4 sm:$0xff]  }
 0x1de   : > { %v12711_v45 = vpop.f32.mrb[13].mxu1 }
 0x1df   : > { %v12712_v46 = vadd.f32 %v12711_v45, %v12710_v43  ;;  %v12713_v47 = vpop.f32.mrb[14].mxu1  ;;  %v13618_v43 = vld [vmem:[%s18258_s5 + $0x3c4] ss:$48 sps:$4 sm:$0xff]   ;;  %v13621_v45 = vld [vmem:[%s18258_s5 + $0x49c] ss:$48 sps:$4 sm:$0xff]  }
 0x1e0   : > { %3997 = vmatpush1.bf16.msra.mxu0 %v13544_v41  ;;  %v12714_v48 = vpop.f32.mrb[15].mxu1  ;;  %v13610_v41 = vld [vmem:[%s18258_s5 + $0x360] ss:$48 sps:$4 sm:$0xff]  }
 0x1e1   : > { %3998 = vmatprep.subr.bf16.mxu0 %v13549_v42  ;;  %v1894_v50 = vadd.f32 %v12712_v46, %v1853_v18  ;;  %v12715_v51 = vadd.f32 %v12714_v48, %v12713_v47  ;;  %v13586_v18 = vld [vmem:[%s18258_s5 + $0x1e0] ss:$48 sps:$4 sm:$0xff]   ;;  %v13613_v42 = vld [vmem:[%s18258_s5 + $0x438] ss:$48 sps:$4 sm:$0xff]   ;;  %v13624_v47 = vld [vmem:[%s18258_s5 + $0x424] ss:$48 sps:$4 sm:$0xff]  }
 0x1e2   : > { %v13619_v46 = vld [vmem:[%s18258_s5 + $0x498] ss:$48 sps:$4 sm:$0xff]   ;;  %v13622_v48 = vld [vmem:[%s18258_s5 + $0x420] ss:$48 sps:$4 sm:$0xff]  }
 0x1e3   : > { %v1897_v52 = vadd.f32 %v12715_v51, %v1856_v24  ;;  %v13592_v24 = vld [vmem:[%s18258_s5 + $0x240] ss:$48 sps:$4 sm:$0xff]   ;;  %v13630_v51 = vld [vmem:[%s18258_s5 + $0x484] ss:$48 sps:$4 sm:$0xff]  }
 0x1e4   : > { %3999 = vmatpush1.bf16.msra.mxu0 %v13547_v44  ;;  %v13616_v44 = vld [vmem:[%s18258_s5 + $0x3c0] ss:$48 sps:$4 sm:$0xff]  }
 0x1e5   : > { %4113 = vmatprep.subr.bf16.mxu0 %v13552_v49  ;;  %v16050_v55 = vpack.c.bf16 %v1897_v52, %v1894_v50  ;;  %v13627_v49 = vld [vmem:[%s18258_s5 + $0x4fc] ss:$48 sps:$4 sm:$0xff]   ;;  %v13625_v50 = vld [vmem:[%s18258_s5 + $0x4f8] ss:$48 sps:$4 sm:$0xff]   ;;  %v13628_v52 = vld [vmem:[%s18258_s5 + $0x480] ss:$48 sps:$4 sm:$0xff]  }
 0x1e7   : > { %13013 = vmatpush3.bf16.xpose.msra.mxu1 %v16050_v55  ;;  %4017 = vmatmul.mubr.bf16.vlgmr.msra.gmra.mrb[4].mxu0 %v16050_v55 }
 0x1e8   : > { %4114 = vmatpush1.bf16.msra.mxu0 %v13550_v53  ;;  %4145 = vmatprep.mubr.bf16.mxu0 %v15984_v23  ;;  %v13633_v53 = vld [vmem:[%s18258_s5 + $0x55c] ss:$48 sps:$4 sm:$0xff]  }
 0x1e9   : > { %4115 = vmatprep.subr.bf16.mxu0 %v13555_v54  ;;  %3855 = vmatprep.subr.bf16.mxu1 %v13558_v59  ;;  %v13631_v54 = vld [vmem:[%s18258_s5 + $0x558] ss:$48 sps:$4 sm:$0xff]   ;;  %v13636_v59 = vld [vmem:[%s18258_s5 + $0x4e4] ss:$48 sps:$4 sm:$0xff]  }
 0x1ec   : > { %4116 = vmatpush1.bf16.msra.mxu0 %v13553_v61  ;;  %v13634_v61 = vld [vmem:[%s18258_s5 + $0x4e0] ss:$48 sps:$4 sm:$0xff]  }
 0x1ed   : > { %4117 = vmatprep.subr.bf16.mxu0 %v13561_v62  ;;  %v13639_v62 = vld [vmem:[%s18258_s5 + $0x5bc] ss:$48 sps:$4 sm:$0xff]  }
 0x1ee   : > { %12937 = vmatmul.mubr.f32.vlgmr.msra.gmra.mrb[16].mxu1 %v1914_v0  ;;  %v13642_v0 = vld [vmem:[%s18258_s5 + $0x544] ss:$48 sps:$4 sm:$0xff]  }
 0x1ef   : > { %3856 = vmatpush1.bf16.msra.mxu1 %v13556_v63  ;;  %3887 = vmatprep.mubr.bf16.mxu1 %v15984_v23  ;;  %v13637_v63 = vld [vmem:[%s18258_s5 + $0x5b8] ss:$48 sps:$4 sm:$0xff]  }
 0x1f0   : > { %4118 = vmatpush1.bf16.msra.mxu0 %v13559_v1  ;;  %3857 = vmatprep.subr.bf16.mxu1 %v13564_v2  ;;  %v13640_v1 = vld [vmem:[%s18258_s5 + $0x540] ss:$48 sps:$4 sm:$0xff]   ;;  %v13645_v2 = vld [vmem:[%s18258_s5 + $0x61c] ss:$48 sps:$4 sm:$0xff]  }
 0x1f1   : > { %4119 = vmatprep.subr.bf16.mxu0 %v13567_v5  ;;  %v13648_v5 = vld [vmem:[%s18258_s5 + $0x5a4] ss:$48 sps:$4 sm:$0xff]  }
 0x1f3   : > { %3858 = vmatpush1.bf16.msra.mxu1 %v13562_v3  ;;  %v13643_v3 = vld [vmem:[%s18258_s5 + $0x618] ss:$48 sps:$4 sm:$0xff]  }
 0x1f4   : > { %4120 = vmatpush1.bf16.msra.mxu0 %v13565_v58  ;;  %3859 = vmatprep.subr.bf16.mxu1 %v13570_v6  ;;  %v13651_v58 = vld [vmem:[%s18258_s5 + $0x67c] ss:$48 sps:$4 sm:$0xff]   ;;  %v13646_v6 = vld [vmem:[%s18258_s5 + $0x5a0] ss:$48 sps:$4 sm:$0xff]  }
 0x1f5   : > { %4121 = vmatprep.subr.bf16.mxu0 %v13573_v8  ;;  %v13654_v8 = vld [vmem:[%s18258_s5 + $0x604] ss:$48 sps:$4 sm:$0xff]  }
 0x1f7   : > { %3860 = vmatpush1.bf16.msra.mxu1 %v13568_v7  ;;  %v13649_v7 = vld [vmem:[%s18258_s5 + $0x678] ss:$48 sps:$4 sm:$0xff]  }
 0x1f8   : > { %4122 = vmatpush1.bf16.msra.mxu0 %v13571_v9  ;;  %3861 = vmatprep.subr.bf16.mxu1 %v13576_v10  ;;  %v13657_v9 = vld [vmem:[%s18258_s5 + $0x6dc] ss:$48 sps:$4 sm:$0xff]   ;;  %v13652_v10 = vld [vmem:[%s18258_s5 + $0x600] ss:$48 sps:$4 sm:$0xff]  }
 0x1f9   : > { %4123 = vmatprep.subr.bf16.mxu0 %v13579_v12  ;;  %v13660_v12 = vld [vmem:[%s18258_s5 + $0x664] ss:$48 sps:$4 sm:$0xff]  }
 0x1fb   : > { %3862 = vmatpush1.bf16.msra.mxu1 %v13574_v11  ;;  %v13655_v11 = vld [vmem:[%s18258_s5 + $0x6d8] ss:$48 sps:$4 sm:$0xff]  }
 0x1fc   : > { %4124 = vmatpush1.bf16.msra.mxu0 %v13577_v13  ;;  %3863 = vmatprep.subr.bf16.mxu1 %v13582_v4  ;;  %v13658_v13 = vld [vmem:[%s18258_s5 + $0x660] ss:$48 sps:$4 sm:$0xff]   ;;  %v13663_v4 = vld [vmem:[%s18258_s5 + $0x73c] ss:$48 sps:$4 sm:$0xff]  }
 0x1fd   : > { %4125 = vmatprep.subr.bf16.mxu0 %v13585_v15  ;;  %v13666_v15 = vld [vmem:[%s18258_s5 + $0x6c4] ss:$48 sps:$4 sm:$0xff]  }
 0x1ff   : > { %3864 = vmatpush1.bf16.msra.mxu1 %v13580_v14  ;;  %v13661_v14 = vld [vmem:[%s18258_s5 + $0x738] ss:$48 sps:$4 sm:$0xff]  }
 0x200   : > { %4126 = vmatpush1.bf16.msra.mxu0 %v13583_v16  ;;  %3865 = vmatprep.subr.bf16.mxu1 %v13588_v17  ;;  %v13669_v16 = vld [vmem:[%s18258_s5 + $0x79c] ss:$48 sps:$4 sm:$0xff]   ;;  %v13664_v17 = vld [vmem:[%s18258_s5 + $0x6c0] ss:$48 sps:$4 sm:$0xff]  }
 0x201   : > { %4127 = vmatprep.subr.bf16.mxu0 %v13591_v19  ;;  %v13672_v19 = vld [vmem:[%s18258_s5 + $0x724] ss:$48 sps:$4 sm:$0xff]  }
 0x203   : > { %3866 = vmatpush1.bf16.msra.mxu1 %v13586_v18  ;;  %v13667_v18 = vld [vmem:[%s18258_s5 + $0x798] ss:$48 sps:$4 sm:$0xff]  }
 0x204   : > { %4128 = vmatpush1.bf16.msra.mxu0 %v13589_v20  ;;  %3867 = vmatprep.subr.bf16.mxu1 %v13594_v21  ;;  %v13675_v20 = vld [vmem:[%s18258_s5 + $0x7fc] ss:$48 sps:$4 sm:$0xff]   ;;  %v13670_v21 = vld [vmem:[%s18258_s5 + $0x720] ss:$48 sps:$4 sm:$0xff]  }
 0x205   : > { %4129 = vmatprep.subr.bf16.mxu0 %v13597_v25  ;;  %v13678_v25 = vld [vmem:[%s18258_s5 + $0x784] ss:$48 sps:$4 sm:$0xff]  }
 0x207   : > { %3868 = vmatpush1.bf16.msra.mxu1 %v13592_v24  ;;  %v13673_v24 = vld [vmem:[%s18258_s5 + $0x7f8] ss:$48 sps:$4 sm:$0xff]  }
 0x208   : > { %4130 = vmatpush1.bf16.msra.mxu0 %v13595_v27  ;;  %3869 = vmatprep.subr.bf16.mxu1 %v13600_v29  ;;  %v13676_v27 = vld [vmem:[%s18258_s5 + $0x780] ss:$48 sps:$4 sm:$0xff]   ;;  %v13681_v29 = vld [vmem:[%s18258_s5 + $0x85c] ss:$48 sps:$4 sm:$0xff]  }
 0x209   : > { %4131 = vmatprep.subr.bf16.mxu0 %v13603_v31  ;;  %v13679_v31 = vld [vmem:[%s18258_s5 + $0x858] ss:$48 sps:$4 sm:$0xff]  }
 0x20b   : > { %3870 = vmatpush1.bf16.msra.mxu1 %v13598_v32  ;;  %v13684_v32 = vld [vmem:[%s18258_s5 + $0x7e4] ss:$48 sps:$4 sm:$0xff]  }
 0x20c   : > { %4132 = vmatpush1.bf16.msra.mxu0 %v13601_v33  ;;  %3871 = vmatprep.subr.bf16.mxu1 %v13606_v34  ;;  %v13682_v33 = vld [vmem:[%s18258_s5 + $0x7e0] ss:$48 sps:$4 sm:$0xff]   ;;  %v13687_v34 = vld [vmem:[%s18258_s5 + $0x8bc] ss:$48 sps:$4 sm:$0xff]  }
 0x20d   : > { %4133 = vmatprep.subr.bf16.mxu0 %v13609_v37  ;;  %v13690_v37 = vld [vmem:[%s18258_s5 + $0x844] ss:$48 sps:$4 sm:$0xff]  }
 0x20f   : > { %3872 = vmatpush1.bf16.msra.mxu1 %v13604_v36  ;;  %v13685_v36 = vld [vmem:[%s18258_s5 + $0x8b8] ss:$48 sps:$4 sm:$0xff]  }
 0x210   : > { %4134 = vmatpush1.bf16.msra.mxu0 %v13607_v38  ;;  %3873 = vmatprep.subr.bf16.mxu1 %v13612_v39  ;;  %v13688_v38 = vld [vmem:[%s18258_s5 + $0x840] ss:$48 sps:$4 sm:$0xff]   ;;  %v13693_v39 = vld [vmem:[%s18258_s5 + $0x2c] ss:$48 sps:$4 sm:$0xff]  }
 0x211   : > { %4135 = vmatprep.subr.bf16.mxu0 %v13615_v40  ;;  %v13691_v40 = vld [vmem:[%s18258_s5 + $0x28] ss:$48 sps:$4 sm:$0xff]  }
 0x213   : > { %3874 = vmatpush1.bf16.msra.mxu1 %v13610_v41  ;;  %v13696_v41 = vld [vmem:[%s18258_s5 + $0x8a4] ss:$48 sps:$4 sm:$0xff]  }
 0x214   : > { %4136 = vmatpush1.bf16.msra.mxu0 %v13613_v42  ;;  %3875 = vmatprep.subr.bf16.mxu1 %v13618_v43  ;;  %v13699_v42 = vld [vmem:[%s18258_s5 + $0x8c] ss:$48 sps:$4 sm:$0xff]   ;;  %v13694_v43 = vld [vmem:[%s18258_s5 + $0x8a0] ss:$48 sps:$4 sm:$0xff]  }
 0x215   : > { %4137 = vmatprep.subr.bf16.mxu0 %v13621_v45  ;;  %v13702_v45 = vld [vmem:[%s18258_s5 + $0x14] ss:$48 sps:$4 sm:$0xff]  }
 0x217   : > { %3876 = vmatpush1.bf16.msra.mxu1 %v13616_v44  ;;  %v13697_v44 = vld [vmem:[%s18258_s5 + $0x88] ss:$48 sps:$4 sm:$0xff]  }
 0x218   : > { %4138 = vmatpush1.bf16.msra.mxu0 %v13619_v46  ;;  %3877 = vmatprep.subr.bf16.mxu1 %v13624_v47  ;;  %v13705_v46 = vld [vmem:[%s18258_s5 + $0xec] ss:$48 sps:$4 sm:$0xff]   ;;  %v13700_v47 = vld [vmem:[%s18258_s5 + $0x10] ss:$48 sps:$4 sm:$0xff]  }
 0x219   : > { %4139 = vmatprep.subr.bf16.mxu0 %v13627_v49  ;;  %v13708_v49 = vld [vmem:[%s18258_s5 + $0x74] ss:$48 sps:$4 sm:$0xff]  }
 0x21b   : > { %3878 = vmatpush1.bf16.msra.mxu1 %v13622_v48  ;;  %v13703_v48 = vld [vmem:[%s18258_s5 + $0xe8] ss:$48 sps:$4 sm:$0xff]  }
 0x21c   : > { %4140 = vmatpush1.bf16.msra.mxu0 %v13625_v50  ;;  %3879 = vmatprep.subr.bf16.mxu1 %v13630_v51  ;;  %v13711_v50 = vld [vmem:[%s18258_s5 + $0x14c] ss:$48 sps:$4 sm:$0xff]   ;;  %v13706_v51 = vld [vmem:[%s18258_s5 + $0x70] ss:$48 sps:$4 sm:$0xff]  }
 0x21d   : > { %4141 = vmatprep.subr.bf16.mxu0 %v13633_v53  ;;  %v13714_v53 = vld [vmem:[%s18258_s5 + $0xd4] ss:$48 sps:$4 sm:$0xff]  }
 0x21f   : > { %3880 = vmatpush1.bf16.msra.mxu1 %v13628_v52  ;;  %v13709_v52 = vld [vmem:[%s18258_s5 + $0x148] ss:$48 sps:$4 sm:$0xff]  }
 0x220   : > { %4142 = vmatpush1.bf16.msra.mxu0 %v13631_v54  ;;  %3881 = vmatprep.subr.bf16.mxu1 %v13636_v59  ;;  %v13717_v54 = vld [vmem:[%s18258_s5 + $0x1ac] ss:$48 sps:$4 sm:$0xff]   ;;  %v13712_v59 = vld [vmem:[%s18258_s5 + $0xd0] ss:$48 sps:$4 sm:$0xff]  }
 0x221   : > { %4143 = vmatprep.subr.bf16.mxu0 %v13639_v62  ;;  %v13720_v62 = vld [vmem:[%s18258_s5 + $0x134] ss:$48 sps:$4 sm:$0xff]  }
 0x223   : > { %3882 = vmatpush1.bf16.msra.mxu1 %v13634_v61  ;;  %v13715_v61 = vld [vmem:[%s18258_s5 + $0x1a8] ss:$48 sps:$4 sm:$0xff]  }
 0x224   : > { %4144 = vmatpush1.bf16.msra.mxu0 %v13637_v63  ;;  %3883 = vmatprep.subr.bf16.mxu1 %v13642_v0  ;;  %v13723_v63 = vld [vmem:[%s18258_s5 + $0x20c] ss:$48 sps:$4 sm:$0xff]   ;;  %v13718_v0 = vld [vmem:[%s18258_s5 + $0x130] ss:$48 sps:$4 sm:$0xff]  }
 0x225   : > { %4156 = vmatprep.subr.bf16.mxu0 %v13645_v2  ;;  %v13726_v2 = vld [vmem:[%s18258_s5 + $0x194] ss:$48 sps:$4 sm:$0xff]  }
 0x227   : > { %4146 = vmatmul.mubr.bf16.vlgmr.msra.gmra.mrb[8].mxu0 %v15982_v22  ;;  %3884 = vmatpush1.bf16.msra.mxu1 %v13640_v1  ;;  %v13721_v1 = vld [vmem:[%s18258_s5 + $0x208] ss:$48 sps:$4 sm:$0xff]  }
 0x228   : > { %4157 = vmatpush1.bf16.msra.mxu0 %v13643_v3  ;;  %3885 = vmatprep.subr.bf16.mxu1 %v13648_v5  ;;  %v13729_v3 = vld [vmem:[%s18258_s5 + $0x26c] ss:$48 sps:$4 sm:$0xff]   ;;  %v13724_v5 = vld [vmem:[%s18258_s5 + $0x190] ss:$48 sps:$4 sm:$0xff]  }
 0x229   : > { %4158 = vmatprep.subr.bf16.mxu0 %v13651_v58  ;;  %4188 = vmatprep.mubr.bf16.mxu0 %v15159_v30  ;;  %v13727_v58 = vld [vmem:[%s18258_s5 + $0x268] ss:$48 sps:$4 sm:$0xff]  }
 0x22b   : > { %3886 = vmatpush1.bf16.msra.mxu1 %v13646_v6  ;;  %v13732_v6 = vld [vmem:[%s18258_s5 + $0x1f4] ss:$48 sps:$4 sm:$0xff]  }
 0x22c   : > { %4159 = vmatpush1.bf16.msra.mxu0 %v13649_v7  ;;  %3898 = vmatprep.subr.bf16.mxu1 %v13654_v8  ;;  %v13735_v7 = vld [vmem:[%s18258_s5 + $0x2cc] ss:$48 sps:$4 sm:$0xff]   ;;  %v13730_v8 = vld [vmem:[%s18258_s5 + $0x1f0] ss:$48 sps:$4 sm:$0xff]  }
 0x22d   : > { %4160 = vmatprep.subr.bf16.mxu0 %v13657_v9  ;;  %v13733_v9 = vld [vmem:[%s18258_s5 + $0x2c8] ss:$48 sps:$4 sm:$0xff]  }
 0x22e   : > { %3888 = vmatmul.mubr.bf16.vlgmr.msra.gmra.mrb[20].mxu1 %v15982_v22 }
 0x22f   : > { %3899 = vmatpush1.bf16.msra.mxu1 %v13652_v10  ;;  %3930 = vmatprep.mubr.bf16.mxu1 %v15159_v30  ;;  %v13738_v10 = vld [vmem:[%s18258_s5 + $0x254] ss:$48 sps:$4 sm:$0xff]  }
 0x230   : > { %4161 = vmatpush1.bf16.msra.mxu0 %v13655_v11  ;;  %3900 = vmatprep.subr.bf16.mxu1 %v13660_v12  ;;  %v13741_v11 = vld [vmem:[%s18258_s5 + $0x32c] ss:$48 sps:$4 sm:$0xff]   ;;  %v13736_v12 = vld [vmem:[%s18258_s5 + $0x250] ss:$48 sps:$4 sm:$0xff]  }
 0x231   : > { %4162 = vmatprep.subr.bf16.mxu0 %v13663_v4  ;;  %v13744_v4 = vld [vmem:[%s18258_s5 + $0x2b4] ss:$48 sps:$4 sm:$0xff]  }
 0x233   : > { %3901 = vmatpush1.bf16.msra.mxu1 %v13658_v13  ;;  %v13739_v13 = vld [vmem:[%s18258_s5 + $0x328] ss:$48 sps:$4 sm:$0xff]  }
 0x234   : > { %4163 = vmatpush1.bf16.msra.mxu0 %v13661_v14  ;;  %3902 = vmatprep.subr.bf16.mxu1 %v13666_v15  ;;  %v13747_v14 = vld [vmem:[%s18258_s5 + $0x38c] ss:$48 sps:$4 sm:$0xff]   ;;  %v13742_v15 = vld [vmem:[%s18258_s5 + $0x2b0] ss:$48 sps:$4 sm:$0xff]  }
 0x235   : > { %4164 = vmatprep.subr.bf16.mxu0 %v13669_v16  ;;  %v13745_v16 = vld [vmem:[%s18258_s5 + $0x388] ss:$48 sps:$4 sm:$0xff]  }
 0x237   : > { %3903 = vmatpush1.bf16.msra.mxu1 %v13664_v17  ;;  %v13750_v17 = vld [vmem:[%s18258_s5 + $0x314] ss:$48 sps:$4 sm:$0xff]  }
 0x238   : > { %4165 = vmatpush1.bf16.msra.mxu0 %v13667_v18  ;;  %3904 = vmatprep.subr.bf16.mxu1 %v13672_v19  ;;  %v13753_v18 = vld [vmem:[%s18258_s5 + $0x3ec] ss:$48 sps:$4 sm:$0xff]   ;;  %v13748_v19 = vld [vmem:[%s18258_s5 + $0x310] ss:$48 sps:$4 sm:$0xff]  }
 0x239   : > { %4166 = vmatprep.subr.bf16.mxu0 %v13675_v20  ;;  %v13751_v20 = vld [vmem:[%s18258_s5 + $0x3e8] ss:$48 sps:$4 sm:$0xff]  }
 0x23b   : > { %3905 = vmatpush1.bf16.msra.mxu1 %v13670_v21  ;;  %v13756_v21 = vld [vmem:[%s18258_s5 + $0x374] ss:$48 sps:$4 sm:$0xff]  }
 0x23c   : > { %4167 = vmatpush1.bf16.msra.mxu0 %v13673_v24  ;;  %3906 = vmatprep.subr.bf16.mxu1 %v13678_v25  ;;  %v13754_v24 = vld [vmem:[%s18258_s5 + $0x370] ss:$48 sps:$4 sm:$0xff]   ;;  %v13759_v25 = vld [vmem:[%s18258_s5 + $0x44c] ss:$48 sps:$4 sm:$0xff]  }
 0x23d   : > { %4168 = vmatprep.subr.bf16.mxu0 %v13681_v29  ;;  %v13762_v29 = vld [vmem:[%s18258_s5 + $0x3d4] ss:$48 sps:$4 sm:$0xff]  }
 0x23f   : > { %3907 = vmatpush1.bf16.msra.mxu1 %v13676_v27  ;;  %v13757_v27 = vld [vmem:[%s18258_s5 + $0x448] ss:$48 sps:$4 sm:$0xff]  }
 0x240   : > { %4169 = vmatpush1.bf16.msra.mxu0 %v13679_v31  ;;  %3908 = vmatprep.subr.bf16.mxu1 %v13684_v32  ;;  %v13765_v31 = vld [vmem:[%s18258_s5 + $0x4ac] ss:$48 sps:$4 sm:$0xff]   ;;  %v13760_v32 = vld [vmem:[%s18258_s5 + $0x3d0] ss:$48 sps:$4 sm:$0xff]  }
 0x241   : > { %4170 = vmatprep.subr.bf16.mxu0 %v13687_v34  ;;  %v13768_v34 = vld [vmem:[%s18258_s5 + $0x434] ss:$48 sps:$4 sm:$0xff]  }
 0x243   : > { %3909 = vmatpush1.bf16.msra.mxu1 %v13682_v33  ;;  %v13763_v33 = vld [vmem:[%s18258_s5 + $0x4a8] ss:$48 sps:$4 sm:$0xff]  }
 0x244   : > { %4171 = vmatpush1.bf16.msra.mxu0 %v13685_v36  ;;  %3910 = vmatprep.subr.bf16.mxu1 %v13690_v37  ;;  %v13771_v36 = vld [vmem:[%s18258_s5 + $0x50c] ss:$48 sps:$4 sm:$0xff]   ;;  %v13766_v37 = vld [vmem:[%s18258_s5 + $0x430] ss:$48 sps:$4 sm:$0xff]  }
 0x245   : > { %4285 = vmatprep.subr.bf16.mxu0 %v13693_v39  ;;  %v13774_v39 = vld [vmem:[%s18258_s5 + $0x494] ss:$48 sps:$4 sm:$0xff]  }
 0x247   : > { %4189 = vmatmul.mubr.bf16.vlgmr.msra.gmra.mrb[8].mxu0 %v16050_v55  ;;  %3911 = vmatpush1.bf16.msra.mxu1 %v13688_v38  ;;  %v13769_v38 = vld [vmem:[%s18258_s5 + $0x508] ss:$48 sps:$4 sm:$0xff]  }
 0x248   : > { %4286 = vmatpush1.bf16.msra.mxu0 %v13691_v40  ;;  %4317 = vmatprep.mubr.bf16.mxu0 %v15984_v23  ;;  %v13777_v40 = vld [vmem:[%s18258_s5 + $0x56c] ss:$48 sps:$4 sm:$0xff]  }
 0x249   : > { %3912 = vmatprep.subr.bf16.mxu1 %v13696_v41  ;;  %4287 = vmatprep.subr.bf16.mxu0 %v13699_v42  ;;  %v13772_v41 = vld [vmem:[%s18258_s5 + $0x490] ss:$48 sps:$4 sm:$0xff]   ;;  %v13775_v42 = vld [vmem:[%s18258_s5 + $0x568] ss:$48 sps:$4 sm:$0xff]  }
 0x24b   : > { %3913 = vmatpush1.bf16.msra.mxu1 %v13694_v43  ;;  %v13780_v43 = vld [vmem:[%s18258_s5 + $0x4f4] ss:$48 sps:$4 sm:$0xff]  }
 0x24c   : > { %4288 = vmatpush1.bf16.msra.mxu0 %v13697_v44  ;;  %4027 = vmatprep.subr.bf16.mxu1 %v13702_v45  ;;  %v13783_v44 = vld [vmem:[%s18258_s5 + $0x5cc] ss:$48 sps:$4 sm:$0xff]   ;;  %v13778_v45 = vld [vmem:[%s18258_s5 + $0x4f0] ss:$48 sps:$4 sm:$0xff]  }
 0x24d   : > { %4289 = vmatprep.subr.bf16.mxu0 %v13705_v46  ;;  %v13781_v46 = vld [vmem:[%s18258_s5 + $0x5c8] ss:$48 sps:$4 sm:$0xff]  }
 0x24e   : > { %3931 = vmatmul.mubr.bf16.vlgmr.msra.gmra.mrb[20].mxu1 %v16050_v55 }
 0x24f   : > { %4028 = vmatpush1.bf16.msra.mxu1 %v13700_v47  ;;  %4059 = vmatprep.mubr.bf16.mxu1 %v15984_v23  ;;  %v13786_v47 = vld [vmem:[%s18258_s5 + $0x554] ss:$48 sps:$4 sm:$0xff]  }
 0x250   : > { %4290 = vmatpush1.bf16.msra.mxu0 %v13703_v48  ;;  %4029 = vmatprep.subr.bf16.mxu1 %v13708_v49  ;;  %v13789_v48 = vld [vmem:[%s18258_s5 + $0x62c] ss:$48 sps:$4 sm:$0xff]   ;;  %v13784_v49 = vld [vmem:[%s18258_s5 + $0x550] ss:$48 sps:$4 sm:$0xff]  }
 0x251   : > { %4291 = vmatprep.subr.bf16.mxu0 %v13711_v50  ;;  %v13787_v50 = vld [vmem:[%s18258_s5 + $0x628] ss:$48 sps:$4 sm:$0xff]  }
 0x253   : > { %4030 = vmatpush1.bf16.msra.mxu1 %v13706_v51  ;;  %v13792_v51 = vld [vmem:[%s18258_s5 + $0x5b4] ss:$48 sps:$4 sm:$0xff]  }
 0x254   : > { %4292 = vmatpush1.bf16.msra.mxu0 %v13709_v52  ;;  %4031 = vmatprep.subr.bf16.mxu1 %v13714_v53  ;;  %v13795_v52 = vld [vmem:[%s18258_s5 + $0x68c] ss:$48 sps:$4 sm:$0xff]   ;;  %v13790_v53 = vld [vmem:[%s18258_s5 + $0x5b0] ss:$48 sps:$4 sm:$0xff]  }
 0x255   : > { %4293 = vmatprep.subr.bf16.mxu0 %v13717_v54  ;;  %v13793_v54 = vld [vmem:[%s18258_s5 + $0x688] ss:$48 sps:$4 sm:$0xff]  }
 0x257   : > { %4032 = vmatpush1.bf16.msra.mxu1 %v13712_v59  ;;  %v13798_v59 = vld [vmem:[%s18258_s5 + $0x614] ss:$48 sps:$4 sm:$0xff]  }
 0x258   : > { %4294 = vmatpush1.bf16.msra.mxu0 %v13715_v61  ;;  %4033 = vmatprep.subr.bf16.mxu1 %v13720_v62  ;;  %v13801_v61 = vld [vmem:[%s18258_s5 + $0x6ec] ss:$48 sps:$4 sm:$0xff]   ;;  %v13796_v62 = vld [vmem:[%s18258_s5 + $0x610] ss:$48 sps:$4 sm:$0xff]  }
 0x259   : > { %4295 = vmatprep.subr.bf16.mxu0 %v13723_v63  ;;  %v13799_v63 = vld [vmem:[%s18258_s5 + $0x6e8] ss:$48 sps:$4 sm:$0xff]  }
 0x25b   : > { %4034 = vmatpush1.bf16.msra.mxu1 %v13718_v0  ;;  %v13804_v0 = vld [vmem:[%s18258_s5 + $0x674] ss:$48 sps:$4 sm:$0xff]  }
 0x25c   : > { %4296 = vmatpush1.bf16.msra.mxu0 %v13721_v1  ;;  %4035 = vmatprep.subr.bf16.mxu1 %v13726_v2  ;;  %v13807_v1 = vld [vmem:[%s18258_s5 + $0x74c] ss:$48 sps:$4 sm:$0xff]   ;;  %v13802_v2 = vld [vmem:[%s18258_s5 + $0x670] ss:$48 sps:$4 sm:$0xff]  }
 0x25d   : > { %4297 = vmatprep.subr.bf16.mxu0 %v13729_v3  ;;  %v13805_v3 = vld [vmem:[%s18258_s5 + $0x748] ss:$48 sps:$4 sm:$0xff]  }
 0x25f   : > { %4036 = vmatpush1.bf16.msra.mxu1 %v13724_v5  ;;  %v13810_v5 = vld [vmem:[%s18258_s5 + $0x6d4] ss:$48 sps:$4 sm:$0xff]  }
 0x260   : > { %4298 = vmatpush1.bf16.msra.mxu0 %v13727_v58  ;;  %4037 = vmatprep.subr.bf16.mxu1 %v13732_v6  ;;  %v13813_v58 = vld [vmem:[%s18258_s5 + $0x7ac] ss:$48 sps:$4 sm:$0xff]   ;;  %v13808_v6 = vld [vmem:[%s18258_s5 + $0x6d0] ss:$48 sps:$4 sm:$0xff]  }
 0x261   : > { %4299 = vmatprep.subr.bf16.mxu0 %v13735_v7  ;;  %v13811_v7 = vld [vmem:[%s18258_s5 + $0x7a8] ss:$48 sps:$4 sm:$0xff]  }
 0x263   : > { %4038 = vmatpush1.bf16.msra.mxu1 %v13730_v8  ;;  %v13816_v8 = vld [vmem:[%s18258_s5 + $0x734] ss:$48 sps:$4 sm:$0xff]  }
 0x264   : > { %4300 = vmatpush1.bf16.msra.mxu0 %v13733_v9  ;;  %4039 = vmatprep.subr.bf16.mxu1 %v13738_v10  ;;  %v13819_v9 = vld [vmem:[%s18258_s5 + $0x80c] ss:$48 sps:$4 sm:$0xff]   ;;  %v13814_v10 = vld [vmem:[%s18258_s5 + $0x730] ss:$48 sps:$4 sm:$0xff]  }
 0x265   : > { %4301 = vmatprep.subr.bf16.mxu0 %v13741_v11  ;;  %v13817_v11 = vld [vmem:[%s18258_s5 + $0x808] ss:$48 sps:$4 sm:$0xff]  }
 0x267   : > { %4040 = vmatpush1.bf16.msra.mxu1 %v13736_v12  ;;  %v13822_v12 = vld [vmem:[%s18258_s5 + $0x794] ss:$48 sps:$4 sm:$0xff]  }
 0x268   : > { %4302 = vmatpush1.bf16.msra.mxu0 %v13739_v13  ;;  %4041 = vmatprep.subr.bf16.mxu1 %v13744_v4  ;;  %v13825_v13 = vld [vmem:[%s18258_s5 + $0x86c] ss:$48 sps:$4 sm:$0xff]   ;;  %v13820_v4 = vld [vmem:[%s18258_s5 + $0x790] ss:$48 sps:$4 sm:$0xff]  }
 0x269   : > { %4303 = vmatprep.subr.bf16.mxu0 %v13747_v14  ;;  %v13823_v14 = vld [vmem:[%s18258_s5 + $0x868] ss:$48 sps:$4 sm:$0xff]  }
 0x26b   : > { %4042 = vmatpush1.bf16.msra.mxu1 %v13742_v15  ;;  %v13828_v15 = vld [vmem:[%s18258_s5 + $0x7f4] ss:$48 sps:$4 sm:$0xff]  }
 0x26c   : > { %4304 = vmatpush1.bf16.msra.mxu0 %v13745_v16  ;;  %4043 = vmatprep.subr.bf16.mxu1 %v13750_v17  ;;  %v13831_v16 = vld [vmem:[%s18258_s5 + $0x8cc] ss:$48 sps:$4 sm:$0xff]   ;;  %v13826_v17 = vld [vmem:[%s18258_s5 + $0x7f0] ss:$48 sps:$4 sm:$0xff]  }
 0x26d   : > { %4305 = vmatprep.subr.bf16.mxu0 %v13753_v18  ;;  %v13829_v18 = vld [vmem:[%s18258_s5 + $0x8c8] ss:$48 sps:$4 sm:$0xff]  }
 0x26f   : > { %4044 = vmatpush1.bf16.msra.mxu1 %v13748_v19  ;;  %v13834_v19 = vld [vmem:[%s18258_s5 + $0x854] ss:$48 sps:$4 sm:$0xff]  }
 0x270   : > { %4306 = vmatpush1.bf16.msra.mxu0 %v13751_v20  ;;  %4045 = vmatprep.subr.bf16.mxu1 %v13756_v21  ;;  %v13832_v20 = vld [vmem:[%s18258_s5 + $0x850] ss:$48 sps:$4 sm:$0xff]   ;;  %v13837_v21 = vld [vmem:[%s18258_s5 + $0x8b4] ss:$48 sps:$4 sm:$0xff]  }
 0x271   : > { %4307 = vmatprep.subr.bf16.mxu0 %v13759_v25  ;;  %v13840_v25 = vld [vmem:[%s18258_s5 + $0x24] ss:$48 sps:$4 sm:$0xff]  }
 0x273   : > { %4046 = vmatpush1.bf16.msra.mxu1 %v13754_v24  ;;  %v13835_v24 = vld [vmem:[%s18258_s5 + $0x8b0] ss:$48 sps:$4 sm:$0xff]  }
 0x274   : > { %4308 = vmatpush1.bf16.msra.mxu0 %v13757_v27  ;;  %4047 = vmatprep.subr.bf16.mxu1 %v13762_v29  ;;  %v13838_v27 = vld [vmem:[%s18258_s5 + $0x20] ss:$48 sps:$4 sm:$0xff]   ;;  %v13843_v29 = vld [vmem:[%s18258_s5 + $0x84] ss:$48 sps:$4 sm:$0xff]  }
 0x275   : > { %4309 = vmatprep.subr.bf16.mxu0 %v13765_v31  ;;  %v13841_v31 = vld [vmem:[%s18258_s5 + $0x80] ss:$48 sps:$4 sm:$0xff]  }
 0x277   : > { %4048 = vmatpush1.bf16.msra.mxu1 %v13760_v32  ;;  %v13846_v32 = vld [vmem:[%s18258_s5 + $0xe4] ss:$48 sps:$4 sm:$0xff]  }
 0x278   : > { %4310 = vmatpush1.bf16.msra.mxu0 %v13763_v33  ;;  %4049 = vmatprep.subr.bf16.mxu1 %v13768_v34  ;;  %v13844_v33 = vld [vmem:[%s18258_s5 + $0xe0] ss:$48 sps:$4 sm:$0xff]  }
 0x279   : > { %4311 = vmatprep.subr.bf16.mxu0 %v13771_v36  ;;  %v13847_v34 = vld [vmem:[%s18258_s5 + $0x140] ss:$48 sps:$4 sm:$0xff]   ;;  %v13852_v36 = vld [vmem:[%s18258_s5 + $0x1a4] ss:$48 sps:$4 sm:$0xff]  }
 0x27b   : > { %4050 = vmatpush1.bf16.msra.mxu1 %v13766_v37 }
 0x27c   : > { %4312 = vmatpush1.bf16.msra.mxu0 %v13769_v38  ;;  %4051 = vmatprep.subr.bf16.mxu1 %v13774_v39  ;;  %v13850_v39 = vld [vmem:[%s18258_s5 + $0x1a0] ss:$48 sps:$4 sm:$0xff]  }
 0x27d   : > { %4313 = vmatprep.subr.bf16.mxu0 %v13777_v40 }
 0x27f   : > { %4052 = vmatpush1.bf16.msra.mxu1 %v13772_v41  ;;  %v13855_v41 = vld [vmem:[%s18258_s5 + $0x204] ss:$48 sps:$4 sm:$0xff]  }
 0x280   : > { %4314 = vmatpush1.bf16.msra.mxu0 %v13775_v42  ;;  %4053 = vmatprep.subr.bf16.mxu1 %v13780_v43  ;;  %v1901_v43 = vstv %s648_s23  ;;  %s630_s23 = scalar_lea.vmem [#allocation9], %s16685_s18 }
 0x281   : > { %4315 = vmatprep.subr.bf16.mxu0 %v13783_v44  ;;  %v13853_v44 = vld [vmem:[%s18258_s5 + $0x200] ss:$48 sps:$4 sm:$0xff]  }
 0x283   : > { %4054 = vmatpush1.bf16.msra.mxu1 %v13778_v45  ;;  %v13858_v45 = vld [vmem:[%s18258_s5 + $0x264] ss:$48 sps:$4 sm:$0xff]  }
 0x284   : > { %4316 = vmatpush1.bf16.msra.mxu0 %v13781_v46  ;;  %4055 = vmatprep.subr.bf16.mxu1 %v13786_v47 }
 0x285   : > { %4328 = vmatprep.subr.bf16.mxu0 %v13789_v48 }
 0x287   : > { %4318 = vmatmul.mubr.bf16.vlgmr.msra.gmra.mrb[12].mxu0 %v15982_v22  ;;  %4056 = vmatpush1.bf16.msra.mxu1 %v13784_v49  ;;  %v13856_v49 = vld [vmem:[%s18258_s5 + $0x260] ss:$48 sps:$4 sm:$0xff]  }
 0x288   : > { %4329 = vmatpush1.bf16.msra.mxu0 %v13787_v50  ;;  %4057 = vmatprep.subr.bf16.mxu1 %v13792_v51  ;;  %v13861_v50 = vld [vmem:[%s18258_s5 + $0x2c4] ss:$48 sps:$4 sm:$0xff]   ;;  %v13859_v51 = vld [vmem:[%s18258_s5 + $0x2c0] ss:$48 sps:$4 sm:$0xff]  }
 0x289   : > { %4330 = vmatprep.subr.bf16.mxu0 %v13795_v52  ;;  %4360 = vmatprep.mubr.bf16.mxu0 %v15159_v30  ;;  %v13864_v52 = vld [vmem:[%s18258_s5 + $0x324] ss:$48 sps:$4 sm:$0xff]  }
 0x28b   : > { %4058 = vmatpush1.bf16.msra.mxu1 %v13790_v53  ;;  %v13862_v53 = vld [vmem:[%s18258_s5 + $0x320] ss:$48 sps:$4 sm:$0xff]  }
 0x28c   : > { %4331 = vmatpush1.bf16.msra.mxu0 %v13793_v54  ;;  %4070 = vmatprep.subr.bf16.mxu1 %v13798_v59  ;;  %v13867_v54 = vld [vmem:[%s18258_s5 + $0x384] ss:$48 sps:$4 sm:$0xff]   ;;  %v13865_v59 = vld [vmem:[%s18258_s5 + $0x380] ss:$48 sps:$4 sm:$0xff]  }
 0x28d   : > { %4332 = vmatprep.subr.bf16.mxu0 %v13801_v61  ;;  %v13870_v61 = vld [vmem:[%s18258_s5 + $0x3e4] ss:$48 sps:$4 sm:$0xff]  }
 0x28e   : > { %4060 = vmatmul.mubr.bf16.vlgmr.msra.gmra.mrb[24].mxu1 %v15982_v22 }
 0x28f   : > { %4071 = vmatpush1.bf16.msra.mxu1 %v13796_v62  ;;  %4102 = vmatprep.mubr.bf16.mxu1 %v15159_v30  ;;  %v13868_v62 = vld [vmem:[%s18258_s5 + $0x3e0] ss:$48 sps:$4 sm:$0xff]  }
 0x290   : > { %4333 = vmatpush1.bf16.msra.mxu0 %v13799_v63  ;;  %4072 = vmatprep.subr.bf16.mxu1 %v13804_v0  ;;  %v13873_v63 = vld [vmem:[%s18258_s5 + $0x444] ss:$48 sps:$4 sm:$0xff]   ;;  %v13871_v0 = vld [vmem:[%s18258_s5 + $0x440] ss:$48 sps:$4 sm:$0xff]  }
 0x291   : > { %4334 = vmatprep.subr.bf16.mxu0 %v13807_v1  ;;  %v13876_v1 = vld [vmem:[%s18258_s5 + $0x4a4] ss:$48 sps:$4 sm:$0xff]  }
 0x293   : > { %4073 = vmatpush1.bf16.msra.mxu1 %v13802_v2  ;;  %v13874_v2 = vld [vmem:[%s18258_s5 + $0x4a0] ss:$48 sps:$4 sm:$0xff]  }
 0x294   : > { %4335 = vmatpush1.bf16.msra.mxu0 %v13805_v3  ;;  %4074 = vmatprep.subr.bf16.mxu1 %v13810_v5  ;;  %v13879_v3 = vld [vmem:[%s18258_s5 + $0x504] ss:$48 sps:$4 sm:$0xff]   ;;  %v13877_v5 = vld [vmem:[%s18258_s5 + $0x500] ss:$48 sps:$4 sm:$0xff]  }
 0x295   : > { %4336 = vmatprep.subr.bf16.mxu0 %v13813_v58  ;;  %v13882_v58 = vld [vmem:[%s18258_s5 + $0x564] ss:$48 sps:$4 sm:$0xff]  }
 0x297   : > { %4075 = vmatpush1.bf16.msra.mxu1 %v13808_v6  ;;  %v13880_v6 = vld [vmem:[%s18258_s5 + $0x560] ss:$48 sps:$4 sm:$0xff]  }
 0x298   : > { %4337 = vmatpush1.bf16.msra.mxu0 %v13811_v7  ;;  %4076 = vmatprep.subr.bf16.mxu1 %v13816_v8  ;;  %v13885_v7 = vld [vmem:[%s18258_s5 + $0x5c4] ss:$48 sps:$4 sm:$0xff]   ;;  %v13883_v8 = vld [vmem:[%s18258_s5 + $0x5c0] ss:$48 sps:$4 sm:$0xff]  }
 0x299   : > { %4338 = vmatprep.subr.bf16.mxu0 %v13819_v9  ;;  %v13888_v9 = vld [vmem:[%s18258_s5 + $0x624] ss:$48 sps:$4 sm:$0xff]  }
 0x29b   : > { %4077 = vmatpush1.bf16.msra.mxu1 %v13814_v10  ;;  %v13886_v10 = vld [vmem:[%s18258_s5 + $0x620] ss:$48 sps:$4 sm:$0xff]  }
 0x29c   : > { %4339 = vmatpush1.bf16.msra.mxu0 %v13817_v11  ;;  %4078 = vmatprep.subr.bf16.mxu1 %v13822_v12  ;;  %v13891_v11 = vld [vmem:[%s18258_s5 + $0x684] ss:$48 sps:$4 sm:$0xff]   ;;  %v13889_v12 = vld [vmem:[%s18258_s5 + $0x680] ss:$48 sps:$4 sm:$0xff]  }
 0x29d   : > { %4340 = vmatprep.subr.bf16.mxu0 %v13825_v13  ;;  %v13894_v13 = vld [vmem:[%s18258_s5 + $0x6e4] ss:$48 sps:$4 sm:$0xff]  }
 0x29f   : > { %4079 = vmatpush1.bf16.msra.mxu1 %v13820_v4  ;;  %v13892_v4 = vld [vmem:[%s18258_s5 + $0x6e0] ss:$48 sps:$4 sm:$0xff]  }
 0x2a0   : > { %4341 = vmatpush1.bf16.msra.mxu0 %v13823_v14  ;;  %4080 = vmatprep.subr.bf16.mxu1 %v13828_v15  ;;  %v13895_v14 = vld [vmem:[%s18258_s5 + $0x740] ss:$48 sps:$4 sm:$0xff]   ;;  %v13900_v15 = vld [vmem:[%s18258_s5 + $0x7a4] ss:$48 sps:$4 sm:$0xff]  }
 0x2a1   : > { %4342 = vmatprep.subr.bf16.mxu0 %v13831_v16  ;;  %v13898_v16 = vld [vmem:[%s18258_s5 + $0x7a0] ss:$48 sps:$4 sm:$0xff]  }
 0x2a3   : > { %4081 = vmatpush1.bf16.msra.mxu1 %v13826_v17  ;;  %v13903_v17 = vld [vmem:[%s18258_s5 + $0x804] ss:$48 sps:$4 sm:$0xff]  }
 0x2a4   : > { %4343 = vmatpush1.bf16.msra.mxu0 %v13829_v18  ;;  %4082 = vmatprep.subr.bf16.mxu1 %v13834_v19  ;;  %v13901_v18 = vld [vmem:[%s18258_s5 + $0x800] ss:$48 sps:$4 sm:$0xff]   ;;  %v13906_v19 = vld [vmem:[%s18258_s5 + $0x864] ss:$48 sps:$4 sm:$0xff]  }
 0x2a7   : > { %4361 = vmatmul.mubr.bf16.vlgmr.msra.gmra.mrb[12].mxu0 %v16050_v55  ;;  %4083 = vmatpush1.bf16.msra.mxu1 %v13832_v20  ;;  %v13904_v20 = vld [vmem:[%s18258_s5 + $0x860] ss:$48 sps:$4 sm:$0xff]  }
 0x2a8   : > { %4084 = vmatprep.subr.bf16.mxu1 %v13837_v21  ;;  %v13909_v21 = vld [vmem:[%s18258_s5 + $0x8c4] ss:$48 sps:$4 sm:$0xff]  }
 0x2ab   : > { %4085 = vmatpush1.bf16.msra.mxu1 %v13835_v24  ;;  %v13907_v24 = vld [vmem:[%s18258_s5 + $0x8c0] ss:$48 sps:$4 sm:$0xff]  }
 0x2ac   : > { %4199 = vmatprep.subr.bf16.mxu1 %v13840_v25  ;;  %v2381_v25 = vsub.s32 6, %v15967_v56 }
 0x2ae   : > { %4103 = vmatmul.mubr.bf16.vlgmr.msra.gmra.mrb[24].mxu1 %v16050_v55 }
 0x2af   : > { %4200 = vmatpush1.bf16.msra.mxu1 %v13838_v27  ;;  %4231 = vmatprep.mubr.bf16.mxu1 %v15984_v23  ;;  %v13849_v23 = vld [vmem:[%s18258_s5 + $0x144] ss:$48 sps:$4 sm:$0xff]   ;;  %v2385_v27 = vsub.s32 7, %v15967_v56 }
 0x2b0   : > { %4201 = vmatprep.subr.bf16.mxu1 %v13843_v29  ;;  %v16809_v29 = vld [vmem:[%s18259_s6] sm:$0xff] }
 0x2b3   : > { %4202 = vmatpush1.bf16.msra.mxu1 %v13841_v31  ;;  %v2382_v31 = vrot.slane %v16809_v29, %v2381_v25 }
 0x2b4   : > { %4203 = vmatprep.subr.bf16.mxu1 %v13846_v32 }
 0x2b7   : > { %4204 = vmatpush1.bf16.msra.mxu1 %v13844_v33  ;;  %v2386_v33 = vrot.slane %v16809_v29, %v2385_v27 }
 0x2b8   : > { %4205 = vmatprep.subr.bf16.mxu1 %v13849_v23 }
 0x2ba   : > { %v16670_v37 = vpop.f32.mrb[4].mxu0 }
 0x2bb   : > { %v16672_v38 = vpop.f32.mrb[5].mxu0  ;;  %4206 = vmatpush1.bf16.msra.mxu1 %v13847_v34 }
 0x2bc   : > { %v16677_v40 = vpop.f32.mrb[6].mxu0  ;;  %4207 = vmatprep.subr.bf16.mxu1 %v13852_v36 }
 0x2bd   : > { %v16682_v42 = vpop.f32.mrb[7].mxu0 }
 0x2bf   : > { %4208 = vmatpush1.bf16.msra.mxu1 %v13850_v39 }
 0x2c0   : > { %4209 = vmatprep.subr.bf16.mxu1 %v13855_v41 }
 0x2c1   : > { %v2054_v46 = vpop.f32.mrb[16].mxu1 }
 0x2c2   : > { %v13057_v47 = vadd.f32 %v2054_v46, %v1901_v43  ;;  %v12938_v48 = vpop.f32.mrb[17].mxu1 }
 0x2c3   : > { %4210 = vmatpush1.bf16.msra.mxu1 %v13853_v44  ;;  %v2358_v44 = vrot.slane %v16809_v29, %v15992_v26 }
 0x2c4   : > { %4211 = vmatprep.subr.bf16.mxu1 %v13858_v45  ;;  %2059 = vst.msk [vmem:[%s630_s23] sm:$0x1] %vm2058_vm1, %v13057_v47 }
 0x2c7   : > { %4212 = vmatpush1.bf16.msra.mxu1 %v13856_v49 }
 0x2c8   : > { %4213 = vmatprep.subr.bf16.mxu1 %v13861_v50 }
 0x2cb   : > { %4214 = vmatpush1.bf16.msra.mxu1 %v13859_v51 }
 0x2cc   : > { %4215 = vmatprep.subr.bf16.mxu1 %v13864_v52 }
 0x2cf   : > { %4216 = vmatpush1.bf16.msra.mxu1 %v13862_v53 }
 0x2d0   : > { %4217 = vmatprep.subr.bf16.mxu1 %v13867_v54  ;;  %v2352_v54 = vld [vmem:[%s18259_s6 + $0x8] sm:$0xf] }
 0x2d3   : > { %4218 = vmatpush1.bf16.msra.mxu1 %v13865_v59  ;;  %v16831_v59 = vsub.s32 3, %v15967_v56 }
 0x2d4   : > { %4219 = vmatprep.subr.bf16.mxu1 %v13870_v61  ;;  %v2398_v61 = vrot.slane %v2352_v54, %v16056_v60 }
 0x2d7   : > { %4220 = vmatpush1.bf16.msra.mxu1 %v13868_v62 }
 0x2d8   : > { %4221 = vmatprep.subr.bf16.mxu1 %v13873_v63  ;;  %v2402_v63 = vrot.slane %v2352_v54, %v16831_v59 }
 0x2db   : > { %4222 = vmatpush1.bf16.msra.mxu1 %v13871_v0 }
 0x2dc   : > { %4223 = vmatprep.subr.bf16.mxu1 %v13876_v1 }
 0x2df   : > { %4224 = vmatpush1.bf16.msra.mxu1 %v13874_v2  ;;  %v2373_v2 = vsub.s32 4, %v15967_v56 }
 0x2e0   : > { %4225 = vmatprep.subr.bf16.mxu1 %v13879_v3 }
 0x2e3   : > { %4226 = vmatpush1.bf16.msra.mxu1 %v13877_v5 }
 0x2e4   : > { %4227 = vmatprep.subr.bf16.mxu1 %v13882_v58 }
 0x2e7   : > { %4228 = vmatpush1.bf16.msra.mxu1 %v13880_v6  ;;  %v2377_v6 = vsub.s32 5, %v15967_v56 }
 0x2e8   : > { %4229 = vmatprep.subr.bf16.mxu1 %v13885_v7 }
 0x2eb   : > { %4230 = vmatpush1.bf16.msra.mxu1 %v13883_v8 }
 0x2ec   : > { %4242 = vmatprep.subr.bf16.mxu1 %v13888_v9 }
 0x2ee   : > { %4232 = vmatmul.mubr.bf16.vlgmr.msra.gmra.mrb[28].mxu1 %v15982_v22  ;;  %v13897_v22 = vld [vmem:[%s18258_s5 + $0x744] ss:$48 sps:$4 sm:$0xff]  }
 0x2ef   : > { %4243 = vmatpush1.bf16.msra.mxu1 %v13886_v10  ;;  %4274 = vmatprep.mubr.bf16.mxu1 %v15159_v30 }
 0x2f0   : > { %4244 = vmatprep.subr.bf16.mxu1 %v13891_v11  ;;  %v2374_v11 = vrot.slane %v16809_v29, %v2373_v2 }
 0x2f3   : > { %4245 = vmatpush1.bf16.msra.mxu1 %v13889_v12 }
 0x2f4   : > { %4246 = vmatprep.subr.bf16.mxu1 %v13894_v13  ;;  %v2378_v13 = vrot.slane %v16809_v29, %v2377_v6 }
 0x2f7   : > { %4247 = vmatpush1.bf16.msra.mxu1 %v13892_v4 }
 0x2f8   : > { %4248 = vmatprep.subr.bf16.mxu1 %v13897_v22 }
 0x2fb   : > { %4249 = vmatpush1.bf16.msra.mxu1 %v13895_v14 }
 0x2fc   : > { %4250 = vmatprep.subr.bf16.mxu1 %v13900_v15 }
 0x2ff   : > { %4251 = vmatpush1.bf16.msra.mxu1 %v13898_v16 }
 0x300   : > { %4252 = vmatprep.subr.bf16.mxu1 %v13903_v17 }
 0x303   : > { %4253 = vmatpush1.bf16.msra.mxu1 %v13901_v18 }
 0x304   : > { %4254 = vmatprep.subr.bf16.mxu1 %v13906_v19 }
 0x307   : > { %4255 = vmatpush1.bf16.msra.mxu1 %v13904_v20 }
 0x308   : > { %4256 = vmatprep.subr.bf16.mxu1 %v13909_v21 }
 0x30b   : > { %4257 = vmatpush1.bf16.msra.mxu1 %v13907_v24  ;;  %v2390_v24 = vrot.slane %v2352_v54, %v15992_v26 }
 0x30e   : > { %4275 = vmatmul.mubr.bf16.vlgmr.msra.gmra.mrb[28].mxu1 %v16050_v55 }
 0x31a   : > { %v4190_v32 = vpop.f32.mrb[8].mxu0 }
 0x31b   : > { %v4192_v23 = vpop.f32.mrb[9].mxu0  ;;  %v13070_v34 = vadd.f32 %v4190_v32, %v2382_v31  ;;  %v2394_v32 = vrot.slane %v2352_v54, %v15970_v57 }
 0x31c   : > { %v4194_v55 = vpop.f32.mrb[10].mxu0  ;;  %v13071_v41 = vadd.f32 %v4192_v23, %v2386_v33 }
 0x31d   : > { %v13072_v36 = vadd.f32 %v4194_v55, %v2382_v31  ;;  %v4196_v39 = vpop.f32.mrb[11].mxu0 }
 0x31e   : > { %v13073_v43 = vadd.f32 %v4196_v39, %v2386_v33 }
 0x31f   : > { %v16819_v45 = vpack.c.bf16 %v13072_v36, %v13070_v34 }
 0x320   : > { %v16821_v46 = vpack.c.bf16 %v13073_v43, %v13071_v41 }
 0x321   : > { %v3932_v47 = vpop.f32.mrb[20].mxu1 }
 0x322   : > { %v13058_v48 = vadd.f32 %v3932_v47, %v2358_v44  ;;  %v16823_v49 = vpop.f32.mrb[21].mxu1  ;;  %v16853_v47 = vld [vmem:[%s646_s2] sm:$0xff] }
 0x323   : > { %v3936_v50 = vpop.f32.mrb[22].mxu1 }
 0x324   : > { %v4373_v51 = vmul.f32 0.10206208, %v13058_v48  ;;  %v13060_v52 = vadd.f32 %v3936_v50, %v2358_v44  ;;  %v16825_v53 = vpop.f32.mrb[23].mxu1  ;;  %v16855_v50 = vld [vmem:[%s646_s2 + $0x8] sm:$0xff] }
 0x326   : > { %12943 = vmatprep.mubr.f32.mxu1 %v4373_v51  ;;  %v4374_v21 = vmul.f32 0.10206208, %v13060_v52 }
 0x37a   : > { %v4362_v62 = vpop.f32.mrb[12].mxu0 }
 0x37b   : > { %v4364_v0 = vpop.f32.mrb[13].mxu0  ;;  %v13078_v3 = vadd.f32 %v4362_v62, %v2398_v61 }
 0x37c   : > { %v4366_v1 = vpop.f32.mrb[14].mxu0  ;;  %v13079_v7 = vadd.f32 %v4364_v0, %v2402_v63 }
 0x37d   : > { %v13080_v5 = vadd.f32 %v4366_v1, %v2398_v61  ;;  %v4368_v58 = vpop.f32.mrb[15].mxu0 }
 0x37e   : > { %v13081_v8 = vadd.f32 %v4368_v58, %v2402_v63 }
 0x37f   : > { %v16837_v9 = vpack.c.bf16 %v13080_v5, %v13078_v3 }
 0x380   : > { %v16839_v10 = vpack.c.bf16 %v13081_v8, %v13079_v7 }
 0x381   : > { %v4104_v12 = vpop.f32.mrb[24].mxu1 }
 0x382   : > { %v4106_v4 = vpop.f32.mrb[25].mxu1  ;;  %v13066_v14 = vadd.f32 %v4104_v12, %v2374_v11 }
 0x383   : > { %v4108_v22 = vpop.f32.mrb[26].mxu1  ;;  %v13067_v17 = vadd.f32 %v4106_v4, %v2378_v13 }
 0x384   : > { %v13068_v15 = vadd.f32 %v4108_v22, %v2374_v11  ;;  %v4110_v16 = vpop.f32.mrb[27].mxu1  ;;  %v2362_v22 = vrot.slane %v16809_v29, %v15970_v57 }
 0x385   : > { %v13069_v18 = vadd.f32 %v4110_v16, %v2378_v13 }
 0x386   : > { %v13014_v19 = vpack.c.bf16 %v13068_v15, %v13066_v14  ;;  %v13059_v16 = vadd.f32 %v16823_v49, %v2362_v22 }
 0x387   : > { %v13022_v20 = vpack.c.bf16 %v13069_v18, %v13067_v17 }
 0x388   : > { %13015 = vmatprep.subr.bf16.mxu1 %v13014_v19 }
 0x389   : > { %13017 = vmatpush3.bf16.xpose.msra.mxu1 %v13014_v19  ;;  %v4554_v19 = vmul.f32 0.10206208, %v13059_v16  ;;  %v2366_v16 = vrot.slane %v16809_v29, %v16056_v60 }
 0x390   : > { %12944 = vmatmul.mubr.f32.vlgmr.msra.gmra.mrb[18].mxu1 %v4374_v21  ;;  %v13061_v21 = vadd.f32 %v16825_v53, %v2362_v22  ;;  %v13923_v22 = vld [vmem:[#allocation2 + $0x98] ss:$12 sps:$4 sm:$0xff]  }
 0x3e1   : > { %v4276_v31 = vpop.f32.mrb[28].mxu1 }
 0x3e2   : > { %v4278_v33 = vpop.f32.mrb[29].mxu1  ;;  %v13074_v55 = vadd.f32 %v4276_v31, %v2390_v24 }
 0x3e3   : > { %v4280_v23 = vpop.f32.mrb[30].mxu1  ;;  %v13075_v39 = vadd.f32 %v4278_v33, %v2394_v32 }
 0x3e4   : > { %v13076_v34 = vadd.f32 %v4280_v23, %v2390_v24  ;;  %v4282_v36 = vpop.f32.mrb[31].mxu1  ;;  %v4555_v24 = vmul.f32 0.10206208, %v13061_v21 }
 0x3e5   : > { %v13077_v41 = vadd.f32 %v4282_v36, %v2394_v32 }
 0x3e6   : > { %v13018_v43 = vpack.c.bf16 %v13076_v34, %v13074_v55 }
 0x3e7   : > { %v13026_v44 = vpack.c.bf16 %v13077_v41, %v13075_v39 }
 0x3e8   : > { %13019 = vmatprep.subr.bf16.mxu1 %v13018_v43 }
 0x3e9   : > { %13021 = vmatpush3.bf16.msra.mxu1 %v13018_v43 }
 0x3ea   : > { %13023 = vmatprep.subr.bf16.mxu1 %v13022_v20 }
 0x463   : > { %v12945_v48 = vpop.f32.mrb[18].mxu1 }
 0x464   : > { %v4441_v51 = vpop.f32.mrb[19].mxu1  ;;  %v4447_v54 = vadd.f32 %v12945_v48, %v16855_v50 }
 0x465   : > { %v4442_v52 = vadd.f32 %v4441_v51, %v16853_v47 }
 0x466   : > { %v4454_v62 = vsel %vm4450_vm2, %v4447_v54, -inf }
 0x467   : > { %v4451_v61 = vsel %vm4450_vm2, %v4442_v52, -inf }
 0x468   : > { %4452 = vmax.xlane.f32.xlu0 %v4451_v61 }
 0x46c   : > { %4455 = vmax.xlane.f32.xlu0 %v4454_v62  ;;  %v13910_v62 = vld [vmem:[#allocation2 + $0xc8] ss:$12 sps:$4 sm:$0xff]  }
 0x46d   : > { %12751 = vmatprep.subr.bf16.mxu0 %v13910_v62 }
 0x4f5   : > { %v4453_v63 = vpop.xlane.xlu0 %4452 }
 0x4f6   : > { %v4457_v0 = vsub.f32 %v4442_v52, %v4453_v63  ;;  %v13911_v63 = vld [vmem:[#allocation2 + $0x8] ss:$12 sps:$4 sm:$0xff]  }
 0x4f7   : > { %12752 = vmatpush3.bf16.msra.mxu0 %v13911_v63 }
 0x4f8   : > { %v4459_v1 = vmul.f32 1.442695, %v4457_v0  ;;  %v13912_v0 = vld [vmem:[#allocation2 + $0xe0] ss:$12 sps:$4 sm:$0xff]  }
 0x4f9   : > { %v4456_v3 = vpop.xlane.xlu0 %4455  ;;  %12753 = vmatprep.subr.bf16.mxu0 %v13912_v0 }
 0x4fa   : > { %14854 = vpow2.f32 %v4459_v1  ;;  %v4458_v5 = vsub.f32 %v4447_v54, %v4456_v3  ;;  %v13913_v1 = vld [vmem:[#allocation2 + $0x20] ss:$12 sps:$4 sm:$0xff]   ;;  %v13914_v3 = vld [vmem:[#allocation2 + $0xf8] ss:$12 sps:$4 sm:$0xff]  }
 0x4fb   : > { %12754 = vmatpush3.bf16.msra.mxu0 %v13913_v1 }
 0x4fc   : > { %v4461_v58 = vmul.f32 1.442695, %v4458_v5  ;;  %v13915_v5 = vld [vmem:[#allocation2 + $0x38] ss:$12 sps:$4 sm:$0xff]   ;;  %12755 = vmatprep.subr.bf16.mxu0 %v13914_v3 }
 0x4fe   : > { %14856 = vpow2.f32 %v4461_v58  ;;  %v13916_v58 = vld [vmem:[#allocation2 + $0x110] ss:$12 sps:$4 sm:$0xff]  }
 0x4ff   : > { %12756 = vmatpush3.bf16.msra.mxu0 %v13915_v5 }
 0x500   : > { %12757 = vmatprep.subr.bf16.mxu0 %v13916_v58 }
 0x504   : > { %v14855_v7 = vpop.eup %14854 }
 0x505   : > { %v4463_v8 = vsel %vm4450_vm2, %v14855_v7, 0.0 }
 0x506   : > { %4464 = vadd.xlane.f32.xlu1 %v4463_v8  ;;  %v13918_v8 = vld [vmem:[#allocation2 + $0x128] ss:$12 sps:$4 sm:$0xff]  }
 0x508   : > { %v14857_v11 = vpop.eup %14856 }
 0x509   : > { %v4466_v12 = vsel %vm4450_vm2, %v14857_v11, 0.0 }
 0x50a   : > { %4467 = vadd.xlane.f32.xlu1 %v4466_v12  ;;  %v13920_v12 = vld [vmem:[#allocation2 + $0x140] ss:$12 sps:$4 sm:$0xff]  }
 0x593   : > { %v4465_v13 = vpop.xlane.xlu1 %4464 }
 0x594   : > { %14858 = vrcp.f32 %v4465_v13  ;;  %v13921_v13 = vld [vmem:[#allocation2 + $0x80] ss:$12 sps:$4 sm:$0xff]  }
 0x597   : > { %v4468_v4 = vpop.xlane.xlu1 %4467 }
 0x598   : > { %14860 = vrcp.f32 %v4468_v4  ;;  %v13922_v4 = vld [vmem:[#allocation2 + $0x158] ss:$12 sps:$4 sm:$0xff]  }
 0x59e   : > { %v14859_v14 = vpop.eup %14858 }
 0x59f   : > { %v4470_v15 = vmul.f32 %v14859_v14, %v14855_v7  ;;  %v13917_v7 = vld [vmem:[#allocation2 + $0x50] ss:$12 sps:$4 sm:$0xff]  }
 0x5a0   : > { %12758 = vmatpush3.bf16.msra.mxu0 %v13917_v7 }
 0x5a1   : > { %12950 = vmatprep.mubr.msk.f32.mxu1 %vm4450_vm2, %v4470_v15  ;;  %12759 = vmatprep.subr.bf16.mxu0 %v13918_v8 }
 0x5a2   : > { %v14861_v17 = vpop.eup %14860 }
 0x5a3   : > { %v4472_v18 = vmul.f32 %v14861_v17, %v14857_v11  ;;  %v13919_v11 = vld [vmem:[#allocation2 + $0x68] ss:$12 sps:$4 sm:$0xff]  }
 0x5a4   : > { %12760 = vmatpush3.bf16.msra.mxu0 %v13919_v11 }
 0x5a5   : > { %12951 = vmatmul.mubr.msk.f32.vlgmr.msra.gmra.mrb[32].mxu1 %vm4450_vm2, %v4472_v18  ;;  %12761 = vmatprep.subr.bf16.mxu0 %v13920_v12  ;;  %v13062_v18 = vadd.f32 %v16670_v37, %v2366_v16  ;;  %v13924_v37 = vld [vmem:[#allocation2 + $0x170] ss:$12 sps:$4 sm:$0xff]   ;;  %v2370_v12 = vrot.slane %v16809_v29, %v16831_v59 }
 0x5a6   : > { %13025 = vmatpush3.bf16.xpose.msra.mxu1 %v13022_v20  ;;  %12957 = vmatprep.mubr.f32.mxu1 %v4554_v19 }
 0x5a7   : > { %13027 = vmatprep.subr.bf16.mxu1 %v13026_v44 }
 0x5a8   : > { %12762 = vmatpush3.bf16.msra.mxu0 %v13921_v13 }
 0x5a9   : > { %12763 = vmatprep.subr.bf16.mxu0 %v13922_v4  ;;  %v13063_v4 = vadd.f32 %v16672_v38, %v2370_v12 }
 0x5ac   : > { %12764 = vmatpush3.bf16.msra.mxu0 %v13923_v22 }
 0x5ad   : > { %12958 = vmatmul.mubr.f32.vlgmr.msra.gmra.mrb[34].mxu1 %v4555_v24  ;;  %12765 = vmatprep.subr.bf16.mxu0 %v13924_v37 }
 0x5ae   : > { %13029 = vmatpush3.bf16.msra.mxu1 %v13026_v44 }
 0x5af   : > { %13031 = vmatprep.subr.bf16.mxu1 %v16819_v45 }
 0x678   : > { %v12952_v31 = vpop.f32.mrb[32].mxu1 }
 0x679   : > { %v4545_v32 = vpop.f32.mrb[33].mxu1 }
 0x67a   : > { %v16870_v49 = vpack.c.bf16 %v12952_v31, %v4545_v32  ;;  %v4734_v31 = vmul.f32 0.10206208, %v13062_v18  ;;  %v13064_v32 = vadd.f32 %v16677_v40, %v2366_v16  ;;  %v4914_v16 = vmul.f32 0.10206208, %v13063_v4  ;;  %v13931_v4 = vld [vmem:[#allocation2 + $0x1c] ss:$12 sps:$4 sm:$0xff]  }
 0x680   : > { %v12959_v33 = vpop.f32.mrb[34].mxu1 }
 0x681   : > { %v4628_v23 = vadd.f32 %v12959_v33, %v16855_v50  ;;  %v4622_v55 = vpop.f32.mrb[35].mxu1  ;;  %v4735_v33 = vmul.f32 0.10206208, %v13064_v32 }
 0x682   : > { %v4623_v34 = vadd.f32 %v4622_v55, %v16853_v47 }
 0x683   : > { %v4634_v20 = vsel %vm4450_vm2, %v4628_v23, -inf }
 0x684   : > { %4635 = vmax.xlane.f32.xlu1 %v4634_v20  ;;  %v4631_v53 = vsel %vm4450_vm2, %v4623_v34, -inf }
 0x685   : > { %4632 = vmax.xlane.f32.xlu0 %v4631_v53 }
 0x711   : > { %v4636_v36 = vpop.xlane.xlu1 %4635 }
 0x712   : > { %v4638_v39 = vsub.f32 %v4628_v23, %v4636_v36  ;;  %v4633_v41 = vpop.xlane.xlu0 %4632  ;;  %v13925_v23 = vld [vmem:[#allocation2 + $0xb0] ss:$12 sps:$4 sm:$0xff]  }
 0x713   : > { %v4637_v43 = vsub.f32 %v4623_v34, %v4633_v41  ;;  %12766 = vmatpush3.bf16.msra.mxu0 %v13925_v23 }
 0x714   : > { %v4641_v44 = vmul.f32 1.442695, %v4638_v39 }
 0x715   : > { %v4639_v48 = vmul.f32 1.442695, %v4637_v43 }
 0x716   : > { %14862 = vpow2.f32 %v4641_v44 }
 0x717   : > { %14864 = vpow2.f32 %v4639_v48 }
 0x720   : > { %v14863_v51 = vpop.eup %14862 }
 0x721   : > { %v14865_v52 = vpop.eup %14864  ;;  %v4646_v54 = vsel %vm4450_vm2, %v14863_v51, 0.0 }
 0x722   : > { %4647 = vadd.xlane.f32.xlu1 %v4646_v54  ;;  %v4643_v61 = vsel %vm4450_vm2, %v14865_v52, 0.0 }
 0x723   : > { %4644 = vadd.xlane.f32.xlu0 %v4643_v61 }
 0x7af   : > { %v4648_v14 = vpop.xlane.xlu1 %4647 }
 0x7b0   : > { %14866 = vrcp.f32 %v4648_v14  ;;  %v4645_v15 = vpop.xlane.xlu0 %4644 }
 0x7b1   : > { %14868 = vrcp.f32 %v4645_v15 }
 0x7ba   : > { %v14867_v17 = vpop.eup %14866 }
 0x7bb   : > { %v14869_v19 = vpop.eup %14868  ;;  %v4652_v24 = vmul.f32 %v14867_v17, %v14863_v51  ;;  %v13065_v17 = vadd.f32 %v16682_v42, %v2370_v12  ;;  %v13926_v12 = vld [vmem:[#allocation2] ss:$12 sps:$4 sm:$0xff]  }
 0x7bc   : > { %v4650_v21 = vmul.f32 %v14869_v19, %v14865_v52 }
 0x7bd   : > { %v4915_v18 = vmul.f32 0.10206208, %v13065_v17  ;;  %v13935_v17 = vld [vmem:[#allocation2 + $0x48] ss:$12 sps:$4 sm:$0xff]  }
 0x7be   : > { %12964 = vmatprep.mubr.msk.f32.mxu1 %vm4450_vm2, %v4650_v21 }
 0x7bf   : > { %12965 = vmatmul.mubr.msk.f32.vlgmr.msra.gmra.mrb[36].mxu1 %vm4450_vm2, %v4652_v24 }
 0x7c0   : > { %13033 = vmatpush3.bf16.xpose.msra.mxu1 %v16819_v45  ;;  %12971 = vmatprep.mubr.f32.mxu1 %v4734_v31 }
 0x7c1   : > { %13035 = vmatprep.subr.bf16.mxu1 %v16837_v9 }
 0x7c7   : > { %12972 = vmatmul.mubr.f32.vlgmr.msra.gmra.mrb[38].mxu1 %v4735_v33 }
 0x7c8   : > { %13037 = vmatpush3.bf16.msra.mxu1 %v16837_v9 }
 0x7c9   : > { %13039 = vmatprep.subr.bf16.mxu1 %v16821_v46 }
 0x892   : > { %v12966_v55 = vpop.f32.mrb[36].mxu1 }
 0x893   : > { %v4725_v34 = vpop.f32.mrb[37].mxu1 }
 0x894   : > { %v16888_v20 = vpack.c.bf16 %v12966_v55, %v4725_v34 }
 0x896   : > { %5873 = vmatprep.mubr.bf16.mxu0 %v16888_v20 }
 0x897   : > { %5874 = vmatmul.mubr.bf16.vlgmr.msra.gmra.mrb[16].mxu0 %v16870_v49 }
 0x89a   : > { %v12973_v40 = vpop.f32.mrb[38].mxu1 }
 0x89b   : > { %v4808_v45 = vadd.f32 %v12973_v40, %v16855_v50  ;;  %v4802_v53 = vpop.f32.mrb[39].mxu1 }
 0x89c   : > { %v4803_v9 = vadd.f32 %v4802_v53, %v16853_v47  ;;  %v13928_v53 = vld [vmem:[#allocation2 + $0x4] ss:$12 sps:$4 sm:$0xff]  }
 0x89d   : > { %v4814_v36 = vsel %vm4450_vm2, %v4808_v45, -inf }
 0x89e   : > { %4815 = vmax.xlane.f32.xlu1 %v4814_v36  ;;  %v4811_v39 = vsel %vm4450_vm2, %v4803_v9, -inf  ;;  %v14002_v36 = vld [vmem:[#allocation2 + $0x188] ss:$12 sps:$4 sm:$0xff]  }
 0x89f   : > { %4812 = vmax.xlane.f32.xlu0 %v4811_v39  ;;  %v14006_v39 = vld [vmem:[#allocation2 + $0x260] ss:$12 sps:$4 sm:$0xff]  }
 0x92b   : > { %v4816_v41 = vpop.xlane.xlu1 %4815 }
 0x92c   : > { %v4818_v43 = vsub.f32 %v4808_v45, %v4816_v41  ;;  %v4813_v44 = vpop.xlane.xlu0 %4812  ;;  %v14007_v41 = vld [vmem:[#allocation2 + $0x1a0] ss:$12 sps:$4 sm:$0xff]  }
 0x92d   : > { %v4817_v48 = vsub.f32 %v4803_v9, %v4813_v44  ;;  %v14001_v9 = vld [vmem:[#allocation2 + $0x248] ss:$12 sps:$4 sm:$0xff]   ;;  %v14012_v44 = vld [vmem:[#allocation2 + $0x1b8] ss:$12 sps:$4 sm:$0xff]  }
 0x92e   : > { %v4821_v51 = vmul.f32 1.442695, %v4818_v43  ;;  %12773 = vmatprep.subr.bf16.mxu0 %v14001_v9  ;;  %v14011_v43 = vld [vmem:[#allocation2 + $0x278] ss:$12 sps:$4 sm:$0xff]   ;;  %v13968_v9 = vld [vmem:[#allocation2 + $0x150] ss:$12 sps:$4 sm:$0xff]  }
 0x92f   : > { %v4819_v52 = vmul.f32 1.442695, %v4817_v48  ;;  %12774 = vmatpush3.bf16.msra.mxu0 %v14002_v36  ;;  %v14016_v48 = vld [vmem:[#allocation2 + $0x290] ss:$12 sps:$4 sm:$0xff]   ;;  %v13973_v36 = vld [vmem:[#allocation2 + $0x16c] ss:$12 sps:$4 sm:$0xff]  }
 0x930   : > { %14870 = vpow2.f32 %v4821_v51  ;;  %12775 = vmatprep.subr.bf16.mxu0 %v14006_v39  ;;  %v14017_v51 = vld [vmem:[#allocation2 + $0x1d0] ss:$12 sps:$4 sm:$0xff]   ;;  %v13971_v39 = vld [vmem:[#allocation2 + $0x168] ss:$12 sps:$4 sm:$0xff]  }
 0x931   : > { %14872 = vpow2.f32 %v4819_v52  ;;  %v14021_v52 = vld [vmem:[#allocation2 + $0x2a8] ss:$12 sps:$4 sm:$0xff]  }
 0x933   : > { %12776 = vmatpush3.bf16.msra.mxu0 %v14007_v41  ;;  %v13976_v41 = vld [vmem:[#allocation2 + $0x184] ss:$12 sps:$4 sm:$0xff]  }
 0x934   : > { %12777 = vmatprep.subr.bf16.mxu0 %v14011_v43  ;;  %v13974_v43 = vld [vmem:[#allocation2 + $0x180] ss:$12 sps:$4 sm:$0xff]  }
 0x937   : > { %12778 = vmatpush3.bf16.msra.mxu0 %v14012_v44  ;;  %v13979_v44 = vld [vmem:[#allocation2 + $0x19c] ss:$12 sps:$4 sm:$0xff]  }
 0x938   : > { %12779 = vmatprep.subr.bf16.mxu0 %v14016_v48  ;;  %v13977_v48 = vld [vmem:[#allocation2 + $0x198] ss:$12 sps:$4 sm:$0xff]  }
 0x93a   : > { %v14871_v54 = vpop.eup %14870 }
 0x93b   : > { %v14873_v61 = vpop.eup %14872  ;;  %v4826_v62 = vsel %vm4450_vm2, %v14871_v54, 0.0  ;;  %12780 = vmatpush3.bf16.msra.mxu0 %v14017_v51  ;;  %v13982_v51 = vld [vmem:[#allocation2 + $0x1b4] ss:$12 sps:$4 sm:$0xff]  }
 0x93c   : > { %4827 = vadd.xlane.f32.xlu1 %v4826_v62  ;;  %v4823_v63 = vsel %vm4450_vm2, %v14873_v61, 0.0  ;;  %12781 = vmatprep.subr.bf16.mxu0 %v14021_v52  ;;  %v14022_v62 = vld [vmem:[#allocation2 + $0x1e8] ss:$12 sps:$4 sm:$0xff]   ;;  %v13980_v52 = vld [vmem:[#allocation2 + $0x1b0] ss:$12 sps:$4 sm:$0xff]  }
 0x93d   : > { %4824 = vadd.xlane.f32.xlu0 %v4823_v63  ;;  %v14026_v63 = vld [vmem:[#allocation2 + $0x2c0] ss:$12 sps:$4 sm:$0xff]  }
 0x93f   : > { %12782 = vmatpush3.bf16.msra.mxu0 %v14022_v62  ;;  %v13988_v62 = vld [vmem:[#allocation2 + $0x1e4] ss:$12 sps:$4 sm:$0xff]  }
 0x940   : > { %12783 = vmatprep.subr.bf16.mxu0 %v14026_v63  ;;  %v13986_v63 = vld [vmem:[#allocation2 + $0x1e0] ss:$12 sps:$4 sm:$0xff]  }
 0x96a   : > { %v12767_v0 = vpop.f32.mrb[16].mxu0 }
 0x96b   : > { %v12768_v1 = vpop.f32.mrb[17].mxu0 }
 0x96c   : > { %v16898_v3 = vadd.f32 %v12768_v1, %v12767_v0  ;;  %v12770_v5 = vpop.f32.mrb[18].mxu0  ;;  %v14027_v0 = vld [vmem:[#allocation2 + $0x200] ss:$12 sps:$4 sm:$0xff]   ;;  %v14031_v1 = vld [vmem:[#allocation2 + $0x2d8] ss:$12 sps:$4 sm:$0xff]  }
 0x96d   : > { %v12771_v58 = vpop.f32.mrb[19].mxu0  ;;  %12784 = vmatpush3.bf16.msra.mxu0 %v14027_v0  ;;  %v13991_v0 = vld [vmem:[#allocation2 + $0x1fc] ss:$12 sps:$4 sm:$0xff]  }
 0x96e   : > { %v16900_v7 = vadd.f32 %v12771_v58, %v12770_v5  ;;  %12785 = vmatprep.subr.bf16.mxu0 %v14031_v1  ;;  %v14032_v5 = vld [vmem:[#allocation2 + $0x218] ss:$12 sps:$4 sm:$0xff]  }
 0x96f   : > { %v13989_v1 = vld [vmem:[#allocation2 + $0x1f8] ss:$12 sps:$4 sm:$0xff]  }
 0x971   : > { %12786 = vmatpush3.bf16.msra.mxu0 %v14032_v5  ;;  %v14036_v5 = vld [vmem:[#allocation2 + $0x2f0] ss:$12 sps:$4 sm:$0xff]  }
 0x972   : > { %12787 = vmatprep.subr.bf16.mxu0 %v14036_v5  ;;  %v14041_v5 = vld [vmem:[%s18264_s11 + $0x8] ss:$48 sps:$4 sm:$0xff]  }
 0x9c9   : > { %v4828_v8 = vpop.xlane.xlu1 %4827 }
 0x9ca   : > { %14874 = vrcp.f32 %v4828_v8  ;;  %v4825_v11 = vpop.xlane.xlu0 %4824 }
 0x9cb   : > { %14876 = vrcp.f32 %v4825_v11 }
 0x9d4   : > { %v14875_v13 = vpop.eup %14874 }
 0x9d5   : > { %v14877_v22 = vpop.eup %14876  ;;  %v4832_v15 = vmul.f32 %v14875_v13, %v14871_v54 }
 0x9d6   : > { %v4830_v14 = vmul.f32 %v14877_v22, %v14873_v61  ;;  %v13929_v22 = vld [vmem:[#allocation2 + $0x18] ss:$12 sps:$4 sm:$0xff]  }
 0x9d8   : > { %12978 = vmatprep.mubr.msk.f32.mxu1 %vm4450_vm2, %v4830_v14  ;;  %v13934_v14 = vld [vmem:[#allocation2 + $0x34] ss:$12 sps:$4 sm:$0xff]  }
 0x9d9   : > { %12979 = vmatmul.mubr.msk.f32.vlgmr.msra.gmra.mrb[40].mxu1 %vm4450_vm2, %v4832_v15  ;;  %v13932_v15 = vld [vmem:[#allocation2 + $0x30] ss:$12 sps:$4 sm:$0xff]  }
 0x9da   : > { %13041 = vmatpush3.bf16.xpose.msra.mxu1 %v16821_v46  ;;  %12985 = vmatprep.mubr.f32.mxu1 %v4914_v16  ;;  %v13937_v16 = vld [vmem:[#allocation2 + $0x4c] ss:$12 sps:$4 sm:$0xff]  }
 0x9db   : > { %13043 = vmatprep.subr.bf16.mxu1 %v16839_v10 }
 0x9e1   : > { %12986 = vmatmul.mubr.f32.vlgmr.msra.gmra.mrb[42].mxu1 %v4915_v18  ;;  %v13940_v18 = vld [vmem:[#allocation2 + $0x64] ss:$12 sps:$4 sm:$0xff]  }
 0x9e2   : > { %13045 = vmatpush3.bf16.msra.mxu1 %v16839_v10 }
 0x9e3   : > { %5755 = vmatprep.subr.bf16.mxu1 %v13928_v53  ;;  %v13970_v53 = vld [vmem:[#allocation2 + $0x154] ss:$12 sps:$4 sm:$0xff]  }
 0xaac   : > { %v12980_v38 = vpop.f32.mrb[40].mxu1 }
 0xaad   : > { %v4905_v29 = vpop.f32.mrb[41].mxu1 }
 0xaae   : > { %v16911_v19 = vpack.c.bf16 %v12980_v38, %v4905_v29  ;;  %v13938_v38 = vld [vmem:[#allocation2 + $0x60] ss:$12 sps:$4 sm:$0xff]   ;;  %v13943_v29 = vld [vmem:[#allocation2 + $0x7c] ss:$12 sps:$4 sm:$0xff]  }
 0xab4   : > { %v12987_v21 = vpop.f32.mrb[42].mxu1 }
 0xab5   : > { %v4988_v24 = vadd.f32 %v12987_v21, %v16855_v50  ;;  %v4982_v31 = vpop.f32.mrb[43].mxu1  ;;  %v13941_v21 = vld [vmem:[#allocation2 + $0x78] ss:$12 sps:$4 sm:$0xff]  }
 0xab6   : > { %v4983_v32 = vadd.f32 %v4982_v31, %v16853_v47  ;;  %v13949_v31 = vld [vmem:[#allocation2 + $0xac] ss:$12 sps:$4 sm:$0xff]  }
 0xab7   : > { %v4994_v46 = vsel %vm4450_vm2, %v4988_v24, -inf }
 0xab8   : > { %4995 = vmax.xlane.f32.xlu1 %v4994_v46  ;;  %v4991_v42 = vsel %vm4450_vm2, %v4983_v32, -inf  ;;  %v13952_v46 = vld [vmem:[#allocation2 + $0xc4] ss:$12 sps:$4 sm:$0xff]  }
 0xab9   : > { %4992 = vmax.xlane.f32.xlu0 %v4991_v42  ;;  %v13950_v42 = vld [vmem:[#allocation2 + $0xc0] ss:$12 sps:$4 sm:$0xff]  }
 0xb45   : > { %v4996_v33 = vpop.xlane.xlu1 %4995 }
 0xb46   : > { %v4998_v37 = vsub.f32 %v4988_v24, %v4996_v33  ;;  %v4993_v23 = vpop.xlane.xlu0 %4992  ;;  %v13946_v24 = vld [vmem:[#allocation2 + $0x94] ss:$12 sps:$4 sm:$0xff]   ;;  %v13955_v33 = vld [vmem:[#allocation2 + $0xdc] ss:$12 sps:$4 sm:$0xff]  }
 0xb47   : > { %v4997_v10 = vsub.f32 %v4983_v32, %v4993_v23  ;;  %v13947_v32 = vld [vmem:[#allocation2 + $0xa8] ss:$12 sps:$4 sm:$0xff]  }
 0xb48   : > { %v5001_v55 = vmul.f32 1.442695, %v4998_v37  ;;  %v13953_v37 = vld [vmem:[#allocation2 + $0xd8] ss:$12 sps:$4 sm:$0xff]   ;;  %v13958_v23 = vld [vmem:[#allocation2 + $0xf4] ss:$12 sps:$4 sm:$0xff]  }
 0xb49   : > { %v4999_v34 = vmul.f32 1.442695, %v4997_v10  ;;  %v13956_v10 = vld [vmem:[#allocation2 + $0xf0] ss:$12 sps:$4 sm:$0xff]  }
 0xb4a   : > { %14878 = vpow2.f32 %v5001_v55  ;;  %v13961_v55 = vld [vmem:[#allocation2 + $0x10c] ss:$12 sps:$4 sm:$0xff]  }
 0xb4b   : > { %14880 = vpow2.f32 %v4999_v34  ;;  %v13959_v34 = vld [vmem:[#allocation2 + $0x108] ss:$12 sps:$4 sm:$0xff]  }
 0xb54   : > { %v14879_v40 = vpop.eup %14878 }
 0xb55   : > { %v14881_v45 = vpop.eup %14880  ;;  %v5006_v50 = vsel %vm4450_vm2, %v14879_v40, 0.0 }
 0xb56   : > { %5007 = vadd.xlane.f32.xlu1 %v5006_v50  ;;  %v5003_v47 = vsel %vm4450_vm2, %v14881_v45, 0.0  ;;  %v13967_v50 = vld [vmem:[#allocation2 + $0x13c] ss:$12 sps:$4 sm:$0xff]  }
 0xb57   : > { %5004 = vadd.xlane.f32.xlu0 %v5003_v47  ;;  %v13965_v47 = vld [vmem:[#allocation2 + $0x138] ss:$12 sps:$4 sm:$0xff]  }
 0xbe3   : > { %v5008_v54 = vpop.xlane.xlu1 %5007 }
 0xbe4   : > { %14882 = vrcp.f32 %v5008_v54  ;;  %v5005_v61 = vpop.xlane.xlu0 %5004  ;;  %v13985_v54 = vld [vmem:[#allocation2 + $0x1cc] ss:$12 sps:$4 sm:$0xff]  }
 0xbe5   : > { %14884 = vrcp.f32 %v5005_v61  ;;  %v13983_v61 = vld [vmem:[#allocation2 + $0x1c8] ss:$12 sps:$4 sm:$0xff]  }
 0xbee   : > { %v14883_v58 = vpop.eup %14882 }
 0xbef   : > { %v14885_v8 = vpop.eup %14884  ;;  %v5012_v13 = vmul.f32 %v14883_v58, %v14879_v40  ;;  %v13964_v40 = vld [vmem:[#allocation2 + $0x124] ss:$12 sps:$4 sm:$0xff]  }
 0xbf0   : > { %v5010_v11 = vmul.f32 %v14885_v8, %v14881_v45  ;;  %v13962_v45 = vld [vmem:[#allocation2 + $0x120] ss:$12 sps:$4 sm:$0xff]   ;;  %v14037_v58 = vld [vmem:[#allocation2 + $0x230] ss:$12 sps:$4 sm:$0xff]  }
 0xbf1   : > { %v13992_v8 = vld [vmem:[#allocation2 + $0x210] ss:$12 sps:$4 sm:$0xff]   ;;  %12788 = vmatpush3.bf16.msra.mxu0 %v14037_v58 }
 0xbf2   : > { %12992 = vmatprep.mubr.msk.f32.mxu1 %vm4450_vm2, %v5010_v11  ;;  %v13997_v11 = vld [vmem:[#allocation2 + $0x22c] ss:$12 sps:$4 sm:$0xff]  }
 0xbf3   : > { %12993 = vmatmul.mubr.msk.f32.vlgmr.msra.gmra.mrb[44].mxu1 %vm4450_vm2, %v5012_v13  ;;  %v14000_v13 = vld [vmem:[#allocation2 + $0x244] ss:$12 sps:$4 sm:$0xff]   ;;  %v14043_v58 = vld [vmem:[%s18264_s11 + $0xc] ss:$48 sps:$4 sm:$0xff]  }
 0xbf4   : > { %5756 = vmatpush1.bf16.msra.mxu1 %v13926_v12  ;;  %5787 = vmatprep.mubr.bf16.mxu1 %v16888_v20  ;;  %v13944_v20 = vld [vmem:[#allocation2 + $0x90] ss:$12 sps:$4 sm:$0xff]   ;;  %v13995_v12 = vld [vmem:[#allocation2 + $0x228] ss:$12 sps:$4 sm:$0xff]  }
 0xbf5   : > { %5757 = vmatprep.subr.bf16.mxu1 %v13931_v4  ;;  %v13998_v4 = vld [vmem:[#allocation2 + $0x240] ss:$12 sps:$4 sm:$0xff]  }
 0xbf8   : > { %5758 = vmatpush1.bf16.msra.mxu1 %v13929_v22  ;;  %v14005_v22 = vld [vmem:[#allocation2 + $0x25c] ss:$12 sps:$4 sm:$0xff]  }
 0xbf9   : > { %5759 = vmatprep.subr.bf16.mxu1 %v13934_v14  ;;  %v14003_v14 = vld [vmem:[#allocation2 + $0x258] ss:$12 sps:$4 sm:$0xff]  }
 0xbfc   : > { %5760 = vmatpush1.bf16.msra.mxu1 %v13932_v15  ;;  %v14010_v15 = vld [vmem:[#allocation2 + $0x274] ss:$12 sps:$4 sm:$0xff]  }
 0xbfd   : > { %5761 = vmatprep.subr.bf16.mxu1 %v13937_v16  ;;  %v14008_v16 = vld [vmem:[#allocation2 + $0x270] ss:$12 sps:$4 sm:$0xff]  }
 0xc00   : > { %5762 = vmatpush1.bf16.msra.mxu1 %v13935_v17  ;;  %v14015_v17 = vld [vmem:[#allocation2 + $0x28c] ss:$12 sps:$4 sm:$0xff]  }
 0xc01   : > { %5763 = vmatprep.subr.bf16.mxu1 %v13940_v18  ;;  %v14013_v18 = vld [vmem:[#allocation2 + $0x288] ss:$12 sps:$4 sm:$0xff]  }
 0xc04   : > { %5764 = vmatpush1.bf16.msra.mxu1 %v13938_v38  ;;  %v14020_v38 = vld [vmem:[#allocation2 + $0x2a4] ss:$12 sps:$4 sm:$0xff]  }
 0xc05   : > { %5765 = vmatprep.subr.bf16.mxu1 %v13943_v29  ;;  %v14018_v29 = vld [vmem:[#allocation2 + $0x2a0] ss:$12 sps:$4 sm:$0xff]  }
 0xc08   : > { %5766 = vmatpush1.bf16.msra.mxu1 %v13941_v21  ;;  %v14025_v21 = vld [vmem:[#allocation2 + $0x2bc] ss:$12 sps:$4 sm:$0xff]  }
 0xc09   : > { %5767 = vmatprep.subr.bf16.mxu1 %v13946_v24  ;;  %v14023_v24 = vld [vmem:[#allocation2 + $0x2b8] ss:$12 sps:$4 sm:$0xff]  }
 0xc0c   : > { %5768 = vmatpush1.bf16.msra.mxu1 %v13944_v20  ;;  %v14030_v20 = vld [vmem:[#allocation2 + $0x2d4] ss:$12 sps:$4 sm:$0xff]  }
 0xc0d   : > { %5769 = vmatprep.subr.bf16.mxu1 %v13949_v31  ;;  %v14028_v31 = vld [vmem:[#allocation2 + $0x2d0] ss:$12 sps:$4 sm:$0xff]  }
 0xc10   : > { %5770 = vmatpush1.bf16.msra.mxu1 %v13947_v32  ;;  %v14035_v32 = vld [vmem:[#allocation2 + $0x2ec] ss:$12 sps:$4 sm:$0xff]  }
 0xc11   : > { %5771 = vmatprep.subr.bf16.mxu1 %v13952_v46  ;;  %v14033_v46 = vld [vmem:[#allocation2 + $0x2e8] ss:$12 sps:$4 sm:$0xff]  }
 0xc14   : > { %5772 = vmatpush1.bf16.msra.mxu1 %v13950_v42 }
 0xc15   : > { %5773 = vmatprep.subr.bf16.mxu1 %v13955_v33 }
 0xc18   : > { %5774 = vmatpush1.bf16.msra.mxu1 %v13953_v37 }
 0xc19   : > { %5775 = vmatprep.subr.bf16.mxu1 %v13958_v23  ;;  %v5226_v23 = vld [vmem:[%s18261_s8] sm:$0x7] }
 0xc1c   : > { %5776 = vmatpush1.bf16.msra.mxu1 %v13956_v10  ;;  %v5231_v10 = vrot.slane %v5226_v23, %v15992_v26 }
 0xc1d   : > { %5777 = vmatprep.subr.bf16.mxu1 %v13961_v55  ;;  %v5239_v55 = vrot.slane %v5226_v23, %v16056_v60 }
 0xc20   : > { %5778 = vmatpush1.bf16.msra.mxu1 %v13959_v34  ;;  %v5235_v34 = vrot.slane %v5226_v23, %v15970_v57  ;;  %v14074_v23 = vld [vmem:[%s18264_s11 + $0x240] ss:$48 sps:$4 sm:$0xff]  }
 0xc21   : > { %5779 = vmatprep.subr.bf16.mxu1 %v13964_v40 }
 0xc24   : > { %5780 = vmatpush1.bf16.msra.mxu1 %v13962_v45 }
 0xc25   : > { %5781 = vmatprep.subr.bf16.mxu1 %v13967_v50 }
 0xc28   : > { %5782 = vmatpush1.bf16.msra.mxu1 %v13965_v47 }
 0xc29   : > { %5783 = vmatprep.subr.bf16.mxu1 %v13970_v53 }
 0xc2c   : > { %5784 = vmatpush1.bf16.msra.mxu1 %v13968_v9  ;;  %v5876_v9 = vadd.f32 %v16898_v3, %v5239_v55 }
 0xc2d   : > { %5785 = vmatprep.subr.bf16.mxu1 %v13973_v36 }
 0xc30   : > { %5786 = vmatpush1.bf16.msra.mxu1 %v13971_v39 }
 0xc31   : > { %5798 = vmatprep.subr.bf16.mxu1 %v13976_v41 }
 0xc33   : > { %5788 = vmatmul.mubr.bf16.vlgmr.msra.gmra.mrb[48].mxu1 %v16870_v49  ;;  %v13994_v49 = vld [vmem:[#allocation2 + $0x214] ss:$12 sps:$4 sm:$0xff]  }
 0xc34   : > { %5799 = vmatpush1.bf16.msra.mxu1 %v13974_v43  ;;  %v5879_v43 = vadd.f32 %v16900_v7, %v5239_v55  ;;  %v14082_v55 = vld [vmem:[%s18264_s11 + $0x2a4] ss:$48 sps:$4 sm:$0xff]  }
 0xc35   : > { %5800 = vmatprep.subr.bf16.mxu1 %v13979_v44 }
 0xc38   : > { %5801 = vmatpush1.bf16.msra.mxu1 %v13977_v48 }
 0xc39   : > { %5802 = vmatprep.subr.bf16.mxu1 %v13982_v51 }
 0xc3c   : > { %5803 = vmatpush1.bf16.msra.mxu1 %v13980_v52 }
 0xc3d   : > { %5804 = vmatprep.subr.bf16.mxu1 %v13985_v54 }
 0xc40   : > { %5805 = vmatpush1.bf16.msra.mxu1 %v13983_v61 }
 0xc41   : > { %5806 = vmatprep.subr.bf16.mxu1 %v13988_v62 }
 0xc44   : > { %5807 = vmatpush1.bf16.msra.mxu1 %v13986_v63 }
 0xc45   : > { %5808 = vmatprep.subr.bf16.mxu1 %v13991_v0 }
 0xc48   : > { %5809 = vmatpush1.bf16.msra.mxu1 %v13989_v1  ;;  %v14038_v1 = vld [vmem:[%s18264_s11] ss:$48 sps:$4 sm:$0xff]  }
 0xc49   : > { %5810 = vmatprep.subr.bf16.mxu1 %v13994_v49  ;;  %v14040_v49 = vld [vmem:[%s18264_s11 + $0x4] ss:$48 sps:$4 sm:$0xff]  }
 0xc4a   : > { %7807 = vmatprep.subr.bf16.mxu0 %v14040_v49 }
 0xc4c   : > { %5811 = vmatpush1.bf16.msra.mxu1 %v13992_v8  ;;  %v14046_v8 = vld [vmem:[%s18264_s11 + $0x64] ss:$48 sps:$4 sm:$0xff]  }
 0xc4d   : > { %5812 = vmatprep.subr.bf16.mxu1 %v13997_v11  ;;  %v14049_v11 = vld [vmem:[%s18264_s11 + $0x6c] ss:$48 sps:$4 sm:$0xff]  }
 0xc50   : > { %5813 = vmatpush1.bf16.msra.mxu1 %v13995_v12  ;;  %v14044_v12 = vld [vmem:[%s18264_s11 + $0x60] ss:$48 sps:$4 sm:$0xff]  }
 0xc51   : > { %5814 = vmatprep.subr.bf16.mxu1 %v14000_v13  ;;  %v14047_v13 = vld [vmem:[%s18264_s11 + $0x68] ss:$48 sps:$4 sm:$0xff]  }
 0xc54   : > { %5815 = vmatpush1.bf16.msra.mxu1 %v13998_v4  ;;  %v14052_v4 = vld [vmem:[%s18264_s11 + $0xc4] ss:$48 sps:$4 sm:$0xff]  }
 0xc55   : > { %5816 = vmatprep.subr.bf16.mxu1 %v14005_v22  ;;  %v14055_v22 = vld [vmem:[%s18264_s11 + $0xcc] ss:$48 sps:$4 sm:$0xff]  }
 0xc58   : > { %5817 = vmatpush1.bf16.msra.mxu1 %v14003_v14  ;;  %v14050_v14 = vld [vmem:[%s18264_s11 + $0xc0] ss:$48 sps:$4 sm:$0xff]  }
 0xc59   : > { %5818 = vmatprep.subr.bf16.mxu1 %v14010_v15  ;;  %v14053_v15 = vld [vmem:[%s18264_s11 + $0xc8] ss:$48 sps:$4 sm:$0xff]  }
 0xc5c   : > { %5819 = vmatpush1.bf16.msra.mxu1 %v14008_v16  ;;  %v14058_v16 = vld [vmem:[%s18264_s11 + $0x124] ss:$48 sps:$4 sm:$0xff]  }
 0xc5d   : > { %5820 = vmatprep.subr.bf16.mxu1 %v14015_v17  ;;  %v14061_v17 = vld [vmem:[%s18264_s11 + $0x12c] ss:$48 sps:$4 sm:$0xff]  }
 0xc60   : > { %5821 = vmatpush1.bf16.msra.mxu1 %v14013_v18  ;;  %v14056_v18 = vld [vmem:[%s18264_s11 + $0x120] ss:$48 sps:$4 sm:$0xff]  }
 0xc61   : > { %5822 = vmatprep.subr.bf16.mxu1 %v14020_v38  ;;  %v14059_v38 = vld [vmem:[%s18264_s11 + $0x128] ss:$48 sps:$4 sm:$0xff]  }
 0xc64   : > { %5823 = vmatpush1.bf16.msra.mxu1 %v14018_v29  ;;  %v14064_v29 = vld [vmem:[%s18264_s11 + $0x184] ss:$48 sps:$4 sm:$0xff]  }
 0xc65   : > { %5824 = vmatprep.subr.bf16.mxu1 %v14025_v21  ;;  %v14067_v21 = vld [vmem:[%s18264_s11 + $0x18c] ss:$48 sps:$4 sm:$0xff]  }
 0xc68   : > { %5825 = vmatpush1.bf16.msra.mxu1 %v14023_v24  ;;  %v14062_v24 = vld [vmem:[%s18264_s11 + $0x180] ss:$48 sps:$4 sm:$0xff]  }
 0xc69   : > { %5826 = vmatprep.subr.bf16.mxu1 %v14030_v20  ;;  %v14065_v20 = vld [vmem:[%s18264_s11 + $0x188] ss:$48 sps:$4 sm:$0xff]  }
 0xc6c   : > { %5827 = vmatpush1.bf16.msra.mxu1 %v14028_v31  ;;  %v14070_v31 = vld [vmem:[%s18264_s11 + $0x1e4] ss:$48 sps:$4 sm:$0xff]  }
 0xc6d   : > { %5828 = vmatprep.subr.bf16.mxu1 %v14035_v32  ;;  %v14073_v32 = vld [vmem:[%s18264_s11 + $0x1ec] ss:$48 sps:$4 sm:$0xff]  }
 0xc70   : > { %5829 = vmatpush1.bf16.msra.mxu1 %v14033_v46  ;;  %v14068_v46 = vld [vmem:[%s18264_s11 + $0x1e0] ss:$48 sps:$4 sm:$0xff]  }
 0xc71   : > { %7893 = vmatprep.subr.bf16.mxu1 %v14043_v58 }
 0xcc6   : > { %v12994_v42 = vpop.f32.mrb[44].mxu1 }
 0xcc7   : > { %v5085_v33 = vpop.f32.mrb[45].mxu1 }
 0xcc8   : > { %v5097_v37 = vpack.c.bf16 %v12994_v42, %v5085_v33  ;;  %v14071_v42 = vld [vmem:[%s18264_s11 + $0x1e8] ss:$48 sps:$4 sm:$0xff]   ;;  %v14076_v33 = vld [vmem:[%s18264_s11 + $0x244] ss:$48 sps:$4 sm:$0xff]  }
 0xcca   : > { %5830 = vmatprep.mubr.bf16.mxu1 %v5097_v37  ;;  %5914 = vmatprep.mubr.bf16.mxu0 %v5097_v37  ;;  %v14079_v37 = vld [vmem:[%s18264_s11 + $0x24c] ss:$48 sps:$4 sm:$0xff]  }
 0xccb   : > { %5831 = vmatmul.mubr.bf16.vlgmr.msra.gmra.mrb[48].mxu1 %v16911_v19  ;;  %5915 = vmatmul.mubr.bf16.vlgmr.msra.gmra.mrb[20].mxu0 %v16911_v19 }
 0xccc   : > { %7808 = vmatpush1.bf16.msra.mxu0 %v14038_v1  ;;  %7894 = vmatpush1.bf16.msra.mxu1 %v14041_v5 }
 0xccd   : > { %7809 = vmatprep.subr.bf16.mxu0 %v14046_v8  ;;  %7895 = vmatprep.subr.bf16.mxu1 %v14049_v11 }
 0xcd0   : > { %7810 = vmatpush1.bf16.msra.mxu0 %v14044_v12  ;;  %7896 = vmatpush1.bf16.msra.mxu1 %v14047_v13 }
 0xcd1   : > { %7811 = vmatprep.subr.bf16.mxu0 %v14052_v4  ;;  %7897 = vmatprep.subr.bf16.mxu1 %v14055_v22  ;;  %v14100_v4 = vld [vmem:[%s18264_s11 + $0x3c4] ss:$48 sps:$4 sm:$0xff]   ;;  %v14103_v22 = vld [vmem:[%s18264_s11 + $0x3cc] ss:$48 sps:$4 sm:$0xff]  }
 0xcd4   : > { %7812 = vmatpush1.bf16.msra.mxu0 %v14050_v14  ;;  %7898 = vmatpush1.bf16.msra.mxu1 %v14053_v15  ;;  %v14098_v14 = vld [vmem:[%s18264_s11 + $0x3c0] ss:$48 sps:$4 sm:$0xff]   ;;  %v14101_v15 = vld [vmem:[%s18264_s11 + $0x3c8] ss:$48 sps:$4 sm:$0xff]  }
 0xcd5   : > { %7813 = vmatprep.subr.bf16.mxu0 %v14058_v16  ;;  %7899 = vmatprep.subr.bf16.mxu1 %v14061_v17  ;;  %v14106_v16 = vld [vmem:[%s18264_s11 + $0x424] ss:$48 sps:$4 sm:$0xff]   ;;  %v14109_v17 = vld [vmem:[%s18264_s11 + $0x42c] ss:$48 sps:$4 sm:$0xff]  }
 0xcd8   : > { %7814 = vmatpush1.bf16.msra.mxu0 %v14056_v18  ;;  %7900 = vmatpush1.bf16.msra.mxu1 %v14059_v38  ;;  %v14104_v18 = vld [vmem:[%s18264_s11 + $0x420] ss:$48 sps:$4 sm:$0xff]   ;;  %v14107_v38 = vld [vmem:[%s18264_s11 + $0x428] ss:$48 sps:$4 sm:$0xff]  }
 0xcd9   : > { %7815 = vmatprep.subr.bf16.mxu0 %v14064_v29  ;;  %7901 = vmatprep.subr.bf16.mxu1 %v14067_v21  ;;  %v14112_v29 = vld [vmem:[%s18264_s11 + $0x484] ss:$48 sps:$4 sm:$0xff]   ;;  %v14110_v21 = vld [vmem:[%s18264_s11 + $0x480] ss:$48 sps:$4 sm:$0xff]  }
 0xcdc   : > { %7816 = vmatpush1.bf16.msra.mxu0 %v14062_v24  ;;  %7902 = vmatpush1.bf16.msra.mxu1 %v14065_v20  ;;  %v14113_v24 = vld [vmem:[%s18264_s11 + $0x488] ss:$48 sps:$4 sm:$0xff]   ;;  %v14115_v20 = vld [vmem:[%s18264_s11 + $0x48c] ss:$48 sps:$4 sm:$0xff]  }
 0xcdd   : > { %7817 = vmatprep.subr.bf16.mxu0 %v14070_v31  ;;  %7903 = vmatprep.subr.bf16.mxu1 %v14073_v32  ;;  %v14118_v31 = vld [vmem:[%s18264_s11 + $0x4e4] ss:$48 sps:$4 sm:$0xff]   ;;  %v14121_v32 = vld [vmem:[%s18264_s11 + $0x4ec] ss:$48 sps:$4 sm:$0xff]  }
 0xce0   : > { %7818 = vmatpush1.bf16.msra.mxu0 %v14068_v46  ;;  %7904 = vmatpush1.bf16.msra.mxu1 %v14071_v42  ;;  %v14116_v46 = vld [vmem:[%s18264_s11 + $0x4e0] ss:$48 sps:$4 sm:$0xff]   ;;  %v14119_v42 = vld [vmem:[%s18264_s11 + $0x4e8] ss:$48 sps:$4 sm:$0xff]  }
 0xce1   : > { %7819 = vmatprep.subr.bf16.mxu0 %v14076_v33  ;;  %7905 = vmatprep.subr.bf16.mxu1 %v14079_v37  ;;  %v14124_v33 = vld [vmem:[%s18264_s11 + $0x544] ss:$48 sps:$4 sm:$0xff]   ;;  %v14127_v37 = vld [vmem:[%s18264_s11 + $0x54c] ss:$48 sps:$4 sm:$0xff]  }
 0xce4   : > { %7820 = vmatpush1.bf16.msra.mxu0 %v14074_v23  ;;  %v14122_v23 = vld [vmem:[%s18264_s11 + $0x540] ss:$48 sps:$4 sm:$0xff]  }
 0xce5   : > { %7821 = vmatprep.subr.bf16.mxu0 %v14082_v55  ;;  %v14130_v55 = vld [vmem:[%s18264_s11 + $0x5a4] ss:$48 sps:$4 sm:$0xff]  }
 0xd9e   : > { %v5832_v40 = vpop.f32.mrb[48].mxu1  ;;  %v12789_v45 = vpop.f32.mrb[20].mxu0 }
 0xd9f   : > { %v16931_v50 = vadd.f32 %v5832_v40, %v5231_v10  ;;  %v5834_v47 = vpop.f32.mrb[49].mxu1  ;;  %v12790_v53 = vpop.f32.mrb[21].mxu0  ;;  %v14080_v40 = vld [vmem:[%s18264_s11 + $0x2a0] ss:$48 sps:$4 sm:$0xff]  }
 0xda0   : > { %v16934_v36 = vadd.f32 %v5834_v47, %v5235_v34  ;;  %v12791_v19 = vadd.f32 %v12790_v53, %v12789_v45  ;;  %v5836_v39 = vpop.f32.mrb[50].mxu1  ;;  %v12792_v41 = vpop.f32.mrb[22].mxu0  ;;  %v14083_v45 = vld [vmem:[%s18264_s11 + $0x2a8] ss:$48 sps:$4 sm:$0xff]   ;;  %v14088_v47 = vld [vmem:[%s18264_s11 + $0x304] ss:$48 sps:$4 sm:$0xff]   ;;  %7822 = vmatpush1.bf16.msra.mxu0 %v14080_v40 }
 0xda1   : > { %v16937_v44 = vadd.f32 %v5836_v39, %v5231_v10  ;;  %v5838_v48 = vpop.f32.mrb[51].mxu1  ;;  %v12793_v51 = vpop.f32.mrb[23].mxu0  ;;  %v14077_v10 = vld [vmem:[%s18264_s11 + $0x248] ss:$48 sps:$4 sm:$0xff]   ;;  %v14091_v53 = vld [vmem:[%s18264_s11 + $0x30c] ss:$48 sps:$4 sm:$0xff]   ;;  %7823 = vmatprep.subr.bf16.mxu0 %v14088_v47 }
 0xda2   : > { %v5923_v52 = vadd.f32 %v16934_v36, %v16931_v50  ;;  %v16941_v54 = vadd.f32 %v12791_v19, %v5876_v9  ;;  %v16943_v61 = vadd.f32 %v5838_v48, %v5235_v34  ;;  %v12794_v62 = vadd.f32 %v12793_v51, %v12792_v41  ;;  %v14085_v34 = vld [vmem:[%s18264_s11 + $0x2ac] ss:$48 sps:$4 sm:$0xff]   ;;  %7906 = vmatpush1.bf16.msra.mxu1 %v14077_v10  ;;  %v14086_v9 = vld [vmem:[%s18264_s11 + $0x300] ss:$48 sps:$4 sm:$0xff]   ;;  %v14089_v19 = vld [vmem:[%s18264_s11 + $0x308] ss:$48 sps:$4 sm:$0xff]  }
 0xda3   : > { %7907 = vmatprep.subr.bf16.mxu1 %v14085_v34  ;;  %v14094_v39 = vld [vmem:[%s18264_s11 + $0x364] ss:$48 sps:$4 sm:$0xff]   ;;  %v14097_v41 = vld [vmem:[%s18264_s11 + $0x36c] ss:$48 sps:$4 sm:$0xff]   ;;  %v14095_v48 = vld [vmem:[%s18264_s11 + $0x368] ss:$48 sps:$4 sm:$0xff]  }
 0xda4   : > { %v5927_v3 = vadd.f32 %v16943_v61, %v16937_v44  ;;  %v16947_v63 = vadd.f32 %v12794_v62, %v5879_v43  ;;  %v5924_v0 = vadd.f32 %v5923_v52, %v16941_v54  ;;  %7824 = vmatpush1.bf16.msra.mxu0 %v14086_v9  ;;  %v14092_v43 = vld [vmem:[%s18264_s11 + $0x360] ss:$48 sps:$4 sm:$0xff]   ;;  %v14125_v10 = vld [vmem:[%s18264_s11 + $0x548] ss:$48 sps:$4 sm:$0xff]   ;;  %v14133_v34 = vld [vmem:[%s18264_s11 + $0x5ac] ss:$48 sps:$4 sm:$0xff]  }
 0xda5   : > { %7825 = vmatprep.subr.bf16.mxu0 %v14094_v39  ;;  %v14128_v40 = vld [vmem:[%s18264_s11 + $0x5a0] ss:$48 sps:$4 sm:$0xff]   ;;  %v14136_v47 = vld [vmem:[%s18264_s11 + $0x604] ss:$48 sps:$4 sm:$0xff]  }
 0xda6   : > { %5925 = vadd.xlane.f32.xlu0 %v5924_v0  ;;  %v5928_v7 = vadd.f32 %v5927_v3, %v16947_v63  ;;  %7908 = vmatpush1.bf16.msra.mxu1 %v14083_v45  ;;  %v14131_v45 = vld [vmem:[%s18264_s11 + $0x5a8] ss:$48 sps:$4 sm:$0xff]  }
 0xda7   : > { %7909 = vmatprep.subr.bf16.mxu1 %v14091_v53  ;;  %v14139_v53 = vld [vmem:[%s18264_s11 + $0x60c] ss:$48 sps:$4 sm:$0xff]  }
 0xda8   : > { %5929 = vadd.xlane.f32.xlu1 %v5928_v7  ;;  %7826 = vmatpush1.bf16.msra.mxu0 %v14092_v43 }
 0xda9   : > { %7827 = vmatprep.subr.bf16.mxu0 %v14100_v4 }
 0xdaa   : > { %7910 = vmatpush1.bf16.msra.mxu1 %v14089_v19 }
 0xdab   : > { %7911 = vmatprep.subr.bf16.mxu1 %v14097_v41 }
 0xdac   : > { %7828 = vmatpush1.bf16.msra.mxu0 %v14098_v14 }
 0xdad   : > { %7829 = vmatprep.subr.bf16.mxu0 %v14106_v16 }
 0xdae   : > { %7912 = vmatpush1.bf16.msra.mxu1 %v14095_v48 }
 0xdaf   : > { %7913 = vmatprep.subr.bf16.mxu1 %v14103_v22 }
 0xdb0   : > { %7830 = vmatpush1.bf16.msra.mxu0 %v14104_v18  ;;  %v14142_v18 = vld [vmem:[%s18264_s11 + $0x664] ss:$48 sps:$4 sm:$0xff]  }
 0xdb1   : > { %7831 = vmatprep.subr.bf16.mxu0 %v14112_v29  ;;  %v14140_v29 = vld [vmem:[%s18264_s11 + $0x660] ss:$48 sps:$4 sm:$0xff]  }
 0xdb2   : > { %7914 = vmatpush1.bf16.msra.mxu1 %v14101_v15 }
 0xdb3   : > { %7915 = vmatprep.subr.bf16.mxu1 %v14109_v17 }
 0xdb4   : > { %7832 = vmatpush1.bf16.msra.mxu0 %v14110_v21  ;;  %v14143_v21 = vld [vmem:[%s18264_s11 + $0x668] ss:$48 sps:$4 sm:$0xff]  }
 0xdb5   : > { %7833 = vmatprep.subr.bf16.mxu0 %v14118_v31  ;;  %v14146_v31 = vld [vmem:[%s18264_s11 + $0x6c0] ss:$48 sps:$4 sm:$0xff]  }
 0xdb6   : > { %7916 = vmatpush1.bf16.msra.mxu1 %v14107_v38  ;;  %v14145_v38 = vld [vmem:[%s18264_s11 + $0x66c] ss:$48 sps:$4 sm:$0xff]  }
 0xdb7   : > { %7917 = vmatprep.subr.bf16.mxu1 %v14115_v20  ;;  %v14151_v20 = vld [vmem:[%s18264_s11 + $0x6cc] ss:$48 sps:$4 sm:$0xff]  }
 0xdb8   : > { %7834 = vmatpush1.bf16.msra.mxu0 %v14116_v46  ;;  %v14154_v46 = vld [vmem:[%s18264_s11 + $0x724] ss:$48 sps:$4 sm:$0xff]  }
 0xdb9   : > { %7835 = vmatprep.subr.bf16.mxu0 %v14124_v33  ;;  %v14152_v33 = vld [vmem:[%s18264_s11 + $0x720] ss:$48 sps:$4 sm:$0xff]  }
 0xdba   : > { %7918 = vmatpush1.bf16.msra.mxu1 %v14113_v24  ;;  %v14148_v24 = vld [vmem:[%s18264_s11 + $0x6c4] ss:$48 sps:$4 sm:$0xff]  }
 0xdbb   : > { %7919 = vmatprep.subr.bf16.mxu1 %v14121_v32  ;;  %v14149_v32 = vld [vmem:[%s18264_s11 + $0x6c8] ss:$48 sps:$4 sm:$0xff]  }
 0xdbc   : > { %7836 = vmatpush1.bf16.msra.mxu0 %v14122_v23  ;;  %v14160_v23 = vld [vmem:[%s18264_s11 + $0x784] ss:$48 sps:$4 sm:$0xff]  }
 0xdbd   : > { %7837 = vmatprep.subr.bf16.mxu0 %v14130_v55  ;;  %v14158_v55 = vld [vmem:[%s18264_s11 + $0x780] ss:$48 sps:$4 sm:$0xff]  }
 0xdbe   : > { %7920 = vmatpush1.bf16.msra.mxu1 %v14119_v42  ;;  %v14157_v42 = vld [vmem:[%s18264_s11 + $0x72c] ss:$48 sps:$4 sm:$0xff]  }
 0xdbf   : > { %7921 = vmatprep.subr.bf16.mxu1 %v14127_v37  ;;  %v14155_v37 = vld [vmem:[%s18264_s11 + $0x728] ss:$48 sps:$4 sm:$0xff]  }
 0xdc0   : > { %7838 = vmatpush1.bf16.msra.mxu0 %v14128_v40  ;;  %v14166_v40 = vld [vmem:[%s18264_s11 + $0x7e4] ss:$48 sps:$4 sm:$0xff]  }
 0xdc1   : > { %7850 = vmatprep.subr.bf16.mxu0 %v14136_v47  ;;  %v14164_v47 = vld [vmem:[%s18264_s11 + $0x7e0] ss:$48 sps:$4 sm:$0xff]  }
 0xdc2   : > { %7922 = vmatpush1.bf16.msra.mxu1 %v14125_v10  ;;  %v14163_v10 = vld [vmem:[%s18264_s11 + $0x78c] ss:$48 sps:$4 sm:$0xff]  }
 0xdc3   : > { %7923 = vmatprep.subr.bf16.mxu1 %v14133_v34  ;;  %v14161_v34 = vld [vmem:[%s18264_s11 + $0x788] ss:$48 sps:$4 sm:$0xff]  }
 0xdc6   : > { %7924 = vmatpush1.bf16.msra.mxu1 %v14131_v45  ;;  %v14169_v45 = vld [vmem:[%s18264_s11 + $0x7ec] ss:$48 sps:$4 sm:$0xff]  }
 0xdc7   : > { %7936 = vmatprep.subr.bf16.mxu1 %v14139_v53  ;;  %v14167_v53 = vld [vmem:[%s18264_s11 + $0x7e8] ss:$48 sps:$4 sm:$0xff]  }
 0xe33   : > { %v5926_v51 = vpop.xlane.xlu0 %5925 }
 0xe34   : > { %v5932_v52 = vmul.f32 0.0026041667, %v5926_v51  ;;  %v17182_v51 = vld [vmem:[%s18262_s9] sm:$0x7] }
 0xe35   : > { %v5930_v62 = vpop.xlane.xlu1 %5929 }
 0xe36   : > { %v17072_v3 = vsub.f32 %v16931_v50, %v5932_v52  ;;  %v17075_v0 = vsub.f32 %v16934_v36, %v5932_v52  ;;  %v5933_v7 = vmul.f32 0.0026041667, %v5930_v62  ;;  %v17078_v1 = vsub.f32 %v16941_v54, %v5932_v52  ;;  %v17189_v62 = vld [vmem:[%s18263_s10] sm:$0x7] }
 0xe37   : > { %v5975_v52 = vrot.slane %v17182_v51, %v15970_v57 }
 0xe38   : > { %v17081_v49 = vsub.f32 %v16937_v44, %v5933_v7  ;;  %v17084_v5 = vsub.f32 %v16943_v61, %v5933_v7  ;;  %v17087_v58 = vsub.f32 %v16947_v63, %v5933_v7  ;;  %v5940_v50 = vmul.f32 %v17072_v3, %v17072_v3 }
 0xe39   : > { %v5941_v36 = vmul.f32 %v17075_v0, %v17075_v0  ;;  %v5942_v44 = vmul.f32 %v17078_v1, %v17078_v1  ;;  %v5971_v7 = vrot.slane %v17182_v51, %v15992_v26 }
 0xe3a   : > { %v5943_v8 = vmul.f32 %v17081_v49, %v17081_v49  ;;  %v5944_v54 = vmul.f32 %v17084_v5, %v17084_v5  ;;  %v5945_v63 = vmul.f32 %v17087_v58, %v17087_v58 }
 0xe3b   : > { %v5946_v61 = vadd.f32 %v5941_v36, %v5940_v50 }
 0xe3c   : > { %v5950_v11 = vadd.f32 %v5944_v54, %v5943_v8 }
 0xe3d   : > { %v5947_v12 = vadd.f32 %v5946_v61, %v5942_v44  ;;  %v5998_v61 = vrot.slane %v17189_v62, %v15970_v57 }
 0xe3e   : > { %v5951_v13 = vadd.f32 %v5950_v11, %v5945_v63  ;;  %v5994_v11 = vrot.slane %v17189_v62, %v15992_v26 }
 0xe3f   : > { %5948 = vadd.xlane.f32.xlu0 %v5947_v12 }
 0xe40   : > { %5952 = vadd.xlane.f32.xlu1 %v5951_v13 }
 0xecc   : > { %v5949_v9 = vpop.xlane.xlu0 %5948 }
 0xecd   : > { %v5954_v19 = vmul.f32 0.0026041667, %v5949_v9  ;;  %v5953_v39 = vpop.xlane.xlu1 %5952  ;;  %v14172_v9 = vld [vmem:[%s18264_s11 + $0x844] ss:$48 sps:$4 sm:$0xff]  }
 0xece   : > { %v5955_v41 = vmul.f32 0.0026041667, %v5953_v39 }
 0xecf   : > { %v5956_v43 = vadd.f32 1e-05, %v5954_v19  ;;  %v14175_v19 = vld [vmem:[%s18264_s11 + $0x84c] ss:$48 sps:$4 sm:$0xff]  }
 0xed0   : > { %v5957_v48 = vadd.f32 1e-05, %v5955_v41 }
 0xed1   : > { %14886 = vrsqrt.f32 %v5956_v43  ;;  %v5979_v43 = vrot.slane %v17182_v51, %v16056_v60 }
 0xed2   : > { %14888 = vrsqrt.f32 %v5957_v48  ;;  %v14170_v48 = vld [vmem:[%s18264_s11 + $0x840] ss:$48 sps:$4 sm:$0xff]  }
 0xedb   : > { %v17193_v50 = vpop.eup %14886 }
 0xedc   : > { %v17195_v36 = vpop.eup %14888  ;;  %v5961_v8 = vmul.f32 %v17193_v50, %v17075_v0  ;;  %v5960_v54 = vmul.f32 %v17193_v50, %v17072_v3  ;;  %v5962_v41 = vmul.f32 %v17193_v50, %v17078_v1  ;;  %v14181_v1 = vld [vmem:[%s18264_s11 + $0x8ac] ss:$48 sps:$4 sm:$0xff]   ;;  %v6002_v50 = vrot.slane %v17189_v62, %v16056_v60 }
 0xedd   : > { %v5964_v44 = vmul.f32 %v17195_v36, %v17084_v5  ;;  %v5963_v63 = vmul.f32 %v17195_v36, %v17081_v49  ;;  %v14134_v5 = vld [vmem:[%s18264_s11 + $0x600] ss:$48 sps:$4 sm:$0xff]   ;;  %v14137_v49 = vld [vmem:[%s18264_s11 + $0x608] ss:$48 sps:$4 sm:$0xff]   ;;  %v5965_v39 = vmul.f32 %v17195_v36, %v17087_v58  ;;  %v14178_v58 = vld [vmem:[%s18264_s11 + $0x8a4] ss:$48 sps:$4 sm:$0xff]  }
 0xede   : > { %v5984_v12 = vmul.f32 %v5975_v52, %v5961_v8  ;;  %v5983_v13 = vmul.f32 %v5971_v7, %v5960_v54  ;;  %v14176_v36 = vld [vmem:[%s18264_s11 + $0x8a0] ss:$48 sps:$4 sm:$0xff]   ;;  %v14179_v8 = vld [vmem:[%s18264_s11 + $0x8a8] ss:$48 sps:$4 sm:$0xff]   ;;  %v14187_v62 = vld [vmem:[%s18264_s11 + $0x1c] ss:$48 sps:$4 sm:$0xff]  }
 0xedf   : > { %v5987_v4 = vmul.f32 %v5975_v52, %v5964_v44  ;;  %v5986_v22 = vmul.f32 %v5971_v7, %v5963_v63  ;;  %v14173_v52 = vld [vmem:[%s18264_s11 + $0x848] ss:$48 sps:$4 sm:$0xff]   ;;  %v5988_v51 = vmul.f32 %v5979_v43, %v5965_v39  ;;  %v5985_v7 = vmul.f32 %v5979_v43, %v5962_v41  ;;  %v14184_v44 = vld [vmem:[%s18264_s11 + $0x14] ss:$48 sps:$4 sm:$0xff]   ;;  %v14182_v63 = vld [vmem:[%s18264_s11 + $0x10] ss:$48 sps:$4 sm:$0xff]  }
 0xee0   : > { %v6007_v0 = vadd.f32 %v5998_v61, %v5984_v12  ;;  %v6006_v15 = vadd.f32 %v5994_v11, %v5983_v13  ;;  %v14185_v12 = vld [vmem:[%s18264_s11 + $0x18] ss:$48 sps:$4 sm:$0xff]   ;;  %v14190_v13 = vld [vmem:[%s18264_s11 + $0x74] ss:$48 sps:$4 sm:$0xff]   ;;  %v14241_v43 = vld [vmem:[%s18264_s11 + $0x37c] ss:$48 sps:$4 sm:$0xff]  }
 0xee1   : > { %v6010_v14 = vadd.f32 %v5998_v61, %v5987_v4  ;;  %v6009_v3 = vadd.f32 %v5994_v11, %v5986_v22  ;;  %v6011_v54 = vadd.f32 %v6002_v50, %v5988_v51  ;;  %v6008_v61 = vadd.f32 %v6002_v50, %v5985_v7  ;;  %v14193_v4 = vld [vmem:[%s18264_s11 + $0x7c] ss:$48 sps:$4 sm:$0xff]   ;;  %v14188_v22 = vld [vmem:[%s18264_s11 + $0x70] ss:$48 sps:$4 sm:$0xff]   ;;  %v14233_v39 = vld [vmem:[%s18264_s11 + $0x318] ss:$48 sps:$4 sm:$0xff]  }
 0xee2   : > { %v14238_v41 = vld [vmem:[%s18264_s11 + $0x374] ss:$48 sps:$4 sm:$0xff]   ;;  %v14242_v51 = vld [vmem:[%s18264_s11 + $0x3d0] ss:$48 sps:$4 sm:$0xff]   ;;  %v14245_v7 = vld [vmem:[%s18264_s11 + $0x3d8] ss:$48 sps:$4 sm:$0xff]  }
 0xee3   : > { %v17209_v16 = vpack.c.bf16 %v6010_v14, %v6007_v0  ;;  %v17217_v17 = vpack.c.bf16 %v6009_v3, %v6006_v15  ;;  %v17326_v11 = vpack.c.bf16 %v6011_v54, %v6008_v61  ;;  %v14191_v0 = vld [vmem:[%s18264_s11 + $0x78] ss:$48 sps:$4 sm:$0xff]   ;;  %v14196_v14 = vld [vmem:[%s18264_s11 + $0xd4] ss:$48 sps:$4 sm:$0xff]   ;;  %v14199_v15 = vld [vmem:[%s18264_s11 + $0xdc] ss:$48 sps:$4 sm:$0xff]  }
 0xee4   : > { %v14194_v3 = vld [vmem:[%s18264_s11 + $0xd0] ss:$48 sps:$4 sm:$0xff]   ;;  %v14250_v50 = vld [vmem:[%s18264_s11 + $0x434] ss:$48 sps:$4 sm:$0xff]   ;;  %v14251_v54 = vld [vmem:[%s18264_s11 + $0x438] ss:$48 sps:$4 sm:$0xff]  }
 0xee5   : > { %7839 = vmatprep.mubr.bf16.mxu0 %v17209_v16  ;;  %7925 = vmatprep.mubr.bf16.mxu1 %v17209_v16  ;;  %v14254_v61 = vld [vmem:[%s18264_s11 + $0x490] ss:$48 sps:$4 sm:$0xff]  }
 0xee6   : > { %7840 = vmatmul.mubr.bf16.vlgmr.msra.gmra.mrb[24].mxu0 %v17217_v17  ;;  %7926 = vmatmul.mubr.bf16.vlgmr.msra.gmra.mrb[52].mxu1 %v17217_v17 }
 0xee7   : > { %7851 = vmatpush1.bf16.msra.mxu0 %v14134_v5  ;;  %7937 = vmatpush1.bf16.msra.mxu1 %v14137_v49  ;;  %v14197_v5 = vld [vmem:[%s18264_s11 + $0xd8] ss:$48 sps:$4 sm:$0xff]   ;;  %v14202_v49 = vld [vmem:[%s18264_s11 + $0x134] ss:$48 sps:$4 sm:$0xff]  }
 0xee8   : > { %7852 = vmatprep.subr.bf16.mxu0 %v14142_v18  ;;  %7938 = vmatprep.subr.bf16.mxu1 %v14145_v38  ;;  %v14205_v18 = vld [vmem:[%s18264_s11 + $0x13c] ss:$48 sps:$4 sm:$0xff]   ;;  %v14200_v38 = vld [vmem:[%s18264_s11 + $0x130] ss:$48 sps:$4 sm:$0xff]  }
 0xee9   : > { %7882 = vmatprep.mubr.bf16.mxu0 %v15159_v30  ;;  %7968 = vmatprep.mubr.bf16.mxu1 %v15159_v30 }
 0xeeb   : > { %7853 = vmatpush1.bf16.msra.mxu0 %v14140_v29  ;;  %7939 = vmatpush1.bf16.msra.mxu1 %v14143_v21  ;;  %v14203_v29 = vld [vmem:[%s18264_s11 + $0x138] ss:$48 sps:$4 sm:$0xff]   ;;  %v14208_v21 = vld [vmem:[%s18264_s11 + $0x194] ss:$48 sps:$4 sm:$0xff]  }
 0xeec   : > { %7854 = vmatprep.subr.bf16.mxu0 %v14148_v24  ;;  %7940 = vmatprep.subr.bf16.mxu1 %v14151_v20  ;;  %v14211_v24 = vld [vmem:[%s18264_s11 + $0x19c] ss:$48 sps:$4 sm:$0xff]   ;;  %v14206_v20 = vld [vmem:[%s18264_s11 + $0x190] ss:$48 sps:$4 sm:$0xff]  }
 0xeef   : > { %7855 = vmatpush1.bf16.msra.mxu0 %v14146_v31  ;;  %7941 = vmatpush1.bf16.msra.mxu1 %v14149_v32  ;;  %v14209_v31 = vld [vmem:[%s18264_s11 + $0x198] ss:$48 sps:$4 sm:$0xff]   ;;  %v14214_v32 = vld [vmem:[%s18264_s11 + $0x1f4] ss:$48 sps:$4 sm:$0xff]  }
 0xef0   : > { %7856 = vmatprep.subr.bf16.mxu0 %v14154_v46  ;;  %7942 = vmatprep.subr.bf16.mxu1 %v14157_v42  ;;  %v14217_v46 = vld [vmem:[%s18264_s11 + $0x1fc] ss:$48 sps:$4 sm:$0xff]   ;;  %v14212_v42 = vld [vmem:[%s18264_s11 + $0x1f0] ss:$48 sps:$4 sm:$0xff]  }
 0xef3   : > { %7857 = vmatpush1.bf16.msra.mxu0 %v14152_v33  ;;  %7943 = vmatpush1.bf16.msra.mxu1 %v14155_v37  ;;  %v14215_v33 = vld [vmem:[%s18264_s11 + $0x1f8] ss:$48 sps:$4 sm:$0xff]   ;;  %v14220_v37 = vld [vmem:[%s18264_s11 + $0x254] ss:$48 sps:$4 sm:$0xff]  }
 0xef4   : > { %7858 = vmatprep.subr.bf16.mxu0 %v14160_v23  ;;  %7944 = vmatprep.subr.bf16.mxu1 %v14163_v10  ;;  %v14223_v23 = vld [vmem:[%s18264_s11 + $0x25c] ss:$48 sps:$4 sm:$0xff]   ;;  %v14218_v10 = vld [vmem:[%s18264_s11 + $0x250] ss:$48 sps:$4 sm:$0xff]  }
 0xef7   : > { %7859 = vmatpush1.bf16.msra.mxu0 %v14158_v55  ;;  %7945 = vmatpush1.bf16.msra.mxu1 %v14161_v34  ;;  %v14221_v55 = vld [vmem:[%s18264_s11 + $0x258] ss:$48 sps:$4 sm:$0xff]   ;;  %v14226_v34 = vld [vmem:[%s18264_s11 + $0x2b4] ss:$48 sps:$4 sm:$0xff]  }
 0xef8   : > { %7860 = vmatprep.subr.bf16.mxu0 %v14166_v40  ;;  %7946 = vmatprep.subr.bf16.mxu1 %v14169_v45  ;;  %v14229_v40 = vld [vmem:[%s18264_s11 + $0x2bc] ss:$48 sps:$4 sm:$0xff]   ;;  %v14224_v45 = vld [vmem:[%s18264_s11 + $0x2b0] ss:$48 sps:$4 sm:$0xff]  }
 0xefb   : > { %7861 = vmatpush1.bf16.msra.mxu0 %v14164_v47  ;;  %7947 = vmatpush1.bf16.msra.mxu1 %v14167_v53  ;;  %v14227_v47 = vld [vmem:[%s18264_s11 + $0x2b8] ss:$48 sps:$4 sm:$0xff]   ;;  %v14232_v53 = vld [vmem:[%s18264_s11 + $0x314] ss:$48 sps:$4 sm:$0xff]  }
 0xefc   : > { %7862 = vmatprep.subr.bf16.mxu0 %v14172_v9  ;;  %7948 = vmatprep.subr.bf16.mxu1 %v14175_v19  ;;  %v14235_v9 = vld [vmem:[%s18264_s11 + $0x31c] ss:$48 sps:$4 sm:$0xff]   ;;  %v14230_v19 = vld [vmem:[%s18264_s11 + $0x310] ss:$48 sps:$4 sm:$0xff]  }
 0xeff   : > { %7863 = vmatpush1.bf16.msra.mxu0 %v14170_v48  ;;  %7949 = vmatpush1.bf16.msra.mxu1 %v14173_v52  ;;  %v14236_v48 = vld [vmem:[%s18264_s11 + $0x370] ss:$48 sps:$4 sm:$0xff]   ;;  %v14239_v52 = vld [vmem:[%s18264_s11 + $0x378] ss:$48 sps:$4 sm:$0xff]  }
 0xf00   : > { %7864 = vmatprep.subr.bf16.mxu0 %v14178_v58  ;;  %7950 = vmatprep.subr.bf16.mxu1 %v14181_v1  ;;  %v14244_v58 = vld [vmem:[%s18264_s11 + $0x3d4] ss:$48 sps:$4 sm:$0xff]   ;;  %v14247_v1 = vld [vmem:[%s18264_s11 + $0x3dc] ss:$48 sps:$4 sm:$0xff]  }
 0xf03   : > { %7865 = vmatpush1.bf16.msra.mxu0 %v14176_v36  ;;  %7951 = vmatpush1.bf16.msra.mxu1 %v14179_v8  ;;  %v14253_v36 = vld [vmem:[%s18264_s11 + $0x43c] ss:$48 sps:$4 sm:$0xff]   ;;  %v14248_v8 = vld [vmem:[%s18264_s11 + $0x430] ss:$48 sps:$4 sm:$0xff]  }
 0xf04   : > { %7979 = vmatprep.subr.bf16.mxu0 %v14184_v44  ;;  %8065 = vmatprep.subr.bf16.mxu1 %v14187_v62  ;;  %v14256_v44 = vld [vmem:[%s18264_s11 + $0x494] ss:$48 sps:$4 sm:$0xff]   ;;  %v14259_v62 = vld [vmem:[%s18264_s11 + $0x49c] ss:$48 sps:$4 sm:$0xff]  }
 0xf06   : > { %7883 = vmatmul.mubr.bf16.vlgmr.msra.gmra.mrb[24].mxu0 %v17326_v11  ;;  %7969 = vmatmul.mubr.bf16.vlgmr.msra.gmra.mrb[52].mxu1 %v17326_v11 }
 0xf07   : > { %7980 = vmatpush1.bf16.msra.mxu0 %v14182_v63  ;;  %8011 = vmatprep.mubr.bf16.mxu0 %v17209_v16  ;;  %v14257_v63 = vld [vmem:[%s18264_s11 + $0x498] ss:$48 sps:$4 sm:$0xff]  }
 0xf08   : > { %8066 = vmatpush1.bf16.msra.mxu1 %v14185_v12  ;;  %8097 = vmatprep.mubr.bf16.mxu1 %v17209_v16  ;;  %v14262_v12 = vld [vmem:[%s18264_s11 + $0x4f4] ss:$48 sps:$4 sm:$0xff]  }
 0xf09   : > { %7981 = vmatprep.subr.bf16.mxu0 %v14190_v13  ;;  %8067 = vmatprep.subr.bf16.mxu1 %v14193_v4  ;;  %v14265_v13 = vld [vmem:[%s18264_s11 + $0x4fc] ss:$48 sps:$4 sm:$0xff]   ;;  %v14260_v4 = vld [vmem:[%s18264_s11 + $0x4f0] ss:$48 sps:$4 sm:$0xff]  }
 0xf0b   : > { %7982 = vmatpush1.bf16.msra.mxu0 %v14188_v22  ;;  %v14263_v22 = vld [vmem:[%s18264_s11 + $0x4f8] ss:$48 sps:$4 sm:$0xff]  }
 0xf0c   : > { %8068 = vmatpush1.bf16.msra.mxu1 %v14191_v0  ;;  %7983 = vmatprep.subr.bf16.mxu0 %v14196_v14  ;;  %v14268_v0 = vld [vmem:[%s18264_s11 + $0x554] ss:$48 sps:$4 sm:$0xff]   ;;  %v14271_v14 = vld [vmem:[%s18264_s11 + $0x55c] ss:$48 sps:$4 sm:$0xff]  }
 0xf0d   : > { %8069 = vmatprep.subr.bf16.mxu1 %v14199_v15  ;;  %v14266_v15 = vld [vmem:[%s18264_s11 + $0x550] ss:$48 sps:$4 sm:$0xff]  }
 0xf0f   : > { %7984 = vmatpush1.bf16.msra.mxu0 %v14194_v3  ;;  %v14269_v3 = vld [vmem:[%s18264_s11 + $0x558] ss:$48 sps:$4 sm:$0xff]  }
 0xf10   : > { %8070 = vmatpush1.bf16.msra.mxu1 %v14197_v5  ;;  %7985 = vmatprep.subr.bf16.mxu0 %v14202_v49  ;;  %v14274_v5 = vld [vmem:[%s18264_s11 + $0x5b4] ss:$48 sps:$4 sm:$0xff]   ;;  %v14277_v49 = vld [vmem:[%s18264_s11 + $0x5bc] ss:$48 sps:$4 sm:$0xff]  }
 0xf11   : > { %8071 = vmatprep.subr.bf16.mxu1 %v14205_v18  ;;  %v14272_v18 = vld [vmem:[%s18264_s11 + $0x5b0] ss:$48 sps:$4 sm:$0xff]  }
 0xf13   : > { %7986 = vmatpush1.bf16.msra.mxu0 %v14200_v38  ;;  %v14275_v38 = vld [vmem:[%s18264_s11 + $0x5b8] ss:$48 sps:$4 sm:$0xff]  }
 0xf14   : > { %8072 = vmatpush1.bf16.msra.mxu1 %v14203_v29  ;;  %7987 = vmatprep.subr.bf16.mxu0 %v14208_v21  ;;  %v14280_v29 = vld [vmem:[%s18264_s11 + $0x614] ss:$48 sps:$4 sm:$0xff]   ;;  %v14283_v21 = vld [vmem:[%s18264_s11 + $0x61c] ss:$48 sps:$4 sm:$0xff]  }
 0xf15   : > { %8073 = vmatprep.subr.bf16.mxu1 %v14211_v24  ;;  %v14278_v24 = vld [vmem:[%s18264_s11 + $0x610] ss:$48 sps:$4 sm:$0xff]  }
 0xf17   : > { %7988 = vmatpush1.bf16.msra.mxu0 %v14206_v20  ;;  %v14281_v20 = vld [vmem:[%s18264_s11 + $0x618] ss:$48 sps:$4 sm:$0xff]  }
 0xf18   : > { %8074 = vmatpush1.bf16.msra.mxu1 %v14209_v31  ;;  %7989 = vmatprep.subr.bf16.mxu0 %v14214_v32  ;;  %v14286_v31 = vld [vmem:[%s18264_s11 + $0x674] ss:$48 sps:$4 sm:$0xff]   ;;  %v14289_v32 = vld [vmem:[%s18264_s11 + $0x67c] ss:$48 sps:$4 sm:$0xff]  }
 0xf19   : > { %8075 = vmatprep.subr.bf16.mxu1 %v14217_v46  ;;  %v14284_v46 = vld [vmem:[%s18264_s11 + $0x670] ss:$48 sps:$4 sm:$0xff]  }
 0xf1b   : > { %7990 = vmatpush1.bf16.msra.mxu0 %v14212_v42  ;;  %v14287_v42 = vld [vmem:[%s18264_s11 + $0x678] ss:$48 sps:$4 sm:$0xff]  }
 0xf1c   : > { %8076 = vmatpush1.bf16.msra.mxu1 %v14215_v33  ;;  %7991 = vmatprep.subr.bf16.mxu0 %v14220_v37  ;;  %v14292_v33 = vld [vmem:[%s18264_s11 + $0x6d4] ss:$48 sps:$4 sm:$0xff]   ;;  %v14295_v37 = vld [vmem:[%s18264_s11 + $0x6dc] ss:$48 sps:$4 sm:$0xff]  }
 0xf1d   : > { %8077 = vmatprep.subr.bf16.mxu1 %v14223_v23  ;;  %v14290_v23 = vld [vmem:[%s18264_s11 + $0x6d0] ss:$48 sps:$4 sm:$0xff]  }
 0xf1f   : > { %7992 = vmatpush1.bf16.msra.mxu0 %v14218_v10  ;;  %v14293_v10 = vld [vmem:[%s18264_s11 + $0x6d8] ss:$48 sps:$4 sm:$0xff]  }
 0xf20   : > { %8078 = vmatpush1.bf16.msra.mxu1 %v14221_v55  ;;  %7993 = vmatprep.subr.bf16.mxu0 %v14226_v34  ;;  %v14298_v55 = vld [vmem:[%s18264_s11 + $0x734] ss:$48 sps:$4 sm:$0xff]   ;;  %v14301_v34 = vld [vmem:[%s18264_s11 + $0x73c] ss:$48 sps:$4 sm:$0xff]  }
 0xf21   : > { %8079 = vmatprep.subr.bf16.mxu1 %v14229_v40  ;;  %v14296_v40 = vld [vmem:[%s18264_s11 + $0x730] ss:$48 sps:$4 sm:$0xff]  }
 0xf23   : > { %7994 = vmatpush1.bf16.msra.mxu0 %v14224_v45  ;;  %v14299_v45 = vld [vmem:[%s18264_s11 + $0x738] ss:$48 sps:$4 sm:$0xff]  }
 0xf24   : > { %8080 = vmatpush1.bf16.msra.mxu1 %v14227_v47  ;;  %7995 = vmatprep.subr.bf16.mxu0 %v14232_v53  ;;  %v14304_v47 = vld [vmem:[%s18264_s11 + $0x794] ss:$48 sps:$4 sm:$0xff]   ;;  %v14307_v53 = vld [vmem:[%s18264_s11 + $0x79c] ss:$48 sps:$4 sm:$0xff]  }
 0xf25   : > { %8081 = vmatprep.subr.bf16.mxu1 %v14235_v9  ;;  %v14302_v9 = vld [vmem:[%s18264_s11 + $0x790] ss:$48 sps:$4 sm:$0xff]  }
 0xf27   : > { %7996 = vmatpush1.bf16.msra.mxu0 %v14230_v19  ;;  %v14305_v19 = vld [vmem:[%s18264_s11 + $0x798] ss:$48 sps:$4 sm:$0xff]  }
 0xf28   : > { %8082 = vmatpush1.bf16.msra.mxu1 %v14233_v39  ;;  %7997 = vmatprep.subr.bf16.mxu0 %v14238_v41  ;;  %v14310_v39 = vld [vmem:[%s18264_s11 + $0x7f4] ss:$48 sps:$4 sm:$0xff]   ;;  %v14313_v41 = vld [vmem:[%s18264_s11 + $0x7fc] ss:$48 sps:$4 sm:$0xff]  }
 0xf29   : > { %8083 = vmatprep.subr.bf16.mxu1 %v14241_v43  ;;  %v14308_v43 = vld [vmem:[%s18264_s11 + $0x7f0] ss:$48 sps:$4 sm:$0xff]  }
 0xf2b   : > { %7998 = vmatpush1.bf16.msra.mxu0 %v14236_v48  ;;  %v14311_v48 = vld [vmem:[%s18264_s11 + $0x7f8] ss:$48 sps:$4 sm:$0xff]  }
 0xf2c   : > { %8084 = vmatpush1.bf16.msra.mxu1 %v14239_v52  ;;  %7999 = vmatprep.subr.bf16.mxu0 %v14244_v58  ;;  %v14316_v52 = vld [vmem:[%s18264_s11 + $0x854] ss:$48 sps:$4 sm:$0xff]   ;;  %v14319_v58 = vld [vmem:[%s18264_s11 + $0x85c] ss:$48 sps:$4 sm:$0xff]  }
 0xf2d   : > { %8085 = vmatprep.subr.bf16.mxu1 %v14247_v1  ;;  %v14314_v1 = vld [vmem:[%s18264_s11 + $0x850] ss:$48 sps:$4 sm:$0xff]  }
 0xf2f   : > { %8000 = vmatpush1.bf16.msra.mxu0 %v14242_v51  ;;  %v14317_v51 = vld [vmem:[%s18264_s11 + $0x858] ss:$48 sps:$4 sm:$0xff]  }
 0xf30   : > { %8086 = vmatpush1.bf16.msra.mxu1 %v14245_v7  ;;  %8001 = vmatprep.subr.bf16.mxu0 %v14250_v50  ;;  %v14322_v7 = vld [vmem:[%s18264_s11 + $0x8b4] ss:$48 sps:$4 sm:$0xff]   ;;  %v14325_v50 = vld [vmem:[%s18264_s11 + $0x8bc] ss:$48 sps:$4 sm:$0xff]  }
 0xf31   : > { %8087 = vmatprep.subr.bf16.mxu1 %v14253_v36  ;;  %v14320_v36 = vld [vmem:[%s18264_s11 + $0x8b0] ss:$48 sps:$4 sm:$0xff]  }
 0xf33   : > { %8002 = vmatpush1.bf16.msra.mxu0 %v14248_v8  ;;  %v14323_v8 = vld [vmem:[%s18264_s11 + $0x8b8] ss:$48 sps:$4 sm:$0xff]  }
 0xf34   : > { %8088 = vmatpush1.bf16.msra.mxu1 %v14251_v54  ;;  %8003 = vmatprep.subr.bf16.mxu0 %v14256_v44  ;;  %v14328_v54 = vld [vmem:[%s18264_s11 + $0x24] ss:$48 sps:$4 sm:$0xff]   ;;  %v14331_v44 = vld [vmem:[%s18264_s11 + $0x2c] ss:$48 sps:$4 sm:$0xff]  }
 0xf35   : > { %8089 = vmatprep.subr.bf16.mxu1 %v14259_v62  ;;  %v14326_v62 = vld [vmem:[%s18264_s11 + $0x20] ss:$48 sps:$4 sm:$0xff]  }
 0xf37   : > { %8004 = vmatpush1.bf16.msra.mxu0 %v14254_v61  ;;  %v14329_v61 = vld [vmem:[%s18264_s11 + $0x28] ss:$48 sps:$4 sm:$0xff]  }
 0xf38   : > { %8090 = vmatpush1.bf16.msra.mxu1 %v14257_v63  ;;  %8005 = vmatprep.subr.bf16.mxu0 %v14262_v12  ;;  %v14334_v63 = vld [vmem:[%s18264_s11 + $0x84] ss:$48 sps:$4 sm:$0xff]   ;;  %v14337_v12 = vld [vmem:[%s18264_s11 + $0x8c] ss:$48 sps:$4 sm:$0xff]  }
 0xf39   : > { %8091 = vmatprep.subr.bf16.mxu1 %v14265_v13  ;;  %v14332_v13 = vld [vmem:[%s18264_s11 + $0x80] ss:$48 sps:$4 sm:$0xff]  }
 0xf3b   : > { %8006 = vmatpush1.bf16.msra.mxu0 %v14260_v4  ;;  %v14335_v4 = vld [vmem:[%s18264_s11 + $0x88] ss:$48 sps:$4 sm:$0xff]  }
 0xf3c   : > { %8092 = vmatpush1.bf16.msra.mxu1 %v14263_v22  ;;  %8007 = vmatprep.subr.bf16.mxu0 %v14268_v0  ;;  %v14340_v22 = vld [vmem:[%s18264_s11 + $0xe4] ss:$48 sps:$4 sm:$0xff]   ;;  %v14343_v0 = vld [vmem:[%s18264_s11 + $0xec] ss:$48 sps:$4 sm:$0xff]  }
 0xf3d   : > { %8093 = vmatprep.subr.bf16.mxu1 %v14271_v14  ;;  %v14338_v14 = vld [vmem:[%s18264_s11 + $0xe0] ss:$48 sps:$4 sm:$0xff]  }
 0xf3f   : > { %8008 = vmatpush1.bf16.msra.mxu0 %v14266_v15  ;;  %v14341_v15 = vld [vmem:[%s18264_s11 + $0xe8] ss:$48 sps:$4 sm:$0xff]  }
 0xf40   : > { %8094 = vmatpush1.bf16.msra.mxu1 %v14269_v3  ;;  %8009 = vmatprep.subr.bf16.mxu0 %v14274_v5  ;;  %v14349_v3 = vld [vmem:[%s18264_s11 + $0x14c] ss:$48 sps:$4 sm:$0xff]   ;;  %v14344_v5 = vld [vmem:[%s18264_s11 + $0x140] ss:$48 sps:$4 sm:$0xff]  }
 0xf41   : > { %8095 = vmatprep.subr.bf16.mxu1 %v14277_v49  ;;  %v14347_v49 = vld [vmem:[%s18264_s11 + $0x148] ss:$48 sps:$4 sm:$0xff]  }
 0xf43   : > { %8010 = vmatpush1.bf16.msra.mxu0 %v14272_v18  ;;  %v14352_v18 = vld [vmem:[%s18264_s11 + $0x1a4] ss:$48 sps:$4 sm:$0xff]  }
 0xf44   : > { %8096 = vmatpush1.bf16.msra.mxu1 %v14275_v38  ;;  %8022 = vmatprep.subr.bf16.mxu0 %v14280_v29  ;;  %v14355_v38 = vld [vmem:[%s18264_s11 + $0x1ac] ss:$48 sps:$4 sm:$0xff]   ;;  %v14350_v29 = vld [vmem:[%s18264_s11 + $0x1a0] ss:$48 sps:$4 sm:$0xff]  }
 0xf45   : > { %8108 = vmatprep.subr.bf16.mxu1 %v14283_v21  ;;  %v14353_v21 = vld [vmem:[%s18264_s11 + $0x1a8] ss:$48 sps:$4 sm:$0xff]  }
 0xf46   : > { %8012 = vmatmul.mubr.bf16.vlgmr.msra.gmra.mrb[28].mxu0 %v17217_v17 }
 0xf47   : > { %8098 = vmatmul.mubr.bf16.vlgmr.msra.gmra.mrb[56].mxu1 %v17217_v17  ;;  %8023 = vmatpush1.bf16.msra.mxu0 %v14278_v24  ;;  %v14358_v24 = vld [vmem:[%s18264_s11 + $0x204] ss:$48 sps:$4 sm:$0xff]  }
 0xf48   : > { %8109 = vmatpush1.bf16.msra.mxu1 %v14281_v20  ;;  %8024 = vmatprep.subr.bf16.mxu0 %v14286_v31  ;;  %v14361_v20 = vld [vmem:[%s18264_s11 + $0x20c] ss:$48 sps:$4 sm:$0xff]   ;;  %v14356_v31 = vld [vmem:[%s18264_s11 + $0x200] ss:$48 sps:$4 sm:$0xff]  }
 0xf49   : > { %8110 = vmatprep.subr.bf16.mxu1 %v14289_v32  ;;  %8054 = vmatprep.mubr.bf16.mxu0 %v15159_v30  ;;  %v14359_v32 = vld [vmem:[%s18264_s11 + $0x208] ss:$48 sps:$4 sm:$0xff]  }
 0xf4a   : > { %8140 = vmatprep.mubr.bf16.mxu1 %v15159_v30 }
 0xf4b   : > { %8025 = vmatpush1.bf16.msra.mxu0 %v14284_v46  ;;  %v14364_v46 = vld [vmem:[%s18264_s11 + $0x264] ss:$48 sps:$4 sm:$0xff]  }
 0xf4c   : > { %8111 = vmatpush1.bf16.msra.mxu1 %v14287_v42  ;;  %8026 = vmatprep.subr.bf16.mxu0 %v14292_v33  ;;  %v14367_v42 = vld [vmem:[%s18264_s11 + $0x26c] ss:$48 sps:$4 sm:$0xff]   ;;  %v14362_v33 = vld [vmem:[%s18264_s11 + $0x260] ss:$48 sps:$4 sm:$0xff]  }
 0xf4d   : > { %8112 = vmatprep.subr.bf16.mxu1 %v14295_v37  ;;  %v14365_v37 = vld [vmem:[%s18264_s11 + $0x268] ss:$48 sps:$4 sm:$0xff]  }
 0xf4f   : > { %8027 = vmatpush1.bf16.msra.mxu0 %v14290_v23  ;;  %v14370_v23 = vld [vmem:[%s18264_s11 + $0x2c4] ss:$48 sps:$4 sm:$0xff]  }
 0xf50   : > { %8113 = vmatpush1.bf16.msra.mxu1 %v14293_v10  ;;  %8028 = vmatprep.subr.bf16.mxu0 %v14298_v55  ;;  %v14373_v10 = vld [vmem:[%s18264_s11 + $0x2cc] ss:$48 sps:$4 sm:$0xff]   ;;  %v14368_v55 = vld [vmem:[%s18264_s11 + $0x2c0] ss:$48 sps:$4 sm:$0xff]  }
 0xf51   : > { %8114 = vmatprep.subr.bf16.mxu1 %v14301_v34  ;;  %v14371_v34 = vld [vmem:[%s18264_s11 + $0x2c8] ss:$48 sps:$4 sm:$0xff]  }
 0xf53   : > { %8029 = vmatpush1.bf16.msra.mxu0 %v14296_v40  ;;  %v14376_v40 = vld [vmem:[%s18264_s11 + $0x324] ss:$48 sps:$4 sm:$0xff]  }
 0xf54   : > { %8115 = vmatpush1.bf16.msra.mxu1 %v14299_v45  ;;  %8030 = vmatprep.subr.bf16.mxu0 %v14304_v47  ;;  %v14379_v45 = vld [vmem:[%s18264_s11 + $0x32c] ss:$48 sps:$4 sm:$0xff]   ;;  %v14374_v47 = vld [vmem:[%s18264_s11 + $0x320] ss:$48 sps:$4 sm:$0xff]  }
 0xf55   : > { %8116 = vmatprep.subr.bf16.mxu1 %v14307_v53  ;;  %v14377_v53 = vld [vmem:[%s18264_s11 + $0x328] ss:$48 sps:$4 sm:$0xff]  }
 0xf57   : > { %8031 = vmatpush1.bf16.msra.mxu0 %v14302_v9  ;;  %v14382_v9 = vld [vmem:[%s18264_s11 + $0x384] ss:$48 sps:$4 sm:$0xff]  }
 0xf58   : > { %8117 = vmatpush1.bf16.msra.mxu1 %v14305_v19  ;;  %8032 = vmatprep.subr.bf16.mxu0 %v14310_v39  ;;  %v14385_v19 = vld [vmem:[%s18264_s11 + $0x38c] ss:$48 sps:$4 sm:$0xff]   ;;  %v14380_v39 = vld [vmem:[%s18264_s11 + $0x380] ss:$48 sps:$4 sm:$0xff]  }
 0xf59   : > { %8118 = vmatprep.subr.bf16.mxu1 %v14313_v41  ;;  %v14383_v41 = vld [vmem:[%s18264_s11 + $0x388] ss:$48 sps:$4 sm:$0xff]  }
 0xf5b   : > { %8033 = vmatpush1.bf16.msra.mxu0 %v14308_v43  ;;  %v14388_v43 = vld [vmem:[%s18264_s11 + $0x3e4] ss:$48 sps:$4 sm:$0xff]  }
 0xf5c   : > { %8119 = vmatpush1.bf16.msra.mxu1 %v14311_v48  ;;  %8034 = vmatprep.subr.bf16.mxu0 %v14316_v52  ;;  %v14391_v48 = vld [vmem:[%s18264_s11 + $0x3ec] ss:$48 sps:$4 sm:$0xff]   ;;  %v14386_v52 = vld [vmem:[%s18264_s11 + $0x3e0] ss:$48 sps:$4 sm:$0xff]  }
 0xf5d   : > { %8120 = vmatprep.subr.bf16.mxu1 %v14319_v58  ;;  %v14389_v58 = vld [vmem:[%s18264_s11 + $0x3e8] ss:$48 sps:$4 sm:$0xff]  }
 0xf5f   : > { %8035 = vmatpush1.bf16.msra.mxu0 %v14314_v1  ;;  %v14394_v1 = vld [vmem:[%s18264_s11 + $0x444] ss:$48 sps:$4 sm:$0xff]  }
 0xf60   : > { %8121 = vmatpush1.bf16.msra.mxu1 %v14317_v51  ;;  %8036 = vmatprep.subr.bf16.mxu0 %v14322_v7  ;;  %v14397_v51 = vld [vmem:[%s18264_s11 + $0x44c] ss:$48 sps:$4 sm:$0xff]   ;;  %v14392_v7 = vld [vmem:[%s18264_s11 + $0x440] ss:$48 sps:$4 sm:$0xff]  }
 0xf61   : > { %8122 = vmatprep.subr.bf16.mxu1 %v14325_v50  ;;  %v14395_v50 = vld [vmem:[%s18264_s11 + $0x448] ss:$48 sps:$4 sm:$0xff]  }
 0xf63   : > { %8037 = vmatpush1.bf16.msra.mxu0 %v14320_v36  ;;  %v14400_v36 = vld [vmem:[%s18264_s11 + $0x4a4] ss:$48 sps:$4 sm:$0xff]  }
 0xf64   : > { %8123 = vmatpush1.bf16.msra.mxu1 %v14323_v8  ;;  %8151 = vmatprep.subr.bf16.mxu0 %v14328_v54  ;;  %v14403_v8 = vld [vmem:[%s18264_s11 + $0x4ac] ss:$48 sps:$4 sm:$0xff]   ;;  %v14398_v54 = vld [vmem:[%s18264_s11 + $0x4a0] ss:$48 sps:$4 sm:$0xff]  }
 0xf65   : > { %8237 = vmatprep.subr.bf16.mxu1 %v14331_v44  ;;  %v14401_v44 = vld [vmem:[%s18264_s11 + $0x4a8] ss:$48 sps:$4 sm:$0xff]  }
 0xf66   : > { %8055 = vmatmul.mubr.bf16.vlgmr.msra.gmra.mrb[28].mxu0 %v17326_v11 }
 0xf67   : > { %8141 = vmatmul.mubr.bf16.vlgmr.msra.gmra.mrb[56].mxu1 %v17326_v11  ;;  %8152 = vmatpush1.bf16.msra.mxu0 %v14326_v62  ;;  %v14406_v62 = vld [vmem:[%s18264_s11 + $0x504] ss:$48 sps:$4 sm:$0xff]  }
 0xf68   : > { %8183 = vmatprep.mubr.bf16.mxu0 %v17209_v16  ;;  %8238 = vmatpush1.bf16.msra.mxu1 %v14329_v61  ;;  %v14409_v61 = vld [vmem:[%s18264_s11 + $0x50c] ss:$48 sps:$4 sm:$0xff]  }
 0xf69   : > { %8269 = vmatprep.mubr.bf16.mxu1 %v17209_v16  ;;  %8153 = vmatprep.subr.bf16.mxu0 %v14334_v63  ;;  %v14346_v16 = vld [vmem:[%s18264_s11 + $0x144] ss:$48 sps:$4 sm:$0xff]   ;;  %v14404_v63 = vld [vmem:[%s18264_s11 + $0x500] ss:$48 sps:$4 sm:$0xff]  }
 0xf6a   : > { %8239 = vmatprep.subr.bf16.mxu1 %v14337_v12  ;;  %v14407_v12 = vld [vmem:[%s18264_s11 + $0x508] ss:$48 sps:$4 sm:$0xff]  }
 0xf6b   : > { %8154 = vmatpush1.bf16.msra.mxu0 %v14332_v13  ;;  %v14412_v13 = vld [vmem:[%s18264_s11 + $0x564] ss:$48 sps:$4 sm:$0xff]  }
 0xf6c   : > { %8240 = vmatpush1.bf16.msra.mxu1 %v14335_v4  ;;  %8155 = vmatprep.subr.bf16.mxu0 %v14340_v22  ;;  %v14415_v4 = vld [vmem:[%s18264_s11 + $0x56c] ss:$48 sps:$4 sm:$0xff]   ;;  %v14410_v22 = vld [vmem:[%s18264_s11 + $0x560] ss:$48 sps:$4 sm:$0xff]  }
 0xf6d   : > { %8241 = vmatprep.subr.bf16.mxu1 %v14343_v0  ;;  %v14413_v0 = vld [vmem:[%s18264_s11 + $0x568] ss:$48 sps:$4 sm:$0xff]  }
 0xf6f   : > { %8156 = vmatpush1.bf16.msra.mxu0 %v14338_v14  ;;  %v14418_v14 = vld [vmem:[%s18264_s11 + $0x5c4] ss:$48 sps:$4 sm:$0xff]  }
 0xf70   : > { %8242 = vmatpush1.bf16.msra.mxu1 %v14341_v15  ;;  %8157 = vmatprep.subr.bf16.mxu0 %v14346_v16  ;;  %v14421_v15 = vld [vmem:[%s18264_s11 + $0x5cc] ss:$48 sps:$4 sm:$0xff]   ;;  %v14416_v16 = vld [vmem:[%s18264_s11 + $0x5c0] ss:$48 sps:$4 sm:$0xff]  }
 0xf71   : > { %8243 = vmatprep.subr.bf16.mxu1 %v14349_v3  ;;  %v14419_v3 = vld [vmem:[%s18264_s11 + $0x5c8] ss:$48 sps:$4 sm:$0xff]  }
 0xf73   : > { %8158 = vmatpush1.bf16.msra.mxu0 %v14344_v5  ;;  %v14424_v5 = vld [vmem:[%s18264_s11 + $0x624] ss:$48 sps:$4 sm:$0xff]  }
 0xf74   : > { %8244 = vmatpush1.bf16.msra.mxu1 %v14347_v49  ;;  %8159 = vmatprep.subr.bf16.mxu0 %v14352_v18  ;;  %v14427_v49 = vld [vmem:[%s18264_s11 + $0x62c] ss:$48 sps:$4 sm:$0xff]   ;;  %v14422_v18 = vld [vmem:[%s18264_s11 + $0x620] ss:$48 sps:$4 sm:$0xff]  }
 0xf75   : > { %8245 = vmatprep.subr.bf16.mxu1 %v14355_v38  ;;  %v14425_v38 = vld [vmem:[%s18264_s11 + $0x628] ss:$48 sps:$4 sm:$0xff]  }
 0xf77   : > { %8160 = vmatpush1.bf16.msra.mxu0 %v14350_v29  ;;  %v14430_v29 = vld [vmem:[%s18264_s11 + $0x684] ss:$48 sps:$4 sm:$0xff]  }
 0xf78   : > { %8246 = vmatpush1.bf16.msra.mxu1 %v14353_v21  ;;  %8161 = vmatprep.subr.bf16.mxu0 %v14358_v24  ;;  %v14433_v21 = vld [vmem:[%s18264_s11 + $0x68c] ss:$48 sps:$4 sm:$0xff]   ;;  %v14428_v24 = vld [vmem:[%s18264_s11 + $0x680] ss:$48 sps:$4 sm:$0xff]  }
 0xf79   : > { %8247 = vmatprep.subr.bf16.mxu1 %v14361_v20  ;;  %v14431_v20 = vld [vmem:[%s18264_s11 + $0x688] ss:$48 sps:$4 sm:$0xff]  }
 0xf7b   : > { %8162 = vmatpush1.bf16.msra.mxu0 %v14356_v31  ;;  %v14436_v31 = vld [vmem:[%s18264_s11 + $0x6e4] ss:$48 sps:$4 sm:$0xff]  }
 0xf7c   : > { %8248 = vmatpush1.bf16.msra.mxu1 %v14359_v32  ;;  %8163 = vmatprep.subr.bf16.mxu0 %v14364_v46  ;;  %v14434_v32 = vld [vmem:[%s18264_s11 + $0x6e0] ss:$48 sps:$4 sm:$0xff]   ;;  %v14437_v46 = vld [vmem:[%s18264_s11 + $0x6e8] ss:$48 sps:$4 sm:$0xff]  }
 0xf7d   : > { %8249 = vmatprep.subr.bf16.mxu1 %v14367_v42  ;;  %v14442_v42 = vld [vmem:[%s18264_s11 + $0x744] ss:$48 sps:$4 sm:$0xff]  }
 0xf7f   : > { %8164 = vmatpush1.bf16.msra.mxu0 %v14362_v33  ;;  %v14440_v33 = vld [vmem:[%s18264_s11 + $0x740] ss:$48 sps:$4 sm:$0xff]  }
 0xf80   : > { %8250 = vmatpush1.bf16.msra.mxu1 %v14365_v37  ;;  %8165 = vmatprep.subr.bf16.mxu0 %v14370_v23  ;;  %v14443_v37 = vld [vmem:[%s18264_s11 + $0x748] ss:$48 sps:$4 sm:$0xff]   ;;  %v14448_v23 = vld [vmem:[%s18264_s11 + $0x7a4] ss:$48 sps:$4 sm:$0xff]  }
 0xf81   : > { %8251 = vmatprep.subr.bf16.mxu1 %v14373_v10  ;;  %v14451_v10 = vld [vmem:[%s18264_s11 + $0x7ac] ss:$48 sps:$4 sm:$0xff]  }
 0xf83   : > { %8166 = vmatpush1.bf16.msra.mxu0 %v14368_v55  ;;  %v14446_v55 = vld [vmem:[%s18264_s11 + $0x7a0] ss:$48 sps:$4 sm:$0xff]  }
 0xf84   : > { %8252 = vmatpush1.bf16.msra.mxu1 %v14371_v34  ;;  %8167 = vmatprep.subr.bf16.mxu0 %v14376_v40  ;;  %v14449_v34 = vld [vmem:[%s18264_s11 + $0x7a8] ss:$48 sps:$4 sm:$0xff]   ;;  %v14454_v40 = vld [vmem:[%s18264_s11 + $0x804] ss:$48 sps:$4 sm:$0xff]  }
 0xf85   : > { %8253 = vmatprep.subr.bf16.mxu1 %v14379_v45  ;;  %v14457_v45 = vld [vmem:[%s18264_s11 + $0x80c] ss:$48 sps:$4 sm:$0xff]  }
 0xf87   : > { %8168 = vmatpush1.bf16.msra.mxu0 %v14374_v47  ;;  %v14452_v47 = vld [vmem:[%s18264_s11 + $0x800] ss:$48 sps:$4 sm:$0xff]  }
 0xf88   : > { %8254 = vmatpush1.bf16.msra.mxu1 %v14377_v53  ;;  %8169 = vmatprep.subr.bf16.mxu0 %v14382_v9  ;;  %v14455_v53 = vld [vmem:[%s18264_s11 + $0x808] ss:$48 sps:$4 sm:$0xff]   ;;  %v14460_v9 = vld [vmem:[%s18264_s11 + $0x864] ss:$48 sps:$4 sm:$0xff]  }
 0xf89   : > { %8255 = vmatprep.subr.bf16.mxu1 %v14385_v19  ;;  %v14463_v19 = vld [vmem:[%s18264_s11 + $0x86c] ss:$48 sps:$4 sm:$0xff]  }
 0xf8b   : > { %8170 = vmatpush1.bf16.msra.mxu0 %v14380_v39  ;;  %v14458_v39 = vld [vmem:[%s18264_s11 + $0x860] ss:$48 sps:$4 sm:$0xff]  }
 0xf8c   : > { %8256 = vmatpush1.bf16.msra.mxu1 %v14383_v41  ;;  %8171 = vmatprep.subr.bf16.mxu0 %v14388_v43  ;;  %v14461_v41 = vld [vmem:[%s18264_s11 + $0x868] ss:$48 sps:$4 sm:$0xff]   ;;  %v14466_v43 = vld [vmem:[%s18264_s11 + $0x8c4] ss:$48 sps:$4 sm:$0xff]  }
 0xf8d   : > { %8257 = vmatprep.subr.bf16.mxu1 %v14391_v48  ;;  %v14469_v48 = vld [vmem:[%s18264_s11 + $0x8cc] ss:$48 sps:$4 sm:$0xff]  }
 0xf8f   : > { %8172 = vmatpush1.bf16.msra.mxu0 %v14386_v52  ;;  %v14464_v52 = vld [vmem:[%s18264_s11 + $0x8c0] ss:$48 sps:$4 sm:$0xff]  }
 0xf90   : > { %8258 = vmatpush1.bf16.msra.mxu1 %v14389_v58  ;;  %8173 = vmatprep.subr.bf16.mxu0 %v14394_v1  ;;  %v14467_v58 = vld [vmem:[%s18264_s11 + $0x8c8] ss:$48 sps:$4 sm:$0xff]   ;;  %v14472_v1 = vld [vmem:[#allocation6 + $0x4] ss:$12 sps:$4 sm:$0xff]  }
 0xf91   : > { %8259 = vmatprep.subr.bf16.mxu1 %v14397_v51  ;;  %v14488_v51 = vld [vmem:[#allocation6 + $0xc8] ss:$12 sps:$4 sm:$0xff]  }
 0xf93   : > { %8174 = vmatpush1.bf16.msra.mxu0 %v14392_v7  ;;  %v14470_v7 = vld [vmem:[#allocation6] ss:$12 sps:$4 sm:$0xff]  }
 0xf94   : > { %8260 = vmatpush1.bf16.msra.mxu1 %v14395_v50  ;;  %8175 = vmatprep.subr.bf16.mxu0 %v14400_v36  ;;  %v14475_v50 = vld [vmem:[#allocation6 + $0x1c] ss:$12 sps:$4 sm:$0xff]  }
 0xf95   : > { %8261 = vmatprep.subr.bf16.mxu1 %v14403_v8  ;;  %v14489_v36 = vld [vmem:[#allocation6 + $0x8] ss:$12 sps:$4 sm:$0xff]   ;;  %v14493_v8 = vld [vmem:[#allocation6 + $0xe0] ss:$12 sps:$4 sm:$0xff]  }
 0xf97   : > { %8176 = vmatpush1.bf16.msra.mxu0 %v14398_v54  ;;  %v14473_v54 = vld [vmem:[#allocation6 + $0x18] ss:$12 sps:$4 sm:$0xff]  }
 0xf98   : > { %8262 = vmatpush1.bf16.msra.mxu1 %v14401_v44  ;;  %8177 = vmatprep.subr.bf16.mxu0 %v14406_v62  ;;  %v14478_v44 = vld [vmem:[#allocation6 + $0x34] ss:$12 sps:$4 sm:$0xff]  }
 0xf99   : > { %8263 = vmatprep.subr.bf16.mxu1 %v14409_v61  ;;  %v14494_v62 = vld [vmem:[#allocation6 + $0x20] ss:$12 sps:$4 sm:$0xff]   ;;  %v14498_v61 = vld [vmem:[#allocation6 + $0xf8] ss:$12 sps:$4 sm:$0xff]  }
 0xf9b   : > { %8178 = vmatpush1.bf16.msra.mxu0 %v14404_v63  ;;  %v14476_v63 = vld [vmem:[#allocation6 + $0x30] ss:$12 sps:$4 sm:$0xff]  }
 0xf9c   : > { %8264 = vmatpush1.bf16.msra.mxu1 %v14407_v12  ;;  %8179 = vmatprep.subr.bf16.mxu0 %v14412_v13  ;;  %v14481_v12 = vld [vmem:[#allocation6 + $0x4c] ss:$12 sps:$4 sm:$0xff]  }
 0xf9d   : > { %8265 = vmatprep.subr.bf16.mxu1 %v14415_v4  ;;  %v14499_v13 = vld [vmem:[#allocation6 + $0x38] ss:$12 sps:$4 sm:$0xff]   ;;  %v14503_v4 = vld [vmem:[#allocation6 + $0x110] ss:$12 sps:$4 sm:$0xff]  }
 0xf9f   : > { %8180 = vmatpush1.bf16.msra.mxu0 %v14410_v22  ;;  %v14479_v22 = vld [vmem:[#allocation6 + $0x48] ss:$12 sps:$4 sm:$0xff]  }
 0xfa0   : > { %8266 = vmatpush1.bf16.msra.mxu1 %v14413_v0  ;;  %8181 = vmatprep.subr.bf16.mxu0 %v14418_v14  ;;  %v14504_v0 = vld [vmem:[#allocation6 + $0x50] ss:$12 sps:$4 sm:$0xff]   ;;  %v14508_v14 = vld [vmem:[#allocation6 + $0x128] ss:$12 sps:$4 sm:$0xff]  }
 0xfa1   : > { %8267 = vmatprep.subr.bf16.mxu1 %v14421_v15  ;;  %v14482_v15 = vld [vmem:[#allocation6 + $0x60] ss:$12 sps:$4 sm:$0xff]  }
 0xfa3   : > { %8182 = vmatpush1.bf16.msra.mxu0 %v14416_v16  ;;  %v17916_v16 = vld [vmem:[%s18265_s12] sm:$0xff] }
 0xfa4   : > { %8268 = vmatpush1.bf16.msra.mxu1 %v14419_v3  ;;  %8194 = vmatprep.subr.bf16.mxu0 %v14424_v5  ;;  %v14487_v3 = vld [vmem:[#allocation6 + $0x7c] ss:$12 sps:$4 sm:$0xff]  }
 0xfa5   : > { %8280 = vmatprep.subr.bf16.mxu1 %v14427_v49  ;;  %v14509_v5 = vld [vmem:[#allocation6 + $0x68] ss:$12 sps:$4 sm:$0xff]   ;;  %v14513_v49 = vld [vmem:[#allocation6 + $0x140] ss:$12 sps:$4 sm:$0xff]  }
 0xfa6   : > { %8184 = vmatmul.mubr.bf16.vlgmr.msra.gmra.mrb[32].mxu0 %v17217_v17 }
 0xfa7   : > { %8270 = vmatmul.mubr.bf16.vlgmr.msra.gmra.mrb[60].mxu1 %v17217_v17  ;;  %8195 = vmatpush1.bf16.msra.mxu0 %v14422_v18  ;;  %v14439_v17 = vld [vmem:[%s18264_s11 + $0x6ec] ss:$48 sps:$4 sm:$0xff]   ;;  %v6310_v18 = vrot.slane %v17916_v16, %v15992_v26 }
 0xfa8   : > { %8281 = vmatpush1.bf16.msra.mxu1 %v14425_v38  ;;  %8196 = vmatprep.subr.bf16.mxu0 %v14430_v29  ;;  %v6318_v38 = vrot.slane %v17916_v16, %v16056_v60  ;;  %v6314_v29 = vrot.slane %v17916_v16, %v15970_v57 }
 0xfa9   : > { %8282 = vmatprep.subr.bf16.mxu1 %v14433_v21  ;;  %8226 = vmatprep.mubr.bf16.mxu0 %v15159_v30  ;;  %v6322_v21 = vrot.slane %v17916_v16, %v16831_v59 }
 0xfaa   : > { %8312 = vmatprep.mubr.bf16.mxu1 %v15159_v30  ;;  %v14445_v30 = vld [vmem:[%s18264_s11 + $0x74c] ss:$48 sps:$4 sm:$0xff]  }
 0xfab   : > { %8197 = vmatpush1.bf16.msra.mxu0 %v14428_v24  ;;  %v14485_v24 = vld [vmem:[#allocation6 + $0x78] ss:$12 sps:$4 sm:$0xff]  }
 0xfac   : > { %8283 = vmatpush1.bf16.msra.mxu1 %v14431_v20  ;;  %8198 = vmatprep.subr.bf16.mxu0 %v14436_v31  ;;  %v14492_v20 = vld [vmem:[#allocation6 + $0x94] ss:$12 sps:$4 sm:$0xff]  }
 0xfad   : > { %8284 = vmatprep.subr.bf16.mxu1 %v14439_v17  ;;  %v14514_v31 = vld [vmem:[#allocation6 + $0x80] ss:$12 sps:$4 sm:$0xff]  }
 0xfaf   : > { %8199 = vmatpush1.bf16.msra.mxu0 %v14434_v32 }
 0xfb0   : > { %8285 = vmatpush1.bf16.msra.mxu1 %v14437_v46  ;;  %8200 = vmatprep.subr.bf16.mxu0 %v14442_v42  ;;  %v14518_v46 = vld [vmem:[#allocation6 + $0x158] ss:$12 sps:$4 sm:$0xff]  }
 0xfb1   : > { %8286 = vmatprep.subr.bf16.mxu1 %v14445_v30 }
 0xfb3   : > { %8201 = vmatpush1.bf16.msra.mxu0 %v14440_v33 }
 0xfb4   : > { %8287 = vmatpush1.bf16.msra.mxu1 %v14443_v37  ;;  %8202 = vmatprep.subr.bf16.mxu0 %v14448_v23 }
 0xfb5   : > { %8288 = vmatprep.subr.bf16.mxu1 %v14451_v10 }
 0xfb7   : > { %8203 = vmatpush1.bf16.msra.mxu0 %v14446_v55 }
 0xfb8   : > { %8289 = vmatpush1.bf16.msra.mxu1 %v14449_v34  ;;  %8204 = vmatprep.subr.bf16.mxu0 %v14454_v40  ;;  %v14490_v40 = vld [vmem:[#allocation6 + $0x90] ss:$12 sps:$4 sm:$0xff]  }
 0xfb9   : > { %8290 = vmatprep.subr.bf16.mxu1 %v14457_v45  ;;  %v14497_v45 = vld [vmem:[#allocation6 + $0xac] ss:$12 sps:$4 sm:$0xff]  }
 0xfbb   : > { %8205 = vmatpush1.bf16.msra.mxu0 %v14452_v47 }
 0xfbc   : > { %8291 = vmatpush1.bf16.msra.mxu1 %v14455_v53  ;;  %8206 = vmatprep.subr.bf16.mxu0 %v14460_v9 }
 0xfbd   : > { %8292 = vmatprep.subr.bf16.mxu1 %v14463_v19 }
 0xfbf   : > { %8207 = vmatpush1.bf16.msra.mxu0 %v14458_v39 }
 0xfc0   : > { %8293 = vmatpush1.bf16.msra.mxu1 %v14461_v41  ;;  %8208 = vmatprep.subr.bf16.mxu0 %v14466_v43 }
 0xfc1   : > { %8294 = vmatprep.subr.bf16.mxu1 %v14469_v48 }
 0xfc3   : > { %8209 = vmatpush1.bf16.msra.mxu0 %v14464_v52 }
 0xfc4   : > { %8295 = vmatpush1.bf16.msra.mxu1 %v14467_v58  ;;  %10488 = vmatprep.subr.bf16.mxu0 %v14472_v1  ;;  %v14519_v1 = vld [vmem:[#allocation6 + $0x98] ss:$12 sps:$4 sm:$0xff]  }
 0xfc5   : > { %12795 = vmatprep.subr.bf16.mxu1 %v14488_v51 }
 0xfc6   : > { %8227 = vmatmul.mubr.bf16.vlgmr.msra.gmra.mrb[32].mxu0 %v17326_v11 }
 0xfc7   : > { %8313 = vmatmul.mubr.bf16.vlgmr.msra.gmra.mrb[60].mxu1 %v17326_v11  ;;  %10489 = vmatpush1.bf16.msra.mxu0 %v14470_v7  ;;  %v14484_v11 = vld [vmem:[#allocation6 + $0x64] ss:$12 sps:$4 sm:$0xff]  }
 0xfc8   : > { %10490 = vmatprep.subr.bf16.mxu0 %v14475_v50  ;;  %12796 = vmatpush3.bf16.msra.mxu1 %v14489_v36 }
 0xfc9   : > { %12797 = vmatprep.subr.bf16.mxu1 %v14493_v8  ;;  %v14523_v8 = vld [vmem:[#allocation6 + $0x170] ss:$12 sps:$4 sm:$0xff]  }
 0xfcb   : > { %10491 = vmatpush1.bf16.msra.mxu0 %v14473_v54 }
 0xfcc   : > { %10492 = vmatprep.subr.bf16.mxu0 %v14478_v44  ;;  %12798 = vmatpush3.bf16.msra.mxu1 %v14494_v62 }
 0xfcd   : > { %12799 = vmatprep.subr.bf16.mxu1 %v14498_v61 }
 0xfcf   : > { %10493 = vmatpush1.bf16.msra.mxu0 %v14476_v63  ;;  %v14495_v63 = vld [vmem:[#allocation6 + $0xa8] ss:$12 sps:$4 sm:$0xff]  }
 0xfd0   : > { %10494 = vmatprep.subr.bf16.mxu0 %v14481_v12  ;;  %12800 = vmatpush3.bf16.msra.mxu1 %v14499_v13 }
 0xfd1   : > { %12801 = vmatprep.subr.bf16.mxu1 %v14503_v4 }
 0xfd3   : > { %10495 = vmatpush1.bf16.msra.mxu0 %v14479_v22 }
 0xfd4   : > { %10496 = vmatprep.subr.bf16.mxu0 %v14484_v11  ;;  %12802 = vmatpush3.bf16.msra.mxu1 %v14504_v0  ;;  %v14502_v11 = vld [vmem:[#allocation6 + $0xc4] ss:$12 sps:$4 sm:$0xff]  }
 0xfd5   : > { %12803 = vmatprep.subr.bf16.mxu1 %v14508_v14 }
 0xfd7   : > { %10497 = vmatpush1.bf16.msra.mxu0 %v14482_v15 }
 0xfd8   : > { %10498 = vmatprep.subr.bf16.mxu0 %v14487_v3  ;;  %12804 = vmatpush3.bf16.msra.mxu1 %v14509_v5  ;;  %v14524_v3 = vld [vmem:[#allocation6 + $0xb0] ss:$12 sps:$4 sm:$0xff]  }
 0xfd9   : > { %v7884_v17 = vpop.f32.mrb[24].mxu0  ;;  %v7970_v32 = vpop.f32.mrb[52].mxu1  ;;  %12805 = vmatprep.subr.bf16.mxu1 %v14513_v49 }
 0xfda   : > { %v17926_v42 = vadd.f32 %v7884_v17, %v6310_v18  ;;  %v17928_v30 = vadd.f32 %v7970_v32, %v6318_v38  ;;  %v7886_v33 = vpop.f32.mrb[25].mxu0  ;;  %v7972_v37 = vpop.f32.mrb[53].mxu1 }
 0xfdb   : > { %v17930_v23 = vadd.f32 %v7886_v33, %v6314_v29  ;;  %v17932_v10 = vadd.f32 %v7972_v37, %v6322_v21  ;;  %v7888_v55 = vpop.f32.mrb[26].mxu0  ;;  %v7974_v34 = vpop.f32.mrb[54].mxu1  ;;  %10499 = vmatpush1.bf16.msra.mxu0 %v14485_v24  ;;  %v14507_v37 = vld [vmem:[#allocation6 + $0xdc] ss:$12 sps:$4 sm:$0xff]  }
 0xfdc   : > { %v8347_v47 = vmul.f32 0.044715, %v17926_v42  ;;  %v8349_v53 = vmul.f32 0.044715, %v17928_v30  ;;  %v17936_v9 = vadd.f32 %v7888_v55, %v6310_v18  ;;  %v17938_v19 = vadd.f32 %v7974_v34, %v6318_v38  ;;  %v7890_v39 = vpop.f32.mrb[27].mxu0  ;;  %v7976_v41 = vpop.f32.mrb[55].mxu1  ;;  %10500 = vmatprep.subr.bf16.mxu0 %v14492_v20  ;;  %12806 = vmatpush3.bf16.msra.mxu1 %v14514_v31 }
 0xfdd   : > { %v8348_v43 = vmul.f32 0.044715, %v17930_v23  ;;  %v8350_v48 = vmul.f32 0.044715, %v17932_v10  ;;  %v17942_v52 = vadd.f32 %v7890_v39, %v6314_v29  ;;  %v17944_v58 = vadd.f32 %v7976_v41, %v6322_v21  ;;  %12807 = vmatprep.subr.bf16.mxu1 %v14518_v46  ;;  %v14528_v29 = vld [vmem:[#allocation6 + $0x248] ss:$12 sps:$4 sm:$0xff]  }
 0xfde   : > { %v8371_v51 = vmul.f32 %v17926_v42, %v8347_v47  ;;  %v8373_v7 = vmul.f32 %v17928_v30, %v8349_v53  ;;  %v8359_v50 = vmul.f32 0.044715, %v17936_v9  ;;  %v8361_v36 = vmul.f32 0.044715, %v17938_v19  ;;  %v14500_v31 = vld [vmem:[#allocation6 + $0xc0] ss:$12 sps:$4 sm:$0xff]  }
 0xfdf   : > { %v8372_v54 = vmul.f32 %v17930_v23, %v8348_v43  ;;  %v8374_v44 = vmul.f32 %v17932_v10, %v8350_v48  ;;  %v8360_v62 = vmul.f32 0.044715, %v17942_v52  ;;  %v8362_v61 = vmul.f32 0.044715, %v17944_v58  ;;  %10501 = vmatpush1.bf16.msra.mxu0 %v14490_v40  ;;  %v14505_v47 = vld [vmem:[#allocation6 + $0xd8] ss:$12 sps:$4 sm:$0xff]  }
 0xfe0   : > { %v8395_v12 = vmul.f32 %v17926_v42, %v8371_v51  ;;  %v8397_v13 = vmul.f32 %v17928_v30, %v8373_v7  ;;  %v8383_v4 = vmul.f32 %v17936_v9, %v8359_v50  ;;  %v8385_v22 = vmul.f32 %v17938_v19, %v8361_v36  ;;  %10502 = vmatprep.subr.bf16.mxu0 %v14497_v45  ;;  %v14512_v41 = vld [vmem:[#allocation6 + $0xf4] ss:$12 sps:$4 sm:$0xff]   ;;  %v14510_v7 = vld [vmem:[#allocation6 + $0xf0] ss:$12 sps:$4 sm:$0xff]   ;;  %v14517_v50 = vld [vmem:[#allocation6 + $0x10c] ss:$12 sps:$4 sm:$0xff]  }
 0xfe1   : > { %v8396_v0 = vmul.f32 %v17930_v23, %v8372_v54  ;;  %v8384_v14 = vmul.f32 %v17942_v52, %v8360_v62  ;;  %v8386_v15 = vmul.f32 %v17944_v58, %v8362_v61  ;;  %12808 = vmatpush3.bf16.msra.mxu1 %v14519_v1  ;;  %v8398_v21 = vmul.f32 %v17932_v10, %v8374_v44  ;;  %v14515_v36 = vld [vmem:[#allocation6 + $0x108] ss:$12 sps:$4 sm:$0xff]   ;;  %v14522_v54 = vld [vmem:[#allocation6 + $0x124] ss:$12 sps:$4 sm:$0xff]  }
 0xfe2   : > { %v8419_v5 = vadd.f32 %v17926_v42, %v8395_v12  ;;  %v8421_v49 = vadd.f32 %v17928_v30, %v8397_v13  ;;  %v8407_v18 = vmul.f32 %v17936_v9, %v8383_v4  ;;  %v8409_v38 = vmul.f32 %v17938_v19, %v8385_v22  ;;  %12809 = vmatprep.subr.bf16.mxu1 %v14523_v8  ;;  %v14520_v13 = vld [vmem:[#allocation6 + $0x120] ss:$12 sps:$4 sm:$0xff]  }
 0xfe3   : > { %v8408_v24 = vmul.f32 %v17942_v52, %v8384_v14  ;;  %v8410_v20 = vmul.f32 %v17944_v58, %v8386_v15  ;;  %10503 = vmatpush1.bf16.msra.mxu0 %v14495_v63  ;;  %v8420_v55 = vadd.f32 %v17930_v23, %v8396_v0  ;;  %v8422_v43 = vadd.f32 %v17932_v10, %v8398_v21  ;;  %v14527_v14 = vld [vmem:[#allocation6 + $0x13c] ss:$12 sps:$4 sm:$0xff]  }
 0xfe4   : > { %v8443_v17 = vmul.f32 0.7978846, %v8419_v5  ;;  %v8445_v32 = vmul.f32 0.7978846, %v8421_v49  ;;  %v8431_v46 = vadd.f32 %v17936_v9, %v8407_v18  ;;  %v8433_v33 = vadd.f32 %v17938_v19, %v8409_v38  ;;  %10504 = vmatprep.subr.bf16.mxu0 %v14502_v11 }
 0xfe5   : > { %12810 = vmatpush3.bf16.msra.mxu1 %v14524_v3  ;;  %v8432_v34 = vadd.f32 %v17942_v52, %v8408_v24  ;;  %v8444_v53 = vmul.f32 0.7978846, %v8420_v55  ;;  %v8434_v48 = vadd.f32 %v17944_v58, %v8410_v20  ;;  %v8446_v1 = vmul.f32 0.7978846, %v8422_v43  ;;  %v14537_v43 = vld [vmem:[#allocation6 + $0x16c] ss:$12 sps:$4 sm:$0xff]  }
 0xfe6   : > { %14890 = vtanh.f32 %v8443_v17  ;;  %v8455_v40 = vmul.f32 0.7978846, %v8431_v46  ;;  %v8457_v45 = vmul.f32 0.7978846, %v8433_v33  ;;  %12817 = vmatprep.subr.bf16.mxu1 %v14528_v29  ;;  %v8323_v4 = vmul.f32 0.5, %v17926_v42 }
 0xfe7   : > { %14892 = vtanh.f32 %v8445_v32  ;;  %10505 = vmatpush1.bf16.msra.mxu0 %v14500_v31  ;;  %v8456_v39 = vmul.f32 0.7978846, %v8432_v34  ;;  %v8458_v51 = vmul.f32 0.7978846, %v8434_v48  ;;  %v8335_v22 = vmul.f32 0.5, %v17936_v9 }
 0xfe8   : > { %14894 = vtanh.f32 %v8455_v40  ;;  %10506 = vmatprep.subr.bf16.mxu0 %v14507_v37  ;;  %v8325_v15 = vmul.f32 0.5, %v17928_v30  ;;  %v8337_v3 = vmul.f32 0.5, %v17938_v19  ;;  %v8324_v18 = vmul.f32 0.5, %v17930_v23  ;;  %v14525_v32 = vld [vmem:[#allocation6 + $0x138] ss:$12 sps:$4 sm:$0xff]  }
 0xfe9   : > { %14896 = vtanh.f32 %v8457_v45  ;;  %v8336_v42 = vmul.f32 0.5, %v17942_v52  ;;  %v8326_v30 = vmul.f32 0.5, %v17932_v10  ;;  %v8338_v19 = vmul.f32 0.5, %v17944_v58  ;;  %v14532_v40 = vld [vmem:[#allocation6 + $0x154] ss:$12 sps:$4 sm:$0xff]  }
 0xfea   : > { %14898 = vtanh.f32 %v8444_v53  ;;  %v14529_v45 = vld [vmem:[#allocation6 + $0x188] ss:$12 sps:$4 sm:$0xff]   ;;  %v14534_v58 = vld [vmem:[#allocation6 + $0x1a0] ss:$12 sps:$4 sm:$0xff]  }
 0xfeb   : > { %10507 = vmatpush1.bf16.msra.mxu0 %v14505_v47  ;;  %14900 = vtanh.f32 %v8456_v39  ;;  %v14530_v39 = vld [vmem:[#allocation6 + $0x150] ss:$12 sps:$4 sm:$0xff]   ;;  %v14535_v48 = vld [vmem:[#allocation6 + $0x168] ss:$12 sps:$4 sm:$0xff]  }
 0xfec   : > { %10508 = vmatprep.subr.bf16.mxu0 %v14512_v41  ;;  %14902 = vtanh.f32 %v8446_v1  ;;  %v14533_v41 = vld [vmem:[#allocation6 + $0x260] ss:$12 sps:$4 sm:$0xff]   ;;  %v14538_v1 = vld [vmem:[#allocation6 + $0x278] ss:$12 sps:$4 sm:$0xff]  }
 0xfed   : > { %14904 = vtanh.f32 %v8458_v51  ;;  %v14542_v51 = vld [vmem:[#allocation6 + $0x184] ss:$12 sps:$4 sm:$0xff]  }
 0xfef   : > { %10509 = vmatpush1.bf16.msra.mxu0 %v14510_v7  ;;  %v14539_v7 = vld [vmem:[#allocation6 + $0x1b8] ss:$12 sps:$4 sm:$0xff]  }
 0xff0   : > { %v14891_v8 = vpop.eup %14890  ;;  %10510 = vmatprep.subr.bf16.mxu0 %v14517_v50  ;;  %v14540_v50 = vld [vmem:[#allocation6 + $0x180] ss:$12 sps:$4 sm:$0xff]  }
 0xff1   : > { %v14893_v44 = vpop.eup %14892  ;;  %v8491_v62 = vadd.f32 1.0, %v14891_v8  ;;  %v14547_v8 = vld [vmem:[#allocation6 + $0x19c] ss:$12 sps:$4 sm:$0xff]  }
 0xff2   : > { %v14895_v61 = vpop.eup %14894  ;;  %v8493_v63 = vadd.f32 1.0, %v14893_v44  ;;  %v14545_v44 = vld [vmem:[#allocation6 + $0x198] ss:$12 sps:$4 sm:$0xff]  }
 0xff3   : > { %v14897_v12 = vpop.eup %14896  ;;  %10511 = vmatpush1.bf16.msra.mxu0 %v14515_v36  ;;  %v8503_v11 = vadd.f32 1.0, %v14895_v61  ;;  %v8515_v29 = vmul.f32 %v8491_v62, %v8323_v4  ;;  %v14543_v36 = vld [vmem:[#allocation6 + $0x290] ss:$12 sps:$4 sm:$0xff]   ;;  %v14548_v62 = vld [vmem:[#allocation6 + $0x2a8] ss:$12 sps:$4 sm:$0xff]  }
 0xff4   : > { %v14899_v0 = vpop.eup %14898  ;;  %10512 = vmatprep.subr.bf16.mxu0 %v14522_v54  ;;  %v8505_v5 = vadd.f32 1.0, %v14897_v12  ;;  %v8517_v9 = vmul.f32 %v8493_v63, %v8325_v15  ;;  %v14544_v54 = vld [vmem:[#allocation6 + $0x1d0] ss:$12 sps:$4 sm:$0xff]   ;;  %v14552_v61 = vld [vmem:[#allocation6 + $0x1b4] ss:$12 sps:$4 sm:$0xff]  }
 0xff5   : > { %v14901_v49 = vpop.eup %14900  ;;  %v8492_v38 = vadd.f32 1.0, %v14899_v0  ;;  %v8527_v21 = vmul.f32 %v8503_v11, %v8335_v22  ;;  %v14549_v63 = vld [vmem:[#allocation6 + $0x1e8] ss:$12 sps:$4 sm:$0xff]   ;;  %v14550_v12 = vld [vmem:[#allocation6 + $0x1b0] ss:$12 sps:$4 sm:$0xff]  }
 0xff6   : > { %v14903_v24 = vpop.eup %14902  ;;  %v8504_v20 = vadd.f32 1.0, %v14901_v49  ;;  %v8529_v31 = vmul.f32 %v8505_v5, %v8337_v3  ;;  %v14557_v4 = vld [vmem:[#allocation6 + $0x1cc] ss:$12 sps:$4 sm:$0xff]   ;;  %v14555_v11 = vld [vmem:[#allocation6 + $0x1c8] ss:$12 sps:$4 sm:$0xff]  }
 0xff7   : > { %v14905_v17 = vpop.eup %14904  ;;  %10513 = vmatpush1.bf16.msra.mxu0 %v14520_v13  ;;  %v8539_v46 = vpack.c.bf16 %v8527_v21, %v8515_v29  ;;  %v8494_v33 = vadd.f32 1.0, %v14903_v24  ;;  %v8516_v23 = vmul.f32 %v8492_v38, %v8324_v18  ;;  %v14553_v13 = vld [vmem:[#allocation6 + $0x2c0] ss:$12 sps:$4 sm:$0xff]   ;;  %v14558_v0 = vld [vmem:[#allocation6 + $0x2d8] ss:$12 sps:$4 sm:$0xff]  }
 0xff8   : > { %10514 = vmatprep.subr.bf16.mxu0 %v14527_v14  ;;  %v8528_v37 = vmul.f32 %v8504_v20, %v8336_v42  ;;  %v8506_v55 = vadd.f32 1.0, %v14905_v17  ;;  %v17982_v34 = vpack.c.bf16 %v8529_v31, %v8517_v9  ;;  %v14554_v22 = vld [vmem:[#allocation6 + $0x200] ss:$12 sps:$4 sm:$0xff]   ;;  %v14562_v14 = vld [vmem:[#allocation6 + $0x1e4] ss:$12 sps:$4 sm:$0xff]  }
 0xff9   : > { %v8518_v47 = vmul.f32 %v8494_v33, %v8326_v30  ;;  %v14559_v15 = vld [vmem:[#allocation6 + $0x218] ss:$12 sps:$4 sm:$0xff]   ;;  %v14560_v3 = vld [vmem:[#allocation6 + $0x1e0] ss:$12 sps:$4 sm:$0xff]   ;;  %v14563_v5 = vld [vmem:[#allocation6 + $0x2f0] ss:$12 sps:$4 sm:$0xff]  }
 0xffa   : > { %v8540_v52 = vpack.c.bf16 %v8528_v37, %v8516_v23  ;;  %v8530_v53 = vmul.f32 %v8506_v55, %v8338_v19  ;;  %v14567_v49 = vld [vmem:[#allocation6 + $0x1fc] ss:$12 sps:$4 sm:$0xff]   ;;  %v14565_v38 = vld [vmem:[#allocation6 + $0x1f8] ss:$12 sps:$4 sm:$0xff]   ;;  %v14570_v21 = vld [vmem:[#allocation6 + $0x214] ss:$12 sps:$4 sm:$0xff]  }
 0xffb   : > { %10515 = vmatpush1.bf16.msra.mxu0 %v14525_v32  ;;  %v14564_v18 = vld [vmem:[#allocation6 + $0x230] ss:$12 sps:$4 sm:$0xff]   ;;  %v14592_v29 = vld [vmem:[#allocation6 + $0x3c8] ss:$12 sps:$4 sm:$0xff]   ;;  %v14597_v20 = vld [vmem:[#allocation6 + $0x3e0] ss:$12 sps:$4 sm:$0xff]  }
 0xffc   : > { %10520 = vmatprep.mubr.bf16.mxu0 %v8540_v52  ;;  %10778 = vmatprep.mubr.bf16.mxu1 %v8540_v52  ;;  %v8542_v10 = vpack.c.bf16 %v8530_v53, %v8518_v47  ;;  %v14593_v24 = vld [vmem:[#allocation6 + $0x308] ss:$12 sps:$4 sm:$0xff]   ;;  %v14568_v42 = vld [vmem:[#allocation6 + $0x210] ss:$12 sps:$4 sm:$0xff]   ;;  %v14573_v9 = vld [vmem:[#allocation6 + $0x22c] ss:$12 sps:$4 sm:$0xff]  }
 0xffd   : > { %10779 = vmatmul.mubr.bf16.vlgmr.msra.gmra.mrb[64].mxu1 %v8539_v46  ;;  %10516 = vmatprep.subr.bf16.mxu0 %v14532_v40  ;;  %v14598_v31 = vld [vmem:[#allocation6 + $0x320] ss:$12 sps:$4 sm:$0xff]   ;;  %v14571_v17 = vld [vmem:[#allocation6 + $0x228] ss:$12 sps:$4 sm:$0xff]   ;;  %v14602_v32 = vld [vmem:[#allocation6 + $0x3f8] ss:$12 sps:$4 sm:$0xff]  }
 0xffe   : > { %12818 = vmatpush3.bf16.msra.mxu1 %v14529_v45  ;;  %10819 = vmatprep.mubr.bf16.mxu1 %v8542_v10  ;;  %v14603_v30 = vld [vmem:[#allocation6 + $0x338] ss:$12 sps:$4 sm:$0xff]   ;;  %v14574_v19 = vld [vmem:[#allocation6 + $0x240] ss:$12 sps:$4 sm:$0xff]   ;;  %v14607_v33 = vld [vmem:[#allocation6 + $0x410] ss:$12 sps:$4 sm:$0xff]  }
 0xfff   : > { %12819 = vmatprep.subr.bf16.mxu1 %v14533_v41  ;;  %10517 = vmatpush1.bf16.msra.mxu0 %v14530_v39  ;;  %v14579_v23 = vld [vmem:[#allocation6 + $0x25c] ss:$12 sps:$4 sm:$0xff]   ;;  %v14577_v55 = vld [vmem:[#allocation6 + $0x258] ss:$12 sps:$4 sm:$0xff]   ;;  %v14582_v52 = vld [vmem:[#allocation6 + $0x274] ss:$12 sps:$4 sm:$0xff]  }
0x1000   : > { %10518 = vmatprep.subr.bf16.mxu0 %v14537_v43  ;;  %v14608_v37 = vld [vmem:[#allocation6 + $0x350] ss:$12 sps:$4 sm:$0xff]   ;;  %v14612_v40 = vld [vmem:[#allocation6 + $0x428] ss:$12 sps:$4 sm:$0xff]   ;;  %v14617_v53 = vld [vmem:[#allocation6 + $0x440] ss:$12 sps:$4 sm:$0xff]  }
0x1001   : > { %v14613_v45 = vld [vmem:[#allocation6 + $0x368] ss:$12 sps:$4 sm:$0xff]   ;;  %v14580_v47 = vld [vmem:[#allocation6 + $0x270] ss:$12 sps:$4 sm:$0xff]   ;;  %v14585_v39 = vld [vmem:[#allocation6 + $0x28c] ss:$12 sps:$4 sm:$0xff]  }
0x1002   : > { %12820 = vmatpush3.bf16.msra.mxu1 %v14534_v58  ;;  %v14618_v41 = vld [vmem:[#allocation6 + $0x380] ss:$12 sps:$4 sm:$0xff]   ;;  %v14622_v43 = vld [vmem:[#allocation6 + $0x458] ss:$12 sps:$4 sm:$0xff]  }
0x1003   : > { %12821 = vmatprep.subr.bf16.mxu1 %v14538_v1  ;;  %10519 = vmatpush1.bf16.msra.mxu0 %v14535_v48  ;;  %v14588_v58 = vld [vmem:[#allocation6 + $0x2a4] ss:$12 sps:$4 sm:$0xff]   ;;  %v14586_v1 = vld [vmem:[#allocation6 + $0x2a0] ss:$12 sps:$4 sm:$0xff]  }
0x1004   : > { %10531 = vmatprep.subr.bf16.mxu0 %v14542_v51  ;;  %v14623_v48 = vld [vmem:[#allocation6 + $0x398] ss:$12 sps:$4 sm:$0xff]   ;;  %v14627_v51 = vld [vmem:[#allocation6 + $0x470] ss:$12 sps:$4 sm:$0xff]  }
0x1006   : > { %12822 = vmatpush3.bf16.msra.mxu1 %v14539_v7  ;;  %10521 = vmatmul.mubr.bf16.vlgmr.msra.gmra.mrb[36].mxu0 %v8539_v46  ;;  %v14576_v46 = vld [vmem:[#allocation6 + $0x244] ss:$12 sps:$4 sm:$0xff]   ;;  %v14591_v7 = vld [vmem:[#allocation6 + $0x2bc] ss:$12 sps:$4 sm:$0xff]  }
0x1007   : > { %12823 = vmatprep.subr.bf16.mxu1 %v14543_v36  ;;  %10532 = vmatpush1.bf16.msra.mxu0 %v14540_v50  ;;  %v6326_v50 = vrot.slane %v17916_v16, %v2373_v2  ;;  %v14628_v36 = vld [vmem:[#allocation6 + $0x3b0] ss:$12 sps:$4 sm:$0xff]   ;;  %v14596_v2 = vld [vmem:[#allocation6 + $0x2d4] ss:$12 sps:$4 sm:$0xff]  }
0x1008   : > { %10563 = vmatprep.mubr.bf16.mxu0 %v8542_v10  ;;  %10533 = vmatprep.subr.bf16.mxu0 %v14547_v8  ;;  %v14583_v10 = vld [vmem:[#allocation6 + $0x288] ss:$12 sps:$4 sm:$0xff]   ;;  %v6334_v8 = vrot.slane %v17916_v16, %v2381_v25 }
0x100a   : > { %12824 = vmatpush3.bf16.msra.mxu1 %v14544_v54  ;;  %v6330_v54 = vrot.slane %v17916_v16, %v2377_v6 }
0x100b   : > { %12825 = vmatprep.subr.bf16.mxu1 %v14548_v62  ;;  %10534 = vmatpush1.bf16.msra.mxu0 %v14545_v44  ;;  %v14589_v44 = vld [vmem:[#allocation6 + $0x2b8] ss:$12 sps:$4 sm:$0xff]   ;;  %v14632_v62 = vld [vmem:[#allocation6 + $0x548] ss:$12 sps:$4 sm:$0xff]  }
0x100c   : > { %10535 = vmatprep.subr.bf16.mxu0 %v14552_v61  ;;  %v6338_v61 = vrot.slane %v17916_v16, %v2385_v27 }
0x100e   : > { %12826 = vmatpush3.bf16.msra.mxu1 %v14549_v63 }
0x100f   : > { %12827 = vmatprep.subr.bf16.mxu1 %v14553_v13  ;;  %10536 = vmatpush1.bf16.msra.mxu0 %v14550_v12 }
0x1010   : > { %10537 = vmatprep.subr.bf16.mxu0 %v14557_v4 }
0x1012   : > { %12828 = vmatpush3.bf16.msra.mxu1 %v14554_v22 }
0x1013   : > { %12829 = vmatprep.subr.bf16.mxu1 %v14558_v0  ;;  %10538 = vmatpush1.bf16.msra.mxu0 %v14555_v11  ;;  %v14594_v0 = vld [vmem:[#allocation6 + $0x2d0] ss:$12 sps:$4 sm:$0xff]  }
0x1014   : > { %10539 = vmatprep.subr.bf16.mxu0 %v14562_v14 }
0x1016   : > { %12830 = vmatpush3.bf16.msra.mxu1 %v14559_v15 }
0x1017   : > { %12831 = vmatprep.subr.bf16.mxu1 %v14563_v5  ;;  %10540 = vmatpush1.bf16.msra.mxu0 %v14560_v3  ;;  %v14601_v3 = vld [vmem:[#allocation6 + $0x2ec] ss:$12 sps:$4 sm:$0xff]  }
0x1018   : > { %10541 = vmatprep.subr.bf16.mxu0 %v14567_v49 }
0x101a   : > { %12832 = vmatpush3.bf16.msra.mxu1 %v14564_v18 }
0x101b   : > { %10542 = vmatpush1.bf16.msra.mxu0 %v14565_v38  ;;  %12839 = vmatprep.subr.bf16.mxu1 %v14592_v29 }
0x101c   : > { %10543 = vmatprep.subr.bf16.mxu0 %v14570_v21 }
0x101d   : > { %10820 = vmatmul.mubr.bf16.vlgmr.msra.gmra.mrb[68].mxu1 %v17982_v34 }
0x101e   : > { %12840 = vmatpush3.bf16.msra.mxu1 %v14593_v24 }
0x101f   : > { %10544 = vmatpush1.bf16.msra.mxu0 %v14568_v42  ;;  %12841 = vmatprep.subr.bf16.mxu1 %v14597_v20 }
0x1020   : > { %10545 = vmatprep.subr.bf16.mxu0 %v14573_v9 }
0x1022   : > { %12842 = vmatpush3.bf16.msra.mxu1 %v14598_v31 }
0x1023   : > { %10546 = vmatpush1.bf16.msra.mxu0 %v14571_v17  ;;  %12843 = vmatprep.subr.bf16.mxu1 %v14602_v32 }
0x1024   : > { %10547 = vmatprep.subr.bf16.mxu0 %v14576_v46  ;;  %v14599_v46 = vld [vmem:[#allocation6 + $0x2e8] ss:$12 sps:$4 sm:$0xff]  }
0x1026   : > { %12844 = vmatpush3.bf16.msra.mxu1 %v14603_v30 }
0x1027   : > { %10548 = vmatpush1.bf16.msra.mxu0 %v14574_v19  ;;  %12845 = vmatprep.subr.bf16.mxu1 %v14607_v33 }
0x1028   : > { %10549 = vmatprep.subr.bf16.mxu0 %v14579_v23 }
0x102a   : > { %12846 = vmatpush3.bf16.msra.mxu1 %v14608_v37  ;;  %v14606_v37 = vld [vmem:[#allocation6 + $0x304] ss:$12 sps:$4 sm:$0xff]  }
0x102b   : > { %10550 = vmatpush1.bf16.msra.mxu0 %v14577_v55  ;;  %12847 = vmatprep.subr.bf16.mxu1 %v14612_v40 }
0x102c   : > { %10551 = vmatprep.subr.bf16.mxu0 %v14582_v52 }
0x102e   : > { %12848 = vmatpush3.bf16.msra.mxu1 %v14613_v45 }
0x102f   : > { %10552 = vmatpush1.bf16.msra.mxu0 %v14580_v47  ;;  %12849 = vmatprep.subr.bf16.mxu1 %v14617_v53 }
0x1030   : > { %10553 = vmatprep.subr.bf16.mxu0 %v14585_v39 }
0x1032   : > { %12850 = vmatpush3.bf16.msra.mxu1 %v14618_v41 }
0x1033   : > { %10554 = vmatpush1.bf16.msra.mxu0 %v14583_v10  ;;  %12851 = vmatprep.subr.bf16.mxu1 %v14622_v43 }
0x1034   : > { %10555 = vmatprep.subr.bf16.mxu0 %v14588_v58  ;;  %v14604_v58 = vld [vmem:[#allocation6 + $0x300] ss:$12 sps:$4 sm:$0xff]  }
0x1036   : > { %12852 = vmatpush3.bf16.msra.mxu1 %v14623_v48 }
0x1037   : > { %10556 = vmatpush1.bf16.msra.mxu0 %v14586_v1  ;;  %12853 = vmatprep.subr.bf16.mxu1 %v14627_v51 }
0x1038   : > { %10557 = vmatprep.subr.bf16.mxu0 %v14591_v7 }
0x1039   : > { %v8056_v63 = vpop.f32.mrb[28].mxu0 }
0x103a   : > { %v17997_v12 = vadd.f32 %v8056_v63, %v6326_v50  ;;  %v8142_v13 = vpop.f32.mrb[56].mxu1  ;;  %v8058_v4 = vpop.f32.mrb[29].mxu0  ;;  %12854 = vmatpush3.bf16.msra.mxu1 %v14628_v36 }
0x103b   : > { %v17999_v25 = vadd.f32 %v8142_v13, %v6334_v8  ;;  %v18001_v22 = vadd.f32 %v8058_v4, %v6330_v54  ;;  %v8144_v6 = vpop.f32.mrb[57].mxu1  ;;  %v8060_v11 = vpop.f32.mrb[30].mxu0  ;;  %10558 = vmatpush1.bf16.msra.mxu0 %v14589_v44  ;;  %12861 = vmatprep.subr.bf16.mxu1 %v14632_v62  ;;  %v14616_v4 = vld [vmem:[#allocation6 + $0x334] ss:$12 sps:$4 sm:$0xff]  }
0x103c   : > { %v8351_v56 = vmul.f32 0.044715, %v17997_v12  ;;  %v18004_v27 = vadd.f32 %v8144_v6, %v6338_v61  ;;  %v18006_v16 = vadd.f32 %v8060_v11, %v6326_v50  ;;  %v8146_v14 = vpop.f32.mrb[58].mxu1  ;;  %v8062_v15 = vpop.f32.mrb[31].mxu0  ;;  %10559 = vmatprep.subr.bf16.mxu0 %v14596_v2  ;;  %v14611_v50 = vld [vmem:[#allocation6 + $0x31c] ss:$12 sps:$4 sm:$0xff]  }
0x103d   : > { %v8353_v5 = vmul.f32 0.044715, %v17999_v25  ;;  %v8352_v49 = vmul.f32 0.044715, %v18001_v22  ;;  %v18010_v18 = vadd.f32 %v8146_v14, %v6334_v8  ;;  %v18012_v38 = vadd.f32 %v8062_v15, %v6330_v54  ;;  %v8148_v29 = vpop.f32.mrb[59].mxu1 }
0x103e   : > { %v8375_v21 = vmul.f32 %v17997_v12, %v8351_v56  ;;  %v8354_v24 = vmul.f32 0.044715, %v18004_v27  ;;  %v8363_v42 = vmul.f32 0.044715, %v18006_v16  ;;  %v18017_v20 = vadd.f32 %v8148_v29, %v6338_v61  ;;  %v14609_v61 = vld [vmem:[#allocation6 + $0x318] ss:$12 sps:$4 sm:$0xff]  }
0x103f   : > { %v8377_v9 = vmul.f32 %v17999_v25, %v8353_v5  ;;  %v8376_v31 = vmul.f32 %v18001_v22, %v8352_v49  ;;  %v8365_v17 = vmul.f32 0.044715, %v18010_v18  ;;  %v8364_v32 = vmul.f32 0.044715, %v18012_v38  ;;  %10560 = vmatpush1.bf16.msra.mxu0 %v14594_v0  ;;  %v14614_v14 = vld [vmem:[#allocation6 + $0x330] ss:$12 sps:$4 sm:$0xff]  }
0x1040   : > { %v8399_v30 = vmul.f32 %v17997_v12, %v8375_v21  ;;  %v8378_v19 = vmul.f32 %v18004_v27, %v8354_v24  ;;  %v8387_v33 = vmul.f32 %v18006_v16, %v8363_v42  ;;  %v8366_v23 = vmul.f32 0.044715, %v18017_v20  ;;  %10561 = vmatprep.subr.bf16.mxu0 %v14601_v3  ;;  %v14619_v15 = vld [vmem:[#allocation6 + $0x348] ss:$12 sps:$4 sm:$0xff]   ;;  %v14626_v5 = vld [vmem:[#allocation6 + $0x364] ss:$12 sps:$4 sm:$0xff]  }
0x1041   : > { %v8401_v55 = vmul.f32 %v17999_v25, %v8377_v9  ;;  %v8400_v40 = vmul.f32 %v18001_v22, %v8376_v31  ;;  %v8389_v52 = vmul.f32 %v18010_v18, %v8365_v17  ;;  %v8388_v45 = vmul.f32 %v18012_v38, %v8364_v32  ;;  %v14624_v9 = vld [vmem:[#allocation6 + $0x360] ss:$12 sps:$4 sm:$0xff]  }
0x1042   : > { %v8423_v47 = vadd.f32 %v17997_v12, %v8399_v30  ;;  %v8411_v53 = vmul.f32 %v18006_v16, %v8387_v33  ;;  %v8390_v39 = vmul.f32 %v18017_v20, %v8366_v23  ;;  %v8402_v1 = vmul.f32 %v18004_v27, %v8378_v19  ;;  %v14631_v30 = vld [vmem:[#allocation6 + $0x37c] ss:$12 sps:$4 sm:$0xff]  }
0x1043   : > { %v8425_v41 = vadd.f32 %v17999_v25, %v8401_v55  ;;  %v8413_v10 = vmul.f32 %v18010_v18, %v8389_v52  ;;  %v8412_v43 = vmul.f32 %v18012_v38, %v8388_v45  ;;  %10562 = vmatpush1.bf16.msra.mxu0 %v14599_v46  ;;  %v8424_v54 = vadd.f32 %v18001_v22, %v8400_v40 }
0x1044   : > { %v8447_v48 = vmul.f32 0.7978846, %v8423_v47  ;;  %v8435_v51 = vadd.f32 %v18006_v16, %v8411_v53  ;;  %v8414_v7 = vmul.f32 %v18017_v20, %v8390_v39  ;;  %10574 = vmatprep.subr.bf16.mxu0 %v14606_v37  ;;  %v8426_v6 = vadd.f32 %v18004_v27, %v8402_v1 }
0x1045   : > { %v8449_v36 = vmul.f32 0.7978846, %v8425_v41  ;;  %v8437_v8 = vadd.f32 %v18010_v18, %v8413_v10  ;;  %v8436_v44 = vadd.f32 %v18012_v38, %v8412_v43  ;;  %v8448_v63 = vmul.f32 0.7978846, %v8424_v54  ;;  %v14629_v10 = vld [vmem:[#allocation6 + $0x378] ss:$12 sps:$4 sm:$0xff]  }
0x1046   : > { %14906 = vtanh.f32 %v8447_v48  ;;  %v8459_v62 = vmul.f32 0.7978846, %v8435_v51  ;;  %10564 = vmatmul.mubr.bf16.vlgmr.msra.gmra.mrb[36].mxu0 %v17982_v34  ;;  %v8438_v11 = vadd.f32 %v18017_v20, %v8414_v7  ;;  %v8450_v0 = vmul.f32 0.7978846, %v8426_v6  ;;  %v14621_v34 = vld [vmem:[#allocation6 + $0x34c] ss:$12 sps:$4 sm:$0xff]  }
0x1047   : > { %14908 = vtanh.f32 %v8449_v36  ;;  %v8461_v2 = vmul.f32 0.7978846, %v8437_v8  ;;  %10575 = vmatpush1.bf16.msra.mxu0 %v14604_v58  ;;  %v8460_v13 = vmul.f32 0.7978846, %v8436_v44  ;;  %v8327_v31 = vmul.f32 0.5, %v17997_v12 }
0x1048   : > { %14910 = vtanh.f32 %v8459_v62  ;;  %10576 = vmatprep.subr.bf16.mxu0 %v14611_v50  ;;  %v8462_v56 = vmul.f32 0.7978846, %v8438_v11  ;;  %v8339_v17 = vmul.f32 0.5, %v18006_v16  ;;  %v8329_v19 = vmul.f32 0.5, %v17999_v25  ;;  %v14633_v50 = vld [vmem:[#allocation6 + $0x488] ss:$12 sps:$4 sm:$0xff]  }
0x1049   : > { %14912 = vtanh.f32 %v8461_v2  ;;  %v8341_v33 = vmul.f32 0.5, %v18010_v18  ;;  %v8328_v55 = vmul.f32 0.5, %v18001_v22  ;;  %v8340_v12 = vmul.f32 0.5, %v18012_v38  ;;  %v14636_v38 = vld [vmem:[#allocation6 + $0x394] ss:$12 sps:$4 sm:$0xff]  }
0x104a   : > { %14914 = vtanh.f32 %v8448_v63  ;;  %v8330_v25 = vmul.f32 0.5, %v18004_v27  ;;  %v8342_v18 = vmul.f32 0.5, %v18017_v20  ;;  %v14634_v54 = vld [vmem:[#allocation6 + $0x390] ss:$12 sps:$4 sm:$0xff]   ;;  %v14637_v44 = vld [vmem:[#allocation6 + $0x560] ss:$12 sps:$4 sm:$0xff]  }
0x104b   : > { %10577 = vmatpush1.bf16.msra.mxu0 %v14609_v61  ;;  %14916 = vtanh.f32 %v8460_v13  ;;  %v14641_v20 = vld [vmem:[#allocation6 + $0x3ac] ss:$12 sps:$4 sm:$0xff]   ;;  %v14639_v61 = vld [vmem:[#allocation6 + $0x3a8] ss:$12 sps:$4 sm:$0xff]   ;;  %v14646_v63 = vld [vmem:[#allocation6 + $0x3c4] ss:$12 sps:$4 sm:$0xff]  }
0x104c   : > { %10578 = vmatprep.subr.bf16.mxu0 %v14616_v4  ;;  %14918 = vtanh.f32 %v8450_v0  ;;  %v14638_v62 = vld [vmem:[#allocation6 + $0x4a0] ss:$12 sps:$4 sm:$0xff]   ;;  %v14642_v2 = vld [vmem:[#allocation6 + $0x578] ss:$12 sps:$4 sm:$0xff]   ;;  %v14647_v6 = vld [vmem:[#allocation6 + $0x590] ss:$12 sps:$4 sm:$0xff]  }
0x104d   : > { %14920 = vtanh.f32 %v8462_v56  ;;  %v14643_v13 = vld [vmem:[#allocation6 + $0x4b8] ss:$12 sps:$4 sm:$0xff]   ;;  %v14644_v4 = vld [vmem:[#allocation6 + $0x3c0] ss:$12 sps:$4 sm:$0xff]   ;;  %v14651_v11 = vld [vmem:[#allocation6 + $0x3dc] ss:$12 sps:$4 sm:$0xff]  }
0x104e   : > { %v14648_v0 = vld [vmem:[#allocation6 + $0x4d0] ss:$12 sps:$4 sm:$0xff]   ;;  %v14649_v56 = vld [vmem:[#allocation6 + $0x3d8] ss:$12 sps:$4 sm:$0xff]  }
0x104f   : > { %10579 = vmatpush1.bf16.msra.mxu0 %v14614_v14  ;;  %v14652_v14 = vld [vmem:[#allocation6 + $0x5a8] ss:$12 sps:$4 sm:$0xff]  }
0x1050   : > { %v14907_v3 = vpop.eup %14906  ;;  %10580 = vmatprep.subr.bf16.mxu0 %v14621_v34  ;;  %v14656_v34 = vld [vmem:[#allocation6 + $0x3f4] ss:$12 sps:$4 sm:$0xff]  }
0x1051   : > { %v14909_v49 = vpop.eup %14908  ;;  %v8495_v29 = vadd.f32 1.0, %v14907_v3  ;;  %v14654_v3 = vld [vmem:[#allocation6 + $0x3f0] ss:$12 sps:$4 sm:$0xff]  }
0x1052   : > { %v14911_v21 = vpop.eup %14910  ;;  %v8497_v24 = vadd.f32 1.0, %v14909_v49  ;;  %v14661_v49 = vld [vmem:[#allocation6 + $0x40c] ss:$12 sps:$4 sm:$0xff]  }
0x1053   : > { %v14913_v42 = vpop.eup %14912  ;;  %10581 = vmatpush1.bf16.msra.mxu0 %v14619_v15  ;;  %v8507_v32 = vadd.f32 1.0, %v14911_v21  ;;  %v8519_v52 = vmul.f32 %v8495_v29, %v8327_v31  ;;  %v14653_v15 = vld [vmem:[#allocation6 + $0x4e8] ss:$12 sps:$4 sm:$0xff]   ;;  %v14658_v29 = vld [vmem:[#allocation6 + $0x500] ss:$12 sps:$4 sm:$0xff]  }
0x1054   : > { %v14915_v46 = vpop.eup %14914  ;;  %10582 = vmatprep.subr.bf16.mxu0 %v14626_v5  ;;  %v8509_v23 = vadd.f32 1.0, %v14913_v42  ;;  %v8521_v16 = vmul.f32 %v8497_v24, %v8329_v19  ;;  %v14657_v5 = vld [vmem:[#allocation6 + $0x5c0] ss:$12 sps:$4 sm:$0xff]   ;;  %v14659_v21 = vld [vmem:[#allocation6 + $0x408] ss:$12 sps:$4 sm:$0xff]  }
0x1055   : > { %v14917_v37 = vpop.eup %14916  ;;  %v8496_v40 = vadd.f32 1.0, %v14915_v46  ;;  %v8531_v45 = vmul.f32 %v8507_v32, %v8339_v17  ;;  %v14662_v24 = vld [vmem:[#allocation6 + $0x5d8] ss:$12 sps:$4 sm:$0xff]   ;;  %v14664_v31 = vld [vmem:[#allocation6 + $0x420] ss:$12 sps:$4 sm:$0xff]  }
0x1056   : > { %v14919_v47 = vpop.eup %14918  ;;  %v8508_v53 = vadd.f32 1.0, %v14917_v37  ;;  %v8533_v39 = vmul.f32 %v8509_v23, %v8341_v33  ;;  %v14666_v42 = vld [vmem:[#allocation6 + $0x424] ss:$12 sps:$4 sm:$0xff]   ;;  %v14671_v32 = vld [vmem:[#allocation6 + $0x43c] ss:$12 sps:$4 sm:$0xff]  }
0x1057   : > { %v14921_v41 = vpop.eup %14920  ;;  %10583 = vmatpush1.bf16.msra.mxu0 %v14624_v9  ;;  %v18052_v43 = vpack.c.bf16 %v8531_v45, %v8519_v52  ;;  %v8498_v58 = vadd.f32 1.0, %v14919_v47  ;;  %v8520_v22 = vmul.f32 %v8496_v40, %v8328_v55  ;;  %v14663_v9 = vld [vmem:[#allocation6 + $0x518] ss:$12 sps:$4 sm:$0xff]   ;;  %v14667_v17 = vld [vmem:[#allocation6 + $0x5f0] ss:$12 sps:$4 sm:$0xff]  }
0x1058   : > { %10584 = vmatprep.subr.bf16.mxu0 %v14631_v30  ;;  %v8532_v48 = vmul.f32 %v8508_v53, %v8340_v12  ;;  %v8510_v1 = vadd.f32 1.0, %v14921_v41  ;;  %v18056_v51 = vpack.c.bf16 %v8533_v39, %v8521_v16  ;;  %v14668_v46 = vld [vmem:[#allocation6 + $0x530] ss:$12 sps:$4 sm:$0xff]   ;;  %v14669_v30 = vld [vmem:[#allocation6 + $0x438] ss:$12 sps:$4 sm:$0xff]  }
0x1059   : > { %v8522_v36 = vmul.f32 %v8498_v58, %v8330_v25  ;;  %v14696_v19 = vld [vmem:[#allocation6 + $0x6c8] ss:$12 sps:$4 sm:$0xff]   ;;  %v14672_v37 = vld [vmem:[#allocation6 + $0x450] ss:$12 sps:$4 sm:$0xff]   ;;  %v14701_v55 = vld [vmem:[#allocation6 + $0x6e0] ss:$12 sps:$4 sm:$0xff]  }
0x105a   : > { %v8544_v7 = vpack.c.bf16 %v8532_v48, %v8520_v22  ;;  %v8534_v8 = vmul.f32 %v8510_v1, %v8342_v18  ;;  %v14674_v33 = vld [vmem:[#allocation6 + $0x454] ss:$12 sps:$4 sm:$0xff]   ;;  %v14677_v40 = vld [vmem:[#allocation6 + $0x46c] ss:$12 sps:$4 sm:$0xff]   ;;  %v14680_v12 = vld [vmem:[#allocation6 + $0x484] ss:$12 sps:$4 sm:$0xff]  }
0x105b   : > { %10585 = vmatpush1.bf16.msra.mxu0 %v14629_v10  ;;  %v14697_v23 = vld [vmem:[#allocation6 + $0x608] ss:$12 sps:$4 sm:$0xff]   ;;  %v14702_v52 = vld [vmem:[#allocation6 + $0x620] ss:$12 sps:$4 sm:$0xff]   ;;  %v14706_v47 = vld [vmem:[#allocation6 + $0x6f8] ss:$12 sps:$4 sm:$0xff]  }
0x105c   : > { %10606 = vmatprep.mubr.bf16.mxu0 %v8544_v7  ;;  %10860 = vmatprep.mubr.bf16.mxu1 %v8544_v7  ;;  %v18058_v27 = vpack.c.bf16 %v8534_v8, %v8522_v36  ;;  %v14675_v45 = vld [vmem:[#allocation6 + $0x468] ss:$12 sps:$4 sm:$0xff]   ;;  %v14707_v53 = vld [vmem:[#allocation6 + $0x638] ss:$12 sps:$4 sm:$0xff]   ;;  %v14678_v16 = vld [vmem:[#allocation6 + $0x480] ss:$12 sps:$4 sm:$0xff]  }
0x105d   : > { %10861 = vmatmul.mubr.bf16.vlgmr.msra.gmra.mrb[72].mxu1 %v18052_v43  ;;  %10586 = vmatprep.subr.bf16.mxu0 %v14636_v38  ;;  %v14683_v39 = vld [vmem:[#allocation6 + $0x49c] ss:$12 sps:$4 sm:$0xff]   ;;  %v14681_v25 = vld [vmem:[#allocation6 + $0x498] ss:$12 sps:$4 sm:$0xff]   ;;  %v14686_v58 = vld [vmem:[#allocation6 + $0x4b4] ss:$12 sps:$4 sm:$0xff]  }
0x105e   : > { %12862 = vmatpush3.bf16.msra.mxu1 %v14633_v50  ;;  %10901 = vmatprep.mubr.bf16.mxu1 %v18058_v27  ;;  %v14711_v41 = vld [vmem:[#allocation6 + $0x710] ss:$12 sps:$4 sm:$0xff]   ;;  %v14716_v18 = vld [vmem:[#allocation6 + $0x728] ss:$12 sps:$4 sm:$0xff]   ;;  %v14721_v1 = vld [vmem:[#allocation6 + $0x740] ss:$12 sps:$4 sm:$0xff]  }
0x105f   : > { %12863 = vmatprep.subr.bf16.mxu1 %v14637_v44  ;;  %10587 = vmatpush1.bf16.msra.mxu0 %v14634_v54  ;;  %v14712_v10 = vld [vmem:[#allocation6 + $0x650] ss:$12 sps:$4 sm:$0xff]   ;;  %v14717_v22 = vld [vmem:[#allocation6 + $0x668] ss:$12 sps:$4 sm:$0xff]   ;;  %v14689_v38 = vld [vmem:[#allocation6 + $0x4cc] ss:$12 sps:$4 sm:$0xff]  }
0x1060   : > { %10588 = vmatprep.subr.bf16.mxu0 %v14641_v20  ;;  %v14684_v48 = vld [vmem:[#allocation6 + $0x4b0] ss:$12 sps:$4 sm:$0xff]   ;;  %v14687_v7 = vld [vmem:[#allocation6 + $0x4c8] ss:$12 sps:$4 sm:$0xff]   ;;  %v14726_v50 = vld [vmem:[#allocation6 + $0x758] ss:$12 sps:$4 sm:$0xff]  }
0x1061   : > { %v14692_v36 = vld [vmem:[#allocation6 + $0x4e4] ss:$12 sps:$4 sm:$0xff]   ;;  %v14690_v54 = vld [vmem:[#allocation6 + $0x4e0] ss:$12 sps:$4 sm:$0xff]   ;;  %v6304_v44 = vld [vmem:[%s18265_s12 + $0x8] sm:$0xf] }
0x1062   : > { %12864 = vmatpush3.bf16.msra.mxu1 %v14638_v62  ;;  %v14727_v8 = vld [vmem:[#allocation6 + $0x698] ss:$12 sps:$4 sm:$0xff]   ;;  %v14695_v20 = vld [vmem:[#allocation6 + $0x4fc] ss:$12 sps:$4 sm:$0xff]   ;;  %v6342_v62 = vrot.slane %v6304_v44, %v15992_v26 }
0x1063   : > { %12865 = vmatprep.subr.bf16.mxu1 %v14642_v2  ;;  %10589 = vmatpush1.bf16.msra.mxu0 %v14639_v61  ;;  %v14732_v61 = vld [vmem:[#allocation6 + $0x6b0] ss:$12 sps:$4 sm:$0xff]   ;;  %v6350_v2 = vrot.slane %v6304_v44, %v16056_v60 }
0x1064   : > { %10590 = vmatprep.subr.bf16.mxu0 %v14646_v63  ;;  %v6346_v63 = vrot.slane %v6304_v44, %v15970_v57 }
0x1066   : > { %12866 = vmatpush3.bf16.msra.mxu1 %v14643_v13  ;;  %v14693_v13 = vld [vmem:[#allocation6 + $0x4f8] ss:$12 sps:$4 sm:$0xff]  }
0x1067   : > { %12867 = vmatprep.subr.bf16.mxu1 %v14647_v6  ;;  %10591 = vmatpush1.bf16.msra.mxu0 %v14644_v4  ;;  %v14736_v4 = vld [vmem:[#allocation6 + $0x848] ss:$12 sps:$4 sm:$0xff]   ;;  %v6354_v6 = vrot.slane %v6304_v44, %v16831_v59 }
0x1068   : > { %10592 = vmatprep.subr.bf16.mxu0 %v14651_v11  ;;  %v14700_v11 = vld [vmem:[#allocation6 + $0x514] ss:$12 sps:$4 sm:$0xff]  }
0x106a   : > { %12868 = vmatpush3.bf16.msra.mxu1 %v14648_v0 }
0x106b   : > { %12869 = vmatprep.subr.bf16.mxu1 %v14652_v14  ;;  %10593 = vmatpush1.bf16.msra.mxu0 %v14649_v56 }
0x106c   : > { %10594 = vmatprep.subr.bf16.mxu0 %v14656_v34 }
0x106e   : > { %12870 = vmatpush3.bf16.msra.mxu1 %v14653_v15 }
0x106f   : > { %12871 = vmatprep.subr.bf16.mxu1 %v14657_v5  ;;  %10595 = vmatpush1.bf16.msra.mxu0 %v14654_v3 }
0x1070   : > { %10596 = vmatprep.subr.bf16.mxu0 %v14661_v49 }
0x1072   : > { %12872 = vmatpush3.bf16.msra.mxu1 %v14658_v29  ;;  %v14698_v29 = vld [vmem:[#allocation6 + $0x510] ss:$12 sps:$4 sm:$0xff]  }
0x1073   : > { %12873 = vmatprep.subr.bf16.mxu1 %v14662_v24  ;;  %10597 = vmatpush1.bf16.msra.mxu0 %v14659_v21 }
0x1074   : > { %10598 = vmatprep.subr.bf16.mxu0 %v14666_v42 }
0x1076   : > { %12874 = vmatpush3.bf16.msra.mxu1 %v14663_v9 }
0x1077   : > { %12875 = vmatprep.subr.bf16.mxu1 %v14667_v17  ;;  %10599 = vmatpush1.bf16.msra.mxu0 %v14664_v31  ;;  %v14705_v31 = vld [vmem:[#allocation6 + $0x52c] ss:$12 sps:$4 sm:$0xff]  }
0x1078   : > { %10600 = vmatprep.subr.bf16.mxu0 %v14671_v32 }
0x107a   : > { %12876 = vmatpush3.bf16.msra.mxu1 %v14668_v46 }
0x107b   : > { %10601 = vmatpush1.bf16.msra.mxu0 %v14669_v30  ;;  %12883 = vmatprep.subr.bf16.mxu1 %v14696_v19 }
0x107c   : > { %10602 = vmatprep.subr.bf16.mxu0 %v14674_v33 }
0x107d   : > { %10902 = vmatmul.mubr.bf16.vlgmr.msra.gmra.mrb[76].mxu1 %v18056_v51 }
0x107e   : > { %12884 = vmatpush3.bf16.msra.mxu1 %v14697_v23 }
0x107f   : > { %10603 = vmatpush1.bf16.msra.mxu0 %v14672_v37  ;;  %12885 = vmatprep.subr.bf16.mxu1 %v14701_v55 }
0x1080   : > { %10604 = vmatprep.subr.bf16.mxu0 %v14677_v40 }
0x1082   : > { %12886 = vmatpush3.bf16.msra.mxu1 %v14702_v52 }
0x1083   : > { %10605 = vmatpush1.bf16.msra.mxu0 %v14675_v45  ;;  %12887 = vmatprep.subr.bf16.mxu1 %v14706_v47 }
0x1084   : > { %10617 = vmatprep.subr.bf16.mxu0 %v14680_v12  ;;  %v14703_v12 = vld [vmem:[#allocation6 + $0x528] ss:$12 sps:$4 sm:$0xff]  }
0x1086   : > { %10607 = vmatmul.mubr.bf16.vlgmr.msra.gmra.mrb[36].mxu0 %v18052_v43  ;;  %12888 = vmatpush3.bf16.msra.mxu1 %v14707_v53  ;;  %v14722_v43 = vld [vmem:[#allocation6 + $0x680] ss:$12 sps:$4 sm:$0xff]  }
0x1087   : > { %10618 = vmatpush1.bf16.msra.mxu0 %v14678_v16  ;;  %10649 = vmatprep.mubr.bf16.mxu0 %v18058_v27  ;;  %v14731_v27 = vld [vmem:[#allocation6 + $0x770] ss:$12 sps:$4 sm:$0xff]  }
0x1088   : > { %10619 = vmatprep.subr.bf16.mxu0 %v14683_v39  ;;  %12889 = vmatprep.subr.bf16.mxu1 %v14711_v41 }
0x108a   : > { %12890 = vmatpush3.bf16.msra.mxu1 %v14712_v10  ;;  %v14710_v10 = vld [vmem:[#allocation6 + $0x544] ss:$12 sps:$4 sm:$0xff]  }
0x108b   : > { %10620 = vmatpush1.bf16.msra.mxu0 %v14681_v25  ;;  %12891 = vmatprep.subr.bf16.mxu1 %v14716_v18 }
0x108c   : > { %10621 = vmatprep.subr.bf16.mxu0 %v14686_v58 }
0x108e   : > { %12892 = vmatpush3.bf16.msra.mxu1 %v14717_v22 }
0x108f   : > { %10622 = vmatpush1.bf16.msra.mxu0 %v14684_v48  ;;  %12893 = vmatprep.subr.bf16.mxu1 %v14721_v1 }
0x1090   : > { %10623 = vmatprep.subr.bf16.mxu0 %v14689_v38 }
0x1092   : > { %12894 = vmatpush3.bf16.msra.mxu1 %v14722_v43 }
0x1093   : > { %10624 = vmatpush1.bf16.msra.mxu0 %v14687_v7  ;;  %12895 = vmatprep.subr.bf16.mxu1 %v14726_v50 }
0x1094   : > { %10625 = vmatprep.subr.bf16.mxu0 %v14692_v36  ;;  %v14708_v36 = vld [vmem:[#allocation6 + $0x540] ss:$12 sps:$4 sm:$0xff]  }
0x1096   : > { %12896 = vmatpush3.bf16.msra.mxu1 %v14727_v8 }
0x1097   : > { %10626 = vmatpush1.bf16.msra.mxu0 %v14690_v54  ;;  %12897 = vmatprep.subr.bf16.mxu1 %v14731_v27 }
0x1098   : > { %10627 = vmatprep.subr.bf16.mxu0 %v14695_v20  ;;  %v14715_v20 = vld [vmem:[#allocation6 + $0x55c] ss:$12 sps:$4 sm:$0xff]  }
0x1099   : > { %v8228_v0 = vpop.f32.mrb[32].mxu0 }
0x109a   : > { %v18072_v56 = vadd.f32 %v8228_v0, %v6342_v62  ;;  %v8314_v14 = vpop.f32.mrb[60].mxu1  ;;  %v8230_v34 = vpop.f32.mrb[33].mxu0  ;;  %12898 = vmatpush3.bf16.msra.mxu1 %v14732_v61 }
0x109b   : > { %v18074_v15 = vadd.f32 %v8314_v14, %v6350_v2  ;;  %v18076_v3 = vadd.f32 %v8230_v34, %v6346_v63  ;;  %v8316_v5 = vpop.f32.mrb[61].mxu1  ;;  %v8232_v49 = vpop.f32.mrb[34].mxu0  ;;  %10628 = vmatpush1.bf16.msra.mxu0 %v14693_v13  ;;  %12905 = vmatprep.subr.bf16.mxu1 %v14736_v4  ;;  %v14713_v4 = vld [vmem:[#allocation6 + $0x558] ss:$12 sps:$4 sm:$0xff]   ;;  %v14720_v14 = vld [vmem:[#allocation6 + $0x574] ss:$12 sps:$4 sm:$0xff]  }
0x109c   : > { %v8355_v21 = vmul.f32 0.044715, %v18072_v56  ;;  %v18079_v59 = vadd.f32 %v8316_v5, %v6354_v6  ;;  %v18081_v24 = vadd.f32 %v8232_v49, %v6342_v62  ;;  %v8318_v42 = vpop.f32.mrb[62].mxu1  ;;  %v8234_v9 = vpop.f32.mrb[35].mxu0  ;;  %10629 = vmatprep.subr.bf16.mxu0 %v14700_v11 }
0x109d   : > { %v8357_v17 = vmul.f32 0.044715, %v18074_v15  ;;  %v8356_v32 = vmul.f32 0.044715, %v18076_v3  ;;  %v18085_v46 = vadd.f32 %v8318_v42, %v6350_v2  ;;  %v18087_v30 = vadd.f32 %v8234_v9, %v6346_v63  ;;  %v8320_v19 = vpop.f32.mrb[63].mxu1 }
0x109e   : > { %v8379_v33 = vmul.f32 %v18072_v56, %v8355_v21  ;;  %v8358_v23 = vmul.f32 0.044715, %v18079_v59  ;;  %v8367_v37 = vmul.f32 0.044715, %v18081_v24  ;;  %v18092_v55 = vadd.f32 %v8320_v19, %v6354_v6  ;;  %v14718_v21 = vld [vmem:[#allocation6 + $0x570] ss:$12 sps:$4 sm:$0xff]  }
0x109f   : > { %v8381_v40 = vmul.f32 %v18074_v15, %v8357_v17  ;;  %v8380_v52 = vmul.f32 %v18076_v3, %v8356_v32  ;;  %v8369_v45 = vmul.f32 0.044715, %v18085_v46  ;;  %v8368_v47 = vmul.f32 0.044715, %v18087_v30  ;;  %10630 = vmatpush1.bf16.msra.mxu0 %v14698_v29  ;;  %v14725_v42 = vld [vmem:[#allocation6 + $0x58c] ss:$12 sps:$4 sm:$0xff]  }
0x10a0   : > { %v8403_v53 = vmul.f32 %v18072_v56, %v8379_v33  ;;  %v8382_v16 = vmul.f32 %v18079_v59, %v8358_v23  ;;  %v8391_v39 = vmul.f32 %v18081_v24, %v8367_v37  ;;  %v8370_v41 = vmul.f32 0.044715, %v18092_v55  ;;  %10631 = vmatprep.subr.bf16.mxu0 %v14705_v31  ;;  %v14723_v9 = vld [vmem:[#allocation6 + $0x588] ss:$12 sps:$4 sm:$0xff]   ;;  %v14730_v17 = vld [vmem:[#allocation6 + $0x5a4] ss:$12 sps:$4 sm:$0xff]  }
0x10a1   : > { %v8405_v25 = vmul.f32 %v18074_v15, %v8381_v40  ;;  %v8404_v18 = vmul.f32 %v18076_v3, %v8380_v52  ;;  %v8393_v58 = vmul.f32 %v18085_v46, %v8369_v45  ;;  %v8392_v22 = vmul.f32 %v18087_v30, %v8368_v47  ;;  %v14728_v40 = vld [vmem:[#allocation6 + $0x5a0] ss:$12 sps:$4 sm:$0xff]  }
0x10a2   : > { %v8427_v48 = vadd.f32 %v18072_v56, %v8403_v53  ;;  %v8415_v1 = vmul.f32 %v18081_v24, %v8391_v39  ;;  %v8394_v38 = vmul.f32 %v18092_v55, %v8370_v41  ;;  %v8406_v54 = vmul.f32 %v18079_v59, %v8382_v16  ;;  %v14735_v53 = vld [vmem:[#allocation6 + $0x5bc] ss:$12 sps:$4 sm:$0xff]  }
0x10a3   : > { %v8429_v43 = vadd.f32 %v18074_v15, %v8405_v25  ;;  %v8417_v7 = vmul.f32 %v18085_v46, %v8393_v58  ;;  %v8416_v50 = vmul.f32 %v18087_v30, %v8392_v22  ;;  %10632 = vmatpush1.bf16.msra.mxu0 %v14703_v12  ;;  %v8428_v2 = vadd.f32 %v18076_v3, %v8404_v18 }
0x10a4   : > { %v8451_v8 = vmul.f32 0.7978846, %v8427_v48  ;;  %v8439_v44 = vadd.f32 %v18081_v24, %v8415_v1  ;;  %v8418_v27 = vmul.f32 %v18092_v55, %v8394_v38  ;;  %10633 = vmatprep.subr.bf16.mxu0 %v14710_v10  ;;  %v8430_v34 = vadd.f32 %v18079_v59, %v8406_v54 }
0x10a5   : > { %v8453_v62 = vmul.f32 0.7978846, %v8429_v43  ;;  %v8441_v61 = vadd.f32 %v18085_v46, %v8417_v7  ;;  %v8440_v63 = vadd.f32 %v18087_v30, %v8416_v50  ;;  %v8452_v11 = vmul.f32 0.7978846, %v8428_v2  ;;  %v14733_v7 = vld [vmem:[#allocation6 + $0x5b8] ss:$12 sps:$4 sm:$0xff]  }
0x10a6   : > { %14922 = vtanh.f32 %v8451_v8  ;;  %v8463_v13 = vmul.f32 0.7978846, %v8439_v44  ;;  %v8442_v5 = vadd.f32 %v18092_v55, %v8418_v27  ;;  %v8454_v49 = vmul.f32 0.7978846, %v8430_v34  ;;  %v14740_v44 = vld [vmem:[#allocation6 + $0x5d4] ss:$12 sps:$4 sm:$0xff]  }
0x10a7   : > { %14924 = vtanh.f32 %v8453_v62  ;;  %v8465_v6 = vmul.f32 0.7978846, %v8441_v61  ;;  %10634 = vmatpush1.bf16.msra.mxu0 %v14708_v36  ;;  %v8464_v0 = vmul.f32 0.7978846, %v8440_v63  ;;  %v8331_v52 = vmul.f32 0.5, %v18072_v56 }
0x10a8   : > { %14926 = vtanh.f32 %v8463_v13  ;;  %10635 = vmatprep.subr.bf16.mxu0 %v14715_v20  ;;  %v8466_v29 = vmul.f32 0.7978846, %v8442_v5  ;;  %v8343_v45 = vmul.f32 0.5, %v18081_v24  ;;  %v8333_v16 = vmul.f32 0.5, %v18074_v15  ;;  %v14737_v20 = vld [vmem:[#allocation6 + $0x788] ss:$12 sps:$4 sm:$0xff]  }
0x10a9   : > { %14928 = vtanh.f32 %v8465_v6  ;;  %v8345_v39 = vmul.f32 0.5, %v18085_v46  ;;  %v8332_v25 = vmul.f32 0.5, %v18076_v3  ;;  %v8344_v56 = vmul.f32 0.5, %v18087_v30  ;;  %v14738_v2 = vld [vmem:[#allocation6 + $0x5d0] ss:$12 sps:$4 sm:$0xff]  }
0x10aa   : > { %14930 = vtanh.f32 %v8452_v11  ;;  %v8334_v15 = vmul.f32 0.5, %v18079_v59  ;;  %v8346_v46 = vmul.f32 0.5, %v18092_v55  ;;  %v14741_v63 = vld [vmem:[#allocation6 + $0x860] ss:$12 sps:$4 sm:$0xff]   ;;  %v14746_v6 = vld [vmem:[#allocation6 + $0x878] ss:$12 sps:$4 sm:$0xff]  }
0x10ab   : > { %10636 = vmatpush1.bf16.msra.mxu0 %v14713_v4  ;;  %14932 = vtanh.f32 %v8464_v0  ;;  %v14745_v59 = vld [vmem:[#allocation6 + $0x5ec] ss:$12 sps:$4 sm:$0xff]   ;;  %v14743_v4 = vld [vmem:[#allocation6 + $0x5e8] ss:$12 sps:$4 sm:$0xff]   ;;  %v14750_v11 = vld [vmem:[#allocation6 + $0x604] ss:$12 sps:$4 sm:$0xff]  }
0x10ac   : > { %10637 = vmatprep.subr.bf16.mxu0 %v14720_v14  ;;  %14934 = vtanh.f32 %v8454_v49  ;;  %v14742_v55 = vld [vmem:[#allocation6 + $0x7a0] ss:$12 sps:$4 sm:$0xff]   ;;  %v14747_v0 = vld [vmem:[#allocation6 + $0x7b8] ss:$12 sps:$4 sm:$0xff]   ;;  %v14751_v34 = vld [vmem:[#allocation6 + $0x890] ss:$12 sps:$4 sm:$0xff]  }
0x10ad   : > { %14936 = vtanh.f32 %v8466_v29  ;;  %v14748_v14 = vld [vmem:[#allocation6 + $0x600] ss:$12 sps:$4 sm:$0xff]   ;;  %v14755_v5 = vld [vmem:[#allocation6 + $0x61c] ss:$12 sps:$4 sm:$0xff]   ;;  %v14753_v29 = vld [vmem:[#allocation6 + $0x618] ss:$12 sps:$4 sm:$0xff]  }
0x10ae   : > { %v14752_v49 = vld [vmem:[#allocation6 + $0x7d0] ss:$12 sps:$4 sm:$0xff]  }
0x10af   : > { %10638 = vmatpush1.bf16.msra.mxu0 %v14718_v21  ;;  %v14756_v21 = vld [vmem:[#allocation6 + $0x8a8] ss:$12 sps:$4 sm:$0xff]  }
0x10b0   : > { %v14923_v31 = vpop.eup %14922  ;;  %10639 = vmatprep.subr.bf16.mxu0 %v14725_v42  ;;  %v14760_v42 = vld [vmem:[#allocation6 + $0x634] ss:$12 sps:$4 sm:$0xff]  }
0x10b1   : > { %v14925_v32 = vpop.eup %14924  ;;  %v8499_v19 = vadd.f32 1.0, %v14923_v31  ;;  %v14758_v31 = vld [vmem:[#allocation6 + $0x630] ss:$12 sps:$4 sm:$0xff]  }
0x10b2   : > { %v14927_v33 = vpop.eup %14926  ;;  %v8501_v23 = vadd.f32 1.0, %v14925_v32  ;;  %v14765_v32 = vld [vmem:[#allocation6 + $0x64c] ss:$12 sps:$4 sm:$0xff]  }
0x10b3   : > { %v14929_v37 = vpop.eup %14928  ;;  %10640 = vmatpush1.bf16.msra.mxu0 %v14723_v9  ;;  %v8511_v47 = vadd.f32 1.0, %v14927_v33  ;;  %v8523_v58 = vmul.f32 %v8499_v19, %v8331_v52  ;;  %v14757_v9 = vld [vmem:[#allocation6 + $0x7e8] ss:$12 sps:$4 sm:$0xff]   ;;  %v14762_v19 = vld [vmem:[#allocation6 + $0x800] ss:$12 sps:$4 sm:$0xff]  }
0x10b4   : > { %v14931_v12 = vpop.eup %14930  ;;  %10641 = vmatprep.subr.bf16.mxu0 %v14730_v17  ;;  %v8513_v41 = vadd.f32 1.0, %v14929_v37  ;;  %v8525_v24 = vmul.f32 %v8501_v23, %v8333_v16  ;;  %v14761_v17 = vld [vmem:[#allocation6 + $0x8c0] ss:$12 sps:$4 sm:$0xff]   ;;  %v14766_v33 = vld [vmem:[#allocation6 + $0x8d8] ss:$12 sps:$4 sm:$0xff]  }
0x10b5   : > { %v14933_v10 = vpop.eup %14932  ;;  %v8500_v18 = vadd.f32 1.0, %v14931_v12  ;;  %v8535_v22 = vmul.f32 %v8511_v47, %v8343_v45  ;;  %v14770_v37 = vld [vmem:[#allocation6 + $0x664] ss:$12 sps:$4 sm:$0xff]  }
0x10b6   : > { %v14935_v48 = vpop.eup %14934  ;;  %v8512_v1 = vadd.f32 1.0, %v14933_v10  ;;  %v8537_v38 = vmul.f32 %v8513_v41, %v8345_v39  ;;  %v14767_v47 = vld [vmem:[#allocation6 + $0x818] ss:$12 sps:$4 sm:$0xff]   ;;  %v14771_v16 = vld [vmem:[#allocation6 + $0x8f0] ss:$12 sps:$4 sm:$0xff]  }
0x10b7   : > { %v14937_v43 = vpop.eup %14936  ;;  %10642 = vmatpush1.bf16.msra.mxu0 %v14728_v40  ;;  %v18126_v50 = vpack.c.bf16 %v8535_v22, %v8523_v58  ;;  %v8502_v36 = vadd.f32 1.0, %v14935_v48  ;;  %v8524_v3 = vmul.f32 %v8500_v18, %v8332_v25  ;;  %v14775_v41 = vld [vmem:[#allocation6 + $0x67c] ss:$12 sps:$4 sm:$0xff]   ;;  %v14773_v25 = vld [vmem:[#allocation6 + $0x678] ss:$12 sps:$4 sm:$0xff]  }
0x10b8   : > { %10643 = vmatprep.subr.bf16.mxu0 %v14735_v53  ;;  %v8536_v8 = vmul.f32 %v8512_v1, %v8344_v56  ;;  %v8514_v54 = vadd.f32 1.0, %v14937_v43  ;;  %v18130_v27 = vpack.c.bf16 %v8537_v38, %v8525_v24  ;;  %v14768_v53 = vld [vmem:[#allocation6 + $0x660] ss:$12 sps:$4 sm:$0xff]   ;;  %v14772_v10 = vld [vmem:[#allocation6 + $0x830] ss:$12 sps:$4 sm:$0xff]  }
0x10b9   : > { %v8526_v62 = vmul.f32 %v8502_v36, %v8334_v15  ;;  %v14778_v18 = vld [vmem:[#allocation6 + $0x694] ss:$12 sps:$4 sm:$0xff]   ;;  %v14776_v58 = vld [vmem:[#allocation6 + $0x690] ss:$12 sps:$4 sm:$0xff]   ;;  %v14781_v22 = vld [vmem:[#allocation6 + $0x6ac] ss:$12 sps:$4 sm:$0xff]  }
0x10ba   : > { %v8548_v30 = vpack.c.bf16 %v8536_v8, %v8524_v3  ;;  %v8538_v61 = vmul.f32 %v8514_v54, %v8346_v46  ;;  %v14779_v48 = vld [vmem:[#allocation6 + $0x6a8] ss:$12 sps:$4 sm:$0xff]   ;;  %v14784_v56 = vld [vmem:[#allocation6 + $0x6c4] ss:$12 sps:$4 sm:$0xff]   ;;  %v14782_v1 = vld [vmem:[#allocation6 + $0x6c0] ss:$12 sps:$4 sm:$0xff]  }
0x10bb   : > { %10644 = vmatpush1.bf16.msra.mxu0 %v14733_v7  ;;  %v14787_v24 = vld [vmem:[#allocation6 + $0x6dc] ss:$12 sps:$4 sm:$0xff]   ;;  %v14785_v38 = vld [vmem:[#allocation6 + $0x6d8] ss:$12 sps:$4 sm:$0xff]   ;;  %v14790_v43 = vld [vmem:[#allocation6 + $0x6f4] ss:$12 sps:$4 sm:$0xff]  }
0x10bc   : > { %10942 = vmatprep.mubr.bf16.mxu1 %v8548_v30  ;;  %v18132_v13 = vpack.c.bf16 %v8538_v61, %v8526_v62  ;;  %10645 = vmatprep.subr.bf16.mxu0 %v14740_v44  ;;  %v18142_v7 = vld [vmem:[%s18267_s14] sm:$0x7]  ;;  %v14788_v15 = vld [vmem:[#allocation6 + $0x6f0] ss:$12 sps:$4 sm:$0xff]   ;;  %v14793_v46 = vld [vmem:[#allocation6 + $0x70c] ss:$12 sps:$4 sm:$0xff]  }
0x10bd   : > { %10943 = vmatmul.mubr.bf16.vlgmr.msra.gmra.mrb[80].mxu1 %v18126_v50  ;;  %v8948_v36 = vrot.slane %v18142_v7, %v16056_v60  ;;  %v14791_v3 = vld [vmem:[#allocation6 + $0x708] ss:$12 sps:$4 sm:$0xff]   ;;  %v14796_v54 = vld [vmem:[#allocation6 + $0x724] ss:$12 sps:$4 sm:$0xff]  }
0x10be   : > { %12906 = vmatpush3.bf16.msra.mxu1 %v14737_v20  ;;  %10983 = vmatprep.mubr.bf16.mxu1 %v18132_v13 }
0x10bf   : > { %12907 = vmatprep.subr.bf16.mxu1 %v14741_v63  ;;  %10646 = vmatpush1.bf16.msra.mxu0 %v14738_v2  ;;  %v14794_v2 = vld [vmem:[#allocation6 + $0x720] ss:$12 sps:$4 sm:$0xff]  }
0x10c0   : > { %10647 = vmatprep.subr.bf16.mxu0 %v14745_v59 }
0x10c2   : > { %12908 = vmatpush3.bf16.msra.mxu1 %v14742_v55 }
0x10c3   : > { %12909 = vmatprep.subr.bf16.mxu1 %v14746_v6  ;;  %10648 = vmatpush1.bf16.msra.mxu0 %v14743_v4  ;;  %v14799_v4 = vld [vmem:[#allocation6 + $0x73c] ss:$12 sps:$4 sm:$0xff]  }
0x10c4   : > { %10660 = vmatprep.subr.bf16.mxu0 %v14750_v11  ;;  %v14797_v11 = vld [vmem:[#allocation6 + $0x738] ss:$12 sps:$4 sm:$0xff]  }
0x10c6   : > { %12910 = vmatpush3.bf16.msra.mxu1 %v14747_v0  ;;  %10650 = vmatmul.mubr.bf16.vlgmr.msra.gmra.mrb[36].mxu0 %v18056_v51  ;;  %v14763_v51 = vld [vmem:[#allocation6 + $0x648] ss:$12 sps:$4 sm:$0xff]  }
0x10c7   : > { %12911 = vmatprep.subr.bf16.mxu1 %v14751_v34  ;;  %10661 = vmatpush1.bf16.msra.mxu0 %v14748_v14  ;;  %v14802_v0 = vld [vmem:[#allocation6 + $0x754] ss:$12 sps:$4 sm:$0xff]   ;;  %v14800_v14 = vld [vmem:[#allocation6 + $0x750] ss:$12 sps:$4 sm:$0xff]   ;;  %v14805_v34 = vld [vmem:[#allocation6 + $0x76c] ss:$12 sps:$4 sm:$0xff]  }
0x10c8   : > { %10692 = vmatprep.mubr.bf16.mxu0 %v8548_v30  ;;  %10662 = vmatprep.subr.bf16.mxu0 %v14755_v5  ;;  %v14803_v5 = vld [vmem:[#allocation6 + $0x768] ss:$12 sps:$4 sm:$0xff]  }
0x10ca   : > { %12912 = vmatpush3.bf16.msra.mxu1 %v14752_v49  ;;  %v14808_v49 = vld [vmem:[#allocation6 + $0x784] ss:$12 sps:$4 sm:$0xff]  }
0x10cb   : > { %12913 = vmatprep.subr.bf16.mxu1 %v14756_v21  ;;  %10663 = vmatpush1.bf16.msra.mxu0 %v14753_v29  ;;  %v14806_v29 = vld [vmem:[#allocation6 + $0x780] ss:$12 sps:$4 sm:$0xff]   ;;  %v14811_v21 = vld [vmem:[#allocation6 + $0x79c] ss:$12 sps:$4 sm:$0xff]  }
0x10cc   : > { %10664 = vmatprep.subr.bf16.mxu0 %v14760_v42  ;;  %v14809_v42 = vld [vmem:[#allocation6 + $0x798] ss:$12 sps:$4 sm:$0xff]  }
0x10ce   : > { %12914 = vmatpush3.bf16.msra.mxu1 %v14757_v9  ;;  %v14814_v9 = vld [vmem:[#allocation6 + $0x7b4] ss:$12 sps:$4 sm:$0xff]  }
0x10cf   : > { %12915 = vmatprep.subr.bf16.mxu1 %v14761_v17  ;;  %10665 = vmatpush1.bf16.msra.mxu0 %v14758_v31  ;;  %v14812_v31 = vld [vmem:[#allocation6 + $0x7b0] ss:$12 sps:$4 sm:$0xff]   ;;  %v14817_v17 = vld [vmem:[#allocation6 + $0x7cc] ss:$12 sps:$4 sm:$0xff]  }
0x10d0   : > { %v12811_v23 = vpop.f32.mrb[64].mxu1  ;;  %10666 = vmatprep.subr.bf16.mxu0 %v14765_v32  ;;  %v14815_v32 = vld [vmem:[#allocation6 + $0x7c8] ss:$12 sps:$4 sm:$0xff]  }
0x10d1   : > { %v12812_v40 = vpop.f32.mrb[65].mxu1 }
0x10d2   : > { %v12813_v52 = vadd.f32 %v12812_v40, %v12811_v23  ;;  %12916 = vmatpush3.bf16.msra.mxu1 %v14762_v19  ;;  %v12814_v45 = vpop.f32.mrb[66].mxu1  ;;  %v14820_v19 = vld [vmem:[#allocation6 + $0x7e4] ss:$12 sps:$4 sm:$0xff]   ;;  %v14826_v23 = vld [vmem:[#allocation6 + $0x814] ss:$12 sps:$4 sm:$0xff]  }
0x10d3   : > { %v12815_v12 = vpop.f32.mrb[67].mxu1  ;;  %12917 = vmatprep.subr.bf16.mxu1 %v14766_v33  ;;  %10667 = vmatpush1.bf16.msra.mxu0 %v14763_v51  ;;  %v14818_v51 = vld [vmem:[#allocation6 + $0x7e0] ss:$12 sps:$4 sm:$0xff]   ;;  %v14823_v33 = vld [vmem:[#allocation6 + $0x7fc] ss:$12 sps:$4 sm:$0xff]  }
0x10d4   : > { %v12816_v39 = vadd.f32 %v12815_v12, %v12814_v45  ;;  %10668 = vmatprep.subr.bf16.mxu0 %v14770_v37  ;;  %v10781_v30 = vadd.f32 %v12813_v52, %v8948_v36  ;;  %v14829_v37 = vld [vmem:[#allocation6 + $0x82c] ss:$12 sps:$4 sm:$0xff]   ;;  %v14827_v40 = vld [vmem:[#allocation6 + $0x828] ss:$12 sps:$4 sm:$0xff]   ;;  %v14832_v52 = vld [vmem:[#allocation6 + $0x844] ss:$12 sps:$4 sm:$0xff]  }
0x10d5   : > { %v14830_v45 = vld [vmem:[#allocation6 + $0x840] ss:$12 sps:$4 sm:$0xff]   ;;  %v14833_v12 = vld [vmem:[#allocation6 + $0x858] ss:$12 sps:$4 sm:$0xff]  }
0x10d6   : > { %12918 = vmatpush3.bf16.msra.mxu1 %v14767_v47  ;;  %v10784_v63 = vadd.f32 %v12816_v39, %v8948_v36  ;;  %v14835_v47 = vld [vmem:[#allocation6 + $0x85c] ss:$12 sps:$4 sm:$0xff]   ;;  %v14841_v39 = vld [vmem:[#allocation6 + $0x88c] ss:$12 sps:$4 sm:$0xff]  }
0x10d7   : > { %12919 = vmatprep.subr.bf16.mxu1 %v14771_v16  ;;  %10669 = vmatpush1.bf16.msra.mxu0 %v14768_v53  ;;  %v14838_v53 = vld [vmem:[#allocation6 + $0x874] ss:$12 sps:$4 sm:$0xff]   ;;  %v14836_v16 = vld [vmem:[#allocation6 + $0x870] ss:$12 sps:$4 sm:$0xff]  }
0x10d8   : > { %10670 = vmatprep.subr.bf16.mxu0 %v14775_v41  ;;  %v14839_v41 = vld [vmem:[#allocation6 + $0x888] ss:$12 sps:$4 sm:$0xff]   ;;  %v14848_v36 = vld [vmem:[#allocation6 + $0x8d0] ss:$12 sps:$4 sm:$0xff]  }
0x10da   : > { %12920 = vmatpush3.bf16.msra.mxu1 %v14772_v10 }
0x10db   : > { %10671 = vmatpush1.bf16.msra.mxu0 %v14773_v25  ;;  %v14844_v25 = vld [vmem:[#allocation6 + $0x8a4] ss:$12 sps:$4 sm:$0xff]  }
0x10dc   : > { %10672 = vmatprep.subr.bf16.mxu0 %v14778_v18 }
0x10dd   : > { %10984 = vmatmul.mubr.bf16.vlgmr.msra.gmra.mrb[84].mxu1 %v18130_v27 }
0x10de   : > { %11097 = vmatprep.mubr.f32.mxu1 %v15161_v35 }
0x10df   : > { %10673 = vmatpush1.bf16.msra.mxu0 %v14776_v58 }
0x10e0   : > { %10674 = vmatprep.subr.bf16.mxu0 %v14781_v22 }
0x10e3   : > { %10675 = vmatpush1.bf16.msra.mxu0 %v14779_v48 }
0x10e4   : > { %10676 = vmatprep.subr.bf16.mxu0 %v14784_v56  ;;  %v14842_v56 = vld [vmem:[#allocation6 + $0x8a0] ss:$12 sps:$4 sm:$0xff]  }
0x10e7   : > { %10677 = vmatpush1.bf16.msra.mxu0 %v14782_v1 }
0x10e8   : > { %10678 = vmatprep.subr.bf16.mxu0 %v14787_v24 }
0x10eb   : > { %10679 = vmatpush1.bf16.msra.mxu0 %v14785_v38  ;;  %v14847_v38 = vld [vmem:[#allocation6 + $0x8bc] ss:$12 sps:$4 sm:$0xff]  }
0x10ec   : > { %10680 = vmatprep.subr.bf16.mxu0 %v14790_v43 }
0x10ef   : > { %10681 = vmatpush1.bf16.msra.mxu0 %v14788_v15  ;;  %v14845_v15 = vld [vmem:[#allocation6 + $0x8b8] ss:$12 sps:$4 sm:$0xff]  }
0x10f0   : > { %v12833_v8 = vpop.f32.mrb[68].mxu1  ;;  %10682 = vmatprep.subr.bf16.mxu0 %v14793_v46  ;;  %v14850_v46 = vld [vmem:[#allocation6 + $0x8d4] ss:$12 sps:$4 sm:$0xff]  }
0x10f1   : > { %v12834_v44 = vpop.f32.mrb[69].mxu1 }
0x10f2   : > { %v12835_v20 = vadd.f32 %v12834_v44, %v12833_v8  ;;  %v12836_v62 = vpop.f32.mrb[70].mxu1  ;;  %v14851_v8 = vld [vmem:[#allocation6 + $0x8e8] ss:$12 sps:$4 sm:$0xff]  }
0x10f3   : > { %v12837_v61 = vpop.f32.mrb[71].mxu1  ;;  %10683 = vmatpush1.bf16.msra.mxu0 %v14791_v3  ;;  %v14853_v3 = vld [vmem:[#allocation6 + $0x8ec] ss:$12 sps:$4 sm:$0xff]  }
0x10f4   : > { %v18146_v59 = vadd.f32 %v12835_v20, %v10781_v30  ;;  %v12838_v55 = vadd.f32 %v12837_v61, %v12836_v62  ;;  %10684 = vmatprep.subr.bf16.mxu0 %v14796_v54 }
0x10f6   : > { %v18148_v6 = vadd.f32 %v12838_v55, %v10784_v63 }
0x10f7   : > { %10685 = vmatpush1.bf16.msra.mxu0 %v14794_v2 }
0x10f8   : > { %10686 = vmatprep.subr.bf16.mxu0 %v14799_v4 }
0x10fb   : > { %10687 = vmatpush1.bf16.msra.mxu0 %v14797_v11 }
0x10fc   : > { %10688 = vmatprep.subr.bf16.mxu0 %v14802_v0 }
0x10ff   : > { %10689 = vmatpush1.bf16.msra.mxu0 %v14800_v14 }
0x1100   : > { %10690 = vmatprep.subr.bf16.mxu0 %v14805_v34 }
0x1103   : > { %10691 = vmatpush1.bf16.msra.mxu0 %v14803_v5 }
0x1104   : > { %10703 = vmatprep.subr.bf16.mxu0 %v14808_v49 }
0x1106   : > { %10693 = vmatmul.mubr.bf16.vlgmr.msra.gmra.mrb[36].mxu0 %v18126_v50  ;;  %v14821_v50 = vld [vmem:[#allocation6 + $0x7f8] ss:$12 sps:$4 sm:$0xff]  }
0x1107   : > { %10704 = vmatpush1.bf16.msra.mxu0 %v14806_v29  ;;  %10735 = vmatprep.mubr.bf16.mxu0 %v18132_v13  ;;  %v14824_v13 = vld [vmem:[#allocation6 + $0x810] ss:$12 sps:$4 sm:$0xff]  }
0x1108   : > { %10705 = vmatprep.subr.bf16.mxu0 %v14811_v21 }
0x110b   : > { %10706 = vmatpush1.bf16.msra.mxu0 %v14809_v42 }
0x110c   : > { %10707 = vmatprep.subr.bf16.mxu0 %v14814_v9 }
0x110f   : > { %10708 = vmatpush1.bf16.msra.mxu0 %v14812_v31 }
0x1110   : > { %10709 = vmatprep.subr.bf16.mxu0 %v14817_v17 }
0x1113   : > { %10710 = vmatpush1.bf16.msra.mxu0 %v14815_v32 }
0x1114   : > { %10711 = vmatprep.subr.bf16.mxu0 %v14820_v19 }
0x1117   : > { %10712 = vmatpush1.bf16.msra.mxu0 %v14818_v51  ;;  %v11010_v51 = vstv %s11523_s20  ;;  %s11367_s20 = sshll.u32 %s630_s23, 4  ;;  %s11368_s20 = int_to_ptr.vmem [resolvable:$true] %s11367_s20 }
0x1118   : > { %10713 = vmatprep.subr.bf16.mxu0 %v14823_v33  ;;  %s15045_s29 = scalar_lea.vmem %s11368_s20, 16 }
0x1119   : > { %p15046_p3 = scmp.ne.s32.totalorder %s11368_s20, %s15045_s29 }
0x111b   : > { %10714 = vmatpush1.bf16.msra.mxu0 %v14821_v50  ;;  %p15047_p4 = pnand %p15046_p3, %p15297_p5 }
0x111c   : > { %10715 = vmatprep.subr.bf16.mxu0 %v14826_v23 }
0x111d   : > { %p15048_p7 = pneg %p15047_p4 }
0x111f   : > { %10716 = vmatpush1.bf16.msra.mxu0 %v14824_v13 }
0x1120   : > { %10717 = vmatprep.subr.bf16.mxu0 %v14829_v37 }
0x1123   : > { %10718 = vmatpush1.bf16.msra.mxu0 %v14827_v40 }
0x1124   : > { %10719 = vmatprep.subr.bf16.mxu0 %v14832_v52 }
0x1127   : > { %10720 = vmatpush1.bf16.msra.mxu0 %v14830_v45 }
0x1128   : > { %10721 = vmatprep.subr.bf16.mxu0 %v14835_v47 }
0x112b   : > { %10722 = vmatpush1.bf16.msra.mxu0 %v14833_v12 }
0x112c   : > { %10723 = vmatprep.subr.bf16.mxu0 %v14838_v53  ;;  %v8940_v53 = vrot.slane %v18142_v7, %v15992_v26 }
0x112f   : > { %10724 = vmatpush1.bf16.msra.mxu0 %v14836_v16  ;;  %v8944_v16 = vrot.slane %v18142_v7, %v15970_v57 }
0x1130   : > { %v12855_v10 = vpop.f32.mrb[72].mxu1  ;;  %10725 = vmatprep.subr.bf16.mxu0 %v14841_v39 }
0x1131   : > { %v12856_v18 = vpop.f32.mrb[73].mxu1 }
0x1132   : > { %v12857_v58 = vadd.f32 %v12856_v18, %v12855_v10  ;;  %v12858_v22 = vpop.f32.mrb[74].mxu1 }
0x1133   : > { %v12859_v48 = vpop.f32.mrb[75].mxu1  ;;  %10726 = vmatpush1.bf16.msra.mxu0 %v14839_v41 }
0x1134   : > { %v10863_v1 = vadd.f32 %v12857_v58, %v18146_v59  ;;  %v12860_v24 = vadd.f32 %v12859_v48, %v12858_v22  ;;  %10727 = vmatprep.subr.bf16.mxu0 %v14844_v25 }
0x1136   : > { %v10866_v43 = vadd.f32 %v12860_v24, %v18148_v6 }
0x1137   : > { %10728 = vmatpush1.bf16.msra.mxu0 %v14842_v56 }
0x1138   : > { %10729 = vmatprep.subr.bf16.mxu0 %v14847_v38 }
0x113b   : > { %10730 = vmatpush1.bf16.msra.mxu0 %v14845_v15 }
0x113c   : > { %10731 = vmatprep.subr.bf16.mxu0 %v14850_v46 }
0x113f   : > { %10732 = vmatpush1.bf16.msra.mxu0 %v14848_v36 }
0x1140   : > { %10733 = vmatprep.subr.bf16.mxu0 %v14853_v3 }
0x1143   : > { %10734 = vmatpush1.bf16.msra.mxu0 %v14851_v8 }
0x1146   : > { %10736 = vmatmul.mubr.bf16.vlgmr.msra.gmra.mrb[36].mxu0 %v18130_v27 }
0x1150   : > { %v12877_v54 = vpop.f32.mrb[76].mxu1 }
0x1151   : > { %v12878_v44 = vpop.f32.mrb[77].mxu1 }
0x1152   : > { %v12879_v30 = vadd.f32 %v12878_v44, %v12877_v54  ;;  %v12880_v20 = vpop.f32.mrb[78].mxu1 }
0x1153   : > { %v12881_v62 = vpop.f32.mrb[79].mxu1 }
0x1154   : > { %v10904_v61 = vadd.f32 %v12879_v30, %v10863_v1  ;;  %v12882_v2 = vadd.f32 %v12881_v62, %v12880_v20 }
0x1156   : > { %v10907_v63 = vadd.f32 %v12882_v2, %v10866_v43 }
0x1190   : > { %v12899_v59 = vpop.f32.mrb[80].mxu1 }
0x1191   : > { %v12900_v55 = vpop.f32.mrb[81].mxu1 }
0x1192   : > { %v12901_v4 = vadd.f32 %v12900_v55, %v12899_v59  ;;  %v12902_v6 = vpop.f32.mrb[82].mxu1 }
0x1193   : > { %v12903_v11 = vpop.f32.mrb[83].mxu1 }
0x1194   : > { %v10945_v0 = vadd.f32 %v12901_v4, %v10904_v61  ;;  %v12904_v14 = vadd.f32 %v12903_v11, %v12902_v6 }
0x1196   : > { %v10948_v34 = vadd.f32 %v12904_v14, %v10907_v63 }
0x11b0   : > { %v12921_v5 = vpop.f32.mrb[84].mxu1 }
0x11b1   : > { %v12922_v49 = vpop.f32.mrb[85].mxu1 }
0x11b2   : > { %v12923_v29 = vadd.f32 %v12922_v49, %v12921_v5  ;;  %v12924_v27 = vpop.f32.mrb[86].mxu1  ;;  %v11190_v5 = vld [vmem:[%s18312_s16] sm:$0x7] }
0x11b3   : > { %v12925_v21 = vpop.f32.mrb[87].mxu1  ;;  %v11200_v49 = vrot.slane %v11190_v5, %v15970_v57 }
0x11b4   : > { %v10986_v42 = vadd.f32 %v12923_v29, %v10945_v0  ;;  %v12926_v9 = vadd.f32 %v12925_v21, %v12924_v27 }
0x11b6   : > { %v10994_v31 = vmax.f32 %v10986_v42, 1e-06  ;;  %v10989_v17 = vadd.f32 %v12926_v9, %v10948_v34  ;;  %v11029_v34 = vld [vmem:[%s18311_s22] sm:$0xff]  ;;  %v11180_v9 = vstv %s11524_s17  ;;  %s15162_s22 = smov [#allocation9]  }
0x11b7   : > { %s15049_s26 = sshll.u32 %s15162_s22, 4  ;;  %s15050_s26 = int_to_ptr.vmem [resolvable:$false] %s15049_s26 }
0x11b8   : > { %14938 = vlog2.f32 %v10994_v31  ;;  %v10997_v32 = vmax.f32 %v10989_v17, 1e-06  ;;  %s15051_s15 = scalar_lea.vmem %s15050_s26, 32  ;;  %p15052_p8 = scmp.lt.s32.totalorder %s11368_s20, %s15050_s26 }
0x11b9   : > { %p15053_p11 = scmp.lt.s32.totalorder %s15051_s15, %s15045_s29 }
0x11ba   : > { %14940 = vlog2.f32 %v10997_v32 }
0x11bb   : > { %p15054_p13 = por %p15053_p11, %p15052_p8 }
0x11bd   : > { %p15055_p1 = pnand %p15054_p13, %p15048_p7 }
0x11c2   : > { %v14939_v19 = vpop.eup %14938 }
0x11c3   : > { %v11003_v33 = vmul.f32 0.6931472, %v14939_v19 }
0x11c4   : > { %v14941_v50 = vpop.eup %14940 }
0x11c5   : > { %v11013_v23 = vmul.f32 %v11010_v51, %v11003_v33  ;;  %v11009_v13 = vmul.f32 0.6931472, %v14941_v50 }
0x11c7   : > { %v11021_v37 = vmul.f32 1.442695, %v11013_v23  ;;  %v11016_v40 = vmul.f32 %v11010_v51, %v11009_v13 }
0x11c9   : > { %v11027_v52 = vmul.f32 1.442695, %v11016_v40  ;;  %14942 = vpow2.f32 %v11021_v37 }
0x11cb   : > { %14944 = vpow2.f32 %v11027_v52 }
0x11d3   : > { %v14943_v45 = vpop.eup %14942 }
0x11d5   : > { %v14945_v47 = vpop.eup %14944 }
0x11d6   : > { %v13051_v12 = vpack.c.bf16 %v14945_v47, %v14943_v45  ;;  %v11196_v45 = vrot.slane %v11190_v5, %v15992_v26 }
0x1219   : > { %v10737_v39 = vpop.f32.mrb[36].mxu0 }
0x121a   : > { %v13110_v41 = vadd.f32 %v10737_v39, %v8940_v53  ;;  %v10739_v10 = vpop.f32.mrb[37].mxu0 }
0x121b   : > { %v13111_v25 = vadd.f32 %v10739_v10, %v8944_v16  ;;  %v10741_v18 = vpop.f32.mrb[38].mxu0 }
0x121c   : > { %v10992_v58 = vmax.f32 %v13110_v41, 1e-06  ;;  %v13112_v22 = vadd.f32 %v10741_v18, %v8940_v53  ;;  %v10743_v48 = vpop.f32.mrb[39].mxu0 }
0x121d   : > { %v10993_v56 = vmax.f32 %v13111_v25, 1e-06  ;;  %v13113_v1 = vadd.f32 %v10743_v48, %v8944_v16 }
0x121e   : > { %14946 = vlog2.f32 %v10992_v58  ;;  %v10995_v24 = vmax.f32 %v13112_v22, 1e-06 }
0x121f   : > { %14948 = vlog2.f32 %v10993_v56  ;;  %v10996_v38 = vmax.f32 %v13113_v1, 1e-06 }
0x1220   : > { %14950 = vlog2.f32 %v10995_v24 }
0x1221   : > { %14952 = vlog2.f32 %v10996_v38 }
0x1228   : > { %v14947_v43 = vpop.eup %14946 }
0x1229   : > { %v14949_v15 = vpop.eup %14948  ;;  %v10999_v46 = vmul.f32 0.6931472, %v14947_v43 }
0x122a   : > { %v14951_v7 = vpop.eup %14950  ;;  %v11001_v36 = vmul.f32 0.6931472, %v14949_v15 }
0x122b   : > { %v14953_v3 = vpop.eup %14952  ;;  %v11011_v8 = vmul.f32 %v11010_v51, %v10999_v46  ;;  %v11005_v54 = vmul.f32 0.6931472, %v14951_v7 }
0x122c   : > { %v11012_v44 = vmul.f32 %v11010_v51, %v11001_v36  ;;  %v11007_v30 = vmul.f32 0.6931472, %v14953_v3 }
0x122d   : > { %v11017_v20 = vmul.f32 1.442695, %v11011_v8  ;;  %v11014_v62 = vmul.f32 %v11010_v51, %v11005_v54 }
0x122e   : > { %v11019_v61 = vmul.f32 1.442695, %v11012_v44  ;;  %v11015_v2 = vmul.f32 %v11010_v51, %v11007_v30 }
0x122f   : > { %14954 = vpow2.f32 %v11017_v20  ;;  %v11023_v63 = vmul.f32 1.442695, %v11014_v62 }
0x1230   : > { %14956 = vpow2.f32 %v11019_v61  ;;  %v11025_v59 = vmul.f32 1.442695, %v11015_v2 }
0x1231   : > { %14958 = vpow2.f32 %v11023_v63 }
0x1232   : > { %14960 = vpow2.f32 %v11025_v59 }
0x1239   : > { %v14955_v55 = vpop.eup %14954 }
0x123a   : > { %v14957_v4 = vpop.eup %14956 }
0x123b   : > { %v14959_v6 = vpop.eup %14958 }
0x123c   : > { %v14961_v11 = vpop.eup %14960  ;;  %v13048_v0 = vpack.c.bf16 %v14959_v6, %v14955_v55 }
0x123d   : > { %v13046_v14 = vpack.c.bf16 %v14961_v11, %v14957_v4 }
0x123f   : > { %13047 = vmatprep.subr.bf16.mxu1 %v13046_v14 }
0x1240   : > { %13049 = vmatpush1.bf16.msra.mxu1 %v13048_v0 }
0x1241   : > { %13050 = vmatprep.subr.bf16.mxu1 %v15158_v28 }
0x1243   : > { %12643 = vmatmul.mubr.msk.f32.vlgmr.msra.gmra.mrb[46].mxu1 %vm4450_vm2, %v11029_v34 }
0x1244   : > { %13052 = vmatpush3.bf16.msra.mxu1 %v13051_v12  ;;  %12999 = vmatprep.mubr.msk.f32.mxu1 %vm15160_vm0, %v15161_v35  ;;  %v11204_v12 = vrot.slane %v11190_v5, %v16056_v60 }
0x1247   : > { %13000 = vmatmul.mubr.msk.f32.vlgmr.msra.gmra.mrb[88].mxu1 %vm4450_vm2, %v11029_v34 }
0x1248   : > { %11272 = vmatprep.mubr.f32.mxu1 %v11200_v49 }
0x1316   : > { %v11099_v29 = vpop.f32.mrb[46].mxu1 }
0x1317   : > { %14962 = vlog2.f32 %v11099_v29  ;;  %v11101_v27 = vpop.f32.mrb[47].mxu1 }
0x1318   : > { %14964 = vlog2.f32 %v11101_v27 }
0x131a   : > { %v11170_v28 = vpop.f32.mrb[88].mxu1 }
0x131b   : > { %14966 = vlog2.f32 %v11170_v28  ;;  %v13001_v21 = vpop.f32.mrb[89].mxu1 }
0x1321   : > { %v14963_v42 = vpop.eup %14962 }
0x1322   : > { %v14965_v31 = vpop.eup %14964  ;;  %v11175_v17 = vmul.f32 0.6931472, %v14963_v42 }
0x1323   : > { %v11177_v32 = vmul.f32 0.6931472, %v14965_v31 }
0x1324   : > { %v11181_v19 = vmul.f32 %v11180_v9, %v11175_v17 }
0x1325   : > { %v14967_v51 = vpop.eup %14966  ;;  %v11182_v33 = vmul.f32 %v11180_v9, %v11177_v32 }
0x1326   : > { %v11184_v50 = vmul.f32 1.442695, %v11181_v19  ;;  %v11179_v23 = vmul.f32 0.6931472, %v14967_v51 }
0x1327   : > { %v11186_v57 = vmul.f32 1.442695, %v11182_v33 }
0x1328   : > { %v11183_v13 = vmul.f32 %v11180_v9, %v11179_v23 }
0x1329   : > { %14968 = vpow2.f32 %v11186_v57 }
0x132a   : > { %14970 = vpow2.f32 %v11184_v50  ;;  %v11188_v37 = vmul.f32 1.442695, %v11183_v13 }
0x132c   : > { %14972 = vpow2.f32 %v11188_v37 }
0x1333   : > { %v14969_v40 = vpop.eup %14968 }
0x1334   : > { %v14971_v52 = vpop.eup %14970  ;;  %11208 = vmatprep.subr.mxu1 %v14969_v40 }
0x1335   : > { %11209 = vmatpush1.xpose.msra.mxu1 %v14971_v52 }
0x1336   : > { %v14973_v47 = vpop.eup %14972  ;;  %13002 = vmatprep.subr.mxu1 %v15161_v35 }
0x1338   : > { %11273 = vmatmul.mubr.f32.vlgmr.msra.gmra.mrb[90].mxu1 %v11196_v45 }
0x1339   : > { %13003 = vmatpush3.xpose.msra.mxu1 %v14973_v47  ;;  %13004 = vmatprep.mubr.msk.f32.mxu1 %vm15160_vm0, %v15161_v35 }
0x1340   : > { %13005 = vmatmul.mubr.f32.vlgmr.msra.gmra.mrb[90].mxu1 %v11204_v12 }
0x1341   : > { %15058 = shalt.err (!%p15055_p1)
}
0x1342   : > { %s15059_s23 = scalar_lea.hbm %s18182_s30, 16  ;;  %s15063_s19 = scalar_lea.hbm %s18315_s21, 64 }
0x1343   : > { %p15060_p0 = scmp.ne.s32.totalorder %s18182_s30, %s15059_s23  ;;  %p15064_p2 = scmp.lt.u32.totalorder %s18182_s30, %s18315_s21 }
0x1344   : > { %p15065_p12 = scmp.lt.u32.totalorder %s15063_s19, %s15059_s23  ;;  %p15067_p3 = scmp.lt.u32.totalorder %s15059_s23, %s18182_s30 }
0x1345   : > { %p15061_p6 = pnand %p15060_p0, %p15297_p5 }
0x1346   : > { %p15066_p10 = por %p15065_p12, %p15064_p2 }
0x1347   : > { %p15062_p9 = pneg %p15061_p6 }
0x1348   : > { %p15068_p4 = por %p15067_p3, %p15066_p10 }
0x134a   : > { %p15069_p7 = pnand %p15068_p4, %p15062_p9 }
0x134c   : > { %15072 = shalt.err (!%p15069_p7)
}
0x134d   : > { %13208 = dma.vmem_to_hbm [thread:$0]  (%p15297_p5), %s11368_s20, 16, %s18182_s30, %s11351_s25   ;;  %vm11348_vm3 = vcmask 57344  }
0x134e   : > { %s11522_s29 = sld [smem:[#allocation8 + $0x1]]  ;;  %s636_s22 = scalar_lea.vmem [#allocation10], %s16685_s18 }
0x134f   : > { %s11380_s26 = sshll.u32 %s636_s22, 4  ;;  %s18316_s16 = sld [smem:[#allocation30_spill]]  ;;  %s18212_s26 = int_to_ptr.vmem [resolvable:$true] %s11380_s26 }
0x1350   : > { %s11355_s30 = scalar_lea.sflag [#allocation11], %s16685_s18  ;;  %s15073_s20 = scalar_lea.vmem %s18212_s26, 16 }
0x1351   : > { %p15074_p8 = scmp.ne.s32.totalorder %s18212_s26, %s15073_s20  ;;  %s15163_s25 = smov [#allocation10]  }
0x1352   : > { %s15077_s19 = sshll.u32 %s15163_s25, 4  ;;  %s15078_s19 = int_to_ptr.vmem [resolvable:$false] %s15077_s19 }
0x1353   : > { %p15075_p11 = pnand %p15074_p8, %p15297_p5  ;;  %s15079_s0 = scalar_lea.vmem %s15078_s19, 32 }
0x1354   : > { %v11191_v26 = vstv %s11522_s29  ;;  %p15080_p1 = scmp.lt.s32.totalorder %s18212_s26, %s15078_s19  ;;  %p15081_p0 = scmp.lt.s32.totalorder %s15079_s0, %s15073_s20 }
0x1355   : > { %s18210_s17 = scalar_lea.hbm %s18316_s16, %s12645_s24  ;;  %p15076_p13 = pneg %p15075_p11 }
0x1356   : > { %p15082_p6 = por %p15081_p0, %p15080_p1 }
0x1358   : > { %p15083_p9 = pnand %p15082_p6, %p15076_p13 }
0x1413   : > { %v11344_v35 = vpop.f32.mrb[90].mxu1 }
0x1414   : > { %v13114_v60 = vadd.f32 %v11344_v35, %v11191_v26  ;;  %v13006_v53 = vpop.f32.mrb[91].mxu1 }
0x1416   : > { %11349 = vst.msk [vmem:[%s636_s22] sm:$0x1] %vm11348_vm3, %v13114_v60 }
0x1417   : > { %15086 = shalt.err (!%p15083_p9)
}
0x1418   : > { %s15087_s18 = scalar_lea.hbm %s18210_s17, 16  ;;  %s15091_s27 = scalar_lea.hbm %s18316_s16, 64 }
0x1419   : > { %p15088_p2 = scmp.ne.s32.totalorder %s18210_s17, %s15087_s18  ;;  %p15092_p3 = scmp.lt.u32.totalorder %s18210_s17, %s18316_s16 }
0x141a   : > { %p15093_p4 = scmp.lt.u32.totalorder %s15091_s27, %s15087_s18  ;;  %p15095_p8 = scmp.lt.u32.totalorder %s15087_s18, %s18210_s17 }
0x141b   : > { %p15089_p12 = pnand %p15088_p2, %p15297_p5 }
0x141c   : > { %p15094_p7 = por %p15093_p4, %p15092_p3 }
0x141d   : > { %p15090_p10 = pneg %p15089_p12 }
0x141e   : > { %p15096_p11 = por %p15095_p8, %p15094_p7 }
0x1420   : > { %p15097_p13 = pnand %p15096_p11, %p15090_p10 }
0x1422   : > { %15100 = shalt.err (!%p15097_p13)
}
0x1423   : > { %13209 = dma.vmem_to_hbm [thread:$0]  (%p15297_p5), %s18212_s26, 16, %s18210_s17, %s11355_s30  }
0x1424 PF: > { %s18317_s15 = sld [smem:[#allocation19_spill]]  ;;  %s18318_s23 = sld [smem:[#allocation17_spill]] }
0x1425   : > { %s18319_s20 = sld [smem:[#allocation23_spill]] }
0x142a   : > { %p13235_p1 = scmp.ge.s32.totalorder %s18317_s15, 2  ;;  %s11392_s25 = sand.u32 1, %s18318_s23  }
0x142b   : > { %p18320_p0 = scmp.ne.s32.totalorder %s18319_s20, 0  ;;  %s11393_s19 = scalar_lea.sflag [#allocation4], %s11392_s25 }
0x142d   : > { %p13223_p6 = pnand %p13235_p1, %p18320_p0 }
0x142f   : > { %15130 = dma.done.wait (!%p13223_p6), %s11393_s19, 16  }
0x1430   : > { %15132 = vsyncadd (!%p13223_p6), %s11393_s19, 4294967280  ;;  %s11401_s0 = scalar_lea.sflag [#allocation11], %s11392_s25 }
0x1431   : > { %15134 = dma.done.wait (!%p13223_p6), %s11401_s0, 16  }
0x1432   : > { %15136 = vsyncadd (!%p13223_p6), %s11401_s0, 4294967280  ;;  %s18321_s30 = sld [smem:[#allocation20_spill]]  ;;  %s18322_s1 = sld [smem:[#allocation18_spill]] }
0x1433   : > { %s18323_s29 = sld [smem:[#allocation21_spill]]  ;;  %s18324_s27 = smov %s15143_s28 }
0x1438   : > { %p35_p5 = scmp.ge.s32.totalorder %s18321_s30, 6   ;;  %s18325_s28 = smov %s18322_s1 }
0x143a   :  { %37 = sbr.rel (!%p35_p5) target bundleno = 16 (0x10), region = 157 }
0x1441   :  { %11405 = vsyncpa [#allocation3], 1 }
0x1442   :  { %11407 = vsyncpa [#allocation3 + $0x1], 1 }
0x1443   :  { %11408 = vsyncpa [#allocation7], 1 }
0x1444   :  { %11409 = vsyncpa [#allocation4], 1 }
0x1445   :  { %11411 = vsyncpa [#allocation4 + $0x1], 1 }
0x1446   :  { %11412 = vsyncpa [#allocation11], 1 }
0x1447   :  { %11414 = vsyncpa [#allocation11 + $0x1], 1 }
0x1448   :  { %11415 = vsyncpa [#allocation5], 1 }
0x1449   :  { %11417 = vsyncpa [#allocation5 + $0x1], 1 }

</bundles_post_ra>
